<compile_context>
chip_gen: v6e
topology: v6e:2x2x1
jax: 0.10.0
libtpu: 0.0.40
codegen_flags: <defaults>
</compile_context>

<pallas_src>
import functools

import jax
import jax.numpy as jnp
from jax import lax
from jax.experimental import pallas as pl
from jax.experimental.pallas import tpu as pltpu

NUM_CLASSES = 10
NUM_CLASSES_PAD = 16                 # class axis padded to a bf16 sublane tile (rows 10..15 zero)
IMG_CHANNELS = 3
IMG_FEATS = IMG_CHANNELS * 32 * 32   # 3072 (flattened image)
EMB_FEATS = IMG_FEATS                # embedding dim matches flattened image
IN_FEATS = 2 * IMG_FEATS             # 6144 = concat(img, emb)
H1, H2 = 512, 256
OUT_PAD = 128                        # lane-padded width of the final (256,1) layer


def _default_tk():
    """Per-generation K tile for streaming w1.

    v5e: 4 steps (TK=1536) so per-block MXU work (~1 us) hides under the
    ~1.9 us/block DMA.  v6e/v7x: 2 steps (TK=3072) to halve the ~0.35 us fixed
    per-grid-step overhead while the DMA still covers the compute."""
    try:
        kind = jax.devices()[0].device_kind.lower()
    except Exception:
        return IMG_FEATS
    return IMG_FEATS // 2 if "v5" in kind else IMG_FEATS


def _discriminator_kernel(img_ref, lab_ref, emb_ref, w1_ref, b1_ref,
                          w2_ref, b2_ref, w3_ref, b3_ref, out_ref, acc_ref):
    """Streams layer 1 over K (img half then emb half); layers 2-3 + both
    LeakyReLUs run in a pl.when(last-step) epilogue."""
    k = pl.program_id(0)
    n_steps = pl.num_programs(0)
    n_img = n_steps // 2             # first half of the K steps covers the image features
    bsz = img_ref.shape[0]

    @pl.when(k == 0)
    def _init():
        acc_ref[...] = jnp.zeros_like(acc_ref)

    # --- img half of layer 1: acc += img_k @ w1_k (bf16 operands, f32 acc) ---
    @pl.when(k < n_img)
    def _img_phase():
        xk = img_ref[...].astype(jnp.bfloat16)
        acc_ref[...] += jnp.dot(xk, w1_ref[...],
                                preferred_element_type=jnp.float32)

    # --- emb half: gather rows via a tiny one-hot matmul, then accumulate ---
    @pl.when(k >= n_img)
    def _emb_phase():
        onehot = (lax.broadcasted_iota(jnp.int32, (bsz, NUM_CLASSES_PAD), 1)
                  == lab_ref[...]).astype(jnp.bfloat16)                  # (B, 16)
        # Exact bf16 row selection (one-hot @ table accumulates in f32).
        xk = jnp.dot(onehot, emb_ref[...],
                     preferred_element_type=jnp.float32)                 # (B, TK)
        acc_ref[...] += jnp.dot(xk.astype(jnp.bfloat16), w1_ref[...],
                                preferred_element_type=jnp.float32)

    @pl.when(k == n_steps - 1)
    def _epilogue():
        def leaky_relu(h):
            return jnp.where(h >= 0.0, h, 0.2 * h)

        h1 = leaky_relu(acc_ref[...] + b1_ref[...])                      # (B, 512) f32
        h2 = jnp.dot(h1.astype(jnp.bfloat16), w2_ref[...],
                     preferred_element_type=jnp.float32) + b2_ref[...]   # (B, 256) f32
        h2 = leaky_relu(h2)
        out = jnp.dot(h2.astype(jnp.bfloat16), w3_ref[...],
                      preferred_element_type=jnp.float32) + b3_ref[...]  # (B, 128) padded
        out_ref[...] = out


@functools.partial(jax.jit, static_argnames=("tk",))
def _forward_impl(img, labels, params, tk):
    B = img.shape[0]
    n_img = IMG_FEATS // tk
    n_steps = 2 * n_img

    # Only free/trivial glue remains outside the kernel (reshapes, no concat).
    img_flat = img.reshape(B, IMG_FEATS).astype(jnp.float32)             # (B, 3072)
    labels2d = labels.astype(jnp.int32).reshape(B, 1)                    # (B, 1)

    cost = pl.CostEstimate(
        flops=2 * B * (IN_FEATS * H1 + NUM_CLASSES_PAD * EMB_FEATS
                       + H1 * H2 + H2 * OUT_PAD),
        transcendentals=0,
        bytes_accessed=(img_flat.size * 4 + labels2d.size * 4
                        + params["emb_pad"].size * 2
                        + params["w1"].size * 2 + params["w2"].size * 2
                        + params["w3p"].size * 2
                        + (params["b1"].size + params["b2"].size
                           + params["b3p"].size) * 4
                        + B * OUT_PAD * 4),
    )

    out_padded = pl.pallas_call(
        _discriminator_kernel,
        out_shape=jax.ShapeDtypeStruct((B, OUT_PAD), jnp.float32),
        grid_spec=pltpu.PrefetchScalarGridSpec(
            num_scalar_prefetch=0,
            grid=(n_steps,),
            in_specs=[
                # img: streamed during the first n_img steps; index clamped
                # afterwards so the block index is unchanged -> no redundant DMA.
                pl.BlockSpec((B, tk), lambda k: (0, jnp.minimum(k, n_img - 1))),
                pl.BlockSpec((B, 1), lambda k: (0, 0)),                  # labels (resident)
                # embedding table: streamed only in the emb half (clamped before).
                pl.BlockSpec((NUM_CLASSES_PAD, tk),
                             lambda k: (0, jnp.maximum(k - n_img, 0))),
                pl.BlockSpec((tk, H1), lambda k: (k, 0)),                # w1 (streamed over K)
                pl.BlockSpec((1, H1), lambda k: (0, 0)),                 # b1  (resident)
                pl.BlockSpec((H1, H2), lambda k: (0, 0)),                # w2  (resident)
                pl.BlockSpec((1, H2), lambda k: (0, 0)),                 # b2  (resident)
                pl.BlockSpec((H2, OUT_PAD), lambda k: (0, 0)),           # w3 padded (resident)
                pl.BlockSpec((1, OUT_PAD), lambda k: (0, 0)),            # b3 padded (resident)
            ],
            out_specs=pl.BlockSpec((B, OUT_PAD), lambda k: (0, 0)),
            scratch_shapes=[pltpu.VMEM((B, H1), jnp.float32)],
        ),
        compiler_params=pltpu.CompilerParams(
            # Single K axis carries the accumulator -> reduction -> arbitrary.
            dimension_semantics=("arbitrary",),
            # Footprint ~4-7 MiB depending on TK; 24 MiB fits v5e/v6e/v7x.
            vmem_limit_bytes=24 << 20,
        ),
        cost_estimate=cost,
    )(img_flat, labels2d, params["emb_pad"], params["w1"], params["b1"],
      params["w2"], params["b2"], params["w3p"], params["b3p"])

    return out_padded[:, :1]                                             # (B, 1)


def discriminator_forward(img, labels, params, *, tk=None):
    """Reproduces Discriminator.forward(img, labels) -> (B, 1)."""
    if tk is None:
        tk = _default_tk()
    assert IMG_FEATS % tk == 0, "TK must divide 3072"
    return _forward_impl(img, labels, params, tk)


def init_params(key):
    """Deterministic init matching PyTorch defaults (Linear: U(+-1/sqrt(fan_in)),
    including the bias; Embedding: N(0,1)). Weights/embedding stored in bf16."""
    ks = jax.random.split(key, 4)

    def linear(k, fan_in, fan_out):
        kw, kb = jax.random.split(k)
        bound = 1.0 / (fan_in ** 0.5)
        w = jax.random.uniform(kw, (fan_in, fan_out), jnp.float32, -bound, bound)
        b = jax.random.uniform(kb, (1, fan_out), jnp.float32, -bound, bound)
        return w, b

    w1, b1 = linear(ks[0], IN_FEATS, H1)      # 6144 -> 512
    w2, b2 = linear(ks[1], H1, H2)            # 512  -> 256
    w3, b3 = linear(ks[2], H2, 1)             # 256  -> 1

    # Zero-pad the final layer to 128 lanes; only column 0 is "real".
    w3p = jnp.zeros((H2, OUT_PAD), jnp.float32).at[:, :1].set(w3)
    b3p = jnp.zeros((1, OUT_PAD), jnp.float32).at[:, :1].set(b3)

    emb = jax.random.normal(ks[3], (NUM_CLASSES, EMB_FEATS), jnp.float32)
    emb_pad = jnp.zeros((NUM_CLASSES_PAD, EMB_FEATS),
                        jnp.float32).at[:NUM_CLASSES].set(emb)

    return dict(
        emb_pad=emb_pad.astype(jnp.bfloat16),
        w1=w1.astype(jnp.bfloat16), b1=b1,
        w2=w2.astype(jnp.bfloat16), b2=b2,
        w3p=w3p.astype(jnp.bfloat16), b3p=b3p,
    )


def reference_forward(img, labels, params):
    """Pure-JAX f32 reference using the same (bf16-stored) parameters."""
    B = img.shape[0]
    img_flat = img.reshape(B, -1).astype(jnp.float32)
    emb = jnp.take(params["emb_pad"].astype(jnp.float32), labels, axis=0)
    x = jnp.concatenate([img_flat, emb], axis=1)
    h1 = x @ params["w1"].astype(jnp.float32) + params["b1"]
    h1 = jnp.where(h1 >= 0, h1, 0.2 * h1)
    h2 = h1 @ params["w2"].astype(jnp.float32) + params["b2"]
    h2 = jnp.where(h2 >= 0, h2, 0.2 * h2)
    out = h2 @ params["w3p"].astype(jnp.float32) + params["b3p"]
    return out[:, :1]


if __name__ == "__main__":
    key = jax.random.PRNGKey(0)
    k_param, k_img, k_lab = jax.random.split(key, 3)

    B = 8  # small batch; sublane-aligned
    params = init_params(k_param)
    img = jax.random.normal(k_img, (B, IMG_CHANNELS, 32, 32), jnp.float32)
    labels = jax.random.randint(k_lab, (B,), 0, NUM_CLASSES, jnp.int32)

    logits = discriminator_forward(img, labels, params)
    jax.block_until_ready(logits)

    ref = reference_forward(img, labels, params)
    assert logits.shape == (B, 1)
    assert bool(jnp.all(jnp.isfinite(logits)))
    max_err = float(jnp.max(jnp.abs(logits - ref)))
    # bf16 MXU operands vs f32 reference -> small rounding differences only.
    assert max_err < 0.1, f"max abs error {max_err}"
    print("KERNEL_OK")
</pallas_src>

<mosaic_0001>
module attributes {stable_mosaic.version = 11 : i64} {
  func.func @_discriminator_kernel(%arg0: i32, %arg1: memref<8x3072xf32, #tpu.memory_space<vmem>>, %arg2: memref<8x1xi32, #tpu.memory_space<vmem>>, %arg3: memref<16x3072xbf16, #tpu.memory_space<vmem>>, %arg4: memref<3072x512xbf16, #tpu.memory_space<vmem>>, %arg5: memref<1x512xf32, #tpu.memory_space<vmem>>, %arg6: memref<512x256xbf16, #tpu.memory_space<vmem>>, %arg7: memref<1x256xf32, #tpu.memory_space<vmem>>, %arg8: memref<256x128xbf16, #tpu.memory_space<vmem>>, %arg9: memref<1x128xf32, #tpu.memory_space<vmem>>, %arg10: memref<8x128xf32, #tpu.memory_space<vmem>>, %arg11: memref<8x512xf32, #tpu.memory_space<vmem>>) attributes {dimension_semantics = [#tpu.dimension_semantics<arbitrary>], iteration_bounds = array<i64: 2>, scalar_prefetch = 0 : i64, scratch_operands = 1 : i64, tpu.core_type = #tpu.core_type<tc>, window_params = [{transform_indices = @transform_0, window_bounds = array<i64: 8, 3072>}, {pipeline_mode = #tpu.pipeline_mode<synchronous>, transform_indices = @transform_1, window_bounds = array<i64: 8, 1>}, {transform_indices = @transform_2, window_bounds = array<i64: 16, 3072>}, {transform_indices = @transform_3, window_bounds = array<i64: 3072, 512>}, {pipeline_mode = #tpu.pipeline_mode<synchronous>, transform_indices = @transform_4, window_bounds = array<i64: 1, 512>}, {pipeline_mode = #tpu.pipeline_mode<synchronous>, transform_indices = @transform_5, window_bounds = array<i64: 512, 256>}, {pipeline_mode = #tpu.pipeline_mode<synchronous>, transform_indices = @transform_6, window_bounds = array<i64: 1, 256>}, {pipeline_mode = #tpu.pipeline_mode<synchronous>, transform_indices = @transform_7, window_bounds = array<i64: 256, 128>}, {pipeline_mode = #tpu.pipeline_mode<synchronous>, transform_indices = @transform_8, window_bounds = array<i64: 1, 128>}, {pipeline_mode = #tpu.pipeline_mode<synchronous>, transform_indices = @transform_9, window_bounds = array<i64: 8, 128>}]} {
    %c0_i32 = arith.constant 0 : i32
    %0 = arith.cmpi eq, %arg0, %c0_i32 : i32
    %1 = arith.extui %0 : i1 to i32
    %c0_i32_0 = arith.constant 0 : i32
    %2 = arith.cmpi ne, %1, %c0_i32_0 : i32
    scf.if %2 {
      %cst = arith.constant 0.000000e+00 : f32
      %12 = vector.broadcast %cst : f32 to vector<8x512xf32>
      %c0 = arith.constant 0 : index
      %c0_6 = arith.constant 0 : index
      %13 = vector.load %arg11[%c0, %c0_6] : memref<8x512xf32, #tpu.memory_space<vmem>>, vector<8x512xf32>
      tpu.vector_store %arg11[%c0, %c0_6], %12 {strides = array<i32>} : memref<8x512xf32, #tpu.memory_space<vmem>>, vector<8x512xf32>,
    } else {
    }
    %c1_i32 = arith.constant 1 : i32
    %3 = arith.cmpi slt, %arg0, %c1_i32 : i32
    %4 = arith.extui %3 : i1 to i32
    %c0_i32_1 = arith.constant 0 : i32
    %5 = arith.cmpi ne, %4, %c0_i32_1 : i32
    scf.if %5 {
      %c0 = arith.constant 0 : index
      %c0_6 = arith.constant 0 : index
      %12 = vector.load %arg1[%c0, %c0_6] : memref<8x3072xf32, #tpu.memory_space<vmem>>, vector<8x3072xf32>
      %13 = arith.truncf %12 : vector<8x3072xf32> to vector<8x3072xbf16>
      %c0_7 = arith.constant 0 : index
      %c0_8 = arith.constant 0 : index
      %14 = vector.load %arg11[%c0_7, %c0_8] : memref<8x512xf32, #tpu.memory_space<vmem>>, vector<8x512xf32>
      %c0_9 = arith.constant 0 : index
      %c0_10 = arith.constant 0 : index
      %15 = vector.load %arg4[%c0_9, %c0_10] : memref<3072x512xbf16, #tpu.memory_space<vmem>>, vector<3072x512xbf16>
      %cst = arith.constant dense<0.000000e+00> : vector<8x512xf32>
      %16 = tpu.matmul %13, %15, %cst {dimension_numbers = #tpu.dot_dimension_numbers<[1], [0], [0], [1], [0, 0, 1, 1], [], []>} : vector<8x3072xbf16>, vector<3072x512xbf16>, vector<8x512xf32> -> vector<8x512xf32>
      %17 = arith.addf %14, %16 : vector<8x512xf32>
      %c0_11 = arith.constant 0 : index
      %c0_12 = arith.constant 0 : index
      %18 = vector.load %arg11[%c0_11, %c0_12] : memref<8x512xf32, #tpu.memory_space<vmem>>, vector<8x512xf32>
      tpu.vector_store %arg11[%c0_11, %c0_12], %17 {strides = array<i32>} : memref<8x512xf32, #tpu.memory_space<vmem>>, vector<8x512xf32>,
    } else {
    }
    %c1_i32_2 = arith.constant 1 : i32
    %6 = arith.cmpi sge, %arg0, %c1_i32_2 : i32
    %7 = arith.extui %6 : i1 to i32
    %c0_i32_3 = arith.constant 0 : i32
    %8 = arith.cmpi ne, %7, %c0_i32_3 : i32
    scf.if %8 {
      %12 = tpu.iota {dimensions = array<i32: 1>} : vector<8x16xi32>
      %c0 = arith.constant 0 : index
      %c0_6 = arith.constant 0 : index
      %13 = vector.load %arg2[%c0, %c0_6] : memref<8x1xi32, #tpu.memory_space<vmem>>, vector<8x1xi32>
      %14 = vector.broadcast %13 : vector<8x1xi32> to vector<8x16xi32>
      %15 = arith.cmpi eq, %12, %14 : vector<8x16xi32>
      %16 = arith.extui %15 : vector<8x16xi1> to vector<8x16xi32>
      %17 = arith.sitofp %16 : vector<8x16xi32> to vector<8x16xf32>
      %18 = arith.truncf %17 : vector<8x16xf32> to vector<8x16xbf16>
      %c0_7 = arith.constant 0 : index
      %c0_8 = arith.constant 0 : index
      %19 = vector.load %arg3[%c0_7, %c0_8] : memref<16x3072xbf16, #tpu.memory_space<vmem>>, vector<16x3072xbf16>
      %cst = arith.constant dense<0.000000e+00> : vector<8x3072xf32>
      %20 = tpu.matmul %18, %19, %cst {dimension_numbers = #tpu.dot_dimension_numbers<[1], [0], [0], [1], [0, 0, 1, 1], [], []>} : vector<8x16xbf16>, vector<16x3072xbf16>, vector<8x3072xf32> -> vector<8x3072xf32>
      %c0_9 = arith.constant 0 : index
      %c0_10 = arith.constant 0 : index
      %21 = vector.load %arg11[%c0_9, %c0_10] : memref<8x512xf32, #tpu.memory_space<vmem>>, vector<8x512xf32>
      %22 = arith.truncf %20 : vector<8x3072xf32> to vector<8x3072xbf16>
      %c0_11 = arith.constant 0 : index
      %c0_12 = arith.constant 0 : index
      %23 = vector.load %arg4[%c0_11, %c0_12] : memref<3072x512xbf16, #tpu.memory_space<vmem>>, vector<3072x512xbf16>
      %cst_13 = arith.constant dense<0.000000e+00> : vector<8x512xf32>
      %24 = tpu.matmul %22, %23, %cst_13 {dimension_numbers = #tpu.dot_dimension_numbers<[1], [0], [0], [1], [0, 0, 1, 1], [], []>} : vector<8x3072xbf16>, vector<3072x512xbf16>, vector<8x512xf32> -> vector<8x512xf32>
      %25 = arith.addf %21, %24 : vector<8x512xf32>
      %c0_14 = arith.constant 0 : index
      %c0_15 = arith.constant 0 : index
      %26 = vector.load %arg11[%c0_14, %c0_15] : memref<8x512xf32, #tpu.memory_space<vmem>>, vector<8x512xf32>
      tpu.vector_store %arg11[%c0_14, %c0_15], %25 {strides = array<i32>} : memref<8x512xf32, #tpu.memory_space<vmem>>, vector<8x512xf32>,
    } else {
    }
    %c1_i32_4 = arith.constant 1 : i32
    %9 = arith.cmpi eq, %arg0, %c1_i32_4 : i32
    %10 = arith.extui %9 : i1 to i32
    %c0_i32_5 = arith.constant 0 : i32
    %11 = arith.cmpi ne, %10, %c0_i32_5 : i32
    scf.if %11 {
      %c0 = arith.constant 0 : index
      %c0_6 = arith.constant 0 : index
      %12 = vector.load %arg11[%c0, %c0_6] : memref<8x512xf32, #tpu.memory_space<vmem>>, vector<8x512xf32>
      %c0_7 = arith.constant 0 : index
      %c0_8 = arith.constant 0 : index
      %13 = vector.load %arg5[%c0_7, %c0_8] : memref<1x512xf32, #tpu.memory_space<vmem>>, vector<1x512xf32>
      %14 = vector.broadcast %13 : vector<1x512xf32> to vector<8x512xf32>
      %15 = arith.addf %12, %14 : vector<8x512xf32>
      %cst = arith.constant 0.000000e+00 : f32
      %16 = vector.broadcast %cst : f32 to vector<8x512xf32>
      %17 = arith.cmpf oge, %15, %16 : vector<8x512xf32>
      %cst_9 = arith.constant 2.000000e-01 : f32
      %18 = vector.broadcast %cst_9 : f32 to vector<8x512xf32>
      %19 = arith.mulf %18, %15 : vector<8x512xf32>
      %20 = arith.select %17, %15, %19 : vector<8x512xi1>, vector<8x512xf32>
      %21 = arith.truncf %20 : vector<8x512xf32> to vector<8x512xbf16>
      %c0_10 = arith.constant 0 : index
      %c0_11 = arith.constant 0 : index
      %22 = vector.load %arg6[%c0_10, %c0_11] : memref<512x256xbf16, #tpu.memory_space<vmem>>, vector<512x256xbf16>
      %cst_12 = arith.constant dense<0.000000e+00> : vector<8x256xf32>
      %23 = tpu.matmul %21, %22, %cst_12 {dimension_numbers = #tpu.dot_dimension_numbers<[1], [0], [0], [1], [0, 0, 1, 1], [], []>} : vector<8x512xbf16>, vector<512x256xbf16>, vector<8x256xf32> -> vector<8x256xf32>
      %c0_13 = arith.constant 0 : index
      %c0_14 = arith.constant 0 : index
      %24 = vector.load %arg7[%c0_13, %c0_14] : memref<1x256xf32, #tpu.memory_space<vmem>>, vector<1x256xf32>
      %25 = vector.broadcast %24 : vector<1x256xf32> to vector<8x256xf32>
      %26 = arith.addf %23, %25 : vector<8x256xf32>
      %cst_15 = arith.constant 0.000000e+00 : f32
      %27 = vector.broadcast %cst_15 : f32 to vector<8x256xf32>
      %28 = arith.cmpf oge, %26, %27 : vector<8x256xf32>
      %cst_16 = arith.constant 2.000000e-01 : f32
      %29 = vector.broadcast %cst_16 : f32 to vector<8x256xf32>
      %30 = arith.mulf %29, %26 : vector<8x256xf32>
      %31 = arith.select %28, %26, %30 : vector<8x256xi1>, vector<8x256xf32>
      %32 = arith.truncf %31 : vector<8x256xf32> to vector<8x256xbf16>
      %c0_17 = arith.constant 0 : index
      %c0_18 = arith.constant 0 : index
      %33 = vector.load %arg8[%c0_17, %c0_18] : memref<256x128xbf16, #tpu.memory_space<vmem>>, vector<256x128xbf16>
      %cst_19 = arith.constant dense<0.000000e+00> : vector<8x128xf32>
      %34 = tpu.matmul %32, %33, %cst_19 {dimension_numbers = #tpu.dot_dimension_numbers<[1], [0], [0], [1], [0, 0, 1, 1], [], []>} : vector<8x256xbf16>, vector<256x128xbf16>, vector<8x128xf32> -> vector<8x128xf32>
      %c0_20 = arith.constant 0 : index
      %c0_21 = arith.constant 0 : index
      %35 = vector.load %arg9[%c0_20, %c0_21] : memref<1x128xf32, #tpu.memory_space<vmem>>, vector<1x128xf32>
      %36 = vector.broadcast %35 : vector<1x128xf32> to vector<8x128xf32>
      %37 = arith.addf %34, %36 : vector<8x128xf32>
      %c0_22 = arith.constant 0 : index
      %c0_23 = arith.constant 0 : index
      %38 = vector.load %arg10[%c0_22, %c0_23] : memref<8x128xf32, #tpu.memory_space<vmem>>, vector<8x128xf32>
      tpu.vector_store %arg10[%c0_22, %c0_23], %37 {strides = array<i32>} : memref<8x128xf32, #tpu.memory_space<vmem>>, vector<8x128xf32>,
    } else {
    }
    return
  }
  func.func @transform_0(%arg0: i32) -> (i32, i32) {
    %c0_i32 = arith.constant 0 : i32
    %0 = arith.minsi %arg0, %c0_i32 : i32
    %c0_i32_0 = arith.constant 0 : i32
    %c0_i32_1 = arith.constant 0 : i32
    return %c0_i32_0, %0 : i32, i32
  }
  func.func @transform_1(%arg0: i32) -> (i32, i32) {
    %c0_i32 = arith.constant 0 : i32
    %c0_i32_0 = arith.constant 0 : i32
    %c0_i32_1 = arith.constant 0 : i32
    return %c0_i32, %c0_i32_0 : i32, i32
  }
  func.func @transform_2(%arg0: i32) -> (i32, i32) {
    %c1_i32 = arith.constant 1 : i32
    %0 = arith.subi %arg0, %c1_i32 : i32
    %c0_i32 = arith.constant 0 : i32
    %1 = arith.maxsi %0, %c0_i32 : i32
    %c0_i32_0 = arith.constant 0 : i32
    %c0_i32_1 = arith.constant 0 : i32
    return %c0_i32_0, %1 : i32, i32
  }
  func.func @transform_3(%arg0: i32) -> (i32, i32) {
    %c0_i32 = arith.constant 0 : i32
    %c0_i32_0 = arith.constant 0 : i32
    return %arg0, %c0_i32 : i32, i32
  }
  func.func @transform_4(%arg0: i32) -> (i32, i32) {
    %c0_i32 = arith.constant 0 : i32
    %c0_i32_0 = arith.constant 0 : i32
    %c0_i32_1 = arith.constant 0 : i32
    return %c0_i32, %c0_i32_0 : i32, i32
  }
  func.func @transform_5(%arg0: i32) -> (i32, i32) {
    %c0_i32 = arith.constant 0 : i32
    %c0_i32_0 = arith.constant 0 : i32
    %c0_i32_1 = arith.constant 0 : i32
    return %c0_i32, %c0_i32_0 : i32, i32
  }
  func.func @transform_6(%arg0: i32) -> (i32, i32) {
    %c0_i32 = arith.constant 0 : i32
    %c0_i32_0 = arith.constant 0 : i32
    %c0_i32_1 = arith.constant 0 : i32
    return %c0_i32, %c0_i32_0 : i32, i32
  }
  func.func @transform_7(%arg0: i32) -> (i32, i32) {
    %c0_i32 = arith.constant 0 : i32
    %c0_i32_0 = arith.constant 0 : i32
    %c0_i32_1 = arith.constant 0 : i32
    return %c0_i32, %c0_i32_0 : i32, i32
  }
  func.func @transform_8(%arg0: i32) -> (i32, i32) {
    %c0_i32 = arith.constant 0 : i32
    %c0_i32_0 = arith.constant 0 : i32
    %c0_i32_1 = arith.constant 0 : i32
    return %c0_i32, %c0_i32_0 : i32, i32
  }
  func.func @transform_9(%arg0: i32) -> (i32, i32) {
    %c0_i32 = arith.constant 0 : i32
    %c0_i32_0 = arith.constant 0 : i32
    %c0_i32_1 = arith.constant 0 : i32
    return %c0_i32, %c0_i32_0 : i32, i32
  }
}

</mosaic_0001>

<bundles_post_ra>
// kernel: _forward_impl.1
= control target key start
LH: loop header
LB: loop body
LE: loop exit
PB: predicated region body
PF: predicated region fallthrough
CT: control target
= control target key end

     0   :  { %s20158_s0 = inlined_call_operand.vmem [shape: f32[8,3072], index: 0, kind: input, shape index: {}]   ;;  %s20159_s1 = inlined_call_operand.vmem [shape: s32[8,1], index: 1, kind: input, shape index: {}]   ;;  %s20160_s2 = inlined_call_operand.hbm [shape: bf16[16,3072], index: 2, kind: input, shape index: {}]   ;;  %s20161_s3 = inlined_call_operand.hbm [shape: bf16[6144,512], index: 3, kind: input, shape index: {}]   ;;  %s20162_s4 = inlined_call_operand.hbm [shape: f32[1,512], index: 4, kind: input, shape index: {}]   ;;  %s20163_s5 = inlined_call_operand.hbm [shape: bf16[512,256], index: 5, kind: input, shape index: {}]   ;;  %s20164_s6 = inlined_call_operand.hbm [shape: f32[1,256], index: 6, kind: input, shape index: {}]   ;;  %s20165_s7 = inlined_call_operand.hbm [shape: bf16[256,128], index: 7, kind: input, shape index: {}]   ;;  %s20166_s8 = inlined_call_operand.hbm [shape: f32[1,128], index: 8, kind: input, shape index: {}]   ;;  %s20167_s9 = inlined_call_operand.vmem [shape: f32[8,128], index: 9, kind: output, shape index: {}]  }
   0x1   :  { %20174 = sst [smem:[#allocation19_spill]] %s20162_s4 }
   0x2   :  { %20175 = sst [smem:[#allocation20_spill]] %s20163_s5 }
   0x3   :  { %20176 = sst [smem:[#allocation21_spill]] %s20164_s6 }
   0x4   :  { %20177 = sst [smem:[#allocation22_spill]] %s20165_s7 }
   0x5   :  { %14 = vsyncpa [#allocation4], 0 }
   0x6   :  { %16 = vsyncpa [#allocation4 + $0x1], 0 }
   0x7   :  { %17 = vsyncpa [#allocation6], 0 }
   0x8   :  { %19 = vsyncpa [#allocation6 + $0x1], 0 }
   0x9   :  { %20 = vsyncpa [#allocation9], 0 }
   0xa   :  { %21 = vsyncpa [#allocation12], 0  ;;  %s17863_s30 = smov 0   ;;  %s17865_s10 = smov 0  }
   0xb   :  { %s17867_s11 = smov 0   ;;  %s17869_s12 = smov 0  }
   0xc   :  { %s17871_s13 = smov 0   ;;  %s17873_s14 = smov 0  }
   0xd   :  { %s17875_s15 = smov 0  }
   0xe LB: > { %s17795_s16 = smov [#allocation7]   ;;  %s17899_s18 = sadd.s32 4294967295, %s17793_s15   ;;  %s17793_s15 = sphi %s17875_s15, %s20211_s15   ;;  %s17789_s14 = sphi %s17873_s14, %s20210_s14   ;;  %s17785_s13 = sphi %s17871_s13, %s20209_s13   ;;  %s17781_s12 = sphi %s17869_s12, %s20208_s12   ;;  %s17777_s11 = sphi %s17867_s11, %s20207_s11   ;;  %s17773_s10 = sphi %s17865_s10, %s20206_s10   ;;  %s17769_s30 = sphi %s17863_s30, %s20205_s30  }
   0xf   : > { %s283_s17 = sshll.u32 %s17795_s16, 4  ;;  %p13278_p0 = scmp.ge.s32.totalorder %s17793_s15, 1  ;;  %s284_s17 = int_to_ptr.vmem [resolvable:$true] %s283_s17 }
  0x10   : > { %p20168_p1 = scmp.eq.s32.totalorder %s17899_s18, 0  ;;  %p267_p2 = scmp.lt.s32.totalorder %s17793_s15, 3 }
  0x11   : > { %s17796_s20 = smov [#allocation8]   ;;  %s17797_s23 = smov [#allocation11]  }
  0x12   : > { %p17905_p4 = pnand %p13278_p0, %p267_p2  ;;  %s293_s21 = sshll.u32 %s17796_s20, 4  ;;  %s17911_s21 = int_to_ptr.vmem [resolvable:$true] %s293_s21 }
  0x13   : > { %s317_s24 = sshll.u32 %s17797_s23, 4  ;;  %s17544_s26 = scalar_lea.vmem %s284_s17, 64  ;;  %s17919_s24 = int_to_ptr.vmem [resolvable:$true] %s317_s24 }
  0x14   : > { %s20178_s19 = scalar_select %p17905_p4, 1, 0 }
  0x15   : > { %p15010_p5 = pneg %p17905_p4  ;;  %p17545_p8 = scmp.ne.s32.totalorder %s284_s17, %s17544_s26 }
  0x16   : > { %p17552_p11 = scmp.lt.s32.totalorder %s284_s17, %s284_s17  ;;  %p17553_p12 = scmp.lt.s32.totalorder %s17544_s26, %s17544_s26 }
  0x17   : > { %p17915_p6 = pnand %p15010_p5, %p20168_p1 }
  0x18   : > { %p17554_p13 = por %p17553_p12, %p17552_p11 }
  0x19   : > { %p17923_p7 = pneg %p17915_p6 }
  0x1b   : > { %p17547_p9 = pnand %p17545_p8, %p17923_p7 }
  0x1d   : > { %p17548_p10 = pneg %p17547_p9 }
  0x1f   : > { %p17555_p0 = pnand %p17554_p13, %p17548_p10 }
  0x21   : > { %17558 = shalt.err (!%p17555_p0)
}
  0x22   : > { %s20181_s4 = sld [smem:[#allocation19_spill]]  ;;  %s17570_s29 = scalar_lea.vmem %s17911_s21, 8192 }
  0x23   : > { %p17571_p2 = scmp.ne.s32.totalorder %s17911_s21, %s17570_s29  ;;  %p17578_p9 = scmp.lt.s32.totalorder %s17911_s21, %s17911_s21 }
  0x24   : > { %p17579_p11 = scmp.lt.s32.totalorder %s17570_s29, %s17570_s29 }
  0x25   : > { %p17573_p5 = pnand %p17571_p2, %p17923_p7 }
  0x26   : > { %p17580_p10 = por %p17579_p11, %p17578_p9 }
  0x27   : > { %p17574_p8 = pneg %p17573_p5 }
  0x28   : > { %15013 = dma.hbm_to_vmem [thread:$0]  (!%p17915_p6), %s20181_s4, 64, %s284_s17, [#allocation6]  }
  0x29   : > { %p17581_p12 = pnand %p17580_p10, %p17574_p8 }
  0x2b   : > { %17584 = shalt.err (!%p17581_p12)
}
  0x2c   : > { %s17798_s16 = smov 128   ;;  %s17799_s20 = smov 8  }
  0x2d   : > { %s20182_s5 = sld [smem:[#allocation20_spill]]  ;;  %s17596_s26 = scalar_lea.vmem %s17919_s24, 2048 }
  0x2e   : > { %p17597_p13 = scmp.ne.s32.totalorder %s17919_s24, %s17596_s26  ;;  %p17604_p5 = scmp.lt.s32.totalorder %s17919_s24, %s17919_s24 }
  0x2f   : > { %p17605_p8 = scmp.lt.s32.totalorder %s17596_s26, %s17596_s26 }
  0x30   : > { %p17599_p0 = pnand %p17597_p13, %p17923_p7 }
  0x31   : > { %p17606_p9 = por %p17605_p8, %p17604_p5 }
  0x32   : > { %p17600_p2 = pneg %p17599_p0 }
  0x33   : > { %15016 = dma.hbm_to_vmem [thread:$0]  (!%p17915_p6), %s20182_s5, 8192, %s17911_s21, [#allocation9], %s17798_s16, %s17798_s16, %s17799_s20  }
  0x34   : > { %p17607_p11 = pnand %p17606_p9, %p17600_p2 }
  0x36   : > { %17610 = shalt.err (!%p17607_p11)
}
  0x37   : > { %s17800_s27 = smov 64   ;;  %s17801_s28 = smov 4  }
  0x38   : > { %s20183_s7 = sld [smem:[#allocation22_spill]]  ;;  %s17802_s21 = smov [#allocation10]  }
  0x39   : > { %s307_s16 = sshll.u32 %s17802_s21, 4  ;;  %s17803_s20 = smov [#allocation13]   ;;  %s308_s16 = int_to_ptr.vmem [resolvable:$true] %s307_s16 }
  0x3a   : > { %s331_s23 = sshll.u32 %s17803_s20, 4  ;;  %s17622_s4 = scalar_lea.vmem %s308_s16, 32  ;;  %s332_s23 = int_to_ptr.vmem [resolvable:$true] %s331_s23 }
  0x3b   : > { %p17623_p10 = scmp.ne.s32.totalorder %s308_s16, %s17622_s4  ;;  %p17630_p0 = scmp.lt.s32.totalorder %s308_s16, %s308_s16 }
  0x3c   : > { %p17631_p2 = scmp.lt.s32.totalorder %s17622_s4, %s17622_s4 }
  0x3d   : > { %p17625_p12 = pnand %p17623_p10, %p17923_p7 }
  0x3e   : > { %15022 = dma.hbm_to_vmem [thread:$0]  (!%p17915_p6), %s20183_s7, 2048, %s17919_s24, [#allocation12], %s17800_s27, %s17800_s27, %s17801_s28  }
  0x3f   : > { %p17626_p13 = pneg %p17625_p12  ;;  %p17632_p5 = por %p17631_p2, %p17630_p0 }
  0x41   : > { %p17633_p8 = pnand %p17632_p5, %p17626_p13 }
  0x43   : > { %17636 = shalt.err (!%p17633_p8)
}
  0x44   : > { %s20184_s6 = sld [smem:[#allocation21_spill]]  ;;  %s17648_s24 = scalar_lea.vmem %s332_s23, 16 }
  0x45   : > { %p17649_p9 = scmp.ne.s32.totalorder %s332_s23, %s17648_s24  ;;  %s17655_s27 = scalar_lea.vmem %s332_s23, 32 }
  0x46   : > { %p17656_p10 = scmp.lt.s32.totalorder %s332_s23, %s332_s23  ;;  %p17657_p12 = scmp.lt.s32.totalorder %s17655_s27, %s17648_s24 }
  0x47   : > { %p17651_p11 = pnand %p17649_p9, %p17923_p7 }
  0x48   : > { %p17658_p1 = por %p17657_p12, %p17656_p10 }
  0x49   : > { %p17652_p3 = pneg %p17651_p11 }
  0x4a   : > { %15019 = dma.hbm_to_vmem [thread:$0]  (!%p17915_p6), %s20184_s6, 32, %s308_s16, [#allocation9]  }
  0x4b   : > { %p17659_p0 = pnand %p17658_p1, %p17652_p3 }
  0x4d   : > { %17662 = shalt.err (!%p17659_p0)
}
  0x4e   : > { %15025 = dma.hbm_to_vmem [thread:$0]  (!%p17915_p6), %s20166_s8, 16, %s332_s23, [#allocation12]  }
  0x4f   : > { %s17973_s25 = sadd.s32 1, %s17793_s15   ;;  %p83_p1 = scmp.gt.s32.totalorder %s17899_s18, 0 }
  0x50   : > { %s13277_s22 = sadd.s32 4294967295, %s17973_s25  ;;  %s91_s17 = sadd.s32 1, %s17789_s14 }
  0x51   : > { %p86_p3 = scmp.gt.s32.totalorder %s13277_s22, 0  ;;  %p98_p7 = scmp.ne.s32.totalorder %s17789_s14, %s17785_s13 }
  0x52   : > { %s84_s21 = scalar_select %p83_p1, %s17899_s18, 0 }
  0x53   : > { %s20213_s22 = smov (!%p86_p3, %s13277_s22), 0  ;;  %p20170_p13 = scmp.eq.s32.totalorder %s17793_s15, 0 }
  0x54   : > { %s88_s16 = ssub.s32 %s84_s21, %s20213_s22  ;;  %p104_p2 = scmp.ne.s32.totalorder %s17785_s13, %s17781_s12 }
  0x55   : > { %p89_p5 = scmp.eq.s32.totalorder %s88_s16, 0  ;;  %p100_p6 = por %p20170_p13, %p98_p7 }
  0x56   : > { %p20185_p8 = scmp.eq.s32.totalorder %s17899_s18, 0  ;;  %s114_s23 = ssub.s32 %s17793_s15, %s17973_s25 }
  0x57   : > { %s17995_s26 = scalar_select %p89_p5, %s17789_s14, %s91_s17  }
  0x58   : > { %p17988_p9 = por %p20185_p8, %p104_p2  ;;  %p17997_p11 = scmp.eq.s32.totalorder %s114_s23, 0 }
  0x59   : > { %p20169_p10 = scmp.lt.s32.totalorder %s17793_s15, 2  ;;  %s355_s24 = sand.u32 1, %s17789_s14  }
  0x5a   : > { %s20186_s20 = scalar_select %p17988_p9, 1, 0 }
  0x5b   : > { %s20187_s29 = scalar_select %p17997_p11, 1, 0 }
  0x5c   : > { %s14956_s27 = smul.u32 1536, %s84_s21  ;;  %p18010_p12 = pnand %p20169_p10, %p100_p6 }
  0x5d   : > { %s14982_s4 = smul.u32 192, %s355_s24  ;;  %s18016_s21 = scalar_lea.sflag [#allocation4], %s355_s24 }
  0x5e   : > { %s18006_s22 = scalar_lea.hbm %s20160_s2, %s14956_s27  ;;  %p17665_p1 = pneg %p18010_p12 }
  0x5f   : > { %s359_s16 = scalar_lea.vmem [#allocation3], %s14982_s4  ;;  %s17663_s5 = scalar_lea.hbm %s18006_s22, 3072 }
  0x60   : > { %s369_s23 = sshll.u32 %s359_s16, 4  ;;  %p17664_p0 = scmp.ne.s32.totalorder %s18006_s22, %s17663_s5  ;;  %s18014_s23 = int_to_ptr.vmem [resolvable:$true] %s369_s23 }
  0x61   : > { %s17668_s28 = scalar_lea.hbm %s20160_s2, 3072  ;;  %p17669_p2 = scmp.lt.s32.totalorder %s18006_s22, %s20160_s2 }
  0x62   : > { %p17666_p3 = pnand %p17665_p1, %p17664_p0  ;;  %p17670_p5 = scmp.lt.s32.totalorder %s17668_s28, %s17663_s5 }
  0x64   : > { %p17667_p7 = pneg %p17666_p3  ;;  %p17671_p6 = por %p17670_p5, %p17669_p2 }
  0x66   : > { %p17672_p8 = pnand %p17671_p6, %p17667_p7 }
  0x68   : > { %17675 = shalt.err (!%p17672_p8)
}
  0x69   : > { %s17676_s24 = scalar_lea.vmem %s18014_s23, 3072  ;;  %s17804_s4 = smov [#allocation3]  }
  0x6a   : > { %p17677_p10 = scmp.ne.s32.totalorder %s18014_s23, %s17676_s24  ;;  %s17681_s16 = sshll.u32 %s17804_s4, 4  ;;  %s17682_s16 = int_to_ptr.vmem [resolvable:$false] %s17681_s16 }
  0x6b   : > { %s17683_s27 = scalar_lea.vmem %s17682_s16, 6144  ;;  %p17684_p3 = scmp.lt.s32.totalorder %s18014_s23, %s17682_s16 }
  0x6c   : > { %p17679_p13 = pnand %p17677_p10, %p17665_p1  ;;  %p17685_p9 = scmp.lt.s32.totalorder %s17683_s27, %s17676_s24 }
  0x6e   : > { %p17680_p0 = pneg %p17679_p13  ;;  %p17686_p4 = por %p17685_p9, %p17684_p3 }
  0x70   : > { %p17687_p11 = pnand %p17686_p4, %p17680_p0 }
  0x72   : > { %17690 = shalt.err (!%p17687_p11)
}
  0x73   : > { %s17805_s5 = smov 1536   ;;  %s17806_s6 = smov 96  }
  0x74   : > { %15029 = dma.hbm_to_vmem [thread:$0]  (!%p18010_p12), %s18006_s22, 3072, %s18014_s23, %s18016_s21, %s17805_s5, %s17805_s5, %s17806_s6  }
  0x75   : > { %s117_s7 = sadd.s32 1, %s17777_s11  ;;  %p124_p4 = scmp.ne.s32.totalorder %s17777_s11, %s17773_s10 }
  0x76   : > { %p20189_p13 = scmp.ne.s32.totalorder %s20187_s29, 0  ;;  %p20190_p9 = scmp.eq.s32.totalorder %s17793_s15, 0 }
  0x77   : > { %p130_p10 = scmp.ne.s32.totalorder %s17773_s10, %s17769_s30  ;;  %s379_s28 = sand.u32 1, %s17793_s15  }
  0x78   : > { %s18043_s12 = scalar_select %p20189_p13, %s17777_s11, %s117_s7  }
  0x79   : > { %p126_p11 = por %p124_p4, %p20190_p9  ;;  %s381_s24 = sand.u32 1, %s17777_s11  }
  0x7a   : > { %p20191_p1 = scmp.eq.s32.totalorder %s17899_s18, 0  ;;  %s14983_s16 = smul.u32 6144, %s381_s24 }
  0x7b   : > { %p20193_p2 = scmp.lt.s32.totalorder %s17793_s15, 2  ;;  %s14959_s29 = smul.u32 98304, %s17793_s15 }
  0x7c   : > { %p18053_p7 = por %p130_p10, %p20191_p1  ;;  %s383_s30 = scalar_lea.vmem [#allocation5], %s14983_s16 }
  0x7d   : > { %p18059_p5 = pnand %p20193_p2, %p126_p11  ;;  %s18067_s21 = scalar_lea.hbm %s20161_s3, %s14959_s29 }
  0x7e   : > { %s20192_s4 = scalar_select %p18053_p7, 1, 0 }
  0x7f   : > { %s391_s27 = sshll.u32 %s383_s30, 4  ;;  %s18071_s5 = scalar_lea.sflag [#allocation6], %s379_s28  ;;  %s18069_s27 = int_to_ptr.vmem [resolvable:$true] %s391_s27 }
  0x80   : > { %s17691_s6 = scalar_lea.hbm %s18067_s21, 98304  ;;  %p17693_p6 = pneg %p18059_p5 }
  0x81   : > { %p17692_p12 = scmp.ne.s32.totalorder %s18067_s21, %s17691_s6  ;;  %s17696_s24 = scalar_lea.hbm %s20161_s3, 196608 }
  0x82   : > { %p17697_p3 = scmp.lt.s32.totalorder %s18067_s21, %s20161_s3  ;;  %p17698_p4 = scmp.lt.s32.totalorder %s17696_s24, %s17691_s6 }
  0x83   : > { %p17694_p8 = pnand %p17693_p6, %p17692_p12 }
  0x84   : > { %p17699_p13 = por %p17698_p4, %p17697_p3 }
  0x85   : > { %p17695_p0 = pneg %p17694_p8 }
  0x87   : > { %p17700_p9 = pnand %p17699_p13, %p17695_p0 }
  0x89   : > { %17703 = shalt.err (!%p17700_p9)
}
  0x8a   : > { %s17704_s28 = scalar_lea.vmem %s18069_s27, 98304  ;;  %s17807_s16 = smov [#allocation5]  }
  0x8b   : > { %p17705_p11 = scmp.ne.s32.totalorder %s18069_s27, %s17704_s28  ;;  %s17709_s23 = sshll.u32 %s17807_s16, 4  ;;  %s17710_s23 = int_to_ptr.vmem [resolvable:$false] %s17709_s23 }
  0x8c   : > { %s17711_s30 = scalar_lea.vmem %s17710_s23, 196608  ;;  %p17712_p2 = scmp.lt.s32.totalorder %s18069_s27, %s17710_s23 }
  0x8d   : > { %p17707_p10 = pnand %p17705_p11, %p17693_p6  ;;  %p17713_p12 = scmp.lt.s32.totalorder %s17711_s30, %s17704_s28 }
  0x8f   : > { %p17708_p1 = pneg %p17707_p10  ;;  %p17714_p8 = por %p17713_p12, %p17712_p2 }
  0x91   : > { %p17715_p7 = pnand %p17714_p8, %p17708_p1 }
  0x93   : > { %17718 = shalt.err (!%p17715_p7)
}
  0x94   : > { %s17808_s6 = smov 256   ;;  %s17809_s15 = smov 16  }
  0x95   : > { %15032 = dma.hbm_to_vmem [thread:$0]  (!%p18059_p5), %s18067_s21, 98304, %s18069_s27, %s18071_s5, %s17808_s6, %s17808_s6, %s17809_s15  }
  0x96   : > { %p20195_p6 = scmp.ne.s32.totalorder %s20178_s19, 0 }
  0x97   : > { %s405_s7 = sand.u32 (!%p20195_p6), 1, %s17785_s13   ;;  %p20196_p0 = scmp.ne.s32.totalorder (!%p20195_p6), %s20186_s20, 0 }
  0x98   : > { %403 = sbr.rel (%p20195_p6) target bundleno = 2883 (0xb43), region = 56  ;;  %s406_s29 = scalar_lea.sflag (!%p20195_p6), [#allocation4], %s405_s7 }
  0x99   : > { %s14984_s24 = smul.u32 (!%p20195_p6), 192, %s405_s7 }
  0x9b   : > { %s18095_s22 = scalar_lea.vmem (!%p20195_p6), [#allocation3], %s14984_s24 }
  0x9d   : > { %17748 = dma.done.wait (%p20196_p0), %s406_s29, 3072  }
  0x9e   : > { %17750 = vsyncadd (%p20196_p0), %s406_s29, 4294964224  ;;  %s414_s17 = sand.u32 1, %s17899_s18   ;;  %s416_s21 = sand.u32 1, %s17773_s10  }
  0x9f   : > { %s14985_s27 = smul.u32 6144, %s416_s21  ;;  %s415_s19 = scalar_lea.sflag [#allocation6], %s414_s17 }
  0xa0   : > { %p20197_p7 = scmp.ne.s32.totalorder %s20192_s4, 0 }
  0xa1   : > { %s18103_s5 = scalar_lea.vmem [#allocation5], %s14985_s27 }
  0xa2   : > { %17752 = dma.done.wait (%p20197_p7), %s415_s19, 98304  }
  0xa3   : > { %17754 = vsyncadd (%p20197_p7), %s415_s19, 4294868992  ;;  %p20198_p5 = scmp.eq.s32.totalorder %s17899_s18, 0 }
  0xa5   : > { %17756 = dma.done.wait (%p20198_p5), [#allocation6], 64   ;;  %p20199_p3 = pmov %p20198_p5 }
  0xa7   : > { %17758 = vsyncadd (%p20199_p3), [#allocation6], 4294967232  ;;  %p20200_p4 = pmov %p20199_p3 }
  0xa8   : > { %p20201_p13 = pmov %p20199_p3 }
  0xa9   : > { %17760 = dma.done.wait (%p20200_p4), [#allocation9], 8224  }
  0xaa   : > { %17762 = vsyncadd (%p20201_p13), [#allocation9], 4294959072  ;;  %p20202_p9 = pmov %p20199_p3 }
  0xab   : > { %p20203_p11 = pmov %p20199_p3 }
  0xac   : > { %17764 = dma.done.wait (%p20202_p9), [#allocation12], 2064  }
  0xad   : > { %17766 = vsyncadd (%p20203_p11), [#allocation12], 4294965232  ;;  %p480_p10 = scmp.lt.s32.totalorder %s17899_s18, 0  ;;  %p20204_p2 = scmp.ne.s32.totalorder %s17899_s18, 0 }
  0xaf   : > { %s481_s20 = scalar_select %p480_p10, %s17899_s18, 0 }
  0xb1   : > { %s482_s4 = smul.u32 24, %s481_s20 }
  0xb3   : > { %p483_p1 = scmp.lt.s32.totalorder %s482_s4, 23  ;;  %499 = sbr.rel (%p20204_p2) target bundleno = 187 (0xbb), region = 88 }
  0xb5   : > { %s20215_s4 = smov (!%p483_p1, %s482_s4), 23 }
  0xb6   : > { %s13295_s28 = sshll.u32 %s20215_s4, 3 }
  0xb7   : > { %s18126_s30 = scalar_lea.vmem %s20158_s0, %s13295_s28 }
  0xb8   : > { %v17810_v0 = vmov 0.0  }
  0xb9   : > { %500 = vst [vmem:[#allocation2 + $0x10] sm:$0xff] %v17810_v0  ;;  %501 = vst [vmem:[#allocation2] sm:$0xff] %v17810_v0 }
  0xba   : > { %502 = vst [vmem:[#allocation2 + $0x18] sm:$0xff] %v17810_v0  ;;  %503 = vst [vmem:[#allocation2 + $0x8] sm:$0xff] %v17810_v0 }
  0xbb PF: > { %p13297_p12 = scmp.ge.s32.totalorder %s17899_s18, 1 }
  0xbd   : > { %507 = sbr.rel (%p13297_p12) target bundleno = 1165 (0x48d), region = 92 }
  0xc2   : > { %v15116_v1 = vld [vmem:[%s18103_s5 + $0xe4] ss:$16 sps:$4 sm:$0xff]   ;;  %v15120_v3 = vld [vmem:[%s18103_s5 + $0xe0] ss:$16 sps:$4 sm:$0xff]   ;;  %v509_v47 = vld [vmem:[%s18126_s30 + $0x8] sm:$0xff] }
  0xc3   : > { %v15118_v2 = vld [vmem:[%s18103_s5 + $0x2e4] ss:$16 sps:$4 sm:$0xff]   ;;  %5168 = vmatprep.subr.bf16.mxu0 %v15116_v1  ;;  %v15121_v4 = vld [vmem:[%s18103_s5 + $0x2e0] ss:$16 sps:$4 sm:$0xff]   ;;  %v18180_v50 = vpack.c.bf16 %v509_v47, %v509_v47  ;;  %v511_v51 = vld [vmem:[%s18126_s30 + $0x18] sm:$0xff] }
  0xc4   : > { %5209 = vmatprep.subr.bf16.mxu1 %v15118_v2  ;;  %v15122_v5 = vld [vmem:[%s18103_s5 + $0xc4] ss:$16 sps:$4 sm:$0xff]   ;;  %5169 = vmatpush1.bf16.msra.mxu0 %v15120_v3  ;;  %v15126_v7 = vld [vmem:[%s18103_s5 + $0xc0] ss:$16 sps:$4 sm:$0xff]   ;;  %v18184_v53 = vpack.c.bf16 %v511_v51, %v511_v51 }
  0xc5   : > { %5210 = vmatpush1.bf16.msra.mxu1 %v15121_v4  ;;  %v15124_v6 = vld [vmem:[%s18103_s5 + $0x2c4] ss:$16 sps:$4 sm:$0xff]   ;;  %5170 = vmatprep.subr.bf16.mxu0 %v15122_v5  ;;  %v15127_v8 = vld [vmem:[%s18103_s5 + $0x2c0] ss:$16 sps:$4 sm:$0xff]  }
  0xc6   : > { %5211 = vmatprep.subr.bf16.mxu1 %v15124_v6  ;;  %v15128_v9 = vld [vmem:[%s18103_s5 + $0xa4] ss:$16 sps:$4 sm:$0xff]   ;;  %v15132_v11 = vld [vmem:[%s18103_s5 + $0xa0] ss:$16 sps:$4 sm:$0xff]   ;;  %5200 = vmatprep.mubr.bf16.mxu0 %v18180_v50 }
  0xc7   : > { %v15130_v10 = vld [vmem:[%s18103_s5 + $0x2a4] ss:$16 sps:$4 sm:$0xff]   ;;  %v15133_v12 = vld [vmem:[%s18103_s5 + $0x2a0] ss:$16 sps:$4 sm:$0xff]   ;;  %5241 = vmatprep.mubr.bf16.mxu1 %v18184_v53 }
  0xc8   : > { %5171 = vmatpush1.bf16.msra.mxu0 %v15126_v7  ;;  %v15134_v13 = vld [vmem:[%s18103_s5 + $0x84] ss:$16 sps:$4 sm:$0xff]   ;;  %v15138_v15 = vld [vmem:[%s18103_s5 + $0x80] ss:$16 sps:$4 sm:$0xff]  }
  0xc9   : > { %5212 = vmatpush1.bf16.msra.mxu1 %v15127_v8  ;;  %5172 = vmatprep.subr.bf16.mxu0 %v15128_v9  ;;  %v15136_v14 = vld [vmem:[%s18103_s5 + $0x284] ss:$16 sps:$4 sm:$0xff]   ;;  %v15139_v16 = vld [vmem:[%s18103_s5 + $0x280] ss:$16 sps:$4 sm:$0xff]  }
  0xca   : > { %5213 = vmatprep.subr.bf16.mxu1 %v15130_v10  ;;  %v15140_v17 = vld [vmem:[%s18103_s5 + $0x64] ss:$16 sps:$4 sm:$0xff]   ;;  %v15144_v19 = vld [vmem:[%s18103_s5 + $0x60] ss:$16 sps:$4 sm:$0xff]  }
  0xcb   : > { %v15142_v18 = vld [vmem:[%s18103_s5 + $0x264] ss:$16 sps:$4 sm:$0xff]   ;;  %v15145_v20 = vld [vmem:[%s18103_s5 + $0x260] ss:$16 sps:$4 sm:$0xff]  }
  0xcc   : > { %5173 = vmatpush1.bf16.msra.mxu0 %v15132_v11  ;;  %v15146_v21 = vld [vmem:[%s18103_s5 + $0x44] ss:$16 sps:$4 sm:$0xff]   ;;  %v15150_v23 = vld [vmem:[%s18103_s5 + $0x40] ss:$16 sps:$4 sm:$0xff]  }
  0xcd   : > { %5214 = vmatpush1.bf16.msra.mxu1 %v15133_v12  ;;  %5174 = vmatprep.subr.bf16.mxu0 %v15134_v13  ;;  %v15148_v22 = vld [vmem:[%s18103_s5 + $0x244] ss:$16 sps:$4 sm:$0xff]   ;;  %v15151_v24 = vld [vmem:[%s18103_s5 + $0x240] ss:$16 sps:$4 sm:$0xff]  }
  0xce   : > { %5215 = vmatprep.subr.bf16.mxu1 %v15136_v14  ;;  %v15152_v25 = vld [vmem:[%s18103_s5 + $0x24] ss:$16 sps:$4 sm:$0xff]   ;;  %v15156_v27 = vld [vmem:[%s18103_s5 + $0x20] ss:$16 sps:$4 sm:$0xff]  }
  0xcf   : > { %v15154_v26 = vld [vmem:[%s18103_s5 + $0x224] ss:$16 sps:$4 sm:$0xff]   ;;  %v15157_v28 = vld [vmem:[%s18103_s5 + $0x220] ss:$16 sps:$4 sm:$0xff]  }
  0xd0   : > { %5175 = vmatpush1.bf16.msra.mxu0 %v15138_v15  ;;  %v15158_v29 = vld [vmem:[%s18103_s5 + $0x4] ss:$16 sps:$4 sm:$0xff]   ;;  %v15162_v31 = vld [vmem:[%s18103_s5] ss:$16 sps:$4 sm:$0xff]  }
  0xd1   : > { %5216 = vmatpush1.bf16.msra.mxu1 %v15139_v16  ;;  %5176 = vmatprep.subr.bf16.mxu0 %v15140_v17  ;;  %v15160_v30 = vld [vmem:[%s18103_s5 + $0x204] ss:$16 sps:$4 sm:$0xff]   ;;  %v15163_v32 = vld [vmem:[%s18103_s5 + $0x200] ss:$16 sps:$4 sm:$0xff]  }
  0xd2   : > { %5217 = vmatprep.subr.bf16.mxu1 %v15142_v18  ;;  %v15164_v33 = vld [vmem:[%s18103_s5 + $0x1e4] ss:$16 sps:$4 sm:$0xff]   ;;  %v15168_v35 = vld [vmem:[%s18103_s5 + $0x1e0] ss:$16 sps:$4 sm:$0xff]  }
  0xd3   : > { %v15166_v34 = vld [vmem:[%s18103_s5 + $0x3e4] ss:$16 sps:$4 sm:$0xff]   ;;  %v15169_v36 = vld [vmem:[%s18103_s5 + $0x3e0] ss:$16 sps:$4 sm:$0xff]  }
  0xd4   : > { %5177 = vmatpush1.bf16.msra.mxu0 %v15144_v19  ;;  %v15170_v37 = vld [vmem:[%s18103_s5 + $0x1c4] ss:$16 sps:$4 sm:$0xff]   ;;  %v15174_v39 = vld [vmem:[%s18103_s5 + $0x1c0] ss:$16 sps:$4 sm:$0xff]  }
  0xd5   : > { %5218 = vmatpush1.bf16.msra.mxu1 %v15145_v20  ;;  %5178 = vmatprep.subr.bf16.mxu0 %v15146_v21  ;;  %v15172_v38 = vld [vmem:[%s18103_s5 + $0x3c4] ss:$16 sps:$4 sm:$0xff]   ;;  %v15175_v40 = vld [vmem:[%s18103_s5 + $0x3c0] ss:$16 sps:$4 sm:$0xff]  }
  0xd6   : > { %5219 = vmatprep.subr.bf16.mxu1 %v15148_v22  ;;  %v15176_v41 = vld [vmem:[%s18103_s5 + $0x1a4] ss:$16 sps:$4 sm:$0xff]   ;;  %v15180_v43 = vld [vmem:[%s18103_s5 + $0x1a0] ss:$16 sps:$4 sm:$0xff]  }
  0xd7   : > { %v15178_v42 = vld [vmem:[%s18103_s5 + $0x3a4] ss:$16 sps:$4 sm:$0xff]   ;;  %v15181_v44 = vld [vmem:[%s18103_s5 + $0x3a0] ss:$16 sps:$4 sm:$0xff]  }
  0xd8   : > { %5179 = vmatpush1.bf16.msra.mxu0 %v15150_v23  ;;  %v15182_v45 = vld [vmem:[%s18103_s5 + $0x184] ss:$16 sps:$4 sm:$0xff]   ;;  %v15186_v48 = vld [vmem:[%s18103_s5 + $0x180] ss:$16 sps:$4 sm:$0xff]  }
  0xd9   : > { %5220 = vmatpush1.bf16.msra.mxu1 %v15151_v24  ;;  %5180 = vmatprep.subr.bf16.mxu0 %v15152_v25  ;;  %v15184_v46 = vld [vmem:[%s18103_s5 + $0x384] ss:$16 sps:$4 sm:$0xff]   ;;  %v15187_v49 = vld [vmem:[%s18103_s5 + $0x380] ss:$16 sps:$4 sm:$0xff]  }
  0xda   : > { %5221 = vmatprep.subr.bf16.mxu1 %v15154_v26  ;;  %v15188_v52 = vld [vmem:[%s18103_s5 + $0x164] ss:$16 sps:$4 sm:$0xff]   ;;  %v15192_v55 = vld [vmem:[%s18103_s5 + $0x160] ss:$16 sps:$4 sm:$0xff]  }
  0xdb   : > { %v15190_v54 = vld [vmem:[%s18103_s5 + $0x364] ss:$16 sps:$4 sm:$0xff]   ;;  %v15193_v56 = vld [vmem:[%s18103_s5 + $0x360] ss:$16 sps:$4 sm:$0xff]  }
  0xdc   : > { %5181 = vmatpush1.bf16.msra.mxu0 %v15156_v27  ;;  %v15194_v57 = vld [vmem:[%s18103_s5 + $0x144] ss:$16 sps:$4 sm:$0xff]   ;;  %v15198_v59 = vld [vmem:[%s18103_s5 + $0x140] ss:$16 sps:$4 sm:$0xff]  }
  0xdd   : > { %5222 = vmatpush1.bf16.msra.mxu1 %v15157_v28  ;;  %5182 = vmatprep.subr.bf16.mxu0 %v15158_v29  ;;  %v15196_v58 = vld [vmem:[%s18103_s5 + $0x344] ss:$16 sps:$4 sm:$0xff]   ;;  %v15199_v60 = vld [vmem:[%s18103_s5 + $0x340] ss:$16 sps:$4 sm:$0xff]  }
  0xde   : > { %5223 = vmatprep.subr.bf16.mxu1 %v15160_v30  ;;  %v15200_v61 = vld [vmem:[%s18103_s5 + $0x124] ss:$16 sps:$4 sm:$0xff]   ;;  %v15204_v63 = vld [vmem:[%s18103_s5 + $0x120] ss:$16 sps:$4 sm:$0xff]  }
  0xdf   : > { %v15202_v62 = vld [vmem:[%s18103_s5 + $0x324] ss:$16 sps:$4 sm:$0xff]   ;;  %v15205_v0 = vld [vmem:[%s18103_s5 + $0x320] ss:$16 sps:$4 sm:$0xff]  }
  0xe0   : > { %5183 = vmatpush1.bf16.msra.mxu0 %v15162_v31  ;;  %v15206_v1 = vld [vmem:[%s18103_s5 + $0x104] ss:$16 sps:$4 sm:$0xff]   ;;  %v15210_v3 = vld [vmem:[%s18103_s5 + $0x100] ss:$16 sps:$4 sm:$0xff]  }
  0xe1   : > { %5224 = vmatpush1.bf16.msra.mxu1 %v15163_v32  ;;  %5184 = vmatprep.subr.bf16.mxu0 %v15164_v33  ;;  %v15208_v2 = vld [vmem:[%s18103_s5 + $0x304] ss:$16 sps:$4 sm:$0xff]   ;;  %v15211_v4 = vld [vmem:[%s18103_s5 + $0x300] ss:$16 sps:$4 sm:$0xff]  }
  0xe2   : > { %5225 = vmatprep.subr.bf16.mxu1 %v15166_v34  ;;  %v508_v5 = vld [vmem:[%s18126_s30] sm:$0xff]  ;;  %v510_v6 = vld [vmem:[%s18126_s30 + $0x10] sm:$0xff] }
  0xe3   : > { %v15214_v7 = vld [vmem:[%s18103_s5 + $0x4e4] ss:$16 sps:$4 sm:$0xff]   ;;  %v18207_v9 = vpack.c.bf16 %v508_v5, %v508_v5  ;;  %v18209_v10 = vpack.c.bf16 %v510_v6, %v510_v6  ;;  %v15212_v11 = vld [vmem:[%s18103_s5 + $0x4e0] ss:$16 sps:$4 sm:$0xff]  }
  0xe4   : > { %5185 = vmatpush2.bf16.msra.mxu0 %v15168_v35  ;;  %v15217_v8 = vld [vmem:[%s18103_s5 + $0x6e4] ss:$16 sps:$4 sm:$0xff]   ;;  %v15215_v12 = vld [vmem:[%s18103_s5 + $0x6e0] ss:$16 sps:$4 sm:$0xff]   ;;  %v513_v35 = vld [vmem:[%s18126_s30 + $0x28] sm:$0xff] }
  0xe5   : > { %5226 = vmatpush2.bf16.msra.mxu1 %v15169_v36  ;;  %5186 = vmatprep.subr.bf16.mxu0 %v15170_v37  ;;  %v15220_v13 = vld [vmem:[%s18103_s5 + $0x4c4] ss:$16 sps:$4 sm:$0xff]   ;;  %v15218_v15 = vld [vmem:[%s18103_s5 + $0x4c0] ss:$16 sps:$4 sm:$0xff]  }
  0xe6   : > { %5227 = vmatprep.subr.bf16.mxu1 %v15172_v38  ;;  %v15223_v14 = vld [vmem:[%s18103_s5 + $0x6c4] ss:$16 sps:$4 sm:$0xff]   ;;  %v15221_v16 = vld [vmem:[%s18103_s5 + $0x6c0] ss:$16 sps:$4 sm:$0xff]   ;;  %v18240_v38 = vpack.c.bf16 %v513_v35, %v513_v35 }
  0xe7   : > { %v15226_v17 = vld [vmem:[%s18103_s5 + $0x4a4] ss:$16 sps:$4 sm:$0xff]   ;;  %v15224_v19 = vld [vmem:[%s18103_s5 + $0x4a0] ss:$16 sps:$4 sm:$0xff]  }
  0xe8   : > { %5187 = vmatpush2.bf16.msra.mxu0 %v15174_v39  ;;  %v15229_v18 = vld [vmem:[%s18103_s5 + $0x6a4] ss:$16 sps:$4 sm:$0xff]   ;;  %v15227_v20 = vld [vmem:[%s18103_s5 + $0x6a0] ss:$16 sps:$4 sm:$0xff]   ;;  %v515_v39 = vld [vmem:[%s18126_s30 + $0x38] sm:$0xff] }
  0xe9   : > { %5228 = vmatpush2.bf16.msra.mxu1 %v15175_v40  ;;  %5188 = vmatprep.subr.bf16.mxu0 %v15176_v41  ;;  %v15232_v21 = vld [vmem:[%s18103_s5 + $0x484] ss:$16 sps:$4 sm:$0xff]   ;;  %v15230_v23 = vld [vmem:[%s18103_s5 + $0x480] ss:$16 sps:$4 sm:$0xff]   ;;  %v18244_v41 = vpack.c.bf16 %v515_v39, %v515_v39 }
  0xea   : > { %5229 = vmatprep.subr.bf16.mxu1 %v15178_v42  ;;  %v15235_v22 = vld [vmem:[%s18103_s5 + $0x684] ss:$16 sps:$4 sm:$0xff]   ;;  %v15233_v24 = vld [vmem:[%s18103_s5 + $0x680] ss:$16 sps:$4 sm:$0xff]  }
  0xeb   : > { %v15238_v25 = vld [vmem:[%s18103_s5 + $0x464] ss:$16 sps:$4 sm:$0xff]   ;;  %v15236_v27 = vld [vmem:[%s18103_s5 + $0x460] ss:$16 sps:$4 sm:$0xff]  }
  0xec   : > { %5189 = vmatpush2.bf16.msra.mxu0 %v15180_v43  ;;  %v15241_v26 = vld [vmem:[%s18103_s5 + $0x664] ss:$16 sps:$4 sm:$0xff]   ;;  %v15239_v28 = vld [vmem:[%s18103_s5 + $0x660] ss:$16 sps:$4 sm:$0xff]  }
  0xed   : > { %5230 = vmatpush2.bf16.msra.mxu1 %v15181_v44  ;;  %5190 = vmatprep.subr.bf16.mxu0 %v15182_v45  ;;  %v15244_v29 = vld [vmem:[%s18103_s5 + $0x444] ss:$16 sps:$4 sm:$0xff]   ;;  %v15242_v31 = vld [vmem:[%s18103_s5 + $0x440] ss:$16 sps:$4 sm:$0xff]  }
  0xee   : > { %5231 = vmatprep.subr.bf16.mxu1 %v15184_v46  ;;  %v15247_v30 = vld [vmem:[%s18103_s5 + $0x644] ss:$16 sps:$4 sm:$0xff]   ;;  %v15245_v32 = vld [vmem:[%s18103_s5 + $0x640] ss:$16 sps:$4 sm:$0xff]  }
  0xef   : > { %v15250_v33 = vld [vmem:[%s18103_s5 + $0x424] ss:$16 sps:$4 sm:$0xff]   ;;  %v15248_v36 = vld [vmem:[%s18103_s5 + $0x420] ss:$16 sps:$4 sm:$0xff]  }
  0xf0   : > { %5191 = vmatpush2.bf16.msra.mxu0 %v15186_v48  ;;  %v15253_v34 = vld [vmem:[%s18103_s5 + $0x624] ss:$16 sps:$4 sm:$0xff]   ;;  %v15251_v37 = vld [vmem:[%s18103_s5 + $0x620] ss:$16 sps:$4 sm:$0xff]  }
  0xf1   : > { %5232 = vmatpush2.bf16.msra.mxu1 %v15187_v49  ;;  %5192 = vmatprep.subr.bf16.mxu0 %v15188_v52  ;;  %v15256_v40 = vld [vmem:[%s18103_s5 + $0x404] ss:$16 sps:$4 sm:$0xff]   ;;  %v15254_v43 = vld [vmem:[%s18103_s5 + $0x400] ss:$16 sps:$4 sm:$0xff]  }
  0xf2   : > { %5233 = vmatprep.subr.bf16.mxu1 %v15190_v54  ;;  %v15259_v42 = vld [vmem:[%s18103_s5 + $0x604] ss:$16 sps:$4 sm:$0xff]   ;;  %v15257_v44 = vld [vmem:[%s18103_s5 + $0x600] ss:$16 sps:$4 sm:$0xff]  }
  0xf3   : > { %v15262_v45 = vld [vmem:[%s18103_s5 + $0x5e4] ss:$16 sps:$4 sm:$0xff]   ;;  %v15260_v47 = vld [vmem:[%s18103_s5 + $0x5e0] ss:$16 sps:$4 sm:$0xff]  }
  0xf4   : > { %5193 = vmatpush2.bf16.msra.mxu0 %v15192_v55  ;;  %v15265_v46 = vld [vmem:[%s18103_s5 + $0x7e4] ss:$16 sps:$4 sm:$0xff]   ;;  %v15263_v48 = vld [vmem:[%s18103_s5 + $0x7e0] ss:$16 sps:$4 sm:$0xff]  }
  0xf5   : > { %5234 = vmatpush2.bf16.msra.mxu1 %v15193_v56  ;;  %5194 = vmatprep.subr.bf16.mxu0 %v15194_v57  ;;  %v15268_v49 = vld [vmem:[%s18103_s5 + $0x5c4] ss:$16 sps:$4 sm:$0xff]   ;;  %v15266_v52 = vld [vmem:[%s18103_s5 + $0x5c0] ss:$16 sps:$4 sm:$0xff]  }
  0xf6   : > { %5235 = vmatprep.subr.bf16.mxu1 %v15196_v58  ;;  %v15271_v51 = vld [vmem:[%s18103_s5 + $0x7c4] ss:$16 sps:$4 sm:$0xff]   ;;  %v15269_v54 = vld [vmem:[%s18103_s5 + $0x7c0] ss:$16 sps:$4 sm:$0xff]  }
  0xf7   : > { %v15274_v55 = vld [vmem:[%s18103_s5 + $0x5a4] ss:$16 sps:$4 sm:$0xff]   ;;  %v15272_v57 = vld [vmem:[%s18103_s5 + $0x5a0] ss:$16 sps:$4 sm:$0xff]  }
  0xf8   : > { %5195 = vmatpush2.bf16.msra.mxu0 %v15198_v59  ;;  %v15277_v56 = vld [vmem:[%s18103_s5 + $0x7a4] ss:$16 sps:$4 sm:$0xff]   ;;  %v15275_v58 = vld [vmem:[%s18103_s5 + $0x7a0] ss:$16 sps:$4 sm:$0xff]  }
  0xf9   : > { %5236 = vmatpush2.bf16.msra.mxu1 %v15199_v60  ;;  %5196 = vmatprep.subr.bf16.mxu0 %v15200_v61  ;;  %v15280_v59 = vld [vmem:[%s18103_s5 + $0x584] ss:$16 sps:$4 sm:$0xff]   ;;  %v15278_v61 = vld [vmem:[%s18103_s5 + $0x580] ss:$16 sps:$4 sm:$0xff]  }
  0xfa   : > { %5237 = vmatprep.subr.bf16.mxu1 %v15202_v62  ;;  %v15283_v60 = vld [vmem:[%s18103_s5 + $0x784] ss:$16 sps:$4 sm:$0xff]   ;;  %v15281_v62 = vld [vmem:[%s18103_s5 + $0x780] ss:$16 sps:$4 sm:$0xff]  }
  0xfb   : > { %v15290_v5 = vld [vmem:[%s18103_s5 + $0x540] ss:$16 sps:$4 sm:$0xff]   ;;  %v15331_v39 = vld [vmem:[%s18103_s5 + $0xa84] ss:$16 sps:$4 sm:$0xff]  }
  0xfc   : > { %5197 = vmatpush2.bf16.msra.mxu0 %v15204_v63  ;;  %v15286_v63 = vld [vmem:[%s18103_s5 + $0x564] ss:$16 sps:$4 sm:$0xff]   ;;  %v15293_v6 = vld [vmem:[%s18103_s5 + $0x740] ss:$16 sps:$4 sm:$0xff]  }
  0xfd   : > { %5238 = vmatpush2.bf16.msra.mxu1 %v15205_v0  ;;  %5198 = vmatprep.subr.bf16.mxu0 %v15206_v1  ;;  %v15289_v0 = vld [vmem:[%s18103_s5 + $0x764] ss:$16 sps:$4 sm:$0xff]   ;;  %v15284_v1 = vld [vmem:[%s18103_s5 + $0x560] ss:$16 sps:$4 sm:$0xff]  }
  0xfe   : > { %5239 = vmatprep.subr.bf16.mxu1 %v15208_v2  ;;  %v15287_v2 = vld [vmem:[%s18103_s5 + $0x760] ss:$16 sps:$4 sm:$0xff]  }
  0xff   : > { %v15320_v35 = vld [vmem:[%s18103_s5 + $0x8a0] ss:$16 sps:$4 sm:$0xff]  }
 0x100   : > { %5199 = vmatpush2.bf16.msra.mxu0 %v15210_v3  ;;  %v15292_v3 = vld [vmem:[%s18103_s5 + $0x544] ss:$16 sps:$4 sm:$0xff]  }
 0x101   : > { %5240 = vmatpush2.bf16.msra.mxu1 %v15211_v4  ;;  %5250 = vmatprep.subr.bf16.mxu0 %v15214_v7  ;;  %v15295_v4 = vld [vmem:[%s18103_s5 + $0x744] ss:$16 sps:$4 sm:$0xff]  }
 0x102   : > { %5291 = vmatprep.subr.bf16.mxu1 %v15217_v8  ;;  %v15298_v7 = vld [vmem:[%s18103_s5 + $0x524] ss:$16 sps:$4 sm:$0xff]  }
 0x103   : > { %5201 = vmatmul.mubr.bf16.vlgmr.msra.gmra.mxu0 %v18207_v9  ;;  %v15301_v8 = vld [vmem:[%s18103_s5 + $0x724] ss:$16 sps:$4 sm:$0xff]  }
 0x104   : > { %5242 = vmatmul.mubr.bf16.vlgmr.msra.gmra.mxu1 %v18209_v10  ;;  %5251 = vmatpush1.bf16.msra.mxu0 %v15212_v11  ;;  %v15296_v11 = vld [vmem:[%s18103_s5 + $0x520] ss:$16 sps:$4 sm:$0xff]  }
 0x105   : > { %5292 = vmatpush1.bf16.msra.mxu1 %v15215_v12  ;;  %5252 = vmatprep.subr.bf16.mxu0 %v15220_v13  ;;  %v15299_v12 = vld [vmem:[%s18103_s5 + $0x720] ss:$16 sps:$4 sm:$0xff]   ;;  %v15304_v13 = vld [vmem:[%s18103_s5 + $0x504] ss:$16 sps:$4 sm:$0xff]  }
 0x106   : > { %5293 = vmatprep.subr.bf16.mxu1 %v15223_v14  ;;  %5282 = vmatprep.mubr.bf16.mxu0 %v18240_v38  ;;  %v15307_v14 = vld [vmem:[%s18103_s5 + $0x704] ss:$16 sps:$4 sm:$0xff]  }
 0x107   : > { %5323 = vmatprep.mubr.bf16.mxu1 %v18244_v41 }
 0x108   : > { %5253 = vmatpush1.bf16.msra.mxu0 %v15218_v15  ;;  %v15302_v15 = vld [vmem:[%s18103_s5 + $0x500] ss:$16 sps:$4 sm:$0xff]  }
 0x109   : > { %5294 = vmatpush1.bf16.msra.mxu1 %v15221_v16  ;;  %5254 = vmatprep.subr.bf16.mxu0 %v15226_v17  ;;  %v15305_v16 = vld [vmem:[%s18103_s5 + $0x700] ss:$16 sps:$4 sm:$0xff]  }
 0x10a   : > { %5295 = vmatprep.subr.bf16.mxu1 %v15229_v18  ;;  %v512_v17 = vld [vmem:[%s18126_s30 + $0x20] sm:$0xff]  ;;  %v514_v18 = vld [vmem:[%s18126_s30 + $0x30] sm:$0xff] }
 0x10c   : > { %5255 = vmatpush1.bf16.msra.mxu0 %v15224_v19  ;;  %v15310_v19 = vld [vmem:[%s18103_s5 + $0x8e4] ss:$16 sps:$4 sm:$0xff]  }
 0x10d   : > { %5296 = vmatpush1.bf16.msra.mxu1 %v15227_v20  ;;  %5256 = vmatprep.subr.bf16.mxu0 %v15232_v21  ;;  %v15313_v20 = vld [vmem:[%s18103_s5 + $0xae4] ss:$16 sps:$4 sm:$0xff]   ;;  %v18287_v21 = vpack.c.bf16 %v512_v17, %v512_v17  ;;  %v15380_v17 = vld [vmem:[%s18103_s5 + $0x960] ss:$16 sps:$4 sm:$0xff]  }
 0x10e   : > { %5297 = vmatprep.subr.bf16.mxu1 %v15235_v22  ;;  %v18289_v22 = vpack.c.bf16 %v514_v18, %v514_v18  ;;  %v15383_v18 = vld [vmem:[%s18103_s5 + $0xb60] ss:$16 sps:$4 sm:$0xff]  }
 0x110   : > { %5257 = vmatpush1.bf16.msra.mxu0 %v15230_v23  ;;  %v15308_v23 = vld [vmem:[%s18103_s5 + $0x8e0] ss:$16 sps:$4 sm:$0xff]  }
 0x111   : > { %5298 = vmatpush1.bf16.msra.mxu1 %v15233_v24  ;;  %5258 = vmatprep.subr.bf16.mxu0 %v15238_v25  ;;  %v15311_v24 = vld [vmem:[%s18103_s5 + $0xae0] ss:$16 sps:$4 sm:$0xff]   ;;  %v15316_v25 = vld [vmem:[%s18103_s5 + $0x8c4] ss:$16 sps:$4 sm:$0xff]  }
 0x112   : > { %5299 = vmatprep.subr.bf16.mxu1 %v15241_v26  ;;  %v15319_v26 = vld [vmem:[%s18103_s5 + $0xac4] ss:$16 sps:$4 sm:$0xff]  }
 0x114   : > { %5259 = vmatpush1.bf16.msra.mxu0 %v15236_v27  ;;  %v517_v27 = vld [vmem:[%s18126_s30 + $0x48] sm:$0xff] }
 0x115   : > { %5300 = vmatpush1.bf16.msra.mxu1 %v15239_v28  ;;  %5260 = vmatprep.subr.bf16.mxu0 %v15244_v29  ;;  %v15314_v28 = vld [vmem:[%s18103_s5 + $0x8c0] ss:$16 sps:$4 sm:$0xff]  }
 0x116   : > { %5301 = vmatprep.subr.bf16.mxu1 %v15247_v30  ;;  %v15317_v29 = vld [vmem:[%s18103_s5 + $0xac0] ss:$16 sps:$4 sm:$0xff]   ;;  %v18300_v30 = vpack.c.bf16 %v517_v27, %v517_v27 }
 0x117   : > { %v15392_v27 = vld [vmem:[%s18103_s5 + $0x920] ss:$16 sps:$4 sm:$0xff]  }
 0x118   : > { %5261 = vmatpush1.bf16.msra.mxu0 %v15242_v31  ;;  %v519_v31 = vld [vmem:[%s18126_s30 + $0x58] sm:$0xff] }
 0x119   : > { %5302 = vmatpush1.bf16.msra.mxu1 %v15245_v32  ;;  %5262 = vmatprep.subr.bf16.mxu0 %v15250_v33  ;;  %v15322_v32 = vld [vmem:[%s18103_s5 + $0x8a4] ss:$16 sps:$4 sm:$0xff]   ;;  %v18304_v33 = vpack.c.bf16 %v519_v31, %v519_v31 }
 0x11a   : > { %5303 = vmatprep.subr.bf16.mxu1 %v15253_v34  ;;  %v15325_v34 = vld [vmem:[%s18103_s5 + $0xaa4] ss:$16 sps:$4 sm:$0xff]  }
 0x11b   : > { %v15403_v31 = vld [vmem:[%s18103_s5 + $0xb04] ss:$16 sps:$4 sm:$0xff]  }
 0x11c   : > { %5263 = vmatpush1.bf16.msra.mxu0 %v15248_v36  ;;  %v15323_v36 = vld [vmem:[%s18103_s5 + $0xaa0] ss:$16 sps:$4 sm:$0xff]  }
 0x11d   : > { %5304 = vmatpush1.bf16.msra.mxu1 %v15251_v37  ;;  %5264 = vmatprep.subr.bf16.mxu0 %v15256_v40  ;;  %v15328_v37 = vld [vmem:[%s18103_s5 + $0x884] ss:$16 sps:$4 sm:$0xff]   ;;  %v15326_v40 = vld [vmem:[%s18103_s5 + $0x880] ss:$16 sps:$4 sm:$0xff]  }
 0x11e   : > { %5305 = vmatprep.subr.bf16.mxu1 %v15259_v42  ;;  %v15329_v42 = vld [vmem:[%s18103_s5 + $0xa80] ss:$16 sps:$4 sm:$0xff]  }
 0x120   : > { %5265 = vmatpush1.bf16.msra.mxu0 %v15254_v43  ;;  %v15334_v43 = vld [vmem:[%s18103_s5 + $0x864] ss:$16 sps:$4 sm:$0xff]  }
 0x121   : > { %5306 = vmatpush1.bf16.msra.mxu1 %v15257_v44  ;;  %5266 = vmatprep.subr.bf16.mxu0 %v15262_v45  ;;  %v15337_v44 = vld [vmem:[%s18103_s5 + $0xa64] ss:$16 sps:$4 sm:$0xff]   ;;  %v15332_v45 = vld [vmem:[%s18103_s5 + $0x860] ss:$16 sps:$4 sm:$0xff]  }
 0x122   : > { %5307 = vmatprep.subr.bf16.mxu1 %v15265_v46  ;;  %v15335_v46 = vld [vmem:[%s18103_s5 + $0xa60] ss:$16 sps:$4 sm:$0xff]  }
 0x124   : > { %5267 = vmatpush2.bf16.msra.mxu0 %v15260_v47  ;;  %v15340_v47 = vld [vmem:[%s18103_s5 + $0x844] ss:$16 sps:$4 sm:$0xff]  }
 0x125   : > { %5308 = vmatpush2.bf16.msra.mxu1 %v15263_v48  ;;  %5268 = vmatprep.subr.bf16.mxu0 %v15268_v49  ;;  %v15343_v48 = vld [vmem:[%s18103_s5 + $0xa44] ss:$16 sps:$4 sm:$0xff]   ;;  %v15338_v49 = vld [vmem:[%s18103_s5 + $0x840] ss:$16 sps:$4 sm:$0xff]  }
 0x126   : > { %5309 = vmatprep.subr.bf16.mxu1 %v15271_v51  ;;  %v15341_v51 = vld [vmem:[%s18103_s5 + $0xa40] ss:$16 sps:$4 sm:$0xff]  }
 0x128   : > { %5269 = vmatpush2.bf16.msra.mxu0 %v15266_v52  ;;  %v15346_v52 = vld [vmem:[%s18103_s5 + $0x824] ss:$16 sps:$4 sm:$0xff]  }
 0x129   : > { %5310 = vmatpush2.bf16.msra.mxu1 %v15269_v54  ;;  %5270 = vmatprep.subr.bf16.mxu0 %v15274_v55  ;;  %v15349_v54 = vld [vmem:[%s18103_s5 + $0xa24] ss:$16 sps:$4 sm:$0xff]   ;;  %v15344_v55 = vld [vmem:[%s18103_s5 + $0x820] ss:$16 sps:$4 sm:$0xff]  }
 0x12a   : > { %5311 = vmatprep.subr.bf16.mxu1 %v15277_v56  ;;  %v15347_v56 = vld [vmem:[%s18103_s5 + $0xa20] ss:$16 sps:$4 sm:$0xff]  }
 0x12c   : > { %5271 = vmatpush2.bf16.msra.mxu0 %v15272_v57  ;;  %v15352_v57 = vld [vmem:[%s18103_s5 + $0x804] ss:$16 sps:$4 sm:$0xff]  }
 0x12d   : > { %5312 = vmatpush2.bf16.msra.mxu1 %v15275_v58  ;;  %5272 = vmatprep.subr.bf16.mxu0 %v15280_v59  ;;  %v15355_v58 = vld [vmem:[%s18103_s5 + $0xa04] ss:$16 sps:$4 sm:$0xff]   ;;  %v15350_v59 = vld [vmem:[%s18103_s5 + $0x800] ss:$16 sps:$4 sm:$0xff]  }
 0x12e   : > { %5313 = vmatprep.subr.bf16.mxu1 %v15283_v60  ;;  %v15353_v60 = vld [vmem:[%s18103_s5 + $0xa00] ss:$16 sps:$4 sm:$0xff]  }
 0x130   : > { %5273 = vmatpush2.bf16.msra.mxu0 %v15278_v61  ;;  %v15358_v61 = vld [vmem:[%s18103_s5 + $0x9e4] ss:$16 sps:$4 sm:$0xff]  }
 0x131   : > { %5314 = vmatpush2.bf16.msra.mxu1 %v15281_v62  ;;  %5274 = vmatprep.subr.bf16.mxu0 %v15286_v63  ;;  %v15361_v62 = vld [vmem:[%s18103_s5 + $0xbe4] ss:$16 sps:$4 sm:$0xff]   ;;  %v15356_v63 = vld [vmem:[%s18103_s5 + $0x9e0] ss:$16 sps:$4 sm:$0xff]  }
 0x132   : > { %5315 = vmatprep.subr.bf16.mxu1 %v15289_v0  ;;  %v15359_v0 = vld [vmem:[%s18103_s5 + $0xbe0] ss:$16 sps:$4 sm:$0xff]  }
 0x134   : > { %5275 = vmatpush2.bf16.msra.mxu0 %v15284_v1  ;;  %v15364_v1 = vld [vmem:[%s18103_s5 + $0x9c4] ss:$16 sps:$4 sm:$0xff]  }
 0x135   : > { %5316 = vmatpush2.bf16.msra.mxu1 %v15287_v2  ;;  %5276 = vmatprep.subr.bf16.mxu0 %v15292_v3  ;;  %v15367_v2 = vld [vmem:[%s18103_s5 + $0xbc4] ss:$16 sps:$4 sm:$0xff]   ;;  %v15362_v3 = vld [vmem:[%s18103_s5 + $0x9c0] ss:$16 sps:$4 sm:$0xff]  }
 0x136   : > { %5317 = vmatprep.subr.bf16.mxu1 %v15295_v4  ;;  %v15365_v4 = vld [vmem:[%s18103_s5 + $0xbc0] ss:$16 sps:$4 sm:$0xff]  }
 0x138   : > { %5277 = vmatpush2.bf16.msra.mxu0 %v15290_v5  ;;  %v15370_v5 = vld [vmem:[%s18103_s5 + $0x9a4] ss:$16 sps:$4 sm:$0xff]  }
 0x139   : > { %5318 = vmatpush2.bf16.msra.mxu1 %v15293_v6  ;;  %5278 = vmatprep.subr.bf16.mxu0 %v15298_v7  ;;  %v15373_v6 = vld [vmem:[%s18103_s5 + $0xba4] ss:$16 sps:$4 sm:$0xff]   ;;  %v15368_v7 = vld [vmem:[%s18103_s5 + $0x9a0] ss:$16 sps:$4 sm:$0xff]  }
 0x13a   : > { %5319 = vmatprep.subr.bf16.mxu1 %v15301_v8  ;;  %v15371_v8 = vld [vmem:[%s18103_s5 + $0xba0] ss:$16 sps:$4 sm:$0xff]  }
 0x13c   : > { %5279 = vmatpush2.bf16.msra.mxu0 %v15296_v11  ;;  %v15376_v11 = vld [vmem:[%s18103_s5 + $0x984] ss:$16 sps:$4 sm:$0xff]  }
 0x13d   : > { %5320 = vmatpush2.bf16.msra.mxu1 %v15299_v12  ;;  %5280 = vmatprep.subr.bf16.mxu0 %v15304_v13  ;;  %v15379_v12 = vld [vmem:[%s18103_s5 + $0xb84] ss:$16 sps:$4 sm:$0xff]   ;;  %v15374_v13 = vld [vmem:[%s18103_s5 + $0x980] ss:$16 sps:$4 sm:$0xff]  }
 0x13e   : > { %5321 = vmatprep.subr.bf16.mxu1 %v15307_v14  ;;  %v15377_v14 = vld [vmem:[%s18103_s5 + $0xb80] ss:$16 sps:$4 sm:$0xff]  }
 0x140   : > { %5281 = vmatpush2.bf16.msra.mxu0 %v15302_v15  ;;  %v15382_v15 = vld [vmem:[%s18103_s5 + $0x964] ss:$16 sps:$4 sm:$0xff]  }
 0x141   : > { %5322 = vmatpush2.bf16.msra.mxu1 %v15305_v16  ;;  %5332 = vmatprep.subr.bf16.mxu0 %v15310_v19  ;;  %v15385_v16 = vld [vmem:[%s18103_s5 + $0xb64] ss:$16 sps:$4 sm:$0xff]  }
 0x142   : > { %5373 = vmatprep.subr.bf16.mxu1 %v15313_v20  ;;  %v15388_v19 = vld [vmem:[%s18103_s5 + $0x944] ss:$16 sps:$4 sm:$0xff]  }
 0x143   : > { %5283 = vmatmul.mubr.bf16.vlgmr.msra.gmra.mxu0 %v18287_v21  ;;  %v15391_v20 = vld [vmem:[%s18103_s5 + $0xb44] ss:$16 sps:$4 sm:$0xff]  }
 0x144   : > { %5324 = vmatmul.mubr.bf16.vlgmr.msra.gmra.mxu1 %v18289_v22  ;;  %5333 = vmatpush1.bf16.msra.mxu0 %v15308_v23  ;;  %v15386_v23 = vld [vmem:[%s18103_s5 + $0x940] ss:$16 sps:$4 sm:$0xff]  }
 0x145   : > { %5374 = vmatpush1.bf16.msra.mxu1 %v15311_v24  ;;  %5334 = vmatprep.subr.bf16.mxu0 %v15316_v25  ;;  %v15389_v24 = vld [vmem:[%s18103_s5 + $0xb40] ss:$16 sps:$4 sm:$0xff]   ;;  %v15394_v25 = vld [vmem:[%s18103_s5 + $0x924] ss:$16 sps:$4 sm:$0xff]  }
 0x146   : > { %5375 = vmatprep.subr.bf16.mxu1 %v15319_v26  ;;  %5364 = vmatprep.mubr.bf16.mxu0 %v18300_v30  ;;  %v15397_v26 = vld [vmem:[%s18103_s5 + $0xb24] ss:$16 sps:$4 sm:$0xff]  }
 0x147   : > { %5405 = vmatprep.mubr.bf16.mxu1 %v18304_v33 }
 0x148   : > { %5335 = vmatpush1.bf16.msra.mxu0 %v15314_v28  ;;  %v15395_v28 = vld [vmem:[%s18103_s5 + $0xb20] ss:$16 sps:$4 sm:$0xff]  }
 0x149   : > { %5376 = vmatpush1.bf16.msra.mxu1 %v15317_v29  ;;  %5336 = vmatprep.subr.bf16.mxu0 %v15322_v32  ;;  %v15400_v29 = vld [vmem:[%s18103_s5 + $0x904] ss:$16 sps:$4 sm:$0xff]   ;;  %v15398_v32 = vld [vmem:[%s18103_s5 + $0x900] ss:$16 sps:$4 sm:$0xff]  }
 0x14a   : > { %5377 = vmatprep.subr.bf16.mxu1 %v15325_v34  ;;  %v15401_v34 = vld [vmem:[%s18103_s5 + $0xb00] ss:$16 sps:$4 sm:$0xff]  }
 0x14c   : > { %5337 = vmatpush1.bf16.msra.mxu0 %v15320_v35  ;;  %v516_v35 = vld [vmem:[%s18126_s30 + $0x40] sm:$0xff] }
 0x14d   : > { %5378 = vmatpush1.bf16.msra.mxu1 %v15323_v36  ;;  %5338 = vmatprep.subr.bf16.mxu0 %v15328_v37  ;;  %v518_v36 = vld [vmem:[%s18126_s30 + $0x50] sm:$0xff] }
 0x14e   : > { %5379 = vmatprep.subr.bf16.mxu1 %v15331_v39  ;;  %v15406_v37 = vld [vmem:[%s18103_s5 + $0xce4] ss:$16 sps:$4 sm:$0xff]  }
 0x14f   : > { %v15409_v39 = vld [vmem:[%s18103_s5 + $0xee4] ss:$16 sps:$4 sm:$0xff]  }
 0x150   : > { %5339 = vmatpush1.bf16.msra.mxu0 %v15326_v40  ;;  %v15404_v40 = vld [vmem:[%s18103_s5 + $0xce0] ss:$16 sps:$4 sm:$0xff]  }
 0x151   : > { %5380 = vmatpush1.bf16.msra.mxu1 %v15329_v42  ;;  %5340 = vmatprep.subr.bf16.mxu0 %v15334_v43  ;;  %v15407_v42 = vld [vmem:[%s18103_s5 + $0xee0] ss:$16 sps:$4 sm:$0xff]   ;;  %v18369_v43 = vpack.c.bf16 %v516_v35, %v516_v35 }
 0x152   : > { %5381 = vmatprep.subr.bf16.mxu1 %v15337_v44  ;;  %v18371_v44 = vpack.c.bf16 %v518_v36, %v518_v36  ;;  %v15470_v35 = vld [vmem:[%s18103_s5 + $0xd80] ss:$16 sps:$4 sm:$0xff]  }
 0x153   : > { %v15473_v36 = vld [vmem:[%s18103_s5 + $0xf80] ss:$16 sps:$4 sm:$0xff]  }
 0x154   : > { %5341 = vmatpush1.bf16.msra.mxu0 %v15332_v45  ;;  %v521_v45 = vld [vmem:[%s18126_s30 + $0x68] sm:$0xff] }
 0x155   : > { %5382 = vmatpush1.bf16.msra.mxu1 %v15335_v46  ;;  %5342 = vmatprep.subr.bf16.mxu0 %v15340_v47  ;;  %v523_v46 = vld [vmem:[%s18126_s30 + $0x78] sm:$0xff]  ;;  %v15412_v47 = vld [vmem:[%s18103_s5 + $0xcc4] ss:$16 sps:$4 sm:$0xff]  }
 0x156   : > { %5383 = vmatprep.subr.bf16.mxu1 %v15343_v48  ;;  %v15415_v48 = vld [vmem:[%s18103_s5 + $0xec4] ss:$16 sps:$4 sm:$0xff]  }
 0x158   : > { %5343 = vmatpush1.bf16.msra.mxu0 %v15338_v49  ;;  %v18377_v49 = vpack.c.bf16 %v521_v45, %v521_v45  ;;  %v15484_v45 = vld [vmem:[%s18103_s5 + $0xd44] ss:$16 sps:$4 sm:$0xff]  }
 0x159   : > { %5384 = vmatpush1.bf16.msra.mxu1 %v15341_v51  ;;  %5344 = vmatprep.subr.bf16.mxu0 %v15346_v52  ;;  %v18379_v51 = vpack.c.bf16 %v523_v46, %v523_v46  ;;  %v15410_v52 = vld [vmem:[%s18103_s5 + $0xcc0] ss:$16 sps:$4 sm:$0xff]   ;;  %v15487_v46 = vld [vmem:[%s18103_s5 + $0xf44] ss:$16 sps:$4 sm:$0xff]  }
 0x15a   : > { %5385 = vmatprep.subr.bf16.mxu1 %v15349_v54  ;;  %v15413_v54 = vld [vmem:[%s18103_s5 + $0xec0] ss:$16 sps:$4 sm:$0xff]  }
 0x15c   : > { %5345 = vmatpush1.bf16.msra.mxu0 %v15344_v55  ;;  %v15418_v55 = vld [vmem:[%s18103_s5 + $0xca4] ss:$16 sps:$4 sm:$0xff]  }
 0x15d   : > { %5386 = vmatpush1.bf16.msra.mxu1 %v15347_v56  ;;  %5346 = vmatprep.subr.bf16.mxu0 %v15352_v57  ;;  %v15421_v56 = vld [vmem:[%s18103_s5 + $0xea4] ss:$16 sps:$4 sm:$0xff]   ;;  %v15416_v57 = vld [vmem:[%s18103_s5 + $0xca0] ss:$16 sps:$4 sm:$0xff]  }
 0x15e   : > { %5387 = vmatprep.subr.bf16.mxu1 %v15355_v58  ;;  %v15419_v58 = vld [vmem:[%s18103_s5 + $0xea0] ss:$16 sps:$4 sm:$0xff]  }
 0x160   : > { %5347 = vmatpush1.bf16.msra.mxu0 %v15350_v59  ;;  %v15424_v59 = vld [vmem:[%s18103_s5 + $0xc84] ss:$16 sps:$4 sm:$0xff]  }
 0x161   : > { %5388 = vmatpush1.bf16.msra.mxu1 %v15353_v60  ;;  %5348 = vmatprep.subr.bf16.mxu0 %v15358_v61  ;;  %v15427_v60 = vld [vmem:[%s18103_s5 + $0xe84] ss:$16 sps:$4 sm:$0xff]   ;;  %v15422_v61 = vld [vmem:[%s18103_s5 + $0xc80] ss:$16 sps:$4 sm:$0xff]  }
 0x162   : > { %5389 = vmatprep.subr.bf16.mxu1 %v15361_v62  ;;  %v15425_v62 = vld [vmem:[%s18103_s5 + $0xe80] ss:$16 sps:$4 sm:$0xff]  }
 0x164   : > { %5349 = vmatpush2.bf16.msra.mxu0 %v15356_v63  ;;  %v15430_v63 = vld [vmem:[%s18103_s5 + $0xc64] ss:$16 sps:$4 sm:$0xff]  }
 0x165   : > { %5390 = vmatpush2.bf16.msra.mxu1 %v15359_v0  ;;  %5350 = vmatprep.subr.bf16.mxu0 %v15364_v1  ;;  %v15433_v0 = vld [vmem:[%s18103_s5 + $0xe64] ss:$16 sps:$4 sm:$0xff]   ;;  %v15428_v1 = vld [vmem:[%s18103_s5 + $0xc60] ss:$16 sps:$4 sm:$0xff]  }
 0x166   : > { %5391 = vmatprep.subr.bf16.mxu1 %v15367_v2  ;;  %v15431_v2 = vld [vmem:[%s18103_s5 + $0xe60] ss:$16 sps:$4 sm:$0xff]  }
 0x168   : > { %5351 = vmatpush2.bf16.msra.mxu0 %v15362_v3  ;;  %v15436_v3 = vld [vmem:[%s18103_s5 + $0xc44] ss:$16 sps:$4 sm:$0xff]  }
 0x169   : > { %5392 = vmatpush2.bf16.msra.mxu1 %v15365_v4  ;;  %5352 = vmatprep.subr.bf16.mxu0 %v15370_v5  ;;  %v15439_v4 = vld [vmem:[%s18103_s5 + $0xe44] ss:$16 sps:$4 sm:$0xff]   ;;  %v15434_v5 = vld [vmem:[%s18103_s5 + $0xc40] ss:$16 sps:$4 sm:$0xff]  }
 0x16a   : > { %5393 = vmatprep.subr.bf16.mxu1 %v15373_v6  ;;  %v15437_v6 = vld [vmem:[%s18103_s5 + $0xe40] ss:$16 sps:$4 sm:$0xff]  }
 0x16c   : > { %5353 = vmatpush2.bf16.msra.mxu0 %v15368_v7  ;;  %v15442_v7 = vld [vmem:[%s18103_s5 + $0xc24] ss:$16 sps:$4 sm:$0xff]  }
 0x16d   : > { %5394 = vmatpush2.bf16.msra.mxu1 %v15371_v8  ;;  %5354 = vmatprep.subr.bf16.mxu0 %v15376_v11  ;;  %v15445_v8 = vld [vmem:[%s18103_s5 + $0xe24] ss:$16 sps:$4 sm:$0xff]   ;;  %v15440_v11 = vld [vmem:[%s18103_s5 + $0xc20] ss:$16 sps:$4 sm:$0xff]  }
 0x16e   : > { %5395 = vmatprep.subr.bf16.mxu1 %v15379_v12  ;;  %v15443_v12 = vld [vmem:[%s18103_s5 + $0xe20] ss:$16 sps:$4 sm:$0xff]  }
 0x170   : > { %5355 = vmatpush2.bf16.msra.mxu0 %v15374_v13  ;;  %v15448_v13 = vld [vmem:[%s18103_s5 + $0xc04] ss:$16 sps:$4 sm:$0xff]  }
 0x171   : > { %5396 = vmatpush2.bf16.msra.mxu1 %v15377_v14  ;;  %5356 = vmatprep.subr.bf16.mxu0 %v15382_v15  ;;  %v15451_v14 = vld [vmem:[%s18103_s5 + $0xe04] ss:$16 sps:$4 sm:$0xff]   ;;  %v15446_v15 = vld [vmem:[%s18103_s5 + $0xc00] ss:$16 sps:$4 sm:$0xff]  }
 0x172   : > { %5397 = vmatprep.subr.bf16.mxu1 %v15385_v16  ;;  %v15449_v16 = vld [vmem:[%s18103_s5 + $0xe00] ss:$16 sps:$4 sm:$0xff]  }
 0x174   : > { %5357 = vmatpush2.bf16.msra.mxu0 %v15380_v17  ;;  %v15454_v17 = vld [vmem:[%s18103_s5 + $0xde4] ss:$16 sps:$4 sm:$0xff]  }
 0x175   : > { %5398 = vmatpush2.bf16.msra.mxu1 %v15383_v18  ;;  %5358 = vmatprep.subr.bf16.mxu0 %v15388_v19  ;;  %v15457_v18 = vld [vmem:[%s18103_s5 + $0xfe4] ss:$16 sps:$4 sm:$0xff]   ;;  %v15452_v19 = vld [vmem:[%s18103_s5 + $0xde0] ss:$16 sps:$4 sm:$0xff]  }
 0x176   : > { %5399 = vmatprep.subr.bf16.mxu1 %v15391_v20  ;;  %v15455_v20 = vld [vmem:[%s18103_s5 + $0xfe0] ss:$16 sps:$4 sm:$0xff]  }
 0x178   : > { %5359 = vmatpush2.bf16.msra.mxu0 %v15386_v23  ;;  %v15460_v23 = vld [vmem:[%s18103_s5 + $0xdc4] ss:$16 sps:$4 sm:$0xff]  }
 0x179   : > { %5400 = vmatpush2.bf16.msra.mxu1 %v15389_v24  ;;  %5360 = vmatprep.subr.bf16.mxu0 %v15394_v25  ;;  %v15463_v24 = vld [vmem:[%s18103_s5 + $0xfc4] ss:$16 sps:$4 sm:$0xff]   ;;  %v15458_v25 = vld [vmem:[%s18103_s5 + $0xdc0] ss:$16 sps:$4 sm:$0xff]  }
 0x17a   : > { %5401 = vmatprep.subr.bf16.mxu1 %v15397_v26  ;;  %v15461_v26 = vld [vmem:[%s18103_s5 + $0xfc0] ss:$16 sps:$4 sm:$0xff]  }
 0x17c   : > { %5361 = vmatpush2.bf16.msra.mxu0 %v15392_v27  ;;  %v15466_v27 = vld [vmem:[%s18103_s5 + $0xda4] ss:$16 sps:$4 sm:$0xff]  }
 0x17d   : > { %5402 = vmatpush2.bf16.msra.mxu1 %v15395_v28  ;;  %5362 = vmatprep.subr.bf16.mxu0 %v15400_v29  ;;  %v15469_v28 = vld [vmem:[%s18103_s5 + $0xfa4] ss:$16 sps:$4 sm:$0xff]   ;;  %v15464_v29 = vld [vmem:[%s18103_s5 + $0xda0] ss:$16 sps:$4 sm:$0xff]  }
 0x17e   : > { %5403 = vmatprep.subr.bf16.mxu1 %v15403_v31  ;;  %v15467_v31 = vld [vmem:[%s18103_s5 + $0xfa0] ss:$16 sps:$4 sm:$0xff]  }
 0x180   : > { %5363 = vmatpush2.bf16.msra.mxu0 %v15398_v32  ;;  %v15472_v32 = vld [vmem:[%s18103_s5 + $0xd84] ss:$16 sps:$4 sm:$0xff]  }
 0x181   : > { %5404 = vmatpush2.bf16.msra.mxu1 %v15401_v34  ;;  %5414 = vmatprep.subr.bf16.mxu0 %v15406_v37  ;;  %v15475_v34 = vld [vmem:[%s18103_s5 + $0xf84] ss:$16 sps:$4 sm:$0xff]  }
 0x182   : > { %5455 = vmatprep.subr.bf16.mxu1 %v15409_v39  ;;  %v15478_v37 = vld [vmem:[%s18103_s5 + $0xd64] ss:$16 sps:$4 sm:$0xff]  }
 0x183   : > { %5365 = vmatmul.mubr.bf16.vlgmr.msra.gmra.mxu0 %v18369_v43  ;;  %v15481_v39 = vld [vmem:[%s18103_s5 + $0xf64] ss:$16 sps:$4 sm:$0xff]  }
 0x184   : > { %5406 = vmatmul.mubr.bf16.vlgmr.msra.gmra.mxu1 %v18371_v44  ;;  %5415 = vmatpush1.bf16.msra.mxu0 %v15404_v40  ;;  %v15476_v40 = vld [vmem:[%s18103_s5 + $0xd60] ss:$16 sps:$4 sm:$0xff]  }
 0x185   : > { %5456 = vmatpush1.bf16.msra.mxu1 %v15407_v42  ;;  %5416 = vmatprep.subr.bf16.mxu0 %v15412_v47  ;;  %v15479_v42 = vld [vmem:[%s18103_s5 + $0xf60] ss:$16 sps:$4 sm:$0xff]  }
 0x186   : > { %5457 = vmatprep.subr.bf16.mxu1 %v15415_v48  ;;  %5446 = vmatprep.mubr.bf16.mxu0 %v18377_v49  ;;  %v15482_v47 = vld [vmem:[%s18103_s5 + $0xd40] ss:$16 sps:$4 sm:$0xff]  }
 0x187   : > { %5487 = vmatprep.mubr.bf16.mxu1 %v18379_v51  ;;  %v15485_v48 = vld [vmem:[%s18103_s5 + $0xf40] ss:$16 sps:$4 sm:$0xff]  }
 0x188   : > { %5417 = vmatpush1.bf16.msra.mxu0 %v15410_v52  ;;  %v15490_v52 = vld [vmem:[%s18103_s5 + $0xd24] ss:$16 sps:$4 sm:$0xff]  }
 0x189   : > { %5458 = vmatpush1.bf16.msra.mxu1 %v15413_v54  ;;  %5418 = vmatprep.subr.bf16.mxu0 %v15418_v55  ;;  %v15493_v54 = vld [vmem:[%s18103_s5 + $0xf24] ss:$16 sps:$4 sm:$0xff]   ;;  %v15488_v55 = vld [vmem:[%s18103_s5 + $0xd20] ss:$16 sps:$4 sm:$0xff]  }
 0x18a   : > { %5459 = vmatprep.subr.bf16.mxu1 %v15421_v56  ;;  %v15491_v56 = vld [vmem:[%s18103_s5 + $0xf20] ss:$16 sps:$4 sm:$0xff]  }
 0x18c   : > { %5419 = vmatpush1.bf16.msra.mxu0 %v15416_v57  ;;  %v15496_v57 = vld [vmem:[%s18103_s5 + $0xd04] ss:$16 sps:$4 sm:$0xff]  }
 0x18d   : > { %5460 = vmatpush1.bf16.msra.mxu1 %v15419_v58  ;;  %5420 = vmatprep.subr.bf16.mxu0 %v15424_v59  ;;  %v15499_v58 = vld [vmem:[%s18103_s5 + $0xf04] ss:$16 sps:$4 sm:$0xff]   ;;  %v15494_v59 = vld [vmem:[%s18103_s5 + $0xd00] ss:$16 sps:$4 sm:$0xff]  }
 0x18e   : > { %5461 = vmatprep.subr.bf16.mxu1 %v15427_v60  ;;  %v15497_v60 = vld [vmem:[%s18103_s5 + $0xf00] ss:$16 sps:$4 sm:$0xff]  }
 0x190   : > { %5421 = vmatpush1.bf16.msra.mxu0 %v15422_v61  ;;  %v520_v61 = vld [vmem:[%s18126_s30 + $0x60] sm:$0xff] }
 0x191   : > { %5462 = vmatpush1.bf16.msra.mxu1 %v15425_v62  ;;  %5422 = vmatprep.subr.bf16.mxu0 %v15430_v63  ;;  %v522_v62 = vld [vmem:[%s18126_s30 + $0x70] sm:$0xff] }
 0x192   : > { %5463 = vmatprep.subr.bf16.mxu1 %v15433_v0  ;;  %v15502_v63 = vld [vmem:[%s18103_s5 + $0x10e4] ss:$16 sps:$4 sm:$0xff]  }
 0x193   : > { %v15505_v0 = vld [vmem:[%s18103_s5 + $0x12e4] ss:$16 sps:$4 sm:$0xff]  }
 0x194   : > { %5423 = vmatpush1.bf16.msra.mxu0 %v15428_v1  ;;  %v15500_v1 = vld [vmem:[%s18103_s5 + $0x10e0] ss:$16 sps:$4 sm:$0xff]  }
 0x195   : > { %5464 = vmatpush1.bf16.msra.mxu1 %v15431_v2  ;;  %5424 = vmatprep.subr.bf16.mxu0 %v15436_v3  ;;  %v15503_v2 = vld [vmem:[%s18103_s5 + $0x12e0] ss:$16 sps:$4 sm:$0xff]   ;;  %v18449_v3 = vpack.c.bf16 %v520_v61, %v520_v61  ;;  %v15550_v61 = vld [vmem:[%s18103_s5 + $0x11e4] ss:$16 sps:$4 sm:$0xff]  }
 0x196   : > { %5465 = vmatprep.subr.bf16.mxu1 %v15439_v4  ;;  %v18451_v4 = vpack.c.bf16 %v522_v62, %v522_v62  ;;  %v15553_v62 = vld [vmem:[%s18103_s5 + $0x13e4] ss:$16 sps:$4 sm:$0xff]  }
 0x198   : > { %5425 = vmatpush1.bf16.msra.mxu0 %v15434_v5  ;;  %v525_v5 = vld [vmem:[%s18126_s30 + $0x88] sm:$0xff] }
 0x199   : > { %5466 = vmatpush1.bf16.msra.mxu1 %v15437_v6  ;;  %5426 = vmatprep.subr.bf16.mxu0 %v15442_v7  ;;  %v527_v6 = vld [vmem:[%s18126_s30 + $0x98] sm:$0xff]  ;;  %v15508_v7 = vld [vmem:[%s18103_s5 + $0x10c4] ss:$16 sps:$4 sm:$0xff]  }
 0x19a   : > { %5467 = vmatprep.subr.bf16.mxu1 %v15445_v8  ;;  %v15511_v8 = vld [vmem:[%s18103_s5 + $0x12c4] ss:$16 sps:$4 sm:$0xff]  }
 0x19c   : > { %5427 = vmatpush1.bf16.msra.mxu0 %v15440_v11  ;;  %v18457_v11 = vpack.c.bf16 %v525_v5, %v525_v5  ;;  %v15554_v5 = vld [vmem:[%s18103_s5 + $0x11c0] ss:$16 sps:$4 sm:$0xff]  }
 0x19d   : > { %5468 = vmatpush1.bf16.msra.mxu1 %v15443_v12  ;;  %5428 = vmatprep.subr.bf16.mxu0 %v15448_v13  ;;  %v18459_v12 = vpack.c.bf16 %v527_v6, %v527_v6  ;;  %v15557_v6 = vld [vmem:[%s18103_s5 + $0x13c0] ss:$16 sps:$4 sm:$0xff]  }
 0x19e   : > { %5469 = vmatprep.subr.bf16.mxu1 %v15451_v14 }
 0x1a0   : > { %5429 = vmatpush1.bf16.msra.mxu0 %v15446_v15  ;;  %v15506_v15 = vld [vmem:[%s18103_s5 + $0x10c0] ss:$16 sps:$4 sm:$0xff]  }
 0x1a1   : > { %5470 = vmatpush1.bf16.msra.mxu1 %v15449_v16  ;;  %5430 = vmatprep.subr.bf16.mxu0 %v15454_v17  ;;  %v15509_v16 = vld [vmem:[%s18103_s5 + $0x12c0] ss:$16 sps:$4 sm:$0xff]  }
 0x1a2   : > { %5471 = vmatprep.subr.bf16.mxu1 %v15457_v18  ;;  %v15514_v18 = vld [vmem:[%s18103_s5 + $0x10a4] ss:$16 sps:$4 sm:$0xff]  }
 0x1a4   : > { %5431 = vmatpush2.bf16.msra.mxu0 %v15452_v19 }
 0x1a5   : > { %5472 = vmatpush2.bf16.msra.mxu1 %v15455_v20  ;;  %5432 = vmatprep.subr.bf16.mxu0 %v15460_v23  ;;  %v15517_v23 = vld [vmem:[%s18103_s5 + $0x12a4] ss:$16 sps:$4 sm:$0xff]  }
 0x1a6   : > { %5473 = vmatprep.subr.bf16.mxu1 %v15463_v24 }
 0x1a8   : > { %5433 = vmatpush2.bf16.msra.mxu0 %v15458_v25 }
 0x1a9   : > { %5474 = vmatpush2.bf16.msra.mxu1 %v15461_v26  ;;  %5434 = vmatprep.subr.bf16.mxu0 %v15466_v27  ;;  %v15512_v27 = vld [vmem:[%s18103_s5 + $0x10a0] ss:$16 sps:$4 sm:$0xff]  }
 0x1aa   : > { %5475 = vmatprep.subr.bf16.mxu1 %v15469_v28  ;;  %v15515_v28 = vld [vmem:[%s18103_s5 + $0x12a0] ss:$16 sps:$4 sm:$0xff]  }
 0x1ac   : > { %5435 = vmatpush2.bf16.msra.mxu0 %v15464_v29  ;;  %v15520_v29 = vld [vmem:[%s18103_s5 + $0x1084] ss:$16 sps:$4 sm:$0xff]  }
 0x1ad   : > { %5476 = vmatpush2.bf16.msra.mxu1 %v15467_v31  ;;  %5436 = vmatprep.subr.bf16.mxu0 %v15472_v32 }
 0x1ae   : > { %5477 = vmatprep.subr.bf16.mxu1 %v15475_v34  ;;  %v15523_v34 = vld [vmem:[%s18103_s5 + $0x1284] ss:$16 sps:$4 sm:$0xff]  }
 0x1b0   : > { %5437 = vmatpush2.bf16.msra.mxu0 %v15470_v35  ;;  %v15518_v35 = vld [vmem:[%s18103_s5 + $0x1080] ss:$16 sps:$4 sm:$0xff]  }
 0x1b1   : > { %5478 = vmatpush2.bf16.msra.mxu1 %v15473_v36  ;;  %5438 = vmatprep.subr.bf16.mxu0 %v15478_v37  ;;  %v15521_v36 = vld [vmem:[%s18103_s5 + $0x1280] ss:$16 sps:$4 sm:$0xff]   ;;  %v15526_v37 = vld [vmem:[%s18103_s5 + $0x1064] ss:$16 sps:$4 sm:$0xff]  }
 0x1b2   : > { %5479 = vmatprep.subr.bf16.mxu1 %v15481_v39  ;;  %v15529_v39 = vld [vmem:[%s18103_s5 + $0x1264] ss:$16 sps:$4 sm:$0xff]  }
 0x1b4   : > { %5439 = vmatpush2.bf16.msra.mxu0 %v15476_v40  ;;  %v15524_v40 = vld [vmem:[%s18103_s5 + $0x1060] ss:$16 sps:$4 sm:$0xff]  }
 0x1b5   : > { %5480 = vmatpush2.bf16.msra.mxu1 %v15479_v42  ;;  %5440 = vmatprep.subr.bf16.mxu0 %v15484_v45  ;;  %v15527_v42 = vld [vmem:[%s18103_s5 + $0x1260] ss:$16 sps:$4 sm:$0xff]   ;;  %v15532_v45 = vld [vmem:[%s18103_s5 + $0x1044] ss:$16 sps:$4 sm:$0xff]  }
 0x1b6   : > { %5481 = vmatprep.subr.bf16.mxu1 %v15487_v46  ;;  %v15535_v46 = vld [vmem:[%s18103_s5 + $0x1244] ss:$16 sps:$4 sm:$0xff]  }
 0x1b8   : > { %5441 = vmatpush2.bf16.msra.mxu0 %v15482_v47  ;;  %v15530_v47 = vld [vmem:[%s18103_s5 + $0x1040] ss:$16 sps:$4 sm:$0xff]  }
 0x1b9   : > { %5482 = vmatpush2.bf16.msra.mxu1 %v15485_v48  ;;  %5442 = vmatprep.subr.bf16.mxu0 %v15490_v52  ;;  %v15533_v48 = vld [vmem:[%s18103_s5 + $0x1240] ss:$16 sps:$4 sm:$0xff]   ;;  %v15538_v52 = vld [vmem:[%s18103_s5 + $0x1024] ss:$16 sps:$4 sm:$0xff]  }
 0x1ba   : > { %5483 = vmatprep.subr.bf16.mxu1 %v15493_v54  ;;  %v15541_v54 = vld [vmem:[%s18103_s5 + $0x1224] ss:$16 sps:$4 sm:$0xff]  }
 0x1bc   : > { %5443 = vmatpush2.bf16.msra.mxu0 %v15488_v55  ;;  %v15536_v55 = vld [vmem:[%s18103_s5 + $0x1020] ss:$16 sps:$4 sm:$0xff]  }
 0x1bd   : > { %5484 = vmatpush2.bf16.msra.mxu1 %v15491_v56  ;;  %5444 = vmatprep.subr.bf16.mxu0 %v15496_v57  ;;  %v15539_v56 = vld [vmem:[%s18103_s5 + $0x1220] ss:$16 sps:$4 sm:$0xff]   ;;  %v15544_v57 = vld [vmem:[%s18103_s5 + $0x1004] ss:$16 sps:$4 sm:$0xff]  }
 0x1be   : > { %5485 = vmatprep.subr.bf16.mxu1 %v15499_v58  ;;  %v15547_v58 = vld [vmem:[%s18103_s5 + $0x1204] ss:$16 sps:$4 sm:$0xff]  }
 0x1c0   : > { %5445 = vmatpush2.bf16.msra.mxu0 %v15494_v59  ;;  %v15542_v59 = vld [vmem:[%s18103_s5 + $0x1000] ss:$16 sps:$4 sm:$0xff]  }
 0x1c1   : > { %5486 = vmatpush2.bf16.msra.mxu1 %v15497_v60  ;;  %5496 = vmatprep.subr.bf16.mxu0 %v15502_v63  ;;  %v15545_v60 = vld [vmem:[%s18103_s5 + $0x1200] ss:$16 sps:$4 sm:$0xff]  }
 0x1c2   : > { %5537 = vmatprep.subr.bf16.mxu1 %v15505_v0  ;;  %v15548_v63 = vld [vmem:[%s18103_s5 + $0x11e0] ss:$16 sps:$4 sm:$0xff]  }
 0x1c3   : > { %v5202_v13 = vpop.f32.mrf.mxu0  ;;  %5447 = vmatmul.mubr.bf16.vlgmr.msra.gmra.mxu0 %v18449_v3  ;;  %v15551_v0 = vld [vmem:[%s18103_s5 + $0x13e0] ss:$16 sps:$4 sm:$0xff]  }
 0x1c4   : > { %v5243_v14 = vpop.f32.mrf.mxu1  ;;  %5488 = vmatmul.mubr.bf16.vlgmr.msra.gmra.mxu1 %v18451_v4  ;;  %5497 = vmatpush1.bf16.msra.mxu0 %v15500_v1  ;;  %v15556_v1 = vld [vmem:[%s18103_s5 + $0x11c4] ss:$16 sps:$4 sm:$0xff]  }
 0x1c5   : > { %v18465_v17 = vadd.f32 %v5243_v14, %v5202_v13  ;;  %5538 = vmatpush1.bf16.msra.mxu1 %v15503_v2  ;;  %v5204_v19 = vpop.f32.mrf.mxu0  ;;  %5498 = vmatprep.subr.bf16.mxu0 %v15508_v7  ;;  %v15559_v2 = vld [vmem:[%s18103_s5 + $0x13c4] ss:$16 sps:$4 sm:$0xff]   ;;  %v15560_v13 = vld [vmem:[%s18103_s5 + $0x11a0] ss:$16 sps:$4 sm:$0xff]  }
 0x1c6   : > { %v5245_v20 = vpop.f32.mrf.mxu1  ;;  %5539 = vmatprep.subr.bf16.mxu1 %v15511_v8  ;;  %5528 = vmatprep.mubr.bf16.mxu0 %v18457_v11  ;;  %v15562_v7 = vld [vmem:[%s18103_s5 + $0x11a4] ss:$16 sps:$4 sm:$0xff]   ;;  %v15563_v14 = vld [vmem:[%s18103_s5 + $0x13a0] ss:$16 sps:$4 sm:$0xff]  }
 0x1c7   : > { %v18469_v24 = vadd.f32 %v5245_v20, %v5204_v19  ;;  %5569 = vmatprep.mubr.bf16.mxu1 %v18459_v12  ;;  %v5206_v25 = vpop.f32.mrf.mxu0  ;;  %v15565_v8 = vld [vmem:[%s18103_s5 + $0x13a4] ss:$16 sps:$4 sm:$0xff]   ;;  %v15569_v19 = vld [vmem:[%s18103_s5 + $0x1380] ss:$16 sps:$4 sm:$0xff]  }
 0x1c8   : > { %v5247_v26 = vpop.f32.mrf.mxu1  ;;  %5499 = vmatpush1.bf16.msra.mxu0 %v15506_v15  ;;  %v15568_v15 = vld [vmem:[%s18103_s5 + $0x1184] ss:$16 sps:$4 sm:$0xff]   ;;  %v15572_v25 = vld [vmem:[%s18103_s5 + $0x1160] ss:$16 sps:$4 sm:$0xff]  }
 0x1c9   : > { %5540 = vmatpush1.bf16.msra.mxu1 %v15509_v16  ;;  %v5207_v31 = vpop.f32.mrf.mxu0  ;;  %5500 = vmatprep.subr.bf16.mxu0 %v15514_v18  ;;  %v15571_v16 = vld [vmem:[%s18103_s5 + $0x1384] ss:$16 sps:$4 sm:$0xff]   ;;  %v15566_v18 = vld [vmem:[%s18103_s5 + $0x1180] ss:$16 sps:$4 sm:$0xff]  }
 0x1ca   : > { %v5248_v32 = vpop.f32.mrf.mxu1  ;;  %5541 = vmatprep.subr.bf16.mxu1 %v15517_v23  ;;  %v15574_v20 = vld [vmem:[%s18103_s5 + $0x1164] ss:$16 sps:$4 sm:$0xff]   ;;  %v15575_v26 = vld [vmem:[%s18103_s5 + $0x1360] ss:$16 sps:$4 sm:$0xff]  }
 0x1cb   : > { %v15577_v23 = vld [vmem:[%s18103_s5 + $0x1364] ss:$16 sps:$4 sm:$0xff]   ;;  %v15581_v31 = vld [vmem:[%s18103_s5 + $0x1340] ss:$16 sps:$4 sm:$0xff]  }
 0x1cc   : > { %5501 = vmatpush1.bf16.msra.mxu0 %v15512_v27  ;;  %v15580_v27 = vld [vmem:[%s18103_s5 + $0x1144] ss:$16 sps:$4 sm:$0xff]  }
 0x1cd   : > { %5542 = vmatpush1.bf16.msra.mxu1 %v15515_v28  ;;  %5502 = vmatprep.subr.bf16.mxu0 %v15520_v29  ;;  %v15583_v28 = vld [vmem:[%s18103_s5 + $0x1344] ss:$16 sps:$4 sm:$0xff]   ;;  %v15578_v29 = vld [vmem:[%s18103_s5 + $0x1140] ss:$16 sps:$4 sm:$0xff]  }
 0x1ce   : > { %5543 = vmatprep.subr.bf16.mxu1 %v15523_v34  ;;  %v15586_v32 = vld [vmem:[%s18103_s5 + $0x1124] ss:$16 sps:$4 sm:$0xff]  }
 0x1cf   : > { %v15589_v34 = vld [vmem:[%s18103_s5 + $0x1324] ss:$16 sps:$4 sm:$0xff]  }
 0x1d0   : > { %5503 = vmatpush1.bf16.msra.mxu0 %v15518_v35  ;;  %v15584_v35 = vld [vmem:[%s18103_s5 + $0x1120] ss:$16 sps:$4 sm:$0xff]  }
 0x1d1   : > { %5544 = vmatpush1.bf16.msra.mxu1 %v15521_v36  ;;  %5504 = vmatprep.subr.bf16.mxu0 %v15526_v37  ;;  %v15587_v36 = vld [vmem:[%s18103_s5 + $0x1320] ss:$16 sps:$4 sm:$0xff]   ;;  %v15592_v37 = vld [vmem:[%s18103_s5 + $0x1104] ss:$16 sps:$4 sm:$0xff]  }
 0x1d2   : > { %5545 = vmatprep.subr.bf16.mxu1 %v15529_v39  ;;  %v15595_v39 = vld [vmem:[%s18103_s5 + $0x1304] ss:$16 sps:$4 sm:$0xff]  }
 0x1d4   : > { %5505 = vmatpush1.bf16.msra.mxu0 %v15524_v40  ;;  %v15590_v40 = vld [vmem:[%s18103_s5 + $0x1100] ss:$16 sps:$4 sm:$0xff]  }
 0x1d5   : > { %5546 = vmatpush1.bf16.msra.mxu1 %v15527_v42  ;;  %5506 = vmatprep.subr.bf16.mxu0 %v15532_v45  ;;  %v15593_v42 = vld [vmem:[%s18103_s5 + $0x1300] ss:$16 sps:$4 sm:$0xff]  }
 0x1d6   : > { %5547 = vmatprep.subr.bf16.mxu1 %v15535_v46  ;;  %v524_v45 = vld [vmem:[%s18126_s30 + $0x80] sm:$0xff]  ;;  %v526_v46 = vld [vmem:[%s18126_s30 + $0x90] sm:$0xff] }
 0x1d8   : > { %5507 = vmatpush1.bf16.msra.mxu0 %v15530_v47  ;;  %v15598_v47 = vld [vmem:[%s18103_s5 + $0x14e4] ss:$16 sps:$4 sm:$0xff]  }
 0x1d9   : > { %5548 = vmatpush1.bf16.msra.mxu1 %v15533_v48  ;;  %5508 = vmatprep.subr.bf16.mxu0 %v15538_v52  ;;  %v15601_v48 = vld [vmem:[%s18103_s5 + $0x16e4] ss:$16 sps:$4 sm:$0xff]   ;;  %v529_v52 = vld [vmem:[%s18126_s30 + $0xa8] sm:$0xff] }
 0x1da   : > { %5549 = vmatprep.subr.bf16.mxu1 %v15541_v54  ;;  %v531_v54 = vld [vmem:[%s18126_s30 + $0xb8] sm:$0xff] }
 0x1dc   : > { %5509 = vmatpush1.bf16.msra.mxu0 %v15536_v55  ;;  %v15596_v55 = vld [vmem:[%s18103_s5 + $0x14e0] ss:$16 sps:$4 sm:$0xff]  }
 0x1dd   : > { %5550 = vmatpush1.bf16.msra.mxu1 %v15539_v56  ;;  %5510 = vmatprep.subr.bf16.mxu0 %v15544_v57  ;;  %v15599_v56 = vld [vmem:[%s18103_s5 + $0x16e0] ss:$16 sps:$4 sm:$0xff]   ;;  %v18535_v57 = vpack.c.bf16 %v524_v45, %v524_v45 }
 0x1de   : > { %5551 = vmatprep.subr.bf16.mxu1 %v15547_v58  ;;  %v18537_v58 = vpack.c.bf16 %v526_v46, %v526_v46  ;;  %v15632_v45 = vld [vmem:[%s18103_s5 + $0x1420] ss:$16 sps:$4 sm:$0xff]  }
 0x1df   : > { %v15635_v46 = vld [vmem:[%s18103_s5 + $0x1620] ss:$16 sps:$4 sm:$0xff]  }
 0x1e0   : > { %5511 = vmatpush1.bf16.msra.mxu0 %v15542_v59  ;;  %v15604_v59 = vld [vmem:[%s18103_s5 + $0x14c4] ss:$16 sps:$4 sm:$0xff]  }
 0x1e1   : > { %5552 = vmatpush1.bf16.msra.mxu1 %v15545_v60  ;;  %5512 = vmatprep.subr.bf16.mxu0 %v15550_v61  ;;  %v15607_v60 = vld [vmem:[%s18103_s5 + $0x16c4] ss:$16 sps:$4 sm:$0xff]   ;;  %v15602_v61 = vld [vmem:[%s18103_s5 + $0x14c0] ss:$16 sps:$4 sm:$0xff]  }
 0x1e2   : > { %5553 = vmatprep.subr.bf16.mxu1 %v15553_v62  ;;  %v15605_v62 = vld [vmem:[%s18103_s5 + $0x16c0] ss:$16 sps:$4 sm:$0xff]  }
 0x1e4   : > { %5513 = vmatpush2.bf16.msra.mxu0 %v15548_v63  ;;  %v18543_v63 = vpack.c.bf16 %v529_v52, %v529_v52  ;;  %v15638_v52 = vld [vmem:[%s18103_s5 + $0x1400] ss:$16 sps:$4 sm:$0xff]  }
 0x1e5   : > { %5554 = vmatpush2.bf16.msra.mxu1 %v15551_v0  ;;  %5514 = vmatprep.subr.bf16.mxu0 %v15556_v1  ;;  %v18545_v0 = vpack.c.bf16 %v531_v54, %v531_v54  ;;  %v15641_v54 = vld [vmem:[%s18103_s5 + $0x1600] ss:$16 sps:$4 sm:$0xff]  }
 0x1e6   : > { %5555 = vmatprep.subr.bf16.mxu1 %v15559_v2 }
 0x1e8   : > { %5515 = vmatpush2.bf16.msra.mxu0 %v15554_v5 }
 0x1e9   : > { %5556 = vmatpush2.bf16.msra.mxu1 %v15557_v6  ;;  %5516 = vmatprep.subr.bf16.mxu0 %v15562_v7 }
 0x1ea   : > { %5557 = vmatprep.subr.bf16.mxu1 %v15565_v8  ;;  %v15610_v8 = vld [vmem:[%s18103_s5 + $0x14a4] ss:$16 sps:$4 sm:$0xff]  }
 0x1ec   : > { %5517 = vmatpush2.bf16.msra.mxu0 %v15560_v13  ;;  %v15613_v13 = vld [vmem:[%s18103_s5 + $0x16a4] ss:$16 sps:$4 sm:$0xff]  }
 0x1ed   : > { %5558 = vmatpush2.bf16.msra.mxu1 %v15563_v14  ;;  %5518 = vmatprep.subr.bf16.mxu0 %v15568_v15 }
 0x1ee   : > { %5559 = vmatprep.subr.bf16.mxu1 %v15571_v16  ;;  %v15608_v16 = vld [vmem:[%s18103_s5 + $0x14a0] ss:$16 sps:$4 sm:$0xff]  }
 0x1f0   : > { %5519 = vmatpush2.bf16.msra.mxu0 %v15566_v18  ;;  %v15611_v18 = vld [vmem:[%s18103_s5 + $0x16a0] ss:$16 sps:$4 sm:$0xff]  }
 0x1f1   : > { %5560 = vmatpush2.bf16.msra.mxu1 %v15569_v19  ;;  %5520 = vmatprep.subr.bf16.mxu0 %v15574_v20 }
 0x1f2   : > { %5561 = vmatprep.subr.bf16.mxu1 %v15577_v23 }
 0x1f4   : > { %5521 = vmatpush2.bf16.msra.mxu0 %v15572_v25 }
 0x1f5   : > { %5562 = vmatpush2.bf16.msra.mxu1 %v15575_v26  ;;  %5522 = vmatprep.subr.bf16.mxu0 %v15580_v27  ;;  %v15619_v26 = vld [vmem:[%s18103_s5 + $0x1684] ss:$16 sps:$4 sm:$0xff]   ;;  %v15614_v27 = vld [vmem:[%s18103_s5 + $0x1480] ss:$16 sps:$4 sm:$0xff]  }
 0x1f6   : > { %5563 = vmatprep.subr.bf16.mxu1 %v15583_v28  ;;  %v15617_v28 = vld [vmem:[%s18103_s5 + $0x1680] ss:$16 sps:$4 sm:$0xff]  }
 0x1f8   : > { %5523 = vmatpush2.bf16.msra.mxu0 %v15578_v29  ;;  %v15622_v29 = vld [vmem:[%s18103_s5 + $0x1464] ss:$16 sps:$4 sm:$0xff]  }
 0x1f9   : > { %5564 = vmatpush2.bf16.msra.mxu1 %v15581_v31  ;;  %5524 = vmatprep.subr.bf16.mxu0 %v15586_v32  ;;  %v15625_v31 = vld [vmem:[%s18103_s5 + $0x1664] ss:$16 sps:$4 sm:$0xff]   ;;  %v15620_v32 = vld [vmem:[%s18103_s5 + $0x1460] ss:$16 sps:$4 sm:$0xff]  }
 0x1fa   : > { %5565 = vmatprep.subr.bf16.mxu1 %v15589_v34  ;;  %v15623_v34 = vld [vmem:[%s18103_s5 + $0x1660] ss:$16 sps:$4 sm:$0xff]  }
 0x1fc   : > { %5525 = vmatpush2.bf16.msra.mxu0 %v15584_v35  ;;  %v15628_v35 = vld [vmem:[%s18103_s5 + $0x1444] ss:$16 sps:$4 sm:$0xff]  }
 0x1fd   : > { %5566 = vmatpush2.bf16.msra.mxu1 %v15587_v36  ;;  %5526 = vmatprep.subr.bf16.mxu0 %v15592_v37  ;;  %v15631_v36 = vld [vmem:[%s18103_s5 + $0x1644] ss:$16 sps:$4 sm:$0xff]   ;;  %v15626_v37 = vld [vmem:[%s18103_s5 + $0x1440] ss:$16 sps:$4 sm:$0xff]  }
 0x1fe   : > { %5567 = vmatprep.subr.bf16.mxu1 %v15595_v39  ;;  %v15629_v39 = vld [vmem:[%s18103_s5 + $0x1640] ss:$16 sps:$4 sm:$0xff]  }
 0x200   : > { %5527 = vmatpush2.bf16.msra.mxu0 %v15590_v40  ;;  %v15634_v40 = vld [vmem:[%s18103_s5 + $0x1424] ss:$16 sps:$4 sm:$0xff]  }
 0x201   : > { %5568 = vmatpush2.bf16.msra.mxu1 %v15593_v42  ;;  %5578 = vmatprep.subr.bf16.mxu0 %v15598_v47  ;;  %v15637_v42 = vld [vmem:[%s18103_s5 + $0x1624] ss:$16 sps:$4 sm:$0xff]  }
 0x202   : > { %5619 = vmatprep.subr.bf16.mxu1 %v15601_v48  ;;  %v15640_v47 = vld [vmem:[%s18103_s5 + $0x1404] ss:$16 sps:$4 sm:$0xff]  }
 0x203   : > { %v5284_v1 = vpop.f32.mrf.mxu0  ;;  %5529 = vmatmul.mubr.bf16.vlgmr.msra.gmra.mxu0 %v18535_v57  ;;  %v15643_v48 = vld [vmem:[%s18103_s5 + $0x1604] ss:$16 sps:$4 sm:$0xff]  }
 0x204   : > { %v5325_v2 = vpop.f32.mrf.mxu1  ;;  %5570 = vmatmul.mubr.bf16.vlgmr.msra.gmra.mxu1 %v18537_v58  ;;  %v5285_v5 = vadd.f32 %v5284_v1, %v18465_v17  ;;  %5579 = vmatpush1.bf16.msra.mxu0 %v15596_v55  ;;  %v15646_v55 = vld [vmem:[%s18103_s5 + $0x15e4] ss:$16 sps:$4 sm:$0xff]   ;;  %v15650_v1 = vld [vmem:[%s18103_s5 + $0x15c0] ss:$16 sps:$4 sm:$0xff]  }
 0x205   : > { %5620 = vmatpush1.bf16.msra.mxu1 %v15599_v56  ;;  %v5286_v6 = vpop.f32.mrf.mxu0  ;;  %5580 = vmatprep.subr.bf16.mxu0 %v15604_v59  ;;  %v15649_v56 = vld [vmem:[%s18103_s5 + $0x17e4] ss:$16 sps:$4 sm:$0xff]   ;;  %v15644_v59 = vld [vmem:[%s18103_s5 + $0x15e0] ss:$16 sps:$4 sm:$0xff]  }
 0x206   : > { %v5327_v7 = vpop.f32.mrf.mxu1  ;;  %5621 = vmatprep.subr.bf16.mxu1 %v15607_v60  ;;  %v18552_v14 = vadd.f32 %v5325_v2, %v5285_v5  ;;  %v5287_v15 = vadd.f32 %v5286_v6, %v18469_v24  ;;  %5610 = vmatprep.mubr.bf16.mxu0 %v18543_v63  ;;  %v15616_v24 = vld [vmem:[%s18103_s5 + $0x1484] ss:$16 sps:$4 sm:$0xff]   ;;  %v15647_v60 = vld [vmem:[%s18103_s5 + $0x17e0] ss:$16 sps:$4 sm:$0xff]  }
 0x207   : > { %5651 = vmatprep.mubr.bf16.mxu1 %v18545_v0  ;;  %v5288_v17 = vpop.f32.mrf.mxu0  ;;  %v15653_v2 = vld [vmem:[%s18103_s5 + $0x17c0] ss:$16 sps:$4 sm:$0xff]   ;;  %v15658_v5 = vld [vmem:[%s18103_s5 + $0x15a4] ss:$16 sps:$4 sm:$0xff]  }
 0x208   : > { %v5329_v19 = vpop.f32.mrf.mxu1  ;;  %v18559_v20 = vadd.f32 %v5327_v7, %v5287_v15  ;;  %5581 = vmatpush1.bf16.msra.mxu0 %v15602_v61  ;;  %v15652_v61 = vld [vmem:[%s18103_s5 + $0x15c4] ss:$16 sps:$4 sm:$0xff]   ;;  %v15656_v7 = vld [vmem:[%s18103_s5 + $0x15a0] ss:$16 sps:$4 sm:$0xff]  }
 0x209   : > { %5622 = vmatpush1.bf16.msra.mxu1 %v15605_v62  ;;  %v5289_v23 = vpop.f32.mrf.mxu0  ;;  %5582 = vmatprep.subr.bf16.mxu0 %v15610_v8  ;;  %v15655_v62 = vld [vmem:[%s18103_s5 + $0x17c4] ss:$16 sps:$4 sm:$0xff]   ;;  %v15659_v8 = vld [vmem:[%s18103_s5 + $0x17a0] ss:$16 sps:$4 sm:$0xff]  }
 0x20a   : > { %v5330_v25 = vpop.f32.mrf.mxu1  ;;  %5623 = vmatprep.subr.bf16.mxu1 %v15613_v13  ;;  %v15661_v6 = vld [vmem:[%s18103_s5 + $0x17a4] ss:$16 sps:$4 sm:$0xff]   ;;  %v15668_v23 = vld [vmem:[%s18103_s5 + $0x1560] ss:$16 sps:$4 sm:$0xff]  }
 0x20b   : > { %v15664_v13 = vld [vmem:[%s18103_s5 + $0x1584] ss:$16 sps:$4 sm:$0xff]   ;;  %v15671_v25 = vld [vmem:[%s18103_s5 + $0x1760] ss:$16 sps:$4 sm:$0xff]  }
 0x20c   : > { %5583 = vmatpush1.bf16.msra.mxu0 %v15608_v16  ;;  %v15667_v15 = vld [vmem:[%s18103_s5 + $0x1784] ss:$16 sps:$4 sm:$0xff]   ;;  %v15662_v16 = vld [vmem:[%s18103_s5 + $0x1580] ss:$16 sps:$4 sm:$0xff]  }
 0x20d   : > { %5624 = vmatpush1.bf16.msra.mxu1 %v15611_v18  ;;  %5584 = vmatprep.subr.bf16.mxu0 %v15616_v24  ;;  %v15665_v18 = vld [vmem:[%s18103_s5 + $0x1780] ss:$16 sps:$4 sm:$0xff]   ;;  %v15670_v17 = vld [vmem:[%s18103_s5 + $0x1564] ss:$16 sps:$4 sm:$0xff]  }
 0x20e   : > { %5625 = vmatprep.subr.bf16.mxu1 %v15619_v26  ;;  %v15673_v19 = vld [vmem:[%s18103_s5 + $0x1764] ss:$16 sps:$4 sm:$0xff]  }
 0x20f   : > { %v15676_v24 = vld [vmem:[%s18103_s5 + $0x1544] ss:$16 sps:$4 sm:$0xff]  }
 0x210   : > { %5585 = vmatpush1.bf16.msra.mxu0 %v15614_v27  ;;  %v15679_v26 = vld [vmem:[%s18103_s5 + $0x1744] ss:$16 sps:$4 sm:$0xff]   ;;  %v15674_v27 = vld [vmem:[%s18103_s5 + $0x1540] ss:$16 sps:$4 sm:$0xff]  }
 0x211   : > { %5626 = vmatpush1.bf16.msra.mxu1 %v15617_v28  ;;  %5586 = vmatprep.subr.bf16.mxu0 %v15622_v29  ;;  %v15677_v28 = vld [vmem:[%s18103_s5 + $0x1740] ss:$16 sps:$4 sm:$0xff]   ;;  %v15682_v29 = vld [vmem:[%s18103_s5 + $0x1524] ss:$16 sps:$4 sm:$0xff]  }
 0x212   : > { %5627 = vmatprep.subr.bf16.mxu1 %v15625_v31  ;;  %v15685_v31 = vld [vmem:[%s18103_s5 + $0x1724] ss:$16 sps:$4 sm:$0xff]  }
 0x214   : > { %5587 = vmatpush1.bf16.msra.mxu0 %v15620_v32  ;;  %v15680_v32 = vld [vmem:[%s18103_s5 + $0x1520] ss:$16 sps:$4 sm:$0xff]  }
 0x215   : > { %5628 = vmatpush1.bf16.msra.mxu1 %v15623_v34  ;;  %5588 = vmatprep.subr.bf16.mxu0 %v15628_v35  ;;  %v15683_v34 = vld [vmem:[%s18103_s5 + $0x1720] ss:$16 sps:$4 sm:$0xff]   ;;  %v15688_v35 = vld [vmem:[%s18103_s5 + $0x1504] ss:$16 sps:$4 sm:$0xff]  }
 0x216   : > { %5629 = vmatprep.subr.bf16.mxu1 %v15631_v36  ;;  %v15691_v36 = vld [vmem:[%s18103_s5 + $0x1704] ss:$16 sps:$4 sm:$0xff]  }
 0x218   : > { %5589 = vmatpush1.bf16.msra.mxu0 %v15626_v37  ;;  %v15686_v37 = vld [vmem:[%s18103_s5 + $0x1500] ss:$16 sps:$4 sm:$0xff]  }
 0x219   : > { %5630 = vmatpush1.bf16.msra.mxu1 %v15629_v39  ;;  %5590 = vmatprep.subr.bf16.mxu0 %v15634_v40  ;;  %v15689_v39 = vld [vmem:[%s18103_s5 + $0x1700] ss:$16 sps:$4 sm:$0xff]  }
 0x21a   : > { %5631 = vmatprep.subr.bf16.mxu1 %v15637_v42  ;;  %v528_v40 = vld [vmem:[%s18126_s30 + $0xa0] sm:$0xff]  ;;  %v530_v42 = vld [vmem:[%s18126_s30 + $0xb0] sm:$0xff] }
 0x21c   : > { %5591 = vmatpush1.bf16.msra.mxu0 %v15632_v45  ;;  %v15694_v45 = vld [vmem:[%s18103_s5 + $0xec] ss:$16 sps:$4 sm:$0xff]  }
 0x21d   : > { %5632 = vmatpush1.bf16.msra.mxu1 %v15635_v46  ;;  %5592 = vmatprep.subr.bf16.mxu0 %v15640_v47  ;;  %v15697_v46 = vld [vmem:[%s18103_s5 + $0x2ec] ss:$16 sps:$4 sm:$0xff]   ;;  %v15692_v47 = vld [vmem:[%s18103_s5 + $0xe8] ss:$16 sps:$4 sm:$0xff]  }
 0x21e   : > { %5633 = vmatprep.subr.bf16.mxu1 %v15643_v48  ;;  %v15695_v48 = vld [vmem:[%s18103_s5 + $0x2e8] ss:$16 sps:$4 sm:$0xff]  }
 0x220   : > { %5593 = vmatpush1.bf16.msra.mxu0 %v15638_v52  ;;  %v18619_v52 = vpack.c.bf16 %v528_v40, %v528_v40  ;;  %v15736_v40 = vld [vmem:[%s18103_s5 + $0xc] ss:$16 sps:$4 sm:$0xff]  }
 0x221   : > { %5634 = vmatpush1.bf16.msra.mxu1 %v15641_v54  ;;  %5594 = vmatprep.subr.bf16.mxu0 %v15646_v55  ;;  %v18621_v54 = vpack.c.bf16 %v530_v42, %v530_v42  ;;  %v15700_v55 = vld [vmem:[%s18103_s5 + $0xcc] ss:$16 sps:$4 sm:$0xff]  }
 0x222   : > { %5635 = vmatprep.subr.bf16.mxu1 %v15649_v56  ;;  %v15703_v56 = vld [vmem:[%s18103_s5 + $0x2cc] ss:$16 sps:$4 sm:$0xff]  }
 0x223   : > { %v15739_v42 = vld [vmem:[%s18103_s5 + $0x20c] ss:$16 sps:$4 sm:$0xff]  }
 0x224   : > { %5595 = vmatpush2.bf16.msra.mxu0 %v15644_v59  ;;  %v15698_v59 = vld [vmem:[%s18103_s5 + $0xc8] ss:$16 sps:$4 sm:$0xff]  }
 0x225   : > { %5636 = vmatpush2.bf16.msra.mxu1 %v15647_v60  ;;  %5596 = vmatprep.subr.bf16.mxu0 %v15652_v61  ;;  %v15701_v60 = vld [vmem:[%s18103_s5 + $0x2c8] ss:$16 sps:$4 sm:$0xff]  }
 0x226   : > { %5637 = vmatprep.subr.bf16.mxu1 %v15655_v62 }
 0x228   : > { %5597 = vmatpush2.bf16.msra.mxu0 %v15650_v1 }
 0x229   : > { %5638 = vmatpush2.bf16.msra.mxu1 %v15653_v2  ;;  %5598 = vmatprep.subr.bf16.mxu0 %v15658_v5 }
 0x22a   : > { %5639 = vmatprep.subr.bf16.mxu1 %v15661_v6  ;;  %v15706_v6 = vld [vmem:[%s18103_s5 + $0xac] ss:$16 sps:$4 sm:$0xff]  }
 0x22c   : > { %5599 = vmatpush2.bf16.msra.mxu0 %v15656_v7  ;;  %v15709_v7 = vld [vmem:[%s18103_s5 + $0x2ac] ss:$16 sps:$4 sm:$0xff]  }
 0x22d   : > { %5640 = vmatpush2.bf16.msra.mxu1 %v15659_v8  ;;  %5600 = vmatprep.subr.bf16.mxu0 %v15664_v13 }
 0x22e   : > { %5641 = vmatprep.subr.bf16.mxu1 %v15667_v15  ;;  %v15704_v15 = vld [vmem:[%s18103_s5 + $0xa8] ss:$16 sps:$4 sm:$0xff]  }
 0x230   : > { %5601 = vmatpush2.bf16.msra.mxu0 %v15662_v16  ;;  %v15707_v16 = vld [vmem:[%s18103_s5 + $0x2a8] ss:$16 sps:$4 sm:$0xff]  }
 0x231   : > { %5642 = vmatpush2.bf16.msra.mxu1 %v15665_v18  ;;  %5602 = vmatprep.subr.bf16.mxu0 %v15670_v17 }
 0x232   : > { %5643 = vmatprep.subr.bf16.mxu1 %v15673_v19 }
 0x234   : > { %5603 = vmatpush2.bf16.msra.mxu0 %v15668_v23 }
 0x235   : > { %5644 = vmatpush2.bf16.msra.mxu1 %v15671_v25  ;;  %5604 = vmatprep.subr.bf16.mxu0 %v15676_v24  ;;  %v15713_v25 = vld [vmem:[%s18103_s5 + $0x288] ss:$16 sps:$4 sm:$0xff]   ;;  %v15718_v24 = vld [vmem:[%s18103_s5 + $0x6c] ss:$16 sps:$4 sm:$0xff]  }
 0x236   : > { %5645 = vmatprep.subr.bf16.mxu1 %v15679_v26  ;;  %v15721_v26 = vld [vmem:[%s18103_s5 + $0x26c] ss:$16 sps:$4 sm:$0xff]  }
 0x238   : > { %5605 = vmatpush2.bf16.msra.mxu0 %v15674_v27  ;;  %v15716_v27 = vld [vmem:[%s18103_s5 + $0x68] ss:$16 sps:$4 sm:$0xff]  }
 0x239   : > { %5646 = vmatpush2.bf16.msra.mxu1 %v15677_v28  ;;  %5606 = vmatprep.subr.bf16.mxu0 %v15682_v29  ;;  %v15719_v28 = vld [vmem:[%s18103_s5 + $0x268] ss:$16 sps:$4 sm:$0xff]   ;;  %v15724_v29 = vld [vmem:[%s18103_s5 + $0x4c] ss:$16 sps:$4 sm:$0xff]  }
 0x23a   : > { %5647 = vmatprep.subr.bf16.mxu1 %v15685_v31  ;;  %v15727_v31 = vld [vmem:[%s18103_s5 + $0x24c] ss:$16 sps:$4 sm:$0xff]  }
 0x23c   : > { %5607 = vmatpush2.bf16.msra.mxu0 %v15680_v32  ;;  %v15722_v32 = vld [vmem:[%s18103_s5 + $0x48] ss:$16 sps:$4 sm:$0xff]  }
 0x23d   : > { %5648 = vmatpush2.bf16.msra.mxu1 %v15683_v34  ;;  %5608 = vmatprep.subr.bf16.mxu0 %v15688_v35  ;;  %v15725_v34 = vld [vmem:[%s18103_s5 + $0x248] ss:$16 sps:$4 sm:$0xff]   ;;  %v15730_v35 = vld [vmem:[%s18103_s5 + $0x2c] ss:$16 sps:$4 sm:$0xff]  }
 0x23e   : > { %5649 = vmatprep.subr.bf16.mxu1 %v15691_v36  ;;  %v15733_v36 = vld [vmem:[%s18103_s5 + $0x22c] ss:$16 sps:$4 sm:$0xff]  }
 0x240   : > { %5609 = vmatpush2.bf16.msra.mxu0 %v15686_v37  ;;  %v15728_v37 = vld [vmem:[%s18103_s5 + $0x28] ss:$16 sps:$4 sm:$0xff]  }
 0x241   : > { %5650 = vmatpush2.bf16.msra.mxu1 %v15689_v39  ;;  %5660 = vmatprep.subr.bf16.mxu0 %v15694_v45  ;;  %v15731_v39 = vld [vmem:[%s18103_s5 + $0x228] ss:$16 sps:$4 sm:$0xff]  }
 0x242   : > { %5701 = vmatprep.subr.bf16.mxu1 %v15697_v46  ;;  %v15734_v45 = vld [vmem:[%s18103_s5 + $0x8] ss:$16 sps:$4 sm:$0xff]  }
 0x243   : > { %v5366_v61 = vpop.f32.mrf.mxu0  ;;  %5611 = vmatmul.mubr.bf16.vlgmr.msra.gmra.mxu0 %v18619_v52  ;;  %v15737_v46 = vld [vmem:[%s18103_s5 + $0x208] ss:$16 sps:$4 sm:$0xff]  }
 0x244   : > { %v5407_v62 = vpop.f32.mrf.mxu1  ;;  %5652 = vmatmul.mubr.bf16.vlgmr.msra.gmra.mxu1 %v18621_v54  ;;  %v5367_v1 = vadd.f32 %v5366_v61, %v18552_v14  ;;  %5661 = vmatpush1.bf16.msra.mxu0 %v15692_v47  ;;  %v15742_v47 = vld [vmem:[%s18103_s5 + $0x1ec] ss:$16 sps:$4 sm:$0xff]   ;;  %v15746_v61 = vld [vmem:[%s18103_s5 + $0x1c8] ss:$16 sps:$4 sm:$0xff]  }
 0x245   : > { %5702 = vmatpush1.bf16.msra.mxu1 %v15695_v48  ;;  %v5368_v2 = vpop.f32.mrf.mxu0  ;;  %5662 = vmatprep.subr.bf16.mxu0 %v15700_v55  ;;  %v15745_v48 = vld [vmem:[%s18103_s5 + $0x3ec] ss:$16 sps:$4 sm:$0xff]   ;;  %v15740_v55 = vld [vmem:[%s18103_s5 + $0x1e8] ss:$16 sps:$4 sm:$0xff]  }
 0x246   : > { %v5409_v5 = vpop.f32.mrf.mxu1  ;;  %5703 = vmatprep.subr.bf16.mxu1 %v15703_v56  ;;  %v18632_v8 = vadd.f32 %v5407_v62, %v5367_v1  ;;  %v5369_v13 = vadd.f32 %v5368_v2, %v18559_v20  ;;  %5692 = vmatprep.mubr.bf16.mxu0 %v18180_v50  ;;  %v15712_v20 = vld [vmem:[%s18103_s5 + $0x8c] ss:$16 sps:$4 sm:$0xff]   ;;  %v15743_v56 = vld [vmem:[%s18103_s5 + $0x3e8] ss:$16 sps:$4 sm:$0xff]  }
 0x247   : > { %5733 = vmatprep.mubr.bf16.mxu1 %v18184_v53  ;;  %v5370_v14 = vpop.f32.mrf.mxu0  ;;  %v15715_v50 = vld [vmem:[%s18103_s5 + $0x28c] ss:$16 sps:$4 sm:$0xff]   ;;  %v15710_v53 = vld [vmem:[%s18103_s5 + $0x88] ss:$16 sps:$4 sm:$0xff]  }
 0x248   : > { %v5411_v18 = vpop.f32.mrf.mxu1  ;;  %v18639_v17 = vadd.f32 %v5409_v5, %v5369_v13  ;;  %5663 = vmatpush1.bf16.msra.mxu0 %v15698_v59  ;;  %v15748_v59 = vld [vmem:[%s18103_s5 + $0x1cc] ss:$16 sps:$4 sm:$0xff]   ;;  %v15749_v62 = vld [vmem:[%s18103_s5 + $0x3c8] ss:$16 sps:$4 sm:$0xff]  }
 0x249   : > { %5704 = vmatpush1.bf16.msra.mxu1 %v15701_v60  ;;  %v5371_v19 = vpop.f32.mrf.mxu0  ;;  %5664 = vmatprep.subr.bf16.mxu0 %v15706_v6  ;;  %v15751_v60 = vld [vmem:[%s18103_s5 + $0x3cc] ss:$16 sps:$4 sm:$0xff]   ;;  %v15752_v5 = vld [vmem:[%s18103_s5 + $0x1a8] ss:$16 sps:$4 sm:$0xff]  }
 0x24a   : > { %v5412_v23 = vpop.f32.mrf.mxu1  ;;  %5705 = vmatprep.subr.bf16.mxu1 %v15709_v7  ;;  %v15754_v1 = vld [vmem:[%s18103_s5 + $0x1ac] ss:$16 sps:$4 sm:$0xff]   ;;  %v15755_v6 = vld [vmem:[%s18103_s5 + $0x3a8] ss:$16 sps:$4 sm:$0xff]  }
 0x24b   : > { %v15757_v2 = vld [vmem:[%s18103_s5 + $0x3ac] ss:$16 sps:$4 sm:$0xff]   ;;  %v15764_v19 = vld [vmem:[%s18103_s5 + $0x168] ss:$16 sps:$4 sm:$0xff]  }
 0x24c   : > { %5665 = vmatpush1.bf16.msra.mxu0 %v15704_v15  ;;  %v15760_v7 = vld [vmem:[%s18103_s5 + $0x18c] ss:$16 sps:$4 sm:$0xff]   ;;  %v15758_v15 = vld [vmem:[%s18103_s5 + $0x188] ss:$16 sps:$4 sm:$0xff]  }
 0x24d   : > { %5706 = vmatpush1.bf16.msra.mxu1 %v15707_v16  ;;  %5666 = vmatprep.subr.bf16.mxu0 %v15712_v20  ;;  %v15763_v13 = vld [vmem:[%s18103_s5 + $0x38c] ss:$16 sps:$4 sm:$0xff]   ;;  %v15761_v16 = vld [vmem:[%s18103_s5 + $0x388] ss:$16 sps:$4 sm:$0xff]  }
 0x24e   : > { %5707 = vmatprep.subr.bf16.mxu1 %v15715_v50  ;;  %v15766_v14 = vld [vmem:[%s18103_s5 + $0x16c] ss:$16 sps:$4 sm:$0xff]   ;;  %v15767_v23 = vld [vmem:[%s18103_s5 + $0x368] ss:$16 sps:$4 sm:$0xff]  }
 0x24f   : > { %v15769_v18 = vld [vmem:[%s18103_s5 + $0x36c] ss:$16 sps:$4 sm:$0xff]  }
 0x250   : > { %5667 = vmatpush1.bf16.msra.mxu0 %v15710_v53  ;;  %v15772_v20 = vld [vmem:[%s18103_s5 + $0x14c] ss:$16 sps:$4 sm:$0xff]   ;;  %v15770_v53 = vld [vmem:[%s18103_s5 + $0x148] ss:$16 sps:$4 sm:$0xff]  }
 0x251   : > { %5708 = vmatpush1.bf16.msra.mxu1 %v15713_v25  ;;  %5668 = vmatprep.subr.bf16.mxu0 %v15718_v24  ;;  %v15775_v50 = vld [vmem:[%s18103_s5 + $0x34c] ss:$16 sps:$4 sm:$0xff]   ;;  %v15773_v25 = vld [vmem:[%s18103_s5 + $0x348] ss:$16 sps:$4 sm:$0xff]  }
 0x252   : > { %5709 = vmatprep.subr.bf16.mxu1 %v15721_v26  ;;  %v15778_v24 = vld [vmem:[%s18103_s5 + $0x12c] ss:$16 sps:$4 sm:$0xff]  }
 0x253   : > { %v15781_v26 = vld [vmem:[%s18103_s5 + $0x32c] ss:$16 sps:$4 sm:$0xff]  }
 0x254   : > { %5669 = vmatpush1.bf16.msra.mxu0 %v15716_v27  ;;  %v15776_v27 = vld [vmem:[%s18103_s5 + $0x128] ss:$16 sps:$4 sm:$0xff]  }
 0x255   : > { %5710 = vmatpush1.bf16.msra.mxu1 %v15719_v28  ;;  %5670 = vmatprep.subr.bf16.mxu0 %v15724_v29  ;;  %v15779_v28 = vld [vmem:[%s18103_s5 + $0x328] ss:$16 sps:$4 sm:$0xff]   ;;  %v15784_v29 = vld [vmem:[%s18103_s5 + $0x10c] ss:$16 sps:$4 sm:$0xff]  }
 0x256   : > { %5711 = vmatprep.subr.bf16.mxu1 %v15727_v31  ;;  %v15787_v31 = vld [vmem:[%s18103_s5 + $0x30c] ss:$16 sps:$4 sm:$0xff]  }
 0x258   : > { %5671 = vmatpush1.bf16.msra.mxu0 %v15722_v32  ;;  %v15782_v32 = vld [vmem:[%s18103_s5 + $0x108] ss:$16 sps:$4 sm:$0xff]  }
 0x259   : > { %5712 = vmatpush1.bf16.msra.mxu1 %v15725_v34  ;;  %5672 = vmatprep.subr.bf16.mxu0 %v15730_v35  ;;  %v15785_v34 = vld [vmem:[%s18103_s5 + $0x308] ss:$16 sps:$4 sm:$0xff]   ;;  %v15790_v35 = vld [vmem:[%s18103_s5 + $0x4ec] ss:$16 sps:$4 sm:$0xff]  }
 0x25a   : > { %5713 = vmatprep.subr.bf16.mxu1 %v15733_v36  ;;  %v15793_v36 = vld [vmem:[%s18103_s5 + $0x6ec] ss:$16 sps:$4 sm:$0xff]  }
 0x25c   : > { %5673 = vmatpush1.bf16.msra.mxu0 %v15728_v37  ;;  %v15788_v37 = vld [vmem:[%s18103_s5 + $0x4e8] ss:$16 sps:$4 sm:$0xff]  }
 0x25d   : > { %5714 = vmatpush1.bf16.msra.mxu1 %v15731_v39  ;;  %5674 = vmatprep.subr.bf16.mxu0 %v15736_v40  ;;  %v15791_v39 = vld [vmem:[%s18103_s5 + $0x6e8] ss:$16 sps:$4 sm:$0xff]   ;;  %v15796_v40 = vld [vmem:[%s18103_s5 + $0x4cc] ss:$16 sps:$4 sm:$0xff]  }
 0x25e   : > { %5715 = vmatprep.subr.bf16.mxu1 %v15739_v42  ;;  %v15799_v42 = vld [vmem:[%s18103_s5 + $0x6cc] ss:$16 sps:$4 sm:$0xff]  }
 0x260   : > { %5675 = vmatpush1.bf16.msra.mxu0 %v15734_v45  ;;  %v15794_v45 = vld [vmem:[%s18103_s5 + $0x4c8] ss:$16 sps:$4 sm:$0xff]  }
 0x261   : > { %5716 = vmatpush1.bf16.msra.mxu1 %v15737_v46  ;;  %5676 = vmatprep.subr.bf16.mxu0 %v15742_v47 }
 0x262   : > { %5717 = vmatprep.subr.bf16.mxu1 %v15745_v48 }
 0x264   : > { %5677 = vmatpush2.bf16.msra.mxu0 %v15740_v55  ;;  %v15797_v55 = vld [vmem:[%s18103_s5 + $0x6c8] ss:$16 sps:$4 sm:$0xff]  }
 0x265   : > { %5718 = vmatpush2.bf16.msra.mxu1 %v15743_v56  ;;  %5678 = vmatprep.subr.bf16.mxu0 %v15748_v59 }
 0x266   : > { %5719 = vmatprep.subr.bf16.mxu1 %v15751_v60  ;;  %v15802_v60 = vld [vmem:[%s18103_s5 + $0x4ac] ss:$16 sps:$4 sm:$0xff]  }
 0x268   : > { %5679 = vmatpush2.bf16.msra.mxu0 %v15746_v61  ;;  %v15805_v61 = vld [vmem:[%s18103_s5 + $0x6ac] ss:$16 sps:$4 sm:$0xff]  }
 0x269   : > { %5720 = vmatpush2.bf16.msra.mxu1 %v15749_v62  ;;  %5680 = vmatprep.subr.bf16.mxu0 %v15754_v1 }
 0x26a   : > { %5721 = vmatprep.subr.bf16.mxu1 %v15757_v2  ;;  %v15803_v2 = vld [vmem:[%s18103_s5 + $0x6a8] ss:$16 sps:$4 sm:$0xff]  }
 0x26c   : > { %5681 = vmatpush2.bf16.msra.mxu0 %v15752_v5 }
 0x26d   : > { %5722 = vmatpush2.bf16.msra.mxu1 %v15755_v6  ;;  %5682 = vmatprep.subr.bf16.mxu0 %v15760_v7 }
 0x26e   : > { %5723 = vmatprep.subr.bf16.mxu1 %v15763_v13  ;;  %v15809_v13 = vld [vmem:[%s18103_s5 + $0x688] ss:$16 sps:$4 sm:$0xff]  }
 0x270   : > { %5683 = vmatpush2.bf16.msra.mxu0 %v15758_v15  ;;  %v15814_v15 = vld [vmem:[%s18103_s5 + $0x46c] ss:$16 sps:$4 sm:$0xff]  }
 0x271   : > { %5724 = vmatpush2.bf16.msra.mxu1 %v15761_v16  ;;  %5684 = vmatprep.subr.bf16.mxu0 %v15766_v14  ;;  %v15817_v16 = vld [vmem:[%s18103_s5 + $0x66c] ss:$16 sps:$4 sm:$0xff]   ;;  %v15812_v14 = vld [vmem:[%s18103_s5 + $0x468] ss:$16 sps:$4 sm:$0xff]  }
 0x272   : > { %5725 = vmatprep.subr.bf16.mxu1 %v15769_v18  ;;  %v15815_v18 = vld [vmem:[%s18103_s5 + $0x668] ss:$16 sps:$4 sm:$0xff]  }
 0x274   : > { %5685 = vmatpush2.bf16.msra.mxu0 %v15764_v19  ;;  %v15820_v19 = vld [vmem:[%s18103_s5 + $0x44c] ss:$16 sps:$4 sm:$0xff]  }
 0x275   : > { %5726 = vmatpush2.bf16.msra.mxu1 %v15767_v23  ;;  %5686 = vmatprep.subr.bf16.mxu0 %v15772_v20  ;;  %v15823_v23 = vld [vmem:[%s18103_s5 + $0x64c] ss:$16 sps:$4 sm:$0xff]   ;;  %v15818_v20 = vld [vmem:[%s18103_s5 + $0x448] ss:$16 sps:$4 sm:$0xff]  }
 0x276   : > { %5727 = vmatprep.subr.bf16.mxu1 %v15775_v50  ;;  %v15821_v50 = vld [vmem:[%s18103_s5 + $0x648] ss:$16 sps:$4 sm:$0xff]  }
 0x278   : > { %5687 = vmatpush2.bf16.msra.mxu0 %v15770_v53  ;;  %v15826_v53 = vld [vmem:[%s18103_s5 + $0x42c] ss:$16 sps:$4 sm:$0xff]  }
 0x279   : > { %5728 = vmatpush2.bf16.msra.mxu1 %v15773_v25  ;;  %5688 = vmatprep.subr.bf16.mxu0 %v15778_v24  ;;  %v15829_v25 = vld [vmem:[%s18103_s5 + $0x62c] ss:$16 sps:$4 sm:$0xff]   ;;  %v15824_v24 = vld [vmem:[%s18103_s5 + $0x428] ss:$16 sps:$4 sm:$0xff]  }
 0x27a   : > { %5729 = vmatprep.subr.bf16.mxu1 %v15781_v26  ;;  %v15827_v26 = vld [vmem:[%s18103_s5 + $0x628] ss:$16 sps:$4 sm:$0xff]  }
 0x27c   : > { %5689 = vmatpush2.bf16.msra.mxu0 %v15776_v27  ;;  %v15832_v27 = vld [vmem:[%s18103_s5 + $0x40c] ss:$16 sps:$4 sm:$0xff]  }
 0x27d   : > { %5730 = vmatpush2.bf16.msra.mxu1 %v15779_v28  ;;  %5690 = vmatprep.subr.bf16.mxu0 %v15784_v29  ;;  %v15835_v28 = vld [vmem:[%s18103_s5 + $0x60c] ss:$16 sps:$4 sm:$0xff]   ;;  %v15830_v29 = vld [vmem:[%s18103_s5 + $0x408] ss:$16 sps:$4 sm:$0xff]  }
 0x27e   : > { %5731 = vmatprep.subr.bf16.mxu1 %v15787_v31  ;;  %v15833_v31 = vld [vmem:[%s18103_s5 + $0x608] ss:$16 sps:$4 sm:$0xff]  }
 0x280   : > { %5691 = vmatpush2.bf16.msra.mxu0 %v15782_v32  ;;  %v15838_v32 = vld [vmem:[%s18103_s5 + $0x5ec] ss:$16 sps:$4 sm:$0xff]  }
 0x281   : > { %5732 = vmatpush2.bf16.msra.mxu1 %v15785_v34  ;;  %5742 = vmatprep.subr.bf16.mxu0 %v15790_v35  ;;  %v15841_v34 = vld [vmem:[%s18103_s5 + $0x7ec] ss:$16 sps:$4 sm:$0xff]   ;;  %v15836_v35 = vld [vmem:[%s18103_s5 + $0x5e8] ss:$16 sps:$4 sm:$0xff]  }
 0x282   : > { %5783 = vmatprep.subr.bf16.mxu1 %v15793_v36  ;;  %v15839_v36 = vld [vmem:[%s18103_s5 + $0x7e8] ss:$16 sps:$4 sm:$0xff]  }
 0x283   : > { %v5448_v46 = vpop.f32.mrf.mxu0  ;;  %5693 = vmatmul.mubr.bf16.vlgmr.msra.gmra.mxu0 %v18207_v9  ;;  %v15800_v9 = vld [vmem:[%s18103_s5 + $0x4a8] ss:$16 sps:$4 sm:$0xff]  }
 0x284   : > { %v5489_v47 = vpop.f32.mrf.mxu1  ;;  %5734 = vmatmul.mubr.bf16.vlgmr.msra.gmra.mxu1 %v18209_v10  ;;  %v5449_v48 = vadd.f32 %v5448_v46, %v18632_v8  ;;  %5743 = vmatpush1.bf16.msra.mxu0 %v15788_v37  ;;  %v15844_v37 = vld [vmem:[%s18103_s5 + $0x5cc] ss:$16 sps:$4 sm:$0xff]  }
 0x285   : > { %5784 = vmatpush1.bf16.msra.mxu1 %v15791_v39  ;;  %v5450_v56 = vpop.f32.mrf.mxu0  ;;  %5744 = vmatprep.subr.bf16.mxu0 %v15796_v40  ;;  %v15847_v39 = vld [vmem:[%s18103_s5 + $0x7cc] ss:$16 sps:$4 sm:$0xff]   ;;  %v15842_v40 = vld [vmem:[%s18103_s5 + $0x5c8] ss:$16 sps:$4 sm:$0xff]  }
 0x286   : > { %v5491_v59 = vpop.f32.mrf.mxu1  ;;  %5785 = vmatprep.subr.bf16.mxu1 %v15799_v42  ;;  %v18706_v62 = vadd.f32 %v5489_v47, %v5449_v48  ;;  %v5451_v1 = vadd.f32 %v5450_v56, %v18639_v17  ;;  %5774 = vmatprep.mubr.bf16.mxu0 %v18240_v38  ;;  %v15808_v17 = vld [vmem:[%s18103_s5 + $0x48c] ss:$16 sps:$4 sm:$0xff]   ;;  %v15845_v42 = vld [vmem:[%s18103_s5 + $0x7c8] ss:$16 sps:$4 sm:$0xff]  }
 0x287   : > { %5815 = vmatprep.mubr.bf16.mxu1 %v18244_v41  ;;  %v5452_v10 = vpop.f32.mrf.mxu0  ;;  %v15811_v38 = vld [vmem:[%s18103_s5 + $0x68c] ss:$16 sps:$4 sm:$0xff]   ;;  %v15806_v41 = vld [vmem:[%s18103_s5 + $0x488] ss:$16 sps:$4 sm:$0xff]  }
 0x288   : > { %v5493_v8 = vpop.f32.mrf.mxu1  ;;  %v18713_v5 = vadd.f32 %v5491_v59, %v5451_v1  ;;  %5745 = vmatpush1.bf16.msra.mxu0 %v15794_v45  ;;  %v15850_v45 = vld [vmem:[%s18103_s5 + $0x5ac] ss:$16 sps:$4 sm:$0xff]   ;;  %v15848_v47 = vld [vmem:[%s18103_s5 + $0x5a8] ss:$16 sps:$4 sm:$0xff]  }
 0x289   : > { %5786 = vmatpush1.bf16.msra.mxu1 %v15797_v55  ;;  %v5453_v6 = vpop.f32.mrf.mxu0  ;;  %5746 = vmatprep.subr.bf16.mxu0 %v15802_v60  ;;  %v15853_v46 = vld [vmem:[%s18103_s5 + $0x7ac] ss:$16 sps:$4 sm:$0xff]   ;;  %v15851_v48 = vld [vmem:[%s18103_s5 + $0x7a8] ss:$16 sps:$4 sm:$0xff]  }
 0x28a   : > { %v5494_v7 = vpop.f32.mrf.mxu1  ;;  %5787 = vmatprep.subr.bf16.mxu1 %v15805_v61  ;;  %v15856_v55 = vld [vmem:[%s18103_s5 + $0x58c] ss:$16 sps:$4 sm:$0xff]   ;;  %v15854_v59 = vld [vmem:[%s18103_s5 + $0x588] ss:$16 sps:$4 sm:$0xff]  }
 0x28b   : > { %v15859_v56 = vld [vmem:[%s18103_s5 + $0x78c] ss:$16 sps:$4 sm:$0xff]   ;;  %v15857_v60 = vld [vmem:[%s18103_s5 + $0x788] ss:$16 sps:$4 sm:$0xff]  }
 0x28c   : > { %5747 = vmatpush1.bf16.msra.mxu0 %v15800_v9  ;;  %v15862_v61 = vld [vmem:[%s18103_s5 + $0x56c] ss:$16 sps:$4 sm:$0xff]   ;;  %v15860_v9 = vld [vmem:[%s18103_s5 + $0x568] ss:$16 sps:$4 sm:$0xff]  }
 0x28d   : > { %5788 = vmatpush1.bf16.msra.mxu1 %v15803_v2  ;;  %5748 = vmatprep.subr.bf16.mxu0 %v15808_v17  ;;  %v15865_v1 = vld [vmem:[%s18103_s5 + $0x76c] ss:$16 sps:$4 sm:$0xff]   ;;  %v15863_v2 = vld [vmem:[%s18103_s5 + $0x768] ss:$16 sps:$4 sm:$0xff]  }
 0x28e   : > { %5789 = vmatprep.subr.bf16.mxu1 %v15811_v38  ;;  %v15868_v10 = vld [vmem:[%s18103_s5 + $0x54c] ss:$16 sps:$4 sm:$0xff]   ;;  %v15866_v6 = vld [vmem:[%s18103_s5 + $0x548] ss:$16 sps:$4 sm:$0xff]  }
 0x28f   : > { %v15871_v8 = vld [vmem:[%s18103_s5 + $0x74c] ss:$16 sps:$4 sm:$0xff]   ;;  %v15869_v7 = vld [vmem:[%s18103_s5 + $0x748] ss:$16 sps:$4 sm:$0xff]  }
 0x290   : > { %5749 = vmatpush1.bf16.msra.mxu0 %v15806_v41  ;;  %v15874_v17 = vld [vmem:[%s18103_s5 + $0x52c] ss:$16 sps:$4 sm:$0xff]   ;;  %v15872_v41 = vld [vmem:[%s18103_s5 + $0x528] ss:$16 sps:$4 sm:$0xff]  }
 0x291   : > { %5790 = vmatpush1.bf16.msra.mxu1 %v15809_v13  ;;  %5750 = vmatprep.subr.bf16.mxu0 %v15814_v15  ;;  %v15877_v38 = vld [vmem:[%s18103_s5 + $0x72c] ss:$16 sps:$4 sm:$0xff]   ;;  %v15875_v13 = vld [vmem:[%s18103_s5 + $0x728] ss:$16 sps:$4 sm:$0xff]  }
 0x292   : > { %5791 = vmatprep.subr.bf16.mxu1 %v15817_v16  ;;  %v15880_v15 = vld [vmem:[%s18103_s5 + $0x50c] ss:$16 sps:$4 sm:$0xff]  }
 0x293   : > { %v15883_v16 = vld [vmem:[%s18103_s5 + $0x70c] ss:$16 sps:$4 sm:$0xff]  }
 0x294   : > { %5751 = vmatpush1.bf16.msra.mxu0 %v15812_v14  ;;  %v15878_v14 = vld [vmem:[%s18103_s5 + $0x508] ss:$16 sps:$4 sm:$0xff]  }
 0x295   : > { %5792 = vmatpush1.bf16.msra.mxu1 %v15815_v18  ;;  %5752 = vmatprep.subr.bf16.mxu0 %v15820_v19  ;;  %v15881_v18 = vld [vmem:[%s18103_s5 + $0x708] ss:$16 sps:$4 sm:$0xff]   ;;  %v15886_v19 = vld [vmem:[%s18103_s5 + $0x8ec] ss:$16 sps:$4 sm:$0xff]  }
 0x296   : > { %5793 = vmatprep.subr.bf16.mxu1 %v15823_v23  ;;  %v15889_v23 = vld [vmem:[%s18103_s5 + $0xaec] ss:$16 sps:$4 sm:$0xff]  }
 0x298   : > { %5753 = vmatpush1.bf16.msra.mxu0 %v15818_v20  ;;  %v15884_v20 = vld [vmem:[%s18103_s5 + $0x8e8] ss:$16 sps:$4 sm:$0xff]  }
 0x299   : > { %5794 = vmatpush1.bf16.msra.mxu1 %v15821_v50  ;;  %5754 = vmatprep.subr.bf16.mxu0 %v15826_v53  ;;  %v15887_v50 = vld [vmem:[%s18103_s5 + $0xae8] ss:$16 sps:$4 sm:$0xff]   ;;  %v15892_v53 = vld [vmem:[%s18103_s5 + $0x8cc] ss:$16 sps:$4 sm:$0xff]  }
 0x29a   : > { %5795 = vmatprep.subr.bf16.mxu1 %v15829_v25  ;;  %v15895_v25 = vld [vmem:[%s18103_s5 + $0xacc] ss:$16 sps:$4 sm:$0xff]  }
 0x29c   : > { %5755 = vmatpush1.bf16.msra.mxu0 %v15824_v24 }
 0x29d   : > { %5796 = vmatpush1.bf16.msra.mxu1 %v15827_v26  ;;  %5756 = vmatprep.subr.bf16.mxu0 %v15832_v27  ;;  %v15890_v27 = vld [vmem:[%s18103_s5 + $0x8c8] ss:$16 sps:$4 sm:$0xff]  }
 0x29e   : > { %5797 = vmatprep.subr.bf16.mxu1 %v15835_v28  ;;  %v15893_v28 = vld [vmem:[%s18103_s5 + $0xac8] ss:$16 sps:$4 sm:$0xff]  }
 0x2a0   : > { %5757 = vmatpush1.bf16.msra.mxu0 %v15830_v29 }
 0x2a1   : > { %5798 = vmatpush1.bf16.msra.mxu1 %v15833_v31  ;;  %5758 = vmatprep.subr.bf16.mxu0 %v15838_v32  ;;  %v15898_v32 = vld [vmem:[%s18103_s5 + $0x8ac] ss:$16 sps:$4 sm:$0xff]  }
 0x2a2   : > { %5799 = vmatprep.subr.bf16.mxu1 %v15841_v34  ;;  %v15901_v34 = vld [vmem:[%s18103_s5 + $0xaac] ss:$16 sps:$4 sm:$0xff]  }
 0x2a4   : > { %5759 = vmatpush2.bf16.msra.mxu0 %v15836_v35  ;;  %v15896_v35 = vld [vmem:[%s18103_s5 + $0x8a8] ss:$16 sps:$4 sm:$0xff]  }
 0x2a5   : > { %5800 = vmatpush2.bf16.msra.mxu1 %v15839_v36  ;;  %5760 = vmatprep.subr.bf16.mxu0 %v15844_v37  ;;  %v15899_v36 = vld [vmem:[%s18103_s5 + $0xaa8] ss:$16 sps:$4 sm:$0xff]  }
 0x2a6   : > { %5801 = vmatprep.subr.bf16.mxu1 %v15847_v39 }
 0x2a8   : > { %5761 = vmatpush2.bf16.msra.mxu0 %v15842_v40  ;;  %v15904_v40 = vld [vmem:[%s18103_s5 + $0x88c] ss:$16 sps:$4 sm:$0xff]  }
 0x2a9   : > { %5802 = vmatpush2.bf16.msra.mxu1 %v15845_v42  ;;  %5762 = vmatprep.subr.bf16.mxu0 %v15850_v45  ;;  %v15905_v42 = vld [vmem:[%s18103_s5 + $0xa88] ss:$16 sps:$4 sm:$0xff]   ;;  %v15910_v45 = vld [vmem:[%s18103_s5 + $0x86c] ss:$16 sps:$4 sm:$0xff]  }
 0x2aa   : > { %5803 = vmatprep.subr.bf16.mxu1 %v15853_v46  ;;  %v15913_v46 = vld [vmem:[%s18103_s5 + $0xa6c] ss:$16 sps:$4 sm:$0xff]  }
 0x2ac   : > { %5763 = vmatpush2.bf16.msra.mxu0 %v15848_v47  ;;  %v15908_v47 = vld [vmem:[%s18103_s5 + $0x868] ss:$16 sps:$4 sm:$0xff]  }
 0x2ad   : > { %5804 = vmatpush2.bf16.msra.mxu1 %v15851_v48  ;;  %5764 = vmatprep.subr.bf16.mxu0 %v15856_v55  ;;  %v15911_v48 = vld [vmem:[%s18103_s5 + $0xa68] ss:$16 sps:$4 sm:$0xff]   ;;  %v15916_v55 = vld [vmem:[%s18103_s5 + $0x84c] ss:$16 sps:$4 sm:$0xff]  }
 0x2ae   : > { %5805 = vmatprep.subr.bf16.mxu1 %v15859_v56  ;;  %v15919_v56 = vld [vmem:[%s18103_s5 + $0xa4c] ss:$16 sps:$4 sm:$0xff]  }
 0x2b0   : > { %5765 = vmatpush2.bf16.msra.mxu0 %v15854_v59  ;;  %v15914_v59 = vld [vmem:[%s18103_s5 + $0x848] ss:$16 sps:$4 sm:$0xff]  }
 0x2b1   : > { %5806 = vmatpush2.bf16.msra.mxu1 %v15857_v60  ;;  %5766 = vmatprep.subr.bf16.mxu0 %v15862_v61  ;;  %v15917_v60 = vld [vmem:[%s18103_s5 + $0xa48] ss:$16 sps:$4 sm:$0xff]   ;;  %v15922_v61 = vld [vmem:[%s18103_s5 + $0x82c] ss:$16 sps:$4 sm:$0xff]  }
 0x2b2   : > { %5807 = vmatprep.subr.bf16.mxu1 %v15865_v1  ;;  %v15925_v1 = vld [vmem:[%s18103_s5 + $0xa2c] ss:$16 sps:$4 sm:$0xff]  }
 0x2b4   : > { %5767 = vmatpush2.bf16.msra.mxu0 %v15860_v9  ;;  %v15920_v9 = vld [vmem:[%s18103_s5 + $0x828] ss:$16 sps:$4 sm:$0xff]  }
 0x2b5   : > { %5808 = vmatpush2.bf16.msra.mxu1 %v15863_v2  ;;  %5768 = vmatprep.subr.bf16.mxu0 %v15868_v10  ;;  %v15923_v2 = vld [vmem:[%s18103_s5 + $0xa28] ss:$16 sps:$4 sm:$0xff]   ;;  %v15928_v10 = vld [vmem:[%s18103_s5 + $0x80c] ss:$16 sps:$4 sm:$0xff]  }
 0x2b6   : > { %5809 = vmatprep.subr.bf16.mxu1 %v15871_v8  ;;  %v15931_v8 = vld [vmem:[%s18103_s5 + $0xa0c] ss:$16 sps:$4 sm:$0xff]  }
 0x2b8   : > { %5769 = vmatpush2.bf16.msra.mxu0 %v15866_v6  ;;  %v15926_v6 = vld [vmem:[%s18103_s5 + $0x808] ss:$16 sps:$4 sm:$0xff]  }
 0x2b9   : > { %5810 = vmatpush2.bf16.msra.mxu1 %v15869_v7  ;;  %5770 = vmatprep.subr.bf16.mxu0 %v15874_v17  ;;  %v15929_v7 = vld [vmem:[%s18103_s5 + $0xa08] ss:$16 sps:$4 sm:$0xff]   ;;  %v15934_v17 = vld [vmem:[%s18103_s5 + $0x9ec] ss:$16 sps:$4 sm:$0xff]  }
 0x2ba   : > { %5811 = vmatprep.subr.bf16.mxu1 %v15877_v38  ;;  %v15937_v38 = vld [vmem:[%s18103_s5 + $0xbec] ss:$16 sps:$4 sm:$0xff]  }
 0x2bc   : > { %5771 = vmatpush2.bf16.msra.mxu0 %v15872_v41  ;;  %v15932_v41 = vld [vmem:[%s18103_s5 + $0x9e8] ss:$16 sps:$4 sm:$0xff]  }
 0x2bd   : > { %5812 = vmatpush2.bf16.msra.mxu1 %v15875_v13  ;;  %5772 = vmatprep.subr.bf16.mxu0 %v15880_v15  ;;  %v15935_v13 = vld [vmem:[%s18103_s5 + $0xbe8] ss:$16 sps:$4 sm:$0xff]   ;;  %v15940_v15 = vld [vmem:[%s18103_s5 + $0x9cc] ss:$16 sps:$4 sm:$0xff]  }
 0x2be   : > { %5813 = vmatprep.subr.bf16.mxu1 %v15883_v16  ;;  %v15943_v16 = vld [vmem:[%s18103_s5 + $0xbcc] ss:$16 sps:$4 sm:$0xff]  }
 0x2c0   : > { %5773 = vmatpush2.bf16.msra.mxu0 %v15878_v14  ;;  %v15938_v14 = vld [vmem:[%s18103_s5 + $0x9c8] ss:$16 sps:$4 sm:$0xff]  }
 0x2c1   : > { %5814 = vmatpush2.bf16.msra.mxu1 %v15881_v18  ;;  %5824 = vmatprep.subr.bf16.mxu0 %v15886_v19  ;;  %v15941_v18 = vld [vmem:[%s18103_s5 + $0xbc8] ss:$16 sps:$4 sm:$0xff]   ;;  %v15946_v19 = vld [vmem:[%s18103_s5 + $0x9ac] ss:$16 sps:$4 sm:$0xff]  }
 0x2c2   : > { %5865 = vmatprep.subr.bf16.mxu1 %v15889_v23  ;;  %v15949_v23 = vld [vmem:[%s18103_s5 + $0xbac] ss:$16 sps:$4 sm:$0xff]  }
 0x2c3   : > { %v18773_v24 = vpop.f32.mrf.mxu0  ;;  %5775 = vmatmul.mubr.bf16.vlgmr.msra.gmra.mxu0 %v18287_v21 }
 0x2c4   : > { %v18775_v26 = vpop.f32.mrf.mxu1  ;;  %5816 = vmatmul.mubr.bf16.vlgmr.msra.gmra.mxu1 %v18289_v22  ;;  %5825 = vmatpush1.bf16.msra.mxu0 %v15884_v20  ;;  %v15944_v20 = vld [vmem:[%s18103_s5 + $0x9a8] ss:$16 sps:$4 sm:$0xff]  }
 0x2c5   : > { %5866 = vmatpush1.bf16.msra.mxu1 %v15887_v50  ;;  %v18781_v29 = vpop.f32.mrf.mxu0  ;;  %5826 = vmatprep.subr.bf16.mxu0 %v15892_v53  ;;  %v15947_v50 = vld [vmem:[%s18103_s5 + $0xba8] ss:$16 sps:$4 sm:$0xff]   ;;  %v15952_v53 = vld [vmem:[%s18103_s5 + $0x98c] ss:$16 sps:$4 sm:$0xff]  }
 0x2c6   : > { %v18783_v31 = vpop.f32.mrf.mxu1  ;;  %5867 = vmatprep.subr.bf16.mxu1 %v15895_v25  ;;  %5856 = vmatprep.mubr.bf16.mxu0 %v18300_v30  ;;  %v15907_v30 = vld [vmem:[%s18103_s5 + $0xa8c] ss:$16 sps:$4 sm:$0xff]  }
 0x2c7   : > { %5897 = vmatprep.mubr.bf16.mxu1 %v18304_v33  ;;  %v5534_v21 = vpop.f32.mrf.mxu0  ;;  %v15902_v33 = vld [vmem:[%s18103_s5 + $0x888] ss:$16 sps:$4 sm:$0xff]   ;;  %v15955_v25 = vld [vmem:[%s18103_s5 + $0xb8c] ss:$16 sps:$4 sm:$0xff]  }
 0x2c8   : > { %v5575_v22 = vpop.f32.mrf.mxu1  ;;  %5827 = vmatpush1.bf16.msra.mxu0 %v15890_v27  ;;  %v15950_v27 = vld [vmem:[%s18103_s5 + $0x988] ss:$16 sps:$4 sm:$0xff]  }
 0x2c9   : > { %5868 = vmatpush1.bf16.msra.mxu1 %v15893_v28  ;;  %v5535_v37 = vpop.f32.mrf.mxu0  ;;  %5828 = vmatprep.subr.bf16.mxu0 %v15898_v32  ;;  %v15953_v28 = vld [vmem:[%s18103_s5 + $0xb88] ss:$16 sps:$4 sm:$0xff]   ;;  %v15958_v32 = vld [vmem:[%s18103_s5 + $0x96c] ss:$16 sps:$4 sm:$0xff]  }
 0x2ca   : > { %v5576_v39 = vpop.f32.mrf.mxu1  ;;  %5869 = vmatprep.subr.bf16.mxu1 %v15901_v34  ;;  %v15961_v34 = vld [vmem:[%s18103_s5 + $0xb6c] ss:$16 sps:$4 sm:$0xff]   ;;  %v15956_v21 = vld [vmem:[%s18103_s5 + $0x968] ss:$16 sps:$4 sm:$0xff]  }
 0x2cb   : > { %v15959_v22 = vld [vmem:[%s18103_s5 + $0xb68] ss:$16 sps:$4 sm:$0xff]  }
 0x2cc   : > { %5829 = vmatpush1.bf16.msra.mxu0 %v15896_v35  ;;  %v15964_v35 = vld [vmem:[%s18103_s5 + $0x94c] ss:$16 sps:$4 sm:$0xff]   ;;  %v15962_v37 = vld [vmem:[%s18103_s5 + $0x948] ss:$16 sps:$4 sm:$0xff]  }
 0x2cd   : > { %5870 = vmatpush1.bf16.msra.mxu1 %v15899_v36  ;;  %5830 = vmatprep.subr.bf16.mxu0 %v15904_v40  ;;  %v15967_v36 = vld [vmem:[%s18103_s5 + $0xb4c] ss:$16 sps:$4 sm:$0xff]   ;;  %v15965_v39 = vld [vmem:[%s18103_s5 + $0xb48] ss:$16 sps:$4 sm:$0xff]  }
 0x2ce   : > { %5871 = vmatprep.subr.bf16.mxu1 %v15907_v30  ;;  %v15970_v40 = vld [vmem:[%s18103_s5 + $0x92c] ss:$16 sps:$4 sm:$0xff]  }
 0x2cf   : > { %v15973_v30 = vld [vmem:[%s18103_s5 + $0xb2c] ss:$16 sps:$4 sm:$0xff]  }
 0x2d0   : > { %5831 = vmatpush1.bf16.msra.mxu0 %v15902_v33  ;;  %v15968_v33 = vld [vmem:[%s18103_s5 + $0x928] ss:$16 sps:$4 sm:$0xff]  }
 0x2d1   : > { %5872 = vmatpush1.bf16.msra.mxu1 %v15905_v42  ;;  %5832 = vmatprep.subr.bf16.mxu0 %v15910_v45  ;;  %v15971_v42 = vld [vmem:[%s18103_s5 + $0xb28] ss:$16 sps:$4 sm:$0xff]   ;;  %v15976_v45 = vld [vmem:[%s18103_s5 + $0x90c] ss:$16 sps:$4 sm:$0xff]  }
 0x2d2   : > { %5873 = vmatprep.subr.bf16.mxu1 %v15913_v46  ;;  %v15979_v46 = vld [vmem:[%s18103_s5 + $0xb0c] ss:$16 sps:$4 sm:$0xff]  }
 0x2d4   : > { %5833 = vmatpush1.bf16.msra.mxu0 %v15908_v47  ;;  %v15974_v47 = vld [vmem:[%s18103_s5 + $0x908] ss:$16 sps:$4 sm:$0xff]  }
 0x2d5   : > { %5874 = vmatpush1.bf16.msra.mxu1 %v15911_v48  ;;  %5834 = vmatprep.subr.bf16.mxu0 %v15916_v55  ;;  %v15977_v48 = vld [vmem:[%s18103_s5 + $0xb08] ss:$16 sps:$4 sm:$0xff]   ;;  %v15982_v55 = vld [vmem:[%s18103_s5 + $0xcec] ss:$16 sps:$4 sm:$0xff]  }
 0x2d6   : > { %5875 = vmatprep.subr.bf16.mxu1 %v15919_v56  ;;  %v15985_v56 = vld [vmem:[%s18103_s5 + $0xeec] ss:$16 sps:$4 sm:$0xff]  }
 0x2d8   : > { %5835 = vmatpush1.bf16.msra.mxu0 %v15914_v59  ;;  %v5531_v59 = vadd.f32 %v18773_v24, %v18706_v62  ;;  %v15986_v24 = vld [vmem:[%s18103_s5 + $0xcc8] ss:$16 sps:$4 sm:$0xff]  }
 0x2d9   : > { %5876 = vmatpush1.bf16.msra.mxu1 %v15917_v60  ;;  %5836 = vmatprep.subr.bf16.mxu0 %v15922_v61  ;;  %v5533_v60 = vadd.f32 %v18781_v29, %v18713_v5  ;;  %v15980_v61 = vld [vmem:[%s18103_s5 + $0xce8] ss:$16 sps:$4 sm:$0xff]  }
 0x2da   : > { %5877 = vmatprep.subr.bf16.mxu1 %v15925_v1  ;;  %v15983_v1 = vld [vmem:[%s18103_s5 + $0xee8] ss:$16 sps:$4 sm:$0xff]  }
 0x2db   : > { %v5574_v62 = vadd.f32 %v18783_v31, %v5533_v60  ;;  %v15989_v29 = vld [vmem:[%s18103_s5 + $0xec8] ss:$16 sps:$4 sm:$0xff]   ;;  %v16039_v60 = vld [vmem:[%s18103_s5 + $0xfcc] ss:$16 sps:$4 sm:$0xff]  }
 0x2dc   : > { %5837 = vmatpush1.bf16.msra.mxu0 %v15920_v9  ;;  %v15988_v9 = vld [vmem:[%s18103_s5 + $0xccc] ss:$16 sps:$4 sm:$0xff]  }
 0x2dd   : > { %5878 = vmatpush1.bf16.msra.mxu1 %v15923_v2  ;;  %5838 = vmatprep.subr.bf16.mxu0 %v15928_v10  ;;  %v15991_v2 = vld [vmem:[%s18103_s5 + $0xecc] ss:$16 sps:$4 sm:$0xff]   ;;  %v5572_v10 = vadd.f32 %v18775_v26, %v5531_v59 }
 0x2de   : > { %5879 = vmatprep.subr.bf16.mxu1 %v15931_v8  ;;  %v15994_v26 = vld [vmem:[%s18103_s5 + $0xcac] ss:$16 sps:$4 sm:$0xff]  }
 0x2df   : > { %v16036_v59 = vld [vmem:[%s18103_s5 + $0xdcc] ss:$16 sps:$4 sm:$0xff]  }
 0x2e0   : > { %5839 = vmatpush1.bf16.msra.mxu0 %v15926_v6 }
 0x2e1   : > { %5880 = vmatpush1.bf16.msra.mxu1 %v15929_v7  ;;  %5840 = vmatprep.subr.bf16.mxu0 %v15934_v17  ;;  %v556_v7 = vld [vmem:[#allocation2 + $0x10] sm:$0xff] }
 0x2e2   : > { %5881 = vmatprep.subr.bf16.mxu1 %v15937_v38 }
 0x2e4   : > { %5841 = vmatpush2.bf16.msra.mxu0 %v15932_v41  ;;  %v15997_v41 = vld [vmem:[%s18103_s5 + $0xeac] ss:$16 sps:$4 sm:$0xff]  }
 0x2e5   : > { %5882 = vmatpush2.bf16.msra.mxu1 %v15935_v13  ;;  %5842 = vmatprep.subr.bf16.mxu0 %v15940_v15 }
 0x2e6   : > { %5883 = vmatprep.subr.bf16.mxu1 %v15943_v16 }
 0x2e8   : > { %5843 = vmatpush2.bf16.msra.mxu0 %v15938_v14 }
 0x2e9   : > { %5884 = vmatpush2.bf16.msra.mxu1 %v15941_v18  ;;  %5844 = vmatprep.subr.bf16.mxu0 %v15946_v19  ;;  %v15992_v18 = vld [vmem:[%s18103_s5 + $0xca8] ss:$16 sps:$4 sm:$0xff]  }
 0x2ea   : > { %5885 = vmatprep.subr.bf16.mxu1 %v15949_v23  ;;  %v15995_v19 = vld [vmem:[%s18103_s5 + $0xea8] ss:$16 sps:$4 sm:$0xff]  }
 0x2ec   : > { %5845 = vmatpush2.bf16.msra.mxu0 %v15944_v20 }
 0x2ed   : > { %5886 = vmatpush2.bf16.msra.mxu1 %v15947_v50  ;;  %5846 = vmatprep.subr.bf16.mxu0 %v15952_v53  ;;  %v15998_v53 = vld [vmem:[%s18103_s5 + $0xc88] ss:$16 sps:$4 sm:$0xff]  }
 0x2ee   : > { %5887 = vmatprep.subr.bf16.mxu1 %v15955_v25  ;;  %v16001_v25 = vld [vmem:[%s18103_s5 + $0xe88] ss:$16 sps:$4 sm:$0xff]  }
 0x2f0   : > { %5847 = vmatpush2.bf16.msra.mxu0 %v15950_v27  ;;  %v16006_v27 = vld [vmem:[%s18103_s5 + $0xc6c] ss:$16 sps:$4 sm:$0xff]  }
 0x2f1   : > { %5888 = vmatpush2.bf16.msra.mxu1 %v15953_v28  ;;  %5848 = vmatprep.subr.bf16.mxu0 %v15958_v32  ;;  %v16009_v28 = vld [vmem:[%s18103_s5 + $0xe6c] ss:$16 sps:$4 sm:$0xff]   ;;  %v16004_v32 = vld [vmem:[%s18103_s5 + $0xc68] ss:$16 sps:$4 sm:$0xff]  }
 0x2f2   : > { %5889 = vmatprep.subr.bf16.mxu1 %v15961_v34  ;;  %v16007_v34 = vld [vmem:[%s18103_s5 + $0xe68] ss:$16 sps:$4 sm:$0xff]  }
 0x2f4   : > { %5849 = vmatpush2.bf16.msra.mxu0 %v15956_v21  ;;  %v16012_v21 = vld [vmem:[%s18103_s5 + $0xc4c] ss:$16 sps:$4 sm:$0xff]  }
 0x2f5   : > { %5890 = vmatpush2.bf16.msra.mxu1 %v15959_v22  ;;  %5850 = vmatprep.subr.bf16.mxu0 %v15964_v35  ;;  %v16015_v22 = vld [vmem:[%s18103_s5 + $0xe4c] ss:$16 sps:$4 sm:$0xff]   ;;  %v16010_v35 = vld [vmem:[%s18103_s5 + $0xc48] ss:$16 sps:$4 sm:$0xff]  }
 0x2f6   : > { %5891 = vmatprep.subr.bf16.mxu1 %v15967_v36  ;;  %v16013_v36 = vld [vmem:[%s18103_s5 + $0xe48] ss:$16 sps:$4 sm:$0xff]  }
 0x2f8   : > { %5851 = vmatpush2.bf16.msra.mxu0 %v15962_v37  ;;  %v16018_v37 = vld [vmem:[%s18103_s5 + $0xc2c] ss:$16 sps:$4 sm:$0xff]  }
 0x2f9   : > { %5892 = vmatpush2.bf16.msra.mxu1 %v15965_v39  ;;  %5852 = vmatprep.subr.bf16.mxu0 %v15970_v40  ;;  %v16021_v39 = vld [vmem:[%s18103_s5 + $0xe2c] ss:$16 sps:$4 sm:$0xff]   ;;  %v16016_v40 = vld [vmem:[%s18103_s5 + $0xc28] ss:$16 sps:$4 sm:$0xff]  }
 0x2fa   : > { %5893 = vmatprep.subr.bf16.mxu1 %v15973_v30  ;;  %v16019_v30 = vld [vmem:[%s18103_s5 + $0xe28] ss:$16 sps:$4 sm:$0xff]  }
 0x2fc   : > { %5853 = vmatpush2.bf16.msra.mxu0 %v15968_v33  ;;  %v16024_v33 = vld [vmem:[%s18103_s5 + $0xc0c] ss:$16 sps:$4 sm:$0xff]  }
 0x2fd   : > { %5894 = vmatpush2.bf16.msra.mxu1 %v15971_v42  ;;  %5854 = vmatprep.subr.bf16.mxu0 %v15976_v45  ;;  %v16027_v42 = vld [vmem:[%s18103_s5 + $0xe0c] ss:$16 sps:$4 sm:$0xff]   ;;  %v16022_v45 = vld [vmem:[%s18103_s5 + $0xc08] ss:$16 sps:$4 sm:$0xff]  }
 0x2fe   : > { %5895 = vmatprep.subr.bf16.mxu1 %v15979_v46  ;;  %v16025_v46 = vld [vmem:[%s18103_s5 + $0xe08] ss:$16 sps:$4 sm:$0xff]  }
 0x300   : > { %5855 = vmatpush2.bf16.msra.mxu0 %v15974_v47  ;;  %v16030_v47 = vld [vmem:[%s18103_s5 + $0xdec] ss:$16 sps:$4 sm:$0xff]  }
 0x301   : > { %5896 = vmatpush2.bf16.msra.mxu1 %v15977_v48  ;;  %5906 = vmatprep.subr.bf16.mxu0 %v15982_v55  ;;  %v16033_v48 = vld [vmem:[%s18103_s5 + $0xfec] ss:$16 sps:$4 sm:$0xff]   ;;  %v16028_v55 = vld [vmem:[%s18103_s5 + $0xde8] ss:$16 sps:$4 sm:$0xff]  }
 0x302   : > { %5947 = vmatprep.subr.bf16.mxu1 %v15985_v56  ;;  %v16031_v56 = vld [vmem:[%s18103_s5 + $0xfe8] ss:$16 sps:$4 sm:$0xff]  }
 0x303   : > { %v5612_v8 = vpop.f32.mrf.mxu0  ;;  %5857 = vmatmul.mubr.bf16.vlgmr.msra.gmra.mxu0 %v18369_v43 }
 0x304   : > { %v5653_v6 = vpop.f32.mrf.mxu1  ;;  %5898 = vmatmul.mubr.bf16.vlgmr.msra.gmra.mxu1 %v18371_v44  ;;  %v5613_v5 = vadd.f32 %v5612_v8, %v5572_v10  ;;  %5907 = vmatpush1.bf16.msra.mxu0 %v15980_v61  ;;  %v557_v44 = vld [vmem:[#allocation2] sm:$0xff]  ;;  %v16034_v61 = vld [vmem:[%s18103_s5 + $0xdc8] ss:$16 sps:$4 sm:$0xff]  }
 0x305   : > { %5948 = vmatpush1.bf16.msra.mxu1 %v15983_v1  ;;  %v5614_v17 = vpop.f32.mrf.mxu0  ;;  %5908 = vmatprep.subr.bf16.mxu0 %v15988_v9  ;;  %v16037_v1 = vld [vmem:[%s18103_s5 + $0xfc8] ss:$16 sps:$4 sm:$0xff]   ;;  %v16042_v9 = vld [vmem:[%s18103_s5 + $0xdac] ss:$16 sps:$4 sm:$0xff]  }
 0x306   : > { %v5655_v38 = vpop.f32.mrf.mxu1  ;;  %5949 = vmatprep.subr.bf16.mxu1 %v15991_v2  ;;  %v5654_v13 = vadd.f32 %v5653_v6, %v5613_v5  ;;  %v5615_v43 = vadd.f32 %v5614_v17, %v5574_v62  ;;  %5938 = vmatprep.mubr.bf16.mxu0 %v18377_v49  ;;  %v16000_v49 = vld [vmem:[%s18103_s5 + $0xc8c] ss:$16 sps:$4 sm:$0xff]   ;;  %v16040_v10 = vld [vmem:[%s18103_s5 + $0xda8] ss:$16 sps:$4 sm:$0xff]  }
 0x307   : > { %5979 = vmatprep.mubr.bf16.mxu1 %v18379_v51  ;;  %v5616_v31 = vpop.f32.mrf.mxu0  ;;  %v16003_v51 = vld [vmem:[%s18103_s5 + $0xe8c] ss:$16 sps:$4 sm:$0xff]   ;;  %v16043_v8 = vld [vmem:[%s18103_s5 + $0xfa8] ss:$16 sps:$4 sm:$0xff]  }
 0x308   : > { %v5657_v15 = vpop.f32.mrf.mxu1  ;;  %v6152_v16 = vadd.f32 %v5654_v13, %v556_v7  ;;  %v5656_v14 = vadd.f32 %v5655_v38, %v5615_v43  ;;  %5909 = vmatpush1.bf16.msra.mxu0 %v15986_v24  ;;  %v16045_v2 = vld [vmem:[%s18103_s5 + $0xfac] ss:$16 sps:$4 sm:$0xff]   ;;  %v16046_v5 = vld [vmem:[%s18103_s5 + $0xd88] ss:$16 sps:$4 sm:$0xff]  }
 0x309   : > { %5950 = vmatpush1.bf16.msra.mxu1 %v15989_v29  ;;  %v5617_v23 = vpop.f32.mrf.mxu0  ;;  %5910 = vmatprep.subr.bf16.mxu0 %v15994_v26  ;;  %v16048_v6 = vld [vmem:[%s18103_s5 + $0xd8c] ss:$16 sps:$4 sm:$0xff]   ;;  %v16049_v24 = vld [vmem:[%s18103_s5 + $0xf88] ss:$16 sps:$4 sm:$0xff]  }
 0x30a   : > { %v5658_v20 = vpop.f32.mrf.mxu1  ;;  %5951 = vmatprep.subr.bf16.mxu1 %v15997_v41  ;;  %6156 = vst [vmem:[#allocation2 + $0x10] sm:$0xff] %v6152_v16  ;;  %v6153_v50 = vadd.f32 %v5656_v14, %v557_v44  ;;  %v16051_v62 = vld [vmem:[%s18103_s5 + $0xf8c] ss:$16 sps:$4 sm:$0xff]   ;;  %v16052_v17 = vld [vmem:[%s18103_s5 + $0xd68] ss:$16 sps:$4 sm:$0xff]  }
 0x30b   : > { %v16054_v29 = vld [vmem:[%s18103_s5 + $0xd6c] ss:$16 sps:$4 sm:$0xff]   ;;  %v16055_v38 = vld [vmem:[%s18103_s5 + $0xf68] ss:$16 sps:$4 sm:$0xff]  }
 0x30c   : > { %6157 = vst [vmem:[#allocation2] sm:$0xff] %v6153_v50  ;;  %5911 = vmatpush1.bf16.msra.mxu0 %v15992_v18  ;;  %v16057_v7 = vld [vmem:[%s18103_s5 + $0xf6c] ss:$16 sps:$4 sm:$0xff]   ;;  %v16058_v13 = vld [vmem:[%s18103_s5 + $0xd48] ss:$16 sps:$4 sm:$0xff]  }
 0x30d   : > { %5952 = vmatpush1.bf16.msra.mxu1 %v15995_v19  ;;  %5912 = vmatprep.subr.bf16.mxu0 %v16000_v49  ;;  %v16060_v26 = vld [vmem:[%s18103_s5 + $0xd4c] ss:$16 sps:$4 sm:$0xff]   ;;  %v16061_v43 = vld [vmem:[%s18103_s5 + $0xf48] ss:$16 sps:$4 sm:$0xff]  }
 0x30e   : > { %5953 = vmatprep.subr.bf16.mxu1 %v16003_v51  ;;  %v16063_v41 = vld [vmem:[%s18103_s5 + $0xf4c] ss:$16 sps:$4 sm:$0xff]   ;;  %v16064_v15 = vld [vmem:[%s18103_s5 + $0xd28] ss:$16 sps:$4 sm:$0xff]  }
 0x30f   : > { %v16066_v44 = vld [vmem:[%s18103_s5 + $0xd2c] ss:$16 sps:$4 sm:$0xff]   ;;  %v16067_v16 = vld [vmem:[%s18103_s5 + $0xf28] ss:$16 sps:$4 sm:$0xff]  }
 0x310   : > { %5913 = vmatpush1.bf16.msra.mxu0 %v15998_v53  ;;  %v16069_v31 = vld [vmem:[%s18103_s5 + $0xf2c] ss:$16 sps:$4 sm:$0xff]   ;;  %v16070_v19 = vld [vmem:[%s18103_s5 + $0xd08] ss:$16 sps:$4 sm:$0xff]  }
 0x311   : > { %5954 = vmatpush1.bf16.msra.mxu1 %v16001_v25  ;;  %5914 = vmatprep.subr.bf16.mxu0 %v16006_v27  ;;  %v16072_v14 = vld [vmem:[%s18103_s5 + $0xd0c] ss:$16 sps:$4 sm:$0xff]   ;;  %v16073_v23 = vld [vmem:[%s18103_s5 + $0xf08] ss:$16 sps:$4 sm:$0xff]  }
 0x312   : > { %5955 = vmatprep.subr.bf16.mxu1 %v16009_v28  ;;  %v16075_v18 = vld [vmem:[%s18103_s5 + $0xf0c] ss:$16 sps:$4 sm:$0xff]   ;;  %v16076_v51 = vld [vmem:[%s18103_s5 + $0x10e8] ss:$16 sps:$4 sm:$0xff]  }
 0x313   : > { %v16078_v20 = vld [vmem:[%s18103_s5 + $0x10ec] ss:$16 sps:$4 sm:$0xff]   ;;  %v16079_v50 = vld [vmem:[%s18103_s5 + $0x12e8] ss:$16 sps:$4 sm:$0xff]  }
 0x314   : > { %5915 = vmatpush1.bf16.msra.mxu0 %v16004_v32  ;;  %v16081_v49 = vld [vmem:[%s18103_s5 + $0x12ec] ss:$16 sps:$4 sm:$0xff]  }
 0x315   : > { %5956 = vmatpush1.bf16.msra.mxu1 %v16007_v34  ;;  %5916 = vmatprep.subr.bf16.mxu0 %v16012_v21  ;;  %v16084_v53 = vld [vmem:[%s18103_s5 + $0x10cc] ss:$16 sps:$4 sm:$0xff]   ;;  %v16082_v34 = vld [vmem:[%s18103_s5 + $0x10c8] ss:$16 sps:$4 sm:$0xff]  }
 0x316   : > { %5957 = vmatprep.subr.bf16.mxu1 %v16015_v22  ;;  %v16087_v25 = vld [vmem:[%s18103_s5 + $0x12cc] ss:$16 sps:$4 sm:$0xff]   ;;  %v16085_v21 = vld [vmem:[%s18103_s5 + $0x12c8] ss:$16 sps:$4 sm:$0xff]  }
 0x318   : > { %5917 = vmatpush1.bf16.msra.mxu0 %v16010_v35 }
 0x319   : > { %5958 = vmatpush1.bf16.msra.mxu1 %v16013_v36  ;;  %5918 = vmatprep.subr.bf16.mxu0 %v16018_v37  ;;  %v16090_v36 = vld [vmem:[%s18103_s5 + $0x10ac] ss:$16 sps:$4 sm:$0xff]  }
 0x31a   : > { %5959 = vmatprep.subr.bf16.mxu1 %v16021_v39  ;;  %v16093_v37 = vld [vmem:[%s18103_s5 + $0x12ac] ss:$16 sps:$4 sm:$0xff]  }
 0x31c   : > { %5919 = vmatpush1.bf16.msra.mxu0 %v16016_v40  ;;  %v16088_v40 = vld [vmem:[%s18103_s5 + $0x10a8] ss:$16 sps:$4 sm:$0xff]  }
 0x31d   : > { %5960 = vmatpush1.bf16.msra.mxu1 %v16019_v30  ;;  %5920 = vmatprep.subr.bf16.mxu0 %v16024_v33  ;;  %v16091_v30 = vld [vmem:[%s18103_s5 + $0x12a8] ss:$16 sps:$4 sm:$0xff]  }
 0x31e   : > { %5961 = vmatprep.subr.bf16.mxu1 %v16027_v42 }
 0x320   : > { %5921 = vmatpush1.bf16.msra.mxu0 %v16022_v45  ;;  %v16096_v45 = vld [vmem:[%s18103_s5 + $0x108c] ss:$16 sps:$4 sm:$0xff]  }
 0x321   : > { %5962 = vmatpush1.bf16.msra.mxu1 %v16025_v46  ;;  %5922 = vmatprep.subr.bf16.mxu0 %v16030_v47  ;;  %v16097_v46 = vld [vmem:[%s18103_s5 + $0x1288] ss:$16 sps:$4 sm:$0xff]   ;;  %v16102_v47 = vld [vmem:[%s18103_s5 + $0x106c] ss:$16 sps:$4 sm:$0xff]  }
 0x322   : > { %5963 = vmatprep.subr.bf16.mxu1 %v16033_v48  ;;  %v16105_v48 = vld [vmem:[%s18103_s5 + $0x126c] ss:$16 sps:$4 sm:$0xff]  }
 0x324   : > { %5923 = vmatpush2.bf16.msra.mxu0 %v16028_v55  ;;  %v16100_v55 = vld [vmem:[%s18103_s5 + $0x1068] ss:$16 sps:$4 sm:$0xff]  }
 0x325   : > { %5964 = vmatpush2.bf16.msra.mxu1 %v16031_v56  ;;  %5924 = vmatprep.subr.bf16.mxu0 %v16036_v59  ;;  %v16103_v56 = vld [vmem:[%s18103_s5 + $0x1268] ss:$16 sps:$4 sm:$0xff]   ;;  %v16108_v59 = vld [vmem:[%s18103_s5 + $0x104c] ss:$16 sps:$4 sm:$0xff]  }
 0x326   : > { %5965 = vmatprep.subr.bf16.mxu1 %v16039_v60  ;;  %v16111_v60 = vld [vmem:[%s18103_s5 + $0x124c] ss:$16 sps:$4 sm:$0xff]  }
 0x328   : > { %5925 = vmatpush2.bf16.msra.mxu0 %v16034_v61  ;;  %v16106_v61 = vld [vmem:[%s18103_s5 + $0x1048] ss:$16 sps:$4 sm:$0xff]  }
 0x329   : > { %5966 = vmatpush2.bf16.msra.mxu1 %v16037_v1  ;;  %5926 = vmatprep.subr.bf16.mxu0 %v16042_v9  ;;  %v16109_v1 = vld [vmem:[%s18103_s5 + $0x1248] ss:$16 sps:$4 sm:$0xff]   ;;  %v16114_v9 = vld [vmem:[%s18103_s5 + $0x102c] ss:$16 sps:$4 sm:$0xff]  }
 0x32a   : > { %5967 = vmatprep.subr.bf16.mxu1 %v16045_v2  ;;  %v16117_v2 = vld [vmem:[%s18103_s5 + $0x122c] ss:$16 sps:$4 sm:$0xff]  }
 0x32c   : > { %5927 = vmatpush2.bf16.msra.mxu0 %v16040_v10  ;;  %v16112_v10 = vld [vmem:[%s18103_s5 + $0x1028] ss:$16 sps:$4 sm:$0xff]  }
 0x32d   : > { %5968 = vmatpush2.bf16.msra.mxu1 %v16043_v8  ;;  %5928 = vmatprep.subr.bf16.mxu0 %v16048_v6  ;;  %v16115_v8 = vld [vmem:[%s18103_s5 + $0x1228] ss:$16 sps:$4 sm:$0xff]   ;;  %v16120_v6 = vld [vmem:[%s18103_s5 + $0x100c] ss:$16 sps:$4 sm:$0xff]  }
 0x32e   : > { %5969 = vmatprep.subr.bf16.mxu1 %v16051_v62  ;;  %v16123_v62 = vld [vmem:[%s18103_s5 + $0x120c] ss:$16 sps:$4 sm:$0xff]  }
 0x330   : > { %5929 = vmatpush2.bf16.msra.mxu0 %v16046_v5  ;;  %v16118_v5 = vld [vmem:[%s18103_s5 + $0x1008] ss:$16 sps:$4 sm:$0xff]  }
 0x331   : > { %5970 = vmatpush2.bf16.msra.mxu1 %v16049_v24  ;;  %5930 = vmatprep.subr.bf16.mxu0 %v16054_v29  ;;  %v16121_v24 = vld [vmem:[%s18103_s5 + $0x1208] ss:$16 sps:$4 sm:$0xff]   ;;  %v16126_v29 = vld [vmem:[%s18103_s5 + $0x11ec] ss:$16 sps:$4 sm:$0xff]  }
 0x332   : > { %5971 = vmatprep.subr.bf16.mxu1 %v16057_v7  ;;  %v16129_v7 = vld [vmem:[%s18103_s5 + $0x13ec] ss:$16 sps:$4 sm:$0xff]  }
 0x334   : > { %5931 = vmatpush2.bf16.msra.mxu0 %v16052_v17  ;;  %v16124_v17 = vld [vmem:[%s18103_s5 + $0x11e8] ss:$16 sps:$4 sm:$0xff]  }
 0x335   : > { %5972 = vmatpush2.bf16.msra.mxu1 %v16055_v38  ;;  %5932 = vmatprep.subr.bf16.mxu0 %v16060_v26  ;;  %v16127_v38 = vld [vmem:[%s18103_s5 + $0x13e8] ss:$16 sps:$4 sm:$0xff]   ;;  %v16132_v26 = vld [vmem:[%s18103_s5 + $0x11cc] ss:$16 sps:$4 sm:$0xff]  }
 0x336   : > { %5973 = vmatprep.subr.bf16.mxu1 %v16063_v41  ;;  %v16135_v41 = vld [vmem:[%s18103_s5 + $0x13cc] ss:$16 sps:$4 sm:$0xff]  }
 0x338   : > { %5933 = vmatpush2.bf16.msra.mxu0 %v16058_v13  ;;  %v16130_v13 = vld [vmem:[%s18103_s5 + $0x11c8] ss:$16 sps:$4 sm:$0xff]  }
 0x339   : > { %5974 = vmatpush2.bf16.msra.mxu1 %v16061_v43  ;;  %5934 = vmatprep.subr.bf16.mxu0 %v16066_v44  ;;  %v16133_v43 = vld [vmem:[%s18103_s5 + $0x13c8] ss:$16 sps:$4 sm:$0xff]   ;;  %v16138_v44 = vld [vmem:[%s18103_s5 + $0x11ac] ss:$16 sps:$4 sm:$0xff]  }
 0x33a   : > { %5975 = vmatprep.subr.bf16.mxu1 %v16069_v31  ;;  %v16141_v31 = vld [vmem:[%s18103_s5 + $0x13ac] ss:$16 sps:$4 sm:$0xff]  }
 0x33c   : > { %5935 = vmatpush2.bf16.msra.mxu0 %v16064_v15  ;;  %v16136_v15 = vld [vmem:[%s18103_s5 + $0x11a8] ss:$16 sps:$4 sm:$0xff]  }
 0x33d   : > { %5976 = vmatpush2.bf16.msra.mxu1 %v16067_v16  ;;  %5936 = vmatprep.subr.bf16.mxu0 %v16072_v14  ;;  %v16139_v16 = vld [vmem:[%s18103_s5 + $0x13a8] ss:$16 sps:$4 sm:$0xff]   ;;  %v16144_v14 = vld [vmem:[%s18103_s5 + $0x118c] ss:$16 sps:$4 sm:$0xff]  }
 0x33e   : > { %5977 = vmatprep.subr.bf16.mxu1 %v16075_v18  ;;  %v16147_v18 = vld [vmem:[%s18103_s5 + $0x138c] ss:$16 sps:$4 sm:$0xff]  }
 0x340   : > { %5937 = vmatpush2.bf16.msra.mxu0 %v16070_v19  ;;  %v16142_v19 = vld [vmem:[%s18103_s5 + $0x1188] ss:$16 sps:$4 sm:$0xff]  }
 0x341   : > { %5978 = vmatpush2.bf16.msra.mxu1 %v16073_v23  ;;  %5988 = vmatprep.subr.bf16.mxu0 %v16078_v20  ;;  %v16145_v23 = vld [vmem:[%s18103_s5 + $0x1388] ss:$16 sps:$4 sm:$0xff]   ;;  %v16150_v20 = vld [vmem:[%s18103_s5 + $0x116c] ss:$16 sps:$4 sm:$0xff]  }
 0x342   : > { %6029 = vmatprep.subr.bf16.mxu1 %v16081_v49  ;;  %v16153_v49 = vld [vmem:[%s18103_s5 + $0x136c] ss:$16 sps:$4 sm:$0xff]  }
 0x343   : > { %v5694_v27 = vpop.f32.mrf.mxu0  ;;  %5939 = vmatmul.mubr.bf16.vlgmr.msra.gmra.mxu0 %v18449_v3 }
 0x344   : > { %v5735_v28 = vpop.f32.mrf.mxu1  ;;  %5980 = vmatmul.mubr.bf16.vlgmr.msra.gmra.mxu1 %v18451_v4  ;;  %5989 = vmatpush1.bf16.msra.mxu0 %v16076_v51  ;;  %v16148_v51 = vld [vmem:[%s18103_s5 + $0x1168] ss:$16 sps:$4 sm:$0xff]  }
 0x345   : > { %v18925_v32 = vadd.f32 %v5735_v28, %v5694_v27  ;;  %6030 = vmatpush1.bf16.msra.mxu1 %v16079_v50  ;;  %v5696_v22 = vpop.f32.mrf.mxu0  ;;  %5990 = vmatprep.subr.bf16.mxu0 %v16084_v53  ;;  %v16151_v50 = vld [vmem:[%s18103_s5 + $0x1368] ss:$16 sps:$4 sm:$0xff]   ;;  %v16156_v53 = vld [vmem:[%s18103_s5 + $0x114c] ss:$16 sps:$4 sm:$0xff]  }
 0x346   : > { %v5737_v35 = vpop.f32.mrf.mxu1  ;;  %6031 = vmatprep.subr.bf16.mxu1 %v16087_v25  ;;  %6020 = vmatprep.mubr.bf16.mxu0 %v18457_v11  ;;  %v16099_v11 = vld [vmem:[%s18103_s5 + $0x128c] ss:$16 sps:$4 sm:$0xff]   ;;  %v16154_v27 = vld [vmem:[%s18103_s5 + $0x1148] ss:$16 sps:$4 sm:$0xff]  }
 0x347   : > { %v18931_v39 = vadd.f32 %v5737_v35, %v5696_v22  ;;  %6061 = vmatprep.mubr.bf16.mxu1 %v18459_v12  ;;  %v5698_v3 = vpop.f32.mrf.mxu0  ;;  %v16094_v12 = vld [vmem:[%s18103_s5 + $0x1088] ss:$16 sps:$4 sm:$0xff]   ;;  %v16159_v25 = vld [vmem:[%s18103_s5 + $0x134c] ss:$16 sps:$4 sm:$0xff]  }
 0x348   : > { %v5739_v4 = vpop.f32.mrf.mxu1  ;;  %5991 = vmatpush1.bf16.msra.mxu0 %v16082_v34  ;;  %v16157_v28 = vld [vmem:[%s18103_s5 + $0x1348] ss:$16 sps:$4 sm:$0xff]   ;;  %v16162_v34 = vld [vmem:[%s18103_s5 + $0x112c] ss:$16 sps:$4 sm:$0xff]  }
 0x349   : > { %6032 = vmatpush1.bf16.msra.mxu1 %v16085_v21  ;;  %v5699_v33 = vpop.f32.mrf.mxu0  ;;  %5992 = vmatprep.subr.bf16.mxu0 %v16090_v36  ;;  %v16165_v21 = vld [vmem:[%s18103_s5 + $0x132c] ss:$16 sps:$4 sm:$0xff]   ;;  %v16160_v22 = vld [vmem:[%s18103_s5 + $0x1128] ss:$16 sps:$4 sm:$0xff]  }
 0x34a   : > { %v5740_v42 = vpop.f32.mrf.mxu1  ;;  %6033 = vmatprep.subr.bf16.mxu1 %v16093_v37  ;;  %v16163_v35 = vld [vmem:[%s18103_s5 + $0x1328] ss:$16 sps:$4 sm:$0xff]   ;;  %v16168_v36 = vld [vmem:[%s18103_s5 + $0x110c] ss:$16 sps:$4 sm:$0xff]  }
 0x34b   : > { %v16171_v37 = vld [vmem:[%s18103_s5 + $0x130c] ss:$16 sps:$4 sm:$0xff]   ;;  %v16166_v3 = vld [vmem:[%s18103_s5 + $0x1108] ss:$16 sps:$4 sm:$0xff]  }
 0x34c   : > { %5993 = vmatpush1.bf16.msra.mxu0 %v16088_v40  ;;  %v16169_v4 = vld [vmem:[%s18103_s5 + $0x1308] ss:$16 sps:$4 sm:$0xff]   ;;  %v16174_v40 = vld [vmem:[%s18103_s5 + $0x14ec] ss:$16 sps:$4 sm:$0xff]  }
 0x34d   : > { %6034 = vmatpush1.bf16.msra.mxu1 %v16091_v30  ;;  %5994 = vmatprep.subr.bf16.mxu0 %v16096_v45  ;;  %v16177_v30 = vld [vmem:[%s18103_s5 + $0x16ec] ss:$16 sps:$4 sm:$0xff]   ;;  %v16172_v33 = vld [vmem:[%s18103_s5 + $0x14e8] ss:$16 sps:$4 sm:$0xff]  }
 0x34e   : > { %6035 = vmatprep.subr.bf16.mxu1 %v16099_v11  ;;  %v16175_v42 = vld [vmem:[%s18103_s5 + $0x16e8] ss:$16 sps:$4 sm:$0xff]   ;;  %v16180_v45 = vld [vmem:[%s18103_s5 + $0x14cc] ss:$16 sps:$4 sm:$0xff]  }
 0x34f   : > { %v16183_v11 = vld [vmem:[%s18103_s5 + $0x16cc] ss:$16 sps:$4 sm:$0xff]  }
 0x350   : > { %5995 = vmatpush1.bf16.msra.mxu0 %v16094_v12 }
 0x351   : > { %6036 = vmatpush1.bf16.msra.mxu1 %v16097_v46  ;;  %5996 = vmatprep.subr.bf16.mxu0 %v16102_v47 }
 0x352   : > { %6037 = vmatprep.subr.bf16.mxu1 %v16105_v48  ;;  %v16178_v48 = vld [vmem:[%s18103_s5 + $0x14c8] ss:$16 sps:$4 sm:$0xff]  }
 0x354   : > { %5997 = vmatpush1.bf16.msra.mxu0 %v16100_v55  ;;  %v16181_v55 = vld [vmem:[%s18103_s5 + $0x16c8] ss:$16 sps:$4 sm:$0xff]  }
 0x355   : > { %6038 = vmatpush1.bf16.msra.mxu1 %v16103_v56  ;;  %5998 = vmatprep.subr.bf16.mxu0 %v16108_v59 }
 0x356   : > { %6039 = vmatprep.subr.bf16.mxu1 %v16111_v60  ;;  %v16186_v60 = vld [vmem:[%s18103_s5 + $0x14ac] ss:$16 sps:$4 sm:$0xff]  }
 0x358   : > { %5999 = vmatpush1.bf16.msra.mxu0 %v16106_v61  ;;  %v16189_v61 = vld [vmem:[%s18103_s5 + $0x16ac] ss:$16 sps:$4 sm:$0xff]  }
 0x359   : > { %6040 = vmatpush1.bf16.msra.mxu1 %v16109_v1  ;;  %6000 = vmatprep.subr.bf16.mxu0 %v16114_v9 }
 0x35a   : > { %6041 = vmatprep.subr.bf16.mxu1 %v16117_v2  ;;  %v16184_v2 = vld [vmem:[%s18103_s5 + $0x14a8] ss:$16 sps:$4 sm:$0xff]  }
 0x35c   : > { %6001 = vmatpush1.bf16.msra.mxu0 %v16112_v10  ;;  %v16187_v10 = vld [vmem:[%s18103_s5 + $0x16a8] ss:$16 sps:$4 sm:$0xff]  }
 0x35d   : > { %6042 = vmatpush1.bf16.msra.mxu1 %v16115_v8  ;;  %6002 = vmatprep.subr.bf16.mxu0 %v16120_v6 }
 0x35e   : > { %6043 = vmatprep.subr.bf16.mxu1 %v16123_v62  ;;  %v16193_v62 = vld [vmem:[%s18103_s5 + $0x1688] ss:$16 sps:$4 sm:$0xff]  }
 0x360   : > { %6003 = vmatpush1.bf16.msra.mxu0 %v16118_v5  ;;  %v16198_v5 = vld [vmem:[%s18103_s5 + $0x146c] ss:$16 sps:$4 sm:$0xff]  }
 0x361   : > { %6044 = vmatpush1.bf16.msra.mxu1 %v16121_v24  ;;  %6004 = vmatprep.subr.bf16.mxu0 %v16126_v29  ;;  %v16201_v24 = vld [vmem:[%s18103_s5 + $0x166c] ss:$16 sps:$4 sm:$0xff]   ;;  %v16196_v29 = vld [vmem:[%s18103_s5 + $0x1468] ss:$16 sps:$4 sm:$0xff]  }
 0x362   : > { %6045 = vmatprep.subr.bf16.mxu1 %v16129_v7  ;;  %v16199_v7 = vld [vmem:[%s18103_s5 + $0x1668] ss:$16 sps:$4 sm:$0xff]  }
 0x364   : > { %6005 = vmatpush2.bf16.msra.mxu0 %v16124_v17  ;;  %v16204_v17 = vld [vmem:[%s18103_s5 + $0x144c] ss:$16 sps:$4 sm:$0xff]  }
 0x365   : > { %6046 = vmatpush2.bf16.msra.mxu1 %v16127_v38  ;;  %6006 = vmatprep.subr.bf16.mxu0 %v16132_v26  ;;  %v16207_v38 = vld [vmem:[%s18103_s5 + $0x164c] ss:$16 sps:$4 sm:$0xff]   ;;  %v16202_v26 = vld [vmem:[%s18103_s5 + $0x1448] ss:$16 sps:$4 sm:$0xff]  }
 0x366   : > { %6047 = vmatprep.subr.bf16.mxu1 %v16135_v41  ;;  %v16205_v41 = vld [vmem:[%s18103_s5 + $0x1648] ss:$16 sps:$4 sm:$0xff]  }
 0x368   : > { %6007 = vmatpush2.bf16.msra.mxu0 %v16130_v13  ;;  %v16210_v13 = vld [vmem:[%s18103_s5 + $0x142c] ss:$16 sps:$4 sm:$0xff]  }
 0x369   : > { %6048 = vmatpush2.bf16.msra.mxu1 %v16133_v43  ;;  %6008 = vmatprep.subr.bf16.mxu0 %v16138_v44  ;;  %v16213_v43 = vld [vmem:[%s18103_s5 + $0x162c] ss:$16 sps:$4 sm:$0xff]   ;;  %v16208_v44 = vld [vmem:[%s18103_s5 + $0x1428] ss:$16 sps:$4 sm:$0xff]  }
 0x36a   : > { %6049 = vmatprep.subr.bf16.mxu1 %v16141_v31  ;;  %v16211_v31 = vld [vmem:[%s18103_s5 + $0x1628] ss:$16 sps:$4 sm:$0xff]  }
 0x36c   : > { %6009 = vmatpush2.bf16.msra.mxu0 %v16136_v15  ;;  %v16216_v15 = vld [vmem:[%s18103_s5 + $0x140c] ss:$16 sps:$4 sm:$0xff]  }
 0x36d   : > { %6050 = vmatpush2.bf16.msra.mxu1 %v16139_v16  ;;  %6010 = vmatprep.subr.bf16.mxu0 %v16144_v14  ;;  %v16219_v16 = vld [vmem:[%s18103_s5 + $0x160c] ss:$16 sps:$4 sm:$0xff]   ;;  %v16214_v14 = vld [vmem:[%s18103_s5 + $0x1408] ss:$16 sps:$4 sm:$0xff]  }
 0x36e   : > { %6051 = vmatprep.subr.bf16.mxu1 %v16147_v18  ;;  %v16217_v18 = vld [vmem:[%s18103_s5 + $0x1608] ss:$16 sps:$4 sm:$0xff]  }
 0x370   : > { %6011 = vmatpush2.bf16.msra.mxu0 %v16142_v19  ;;  %v16222_v19 = vld [vmem:[%s18103_s5 + $0x15ec] ss:$16 sps:$4 sm:$0xff]  }
 0x371   : > { %6052 = vmatpush2.bf16.msra.mxu1 %v16145_v23  ;;  %6012 = vmatprep.subr.bf16.mxu0 %v16150_v20  ;;  %v16225_v23 = vld [vmem:[%s18103_s5 + $0x17ec] ss:$16 sps:$4 sm:$0xff]   ;;  %v16220_v20 = vld [vmem:[%s18103_s5 + $0x15e8] ss:$16 sps:$4 sm:$0xff]  }
 0x372   : > { %6053 = vmatprep.subr.bf16.mxu1 %v16153_v49  ;;  %v16223_v49 = vld [vmem:[%s18103_s5 + $0x17e8] ss:$16 sps:$4 sm:$0xff]  }
 0x374   : > { %6013 = vmatpush2.bf16.msra.mxu0 %v16148_v51  ;;  %v16228_v51 = vld [vmem:[%s18103_s5 + $0x15cc] ss:$16 sps:$4 sm:$0xff]  }
 0x375   : > { %6054 = vmatpush2.bf16.msra.mxu1 %v16151_v50  ;;  %6014 = vmatprep.subr.bf16.mxu0 %v16156_v53  ;;  %v16231_v50 = vld [vmem:[%s18103_s5 + $0x17cc] ss:$16 sps:$4 sm:$0xff]   ;;  %v16226_v53 = vld [vmem:[%s18103_s5 + $0x15c8] ss:$16 sps:$4 sm:$0xff]  }
 0x376   : > { %6055 = vmatprep.subr.bf16.mxu1 %v16159_v25  ;;  %v16229_v25 = vld [vmem:[%s18103_s5 + $0x17c8] ss:$16 sps:$4 sm:$0xff]  }
 0x378   : > { %6015 = vmatpush2.bf16.msra.mxu0 %v16154_v27  ;;  %v16234_v27 = vld [vmem:[%s18103_s5 + $0x15ac] ss:$16 sps:$4 sm:$0xff]  }
 0x379   : > { %6056 = vmatpush2.bf16.msra.mxu1 %v16157_v28  ;;  %6016 = vmatprep.subr.bf16.mxu0 %v16162_v34  ;;  %v16237_v28 = vld [vmem:[%s18103_s5 + $0x17ac] ss:$16 sps:$4 sm:$0xff]   ;;  %v16232_v34 = vld [vmem:[%s18103_s5 + $0x15a8] ss:$16 sps:$4 sm:$0xff]  }
 0x37a   : > { %6057 = vmatprep.subr.bf16.mxu1 %v16165_v21  ;;  %v16235_v21 = vld [vmem:[%s18103_s5 + $0x17a8] ss:$16 sps:$4 sm:$0xff]  }
 0x37c   : > { %6017 = vmatpush2.bf16.msra.mxu0 %v16160_v22  ;;  %v16240_v22 = vld [vmem:[%s18103_s5 + $0x158c] ss:$16 sps:$4 sm:$0xff]  }
 0x37d   : > { %6058 = vmatpush2.bf16.msra.mxu1 %v16163_v35  ;;  %6018 = vmatprep.subr.bf16.mxu0 %v16168_v36  ;;  %v16243_v35 = vld [vmem:[%s18103_s5 + $0x178c] ss:$16 sps:$4 sm:$0xff]   ;;  %v16238_v36 = vld [vmem:[%s18103_s5 + $0x1588] ss:$16 sps:$4 sm:$0xff]  }
 0x37e   : > { %6059 = vmatprep.subr.bf16.mxu1 %v16171_v37  ;;  %v16241_v37 = vld [vmem:[%s18103_s5 + $0x1788] ss:$16 sps:$4 sm:$0xff]  }
 0x380   : > { %6019 = vmatpush2.bf16.msra.mxu0 %v16166_v3  ;;  %v16246_v3 = vld [vmem:[%s18103_s5 + $0x156c] ss:$16 sps:$4 sm:$0xff]  }
 0x381   : > { %6060 = vmatpush2.bf16.msra.mxu1 %v16169_v4  ;;  %6070 = vmatprep.subr.bf16.mxu0 %v16174_v40  ;;  %v16249_v4 = vld [vmem:[%s18103_s5 + $0x176c] ss:$16 sps:$4 sm:$0xff]   ;;  %v16244_v40 = vld [vmem:[%s18103_s5 + $0x1568] ss:$16 sps:$4 sm:$0xff]  }
 0x382   : > { %6111 = vmatprep.subr.bf16.mxu1 %v16177_v30  ;;  %v16247_v30 = vld [vmem:[%s18103_s5 + $0x1768] ss:$16 sps:$4 sm:$0xff]  }
 0x383   : > { %v5776_v12 = vpop.f32.mrf.mxu0  ;;  %6021 = vmatmul.mubr.bf16.vlgmr.msra.gmra.mxu0 %v18535_v57 }
 0x384   : > { %v5817_v46 = vpop.f32.mrf.mxu1  ;;  %6062 = vmatmul.mubr.bf16.vlgmr.msra.gmra.mxu1 %v18537_v58  ;;  %v5777_v47 = vadd.f32 %v5776_v12, %v18925_v32  ;;  %6071 = vmatpush1.bf16.msra.mxu0 %v16172_v33  ;;  %v16252_v33 = vld [vmem:[%s18103_s5 + $0x154c] ss:$16 sps:$4 sm:$0xff]  }
 0x385   : > { %6112 = vmatpush1.bf16.msra.mxu1 %v16175_v42  ;;  %v5778_v56 = vpop.f32.mrf.mxu0  ;;  %6072 = vmatprep.subr.bf16.mxu0 %v16180_v45  ;;  %v16255_v42 = vld [vmem:[%s18103_s5 + $0x174c] ss:$16 sps:$4 sm:$0xff]   ;;  %v16250_v45 = vld [vmem:[%s18103_s5 + $0x1548] ss:$16 sps:$4 sm:$0xff]  }
 0x386   : > { %v5819_v59 = vpop.f32.mrf.mxu1  ;;  %6113 = vmatprep.subr.bf16.mxu1 %v16183_v11  ;;  %v19002_v1 = vadd.f32 %v5817_v46, %v5777_v47  ;;  %v5779_v57 = vadd.f32 %v5778_v56, %v18931_v39  ;;  %6102 = vmatprep.mubr.bf16.mxu0 %v18543_v63  ;;  %v16192_v63 = vld [vmem:[%s18103_s5 + $0x148c] ss:$16 sps:$4 sm:$0xff]   ;;  %v16190_v39 = vld [vmem:[%s18103_s5 + $0x1488] ss:$16 sps:$4 sm:$0xff]  }
 0x387   : > { %6143 = vmatprep.mubr.bf16.mxu1 %v18545_v0  ;;  %v5780_v58 = vpop.f32.mrf.mxu0  ;;  %v16195_v0 = vld [vmem:[%s18103_s5 + $0x168c] ss:$16 sps:$4 sm:$0xff]   ;;  %v16253_v11 = vld [vmem:[%s18103_s5 + $0x1748] ss:$16 sps:$4 sm:$0xff]  }
 0x388   : > { %v5821_v32 = vpop.f32.mrf.mxu1  ;;  %v19007_v9 = vadd.f32 %v5819_v59, %v5779_v57  ;;  %6073 = vmatpush1.bf16.msra.mxu0 %v16178_v48  ;;  %v16258_v12 = vld [vmem:[%s18103_s5 + $0x152c] ss:$16 sps:$4 sm:$0xff]   ;;  %v16256_v47 = vld [vmem:[%s18103_s5 + $0x1528] ss:$16 sps:$4 sm:$0xff]  }
 0x389   : > { %6114 = vmatpush1.bf16.msra.mxu1 %v16181_v55  ;;  %v5781_v8 = vpop.f32.mrf.mxu0  ;;  %6074 = vmatprep.subr.bf16.mxu0 %v16186_v60  ;;  %v16261_v46 = vld [vmem:[%s18103_s5 + $0x172c] ss:$16 sps:$4 sm:$0xff]   ;;  %v16259_v48 = vld [vmem:[%s18103_s5 + $0x1728] ss:$16 sps:$4 sm:$0xff]  }
 0x38a   : > { %v5822_v6 = vpop.f32.mrf.mxu1  ;;  %6115 = vmatprep.subr.bf16.mxu1 %v16189_v61  ;;  %v16264_v55 = vld [vmem:[%s18103_s5 + $0x150c] ss:$16 sps:$4 sm:$0xff]   ;;  %v16262_v59 = vld [vmem:[%s18103_s5 + $0x1508] ss:$16 sps:$4 sm:$0xff]  }
 0x38b   : > { %v16267_v56 = vld [vmem:[%s18103_s5 + $0x170c] ss:$16 sps:$4 sm:$0xff]   ;;  %v16265_v60 = vld [vmem:[%s18103_s5 + $0x1708] ss:$16 sps:$4 sm:$0xff]  }
 0x38c   : > { %6075 = vmatpush1.bf16.msra.mxu0 %v16184_v2 }
 0x38d   : > { %6116 = vmatpush1.bf16.msra.mxu1 %v16187_v10  ;;  %6076 = vmatprep.subr.bf16.mxu0 %v16192_v63 }
 0x38e   : > { %6117 = vmatprep.subr.bf16.mxu1 %v16195_v0 }
 0x390   : > { %6077 = vmatpush1.bf16.msra.mxu0 %v16190_v39 }
 0x391   : > { %6118 = vmatpush1.bf16.msra.mxu1 %v16193_v62  ;;  %6078 = vmatprep.subr.bf16.mxu0 %v16198_v5 }
 0x392   : > { %6119 = vmatprep.subr.bf16.mxu1 %v16201_v24 }
 0x394   : > { %6079 = vmatpush1.bf16.msra.mxu0 %v16196_v29 }
 0x395   : > { %6120 = vmatpush1.bf16.msra.mxu1 %v16199_v7  ;;  %6080 = vmatprep.subr.bf16.mxu0 %v16204_v17 }
 0x396   : > { %6121 = vmatprep.subr.bf16.mxu1 %v16207_v38 }
 0x398   : > { %6081 = vmatpush1.bf16.msra.mxu0 %v16202_v26 }
 0x399   : > { %6122 = vmatpush1.bf16.msra.mxu1 %v16205_v41  ;;  %6082 = vmatprep.subr.bf16.mxu0 %v16210_v13 }
 0x39a   : > { %6123 = vmatprep.subr.bf16.mxu1 %v16213_v43 }
 0x39c   : > { %6083 = vmatpush1.bf16.msra.mxu0 %v16208_v44 }
 0x39d   : > { %6124 = vmatpush1.bf16.msra.mxu1 %v16211_v31  ;;  %6084 = vmatprep.subr.bf16.mxu0 %v16216_v15 }
 0x39e   : > { %6125 = vmatprep.subr.bf16.mxu1 %v16219_v16 }
 0x3a0   : > { %6085 = vmatpush1.bf16.msra.mxu0 %v16214_v14 }
 0x3a1   : > { %6126 = vmatpush1.bf16.msra.mxu1 %v16217_v18  ;;  %6086 = vmatprep.subr.bf16.mxu0 %v16222_v19 }
 0x3a2   : > { %6127 = vmatprep.subr.bf16.mxu1 %v16225_v23 }
 0x3a4   : > { %6087 = vmatpush2.bf16.msra.mxu0 %v16220_v20 }
 0x3a5   : > { %6128 = vmatpush2.bf16.msra.mxu1 %v16223_v49  ;;  %6088 = vmatprep.subr.bf16.mxu0 %v16228_v51 }
 0x3a6   : > { %6129 = vmatprep.subr.bf16.mxu1 %v16231_v50 }
 0x3a8   : > { %6089 = vmatpush2.bf16.msra.mxu0 %v16226_v53 }
 0x3a9   : > { %6130 = vmatpush2.bf16.msra.mxu1 %v16229_v25  ;;  %6090 = vmatprep.subr.bf16.mxu0 %v16234_v27  ;;  %v558_v25 = vld [vmem:[#allocation2 + $0x18] sm:$0xff] }
 0x3aa   : > { %6131 = vmatprep.subr.bf16.mxu1 %v16237_v28 }
 0x3ac   : > { %6091 = vmatpush2.bf16.msra.mxu0 %v16232_v34 }
 0x3ad   : > { %6132 = vmatpush2.bf16.msra.mxu1 %v16235_v21  ;;  %6092 = vmatprep.subr.bf16.mxu0 %v16240_v22  ;;  %v559_v22 = vld [vmem:[#allocation2 + $0x8] sm:$0xff] }
 0x3ae   : > { %6133 = vmatprep.subr.bf16.mxu1 %v16243_v35 }
 0x3b0   : > { %6093 = vmatpush2.bf16.msra.mxu0 %v16238_v36 }
 0x3b1   : > { %6134 = vmatpush2.bf16.msra.mxu1 %v16241_v37  ;;  %6094 = vmatprep.subr.bf16.mxu0 %v16246_v3 }
 0x3b2   : > { %6135 = vmatprep.subr.bf16.mxu1 %v16249_v4 }
 0x3b4   : > { %6095 = vmatpush2.bf16.msra.mxu0 %v16244_v40 }
 0x3b5   : > { %6136 = vmatpush2.bf16.msra.mxu1 %v16247_v30  ;;  %6096 = vmatprep.subr.bf16.mxu0 %v16252_v33 }
 0x3b6   : > { %6137 = vmatprep.subr.bf16.mxu1 %v16255_v42 }
 0x3b8   : > { %6097 = vmatpush2.bf16.msra.mxu0 %v16250_v45 }
 0x3b9   : > { %6138 = vmatpush2.bf16.msra.mxu1 %v16253_v11  ;;  %6098 = vmatprep.subr.bf16.mxu0 %v16258_v12 }
 0x3ba   : > { %6139 = vmatprep.subr.bf16.mxu1 %v16261_v46 }
 0x3bc   : > { %6099 = vmatpush2.bf16.msra.mxu0 %v16256_v47 }
 0x3bd   : > { %6140 = vmatpush2.bf16.msra.mxu1 %v16259_v48  ;;  %6100 = vmatprep.subr.bf16.mxu0 %v16264_v55 }
 0x3be   : > { %6141 = vmatprep.subr.bf16.mxu1 %v16267_v56 }
 0x3c0   : > { %6101 = vmatpush2.bf16.msra.mxu0 %v16262_v59 }
 0x3c1   : > { %6142 = vmatpush2.bf16.msra.mxu1 %v16265_v60 }
 0x3c3   : > { %v5858_v61 = vpop.f32.mrf.mxu0  ;;  %6103 = vmatmul.mubr.bf16.vlgmr.msra.gmra.mxu0 %v18619_v52 }
 0x3c4   : > { %v5899_v57 = vpop.f32.mrf.mxu1  ;;  %6144 = vmatmul.mubr.bf16.vlgmr.msra.gmra.mxu1 %v18621_v54  ;;  %v5859_v58 = vadd.f32 %v5858_v61, %v19002_v1 }
 0x3c5   : > { %v5860_v32 = vpop.f32.mrf.mxu0 }
 0x3c6   : > { %v5901_v2 = vpop.f32.mrf.mxu1  ;;  %v5900_v10 = vadd.f32 %v5899_v57, %v5859_v58  ;;  %v5861_v8 = vadd.f32 %v5860_v32, %v19007_v9 }
 0x3c7   : > { %v5862_v6 = vpop.f32.mrf.mxu0 }
 0x3c8   : > { %v5903_v63 = vpop.f32.mrf.mxu1  ;;  %v5902_v0 = vadd.f32 %v5901_v2, %v5861_v8 }
 0x3c9   : > { %v5863_v39 = vpop.f32.mrf.mxu0 }
 0x3ca   : > { %v5904_v62 = vpop.f32.mrf.mxu1 }
 0x403   : > { %v5940_v5 = vpop.f32.mrf.mxu0 }
 0x404   : > { %v5981_v24 = vpop.f32.mrf.mxu1  ;;  %v5941_v29 = vadd.f32 %v5940_v5, %v5900_v10 }
 0x405   : > { %v5942_v7 = vpop.f32.mrf.mxu0 }
 0x406   : > { %v5983_v17 = vpop.f32.mrf.mxu1  ;;  %v5982_v52 = vadd.f32 %v5981_v24, %v5941_v29  ;;  %v5943_v38 = vadd.f32 %v5942_v7, %v5902_v0 }
 0x407   : > { %v5944_v54 = vpop.f32.mrf.mxu0 }
 0x408   : > { %v5985_v26 = vpop.f32.mrf.mxu1  ;;  %v5984_v1 = vadd.f32 %v5983_v17, %v5943_v38 }
 0x409   : > { %v5945_v41 = vpop.f32.mrf.mxu0 }
 0x40a   : > { %v5986_v13 = vpop.f32.mrf.mxu1 }
 0x443   : > { %v6022_v43 = vpop.f32.mrf.mxu0 }
 0x444   : > { %v6063_v44 = vpop.f32.mrf.mxu1  ;;  %v6023_v19 = vadd.f32 %v6022_v43, %v5982_v52 }
 0x445   : > { %v6024_v9 = vpop.f32.mrf.mxu0 }
 0x446   : > { %v6065_v31 = vpop.f32.mrf.mxu1  ;;  %v6025_v23 = vadd.f32 %v6024_v9, %v5984_v1  ;;  %v6064_v20 = vadd.f32 %v6063_v44, %v6023_v19 }
 0x447   : > { %v6026_v15 = vpop.f32.mrf.mxu0 }
 0x448   : > { %v6067_v16 = vpop.f32.mrf.mxu1  ;;  %v6066_v50 = vadd.f32 %v6065_v31, %v6025_v23 }
 0x449   : > { %v6027_v14 = vpop.f32.mrf.mxu0 }
 0x44a   : > { %v6068_v18 = vpop.f32.mrf.mxu1 }
 0x483   : > { %v6104_v49 = vpop.f32.mrf.mxu0 }
 0x484   : > { %v6145_v51 = vpop.f32.mrf.mxu1  ;;  %v6105_v53 = vadd.f32 %v6104_v49, %v6064_v20 }
 0x485   : > { %v6106_v27 = vpop.f32.mrf.mxu0 }
 0x486   : > { %v6147_v28 = vpop.f32.mrf.mxu1  ;;  %v6146_v34 = vadd.f32 %v6145_v51, %v6105_v53  ;;  %v6107_v21 = vadd.f32 %v6106_v27, %v6066_v50 }
 0x487   : > { %v6108_v35 = vpop.f32.mrf.mxu0 }
 0x488   : > { %v6149_v36 = vpop.f32.mrf.mxu1  ;;  %v6154_v37 = vadd.f32 %v6146_v34, %v558_v25  ;;  %v6148_v3 = vadd.f32 %v6147_v28, %v6107_v21 }
 0x489   : > { %v6109_v4 = vpop.f32.mrf.mxu0 }
 0x48a   : > { %v6150_v40 = vpop.f32.mrf.mxu1  ;;  %6158 = vst [vmem:[#allocation2 + $0x18] sm:$0xff] %v6154_v37  ;;  %v6155_v30 = vadd.f32 %v6148_v3, %v559_v22 }
 0x48c   : > { %6159 = vst [vmem:[#allocation2 + $0x8] sm:$0xff] %v6155_v30 }
 0x48d PF: > { %p14066_p8 = scmp.lt.s32.totalorder %s17899_s18, 1 }
 0x48f   : > { %6163 = sbr.rel (%p14066_p8) target bundleno = 2406 (0x966), region = 96 }
 0x494   : > { %v6166_v33 = vld [vmem:[%s20159_s1] sm:$0xff]  ;;  %v17811_v11 = vmov 0   ;;  %v6175_v46 = vld [vmem:[%s18095_s22 + $0x8] sm:$0xff]  ;;  %v6176_v59 = vld [vmem:[%s18095_s22 + $0x10] sm:$0xff]  ;;  %v6164_v8 = vlaneseq  ;;  %v17812_v24 = vmov 0.0   ;;  %vm6318_vm1 = vcmask 130048  }
 0x495   : > { %v6174_v42 = vld [vmem:[%s18095_s22] sm:$0xff]  ;;  %16268 = vset.pattern.permute.xlu0 %v17811_v11  ;;  %v6187_v47 = vld [vmem:[%s18095_s22 + $0x68] sm:$0xff]  ;;  %6354 = vmatprep.mubr.bf16.mxu0 %v17811_v11  ;;  %v6188_v60 = vld [vmem:[%s18095_s22 + $0x70] sm:$0xff] }
 0x496   : > { %v6186_v45 = vld [vmem:[%s18095_s22 + $0x60] sm:$0xff]  ;;  %6168 = vperm.xlu0 %16268, %v6166_v33   ;;  %v14071_v55 = vcombine.high %v6175_v46, %v6187_v47  ;;  %v14070_v56 = vcombine.low %v6175_v46, %v6187_v47  ;;  %6395 = vmatprep.mubr.bf16.mxu1 %v17811_v11  ;;  %v6177_v61 = vld [vmem:[%s18095_s22 + $0x18] sm:$0xff]  ;;  %v14072_v57 = vcombine.low %v6176_v59, %v6188_v60  ;;  %v6165_v6 = vand.u32 127, %v6164_v8  ;;  %v6179_v39 = vld [vmem:[%s18095_s22 + $0x28] sm:$0xff] }
 0x497   : > { %v14069_v12 = vcombine.high %v6174_v42, %v6186_v45  ;;  %v14068_v48 = vcombine.low %v6174_v42, %v6186_v45  ;;  %v14073_v58 = vcombine.high %v6176_v59, %v6188_v60  ;;  %v6189_v32 = vld [vmem:[%s18095_s22 + $0x78] sm:$0xff]  ;;  %v6178_v63 = vld [vmem:[%s18095_s22 + $0x20] sm:$0xff]  ;;  %v6191_v62 = vld [vmem:[%s18095_s22 + $0x88] sm:$0xff] }
 0x498   : > { %6377 = vmatprep.subr.bf16.mxu1 %v14071_v55  ;;  %v14074_v2 = vcombine.low %v6177_v61, %v6189_v32  ;;  %v14075_v10 = vcombine.high %v6177_v61, %v6189_v32  ;;  %v6190_v0 = vld [vmem:[%s18095_s22 + $0x80] sm:$0xff]  ;;  %v14079_v52 = vcombine.high %v6179_v39, %v6191_v62  ;;  %v6180_v38 = vld [vmem:[%s18095_s22 + $0x30] sm:$0xff]  ;;  %v6181_v26 = vld [vmem:[%s18095_s22 + $0x38] sm:$0xff]  ;;  %v14078_v13 = vcombine.low %v6179_v39, %v6191_v62 }
 0x499   : > { %6336 = vmatprep.subr.bf16.mxu0 %v14069_v12  ;;  %6378 = vmatpush1.bf16.msra.mxu1 %v14070_v56  ;;  %v14077_v17 = vcombine.high %v6178_v63, %v6190_v0  ;;  %v6192_v54 = vld [vmem:[%s18095_s22 + $0x90] sm:$0xff]  ;;  %v6193_v1 = vld [vmem:[%s18095_s22 + $0x98] sm:$0xff]  ;;  %v14076_v41 = vcombine.low %v6178_v63, %v6190_v0  ;;  %v6182_v9 = vld [vmem:[%s18095_s22 + $0x40] sm:$0xff] }
 0x49a   : > { %6337 = vmatpush1.bf16.msra.mxu0 %v14068_v48  ;;  %6459 = vmatprep.subr.bf16.mxu1 %v14075_v10  ;;  %v14081_v43 = vcombine.high %v6180_v38, %v6192_v54  ;;  %v14083_v44 = vcombine.high %v6181_v26, %v6193_v1  ;;  %v6194_v31 = vld [vmem:[%s18095_s22 + $0xa0] sm:$0xff]  ;;  %v6183_v15 = vld [vmem:[%s18095_s22 + $0x48] sm:$0xff]  ;;  %v14080_v14 = vcombine.low %v6180_v38, %v6192_v54  ;;  %v6184_v20 = vld [vmem:[%s18095_s22 + $0x50] sm:$0xff] }
 0x49b   : > { %6418 = vmatprep.subr.bf16.mxu0 %v14073_v58  ;;  %v6195_v16 = vld [vmem:[%s18095_s22 + $0xa8] sm:$0xff]  ;;  %v14082_v18 = vcombine.low %v6181_v26, %v6193_v1  ;;  %v14085_v19 = vcombine.high %v6182_v9, %v6194_v31  ;;  %v6196_v49 = vld [vmem:[%s18095_s22 + $0xb0] sm:$0xff]  ;;  %v6185_v51 = vld [vmem:[%s18095_s22 + $0x58] sm:$0xff]  ;;  %v14084_v53 = vcombine.low %v6182_v9, %v6194_v31 }
 0x49c   : > { %v14087_v23 = vcombine.high %v6183_v15, %v6195_v16  ;;  %v6197_v50 = vld [vmem:[%s18095_s22 + $0xb8] sm:$0xff]  ;;  %v14086_v25 = vcombine.low %v6183_v15, %v6195_v16  ;;  %v14089_v27 = vcombine.high %v6184_v20, %v6196_v49  ;;  %v14088_v34 = vcombine.low %v6184_v20, %v6196_v49  ;;  %v16271_v22 = vld [vmem:[%s18103_s5 + $0xe4] ss:$16 sps:$4 sm:$0xff]   ;;  %v16269_v36 = vld [vmem:[%s18103_s5 + $0xe0] ss:$16 sps:$4 sm:$0xff]  }
 0x49d   : > { %v14091_v28 = vcombine.high %v6185_v51, %v6197_v50  ;;  %v14090_v21 = vcombine.low %v6185_v51, %v6197_v50  ;;  %v16274_v35 = vld [vmem:[%s18103_s5 + $0x2e4] ss:$16 sps:$4 sm:$0xff]   ;;  %v16272_v37 = vld [vmem:[%s18103_s5 + $0x2e0] ss:$16 sps:$4 sm:$0xff]  }
 0x49e   : > { %v16277_v3 = vld [vmem:[%s18103_s5 + $0xc4] ss:$16 sps:$4 sm:$0xff]   ;;  %v16275_v40 = vld [vmem:[%s18103_s5 + $0xc0] ss:$16 sps:$4 sm:$0xff]  }
 0x49f   : > { %v16280_v4 = vld [vmem:[%s18103_s5 + $0x2c4] ss:$16 sps:$4 sm:$0xff]   ;;  %v16278_v30 = vld [vmem:[%s18103_s5 + $0x2c0] ss:$16 sps:$4 sm:$0xff]  }
 0x4a0   : > { %v16283_v33 = vld [vmem:[%s18103_s5 + $0xa4] ss:$16 sps:$4 sm:$0xff]   ;;  %v16281_v45 = vld [vmem:[%s18103_s5 + $0xa0] ss:$16 sps:$4 sm:$0xff]  }
 0x4a1   : > { %v16286_v42 = vld [vmem:[%s18103_s5 + $0x2a4] ss:$16 sps:$4 sm:$0xff]   ;;  %v16287_v47 = vld [vmem:[%s18103_s5 + $0x80] ss:$16 sps:$4 sm:$0xff]  }
 0x4a2   : > { %v16289_v12 = vld [vmem:[%s18103_s5 + $0x84] ss:$16 sps:$4 sm:$0xff]   ;;  %v16290_v48 = vld [vmem:[%s18103_s5 + $0x280] ss:$16 sps:$4 sm:$0xff]  }
 0x4a3   : > { %v16292_v46 = vld [vmem:[%s18103_s5 + $0x284] ss:$16 sps:$4 sm:$0xff]   ;;  %v16293_v59 = vld [vmem:[%s18103_s5 + $0x60] ss:$16 sps:$4 sm:$0xff]  }
 0x4a4   : > { %v16295_v55 = vld [vmem:[%s18103_s5 + $0x64] ss:$16 sps:$4 sm:$0xff]   ;;  %v16296_v60 = vld [vmem:[%s18103_s5 + $0x260] ss:$16 sps:$4 sm:$0xff]  }
 0x4a5   : > { %v16298_v56 = vld [vmem:[%s18103_s5 + $0x264] ss:$16 sps:$4 sm:$0xff]   ;;  %v16299_v58 = vld [vmem:[%s18103_s5 + $0x40] ss:$16 sps:$4 sm:$0xff]  }
 0x4a6   : > { %v16301_v61 = vld [vmem:[%s18103_s5 + $0x44] ss:$16 sps:$4 sm:$0xff]   ;;  %v16302_v32 = vld [vmem:[%s18103_s5 + $0x240] ss:$16 sps:$4 sm:$0xff]  }
 0x4a7   : > { %v16310_v10 = vld [vmem:[%s18103_s5 + $0x224] ss:$16 sps:$4 sm:$0xff]   ;;  %v16305_v8 = vld [vmem:[%s18103_s5 + $0x20] ss:$16 sps:$4 sm:$0xff]  }
 0x4a8   : > { %v16313_v63 = vld [vmem:[%s18103_s5 + $0x4] ss:$16 sps:$4 sm:$0xff]   ;;  %v16311_v39 = vld [vmem:[%s18103_s5] ss:$16 sps:$4 sm:$0xff]  }
 0x4a9   : > { %v16316_v0 = vld [vmem:[%s18103_s5 + $0x204] ss:$16 sps:$4 sm:$0xff]   ;;  %v16314_v62 = vld [vmem:[%s18103_s5 + $0x200] ss:$16 sps:$4 sm:$0xff]  }
 0x4aa   : > { %v16323_v38 = vld [vmem:[%s18103_s5 + $0x1c0] ss:$16 sps:$4 sm:$0xff]   ;;  %v16331_v26 = vld [vmem:[%s18103_s5 + $0x1a4] ss:$16 sps:$4 sm:$0xff]  }
 0x4ab   : > { %v16326_v54 = vld [vmem:[%s18103_s5 + $0x3c0] ss:$16 sps:$4 sm:$0xff]   ;;  %v16334_v1 = vld [vmem:[%s18103_s5 + $0x3a4] ss:$16 sps:$4 sm:$0xff]  }
 0x4ac   : > { %v16335_v9 = vld [vmem:[%s18103_s5 + $0x180] ss:$16 sps:$4 sm:$0xff]   ;;  %v16343_v15 = vld [vmem:[%s18103_s5 + $0x164] ss:$16 sps:$4 sm:$0xff]  }
 0x4ad   : > { %v16338_v31 = vld [vmem:[%s18103_s5 + $0x380] ss:$16 sps:$4 sm:$0xff]   ;;  %v16346_v16 = vld [vmem:[%s18103_s5 + $0x364] ss:$16 sps:$4 sm:$0xff]  }
 0x4ae   : > { %v16347_v20 = vld [vmem:[%s18103_s5 + $0x140] ss:$16 sps:$4 sm:$0xff]   ;;  %v16355_v51 = vld [vmem:[%s18103_s5 + $0x124] ss:$16 sps:$4 sm:$0xff]  }
 0x4af   : > { %v16350_v49 = vld [vmem:[%s18103_s5 + $0x340] ss:$16 sps:$4 sm:$0xff]   ;;  %v16358_v50 = vld [vmem:[%s18103_s5 + $0x324] ss:$16 sps:$4 sm:$0xff]  }
 0x511   : > { %v6169_v5 = vpop.permute.xlu0 %6168 }
 0x512   : > { %vm6170_vm0 = vcmp.eq.s32.totalorder %v6165_v6, %v6169_v5  ;;  %v16308_v6 = vld [vmem:[%s18103_s5 + $0x220] ss:$16 sps:$4 sm:$0xff]   ;;  %v16319_v5 = vld [vmem:[%s18103_s5 + $0x1e4] ss:$16 sps:$4 sm:$0xff]  }
 0x513   : > { %v14067_v29 = vsel %vm6170_vm0, 1.0, %v17812_v24  ;;  %v16322_v24 = vld [vmem:[%s18103_s5 + $0x3e4] ss:$16 sps:$4 sm:$0xff]  }
 0x514   : > { %v19086_v7 = vpack.c.bf16 %v14067_v29, %v14067_v29  ;;  %v16317_v29 = vld [vmem:[%s18103_s5 + $0x1e0] ss:$16 sps:$4 sm:$0xff]  }
 0x516   : > { %14092 = vmatmul.mubr.msk.bf16.vlgmr.msra.gmra.mxu0 %vm6318_vm1, %v19086_v7  ;;  %14093 = vmatmul.mubr.msk.bf16.vlgmr.msra.gmra.mxu1 %vm6318_vm1, %v19086_v7 }
 0x517   : > { %6419 = vmatpush1.bf16.msra.mxu0 %v14072_v57  ;;  %6460 = vmatpush1.bf16.msra.mxu1 %v14074_v2  ;;  %v16304_v57 = vld [vmem:[%s18103_s5 + $0x244] ss:$16 sps:$4 sm:$0xff]  }
 0x518   : > { %6436 = vmatprep.mubr.bf16.mxu0 %v17811_v11  ;;  %6477 = vmatprep.mubr.bf16.mxu1 %v17811_v11  ;;  %v16307_v2 = vld [vmem:[%s18103_s5 + $0x24] ss:$16 sps:$4 sm:$0xff]  }
 0x519   : > { %6500 = vmatprep.subr.bf16.mxu0 %v14077_v17  ;;  %6541 = vmatprep.subr.bf16.mxu1 %v14079_v52  ;;  %v16325_v17 = vld [vmem:[%s18103_s5 + $0x1c4] ss:$16 sps:$4 sm:$0xff]  }
 0x51a   : > { %v16328_v52 = vld [vmem:[%s18103_s5 + $0x3c4] ss:$16 sps:$4 sm:$0xff]  }
 0x51e   : > { %14094 = vmatmul.mubr.msk.bf16.vlgmr.msra.gmra.mxu0 %vm6318_vm1, %v19086_v7  ;;  %14095 = vmatmul.mubr.msk.bf16.vlgmr.msra.gmra.mxu1 %vm6318_vm1, %v19086_v7 }
 0x51f   : > { %6501 = vmatpush1.bf16.msra.mxu0 %v14076_v41  ;;  %6542 = vmatpush1.bf16.msra.mxu1 %v14078_v13  ;;  %v16329_v41 = vld [vmem:[%s18103_s5 + $0x1a0] ss:$16 sps:$4 sm:$0xff]  }
 0x520   : > { %6518 = vmatprep.mubr.bf16.mxu0 %v17811_v11  ;;  %6559 = vmatprep.mubr.bf16.mxu1 %v17811_v11  ;;  %v16332_v13 = vld [vmem:[%s18103_s5 + $0x3a0] ss:$16 sps:$4 sm:$0xff]  }
 0x521   : > { %6582 = vmatprep.subr.bf16.mxu0 %v14081_v43  ;;  %6623 = vmatprep.subr.bf16.mxu1 %v14083_v44  ;;  %v16337_v43 = vld [vmem:[%s18103_s5 + $0x184] ss:$16 sps:$4 sm:$0xff]  }
 0x522   : > { %v16340_v44 = vld [vmem:[%s18103_s5 + $0x384] ss:$16 sps:$4 sm:$0xff]  }
 0x526   : > { %14096 = vmatmul.mubr.msk.bf16.vlgmr.msra.gmra.mxu0 %vm6318_vm1, %v19086_v7  ;;  %14097 = vmatmul.mubr.msk.bf16.vlgmr.msra.gmra.mxu1 %vm6318_vm1, %v19086_v7 }
 0x527   : > { %6583 = vmatpush1.bf16.msra.mxu0 %v14080_v14  ;;  %6624 = vmatpush1.bf16.msra.mxu1 %v14082_v18  ;;  %v16341_v14 = vld [vmem:[%s18103_s5 + $0x160] ss:$16 sps:$4 sm:$0xff]  }
 0x528   : > { %6600 = vmatprep.mubr.bf16.mxu0 %v17811_v11  ;;  %6641 = vmatprep.mubr.bf16.mxu1 %v17811_v11  ;;  %v16344_v18 = vld [vmem:[%s18103_s5 + $0x360] ss:$16 sps:$4 sm:$0xff]  }
 0x529   : > { %6664 = vmatprep.subr.bf16.mxu0 %v14085_v19  ;;  %6705 = vmatprep.subr.bf16.mxu1 %v14087_v23  ;;  %v16349_v19 = vld [vmem:[%s18103_s5 + $0x144] ss:$16 sps:$4 sm:$0xff]  }
 0x52a   : > { %v16352_v23 = vld [vmem:[%s18103_s5 + $0x344] ss:$16 sps:$4 sm:$0xff]  }
 0x52e   : > { %14098 = vmatmul.mubr.msk.bf16.vlgmr.msra.gmra.mxu0 %vm6318_vm1, %v19086_v7  ;;  %14099 = vmatmul.mubr.msk.bf16.vlgmr.msra.gmra.mxu1 %vm6318_vm1, %v19086_v7 }
 0x52f   : > { %6665 = vmatpush1.bf16.msra.mxu0 %v14084_v53  ;;  %6706 = vmatpush1.bf16.msra.mxu1 %v14086_v25  ;;  %v16353_v53 = vld [vmem:[%s18103_s5 + $0x120] ss:$16 sps:$4 sm:$0xff]  }
 0x530   : > { %6682 = vmatprep.mubr.bf16.mxu0 %v17811_v11  ;;  %6723 = vmatprep.mubr.bf16.mxu1 %v17811_v11  ;;  %v16356_v25 = vld [vmem:[%s18103_s5 + $0x320] ss:$16 sps:$4 sm:$0xff]  }
 0x531   : > { %6746 = vmatprep.subr.bf16.mxu0 %v14089_v27  ;;  %6787 = vmatprep.subr.bf16.mxu1 %v14091_v28  ;;  %v16361_v27 = vld [vmem:[%s18103_s5 + $0x104] ss:$16 sps:$4 sm:$0xff]  }
 0x532   : > { %v16364_v28 = vld [vmem:[%s18103_s5 + $0x304] ss:$16 sps:$4 sm:$0xff]  }
 0x536   : > { %14100 = vmatmul.mubr.msk.bf16.vlgmr.msra.gmra.mxu0 %vm6318_vm1, %v19086_v7  ;;  %14101 = vmatmul.mubr.msk.bf16.vlgmr.msra.gmra.mxu1 %vm6318_vm1, %v19086_v7 }
 0x537   : > { %6747 = vmatpush1.bf16.msra.mxu0 %v14088_v34  ;;  %6788 = vmatpush1.bf16.msra.mxu1 %v14090_v21  ;;  %v16359_v34 = vld [vmem:[%s18103_s5 + $0x100] ss:$16 sps:$4 sm:$0xff]  }
 0x538   : > { %6764 = vmatprep.mubr.bf16.mxu0 %v17811_v11  ;;  %6805 = vmatprep.mubr.bf16.mxu1 %v17811_v11  ;;  %v16284_v11 = vld [vmem:[%s18103_s5 + $0x2a0] ss:$16 sps:$4 sm:$0xff]  }
 0x539   : > { %11450 = vmatprep.subr.bf16.mxu0 %v16271_v22  ;;  %11491 = vmatprep.subr.bf16.mxu1 %v16274_v35  ;;  %v16362_v21 = vld [vmem:[%s18103_s5 + $0x300] ss:$16 sps:$4 sm:$0xff]   ;;  %v16367_v22 = vld [vmem:[%s18103_s5 + $0x4e4] ss:$16 sps:$4 sm:$0xff]  }
 0x53a   : > { %v16370_v35 = vld [vmem:[%s18103_s5 + $0x6e4] ss:$16 sps:$4 sm:$0xff]  }
 0x53e   : > { %14102 = vmatmul.mubr.msk.bf16.vlgmr.msra.gmra.mxu0 %vm6318_vm1, %v19086_v7  ;;  %14103 = vmatmul.mubr.msk.bf16.vlgmr.msra.gmra.mxu1 %vm6318_vm1, %v19086_v7  ;;  %v16320_v7 = vld [vmem:[%s18103_s5 + $0x3e0] ss:$16 sps:$4 sm:$0xff]  }
 0x53f   : > { %11451 = vmatpush1.bf16.msra.mxu0 %v16269_v36  ;;  %11492 = vmatpush1.bf16.msra.mxu1 %v16272_v37 }
 0x540   : > { %11452 = vmatprep.subr.bf16.mxu0 %v16277_v3  ;;  %11493 = vmatprep.subr.bf16.mxu1 %v16280_v4  ;;  %v16365_v3 = vld [vmem:[%s18103_s5 + $0x4e0] ss:$16 sps:$4 sm:$0xff]  }
 0x541   : > { %v16368_v4 = vld [vmem:[%s18103_s5 + $0x6e0] ss:$16 sps:$4 sm:$0xff]  }
 0x543   : > { %11453 = vmatpush1.bf16.msra.mxu0 %v16275_v40  ;;  %11494 = vmatpush1.bf16.msra.mxu1 %v16278_v30 }
 0x544   : > { %11454 = vmatprep.subr.bf16.mxu0 %v16283_v33  ;;  %11495 = vmatprep.subr.bf16.mxu1 %v16286_v42  ;;  %v16373_v33 = vld [vmem:[%s18103_s5 + $0x4c4] ss:$16 sps:$4 sm:$0xff]  }
 0x545   : > { %v16376_v42 = vld [vmem:[%s18103_s5 + $0x6c4] ss:$16 sps:$4 sm:$0xff]  }
 0x547   : > { %11455 = vmatpush1.bf16.msra.mxu0 %v16281_v45  ;;  %11496 = vmatpush1.bf16.msra.mxu1 %v16284_v11 }
 0x548   : > { %11456 = vmatprep.subr.bf16.mxu0 %v16289_v12  ;;  %11497 = vmatprep.subr.bf16.mxu1 %v16292_v46 }
 0x54b   : > { %11457 = vmatpush1.bf16.msra.mxu0 %v16287_v47  ;;  %11498 = vmatpush1.bf16.msra.mxu1 %v16290_v48 }
 0x54c   : > { %11458 = vmatprep.subr.bf16.mxu0 %v16295_v55  ;;  %11499 = vmatprep.subr.bf16.mxu1 %v16298_v56 }
 0x54f   : > { %11459 = vmatpush1.bf16.msra.mxu0 %v16293_v59  ;;  %11500 = vmatpush1.bf16.msra.mxu1 %v16296_v60  ;;  %v16371_v59 = vld [vmem:[%s18103_s5 + $0x4c0] ss:$16 sps:$4 sm:$0xff]  }
 0x550   : > { %11460 = vmatprep.subr.bf16.mxu0 %v16301_v61  ;;  %11501 = vmatprep.subr.bf16.mxu1 %v16304_v57  ;;  %v16374_v60 = vld [vmem:[%s18103_s5 + $0x6c0] ss:$16 sps:$4 sm:$0xff]  }
 0x553   : > { %11461 = vmatpush1.bf16.msra.mxu0 %v16299_v58  ;;  %11502 = vmatpush1.bf16.msra.mxu1 %v16302_v32  ;;  %v16379_v58 = vld [vmem:[%s18103_s5 + $0x4a4] ss:$16 sps:$4 sm:$0xff]  }
 0x554   : > { %11462 = vmatprep.subr.bf16.mxu0 %v16307_v2  ;;  %11503 = vmatprep.subr.bf16.mxu1 %v16310_v10  ;;  %v16382_v32 = vld [vmem:[%s18103_s5 + $0x6a4] ss:$16 sps:$4 sm:$0xff]  }
 0x557   : > { %11463 = vmatpush1.bf16.msra.mxu0 %v16305_v8  ;;  %11504 = vmatpush1.bf16.msra.mxu1 %v16308_v6 }
 0x558   : > { %11464 = vmatprep.subr.bf16.mxu0 %v16313_v63  ;;  %11505 = vmatprep.subr.bf16.mxu1 %v16316_v0  ;;  %v16377_v63 = vld [vmem:[%s18103_s5 + $0x4a0] ss:$16 sps:$4 sm:$0xff]  }
 0x559   : > { %v16380_v0 = vld [vmem:[%s18103_s5 + $0x6a0] ss:$16 sps:$4 sm:$0xff]  }
 0x55b   : > { %11465 = vmatpush1.bf16.msra.mxu0 %v16311_v39  ;;  %11506 = vmatpush1.bf16.msra.mxu1 %v16314_v62 }
 0x55c   : > { %11466 = vmatprep.subr.bf16.mxu0 %v16319_v5  ;;  %11507 = vmatprep.subr.bf16.mxu1 %v16322_v24  ;;  %v16385_v5 = vld [vmem:[%s18103_s5 + $0x484] ss:$16 sps:$4 sm:$0xff]  }
 0x55d   : > { %v16388_v24 = vld [vmem:[%s18103_s5 + $0x684] ss:$16 sps:$4 sm:$0xff]  }
 0x55f   : > { %11467 = vmatpush2.bf16.msra.mxu0 %v16317_v29  ;;  %11508 = vmatpush2.bf16.msra.mxu1 %v16320_v7 }
 0x560   : > { %11468 = vmatprep.subr.bf16.mxu0 %v16325_v17  ;;  %11509 = vmatprep.subr.bf16.mxu1 %v16328_v52  ;;  %v16383_v17 = vld [vmem:[%s18103_s5 + $0x480] ss:$16 sps:$4 sm:$0xff]  }
 0x561   : > { %v16386_v52 = vld [vmem:[%s18103_s5 + $0x680] ss:$16 sps:$4 sm:$0xff]  }
 0x563   : > { %11469 = vmatpush2.bf16.msra.mxu0 %v16323_v38  ;;  %11510 = vmatpush2.bf16.msra.mxu1 %v16326_v54 }
 0x564   : > { %11470 = vmatprep.subr.bf16.mxu0 %v16331_v26  ;;  %11511 = vmatprep.subr.bf16.mxu1 %v16334_v1  ;;  %v16391_v26 = vld [vmem:[%s18103_s5 + $0x464] ss:$16 sps:$4 sm:$0xff]  }
 0x565   : > { %v16394_v1 = vld [vmem:[%s18103_s5 + $0x664] ss:$16 sps:$4 sm:$0xff]  }
 0x567   : > { %11471 = vmatpush2.bf16.msra.mxu0 %v16329_v41  ;;  %11512 = vmatpush2.bf16.msra.mxu1 %v16332_v13 }
 0x568   : > { %11472 = vmatprep.subr.bf16.mxu0 %v16337_v43  ;;  %11513 = vmatprep.subr.bf16.mxu1 %v16340_v44  ;;  %v16389_v43 = vld [vmem:[%s18103_s5 + $0x460] ss:$16 sps:$4 sm:$0xff]  }
 0x569   : > { %v16392_v44 = vld [vmem:[%s18103_s5 + $0x660] ss:$16 sps:$4 sm:$0xff]  }
 0x56b   : > { %11473 = vmatpush2.bf16.msra.mxu0 %v16335_v9  ;;  %11514 = vmatpush2.bf16.msra.mxu1 %v16338_v31 }
 0x56c   : > { %11474 = vmatprep.subr.bf16.mxu0 %v16343_v15  ;;  %11515 = vmatprep.subr.bf16.mxu1 %v16346_v16  ;;  %v16397_v15 = vld [vmem:[%s18103_s5 + $0x444] ss:$16 sps:$4 sm:$0xff]  }
 0x56d   : > { %v16400_v16 = vld [vmem:[%s18103_s5 + $0x644] ss:$16 sps:$4 sm:$0xff]  }
 0x56f   : > { %11475 = vmatpush2.bf16.msra.mxu0 %v16341_v14  ;;  %11516 = vmatpush2.bf16.msra.mxu1 %v16344_v18 }
 0x570   : > { %11476 = vmatprep.subr.bf16.mxu0 %v16349_v19  ;;  %11517 = vmatprep.subr.bf16.mxu1 %v16352_v23  ;;  %v16395_v19 = vld [vmem:[%s18103_s5 + $0x440] ss:$16 sps:$4 sm:$0xff]  }
 0x571   : > { %v16398_v23 = vld [vmem:[%s18103_s5 + $0x640] ss:$16 sps:$4 sm:$0xff]  }
 0x573   : > { %11477 = vmatpush2.bf16.msra.mxu0 %v16347_v20  ;;  %11518 = vmatpush2.bf16.msra.mxu1 %v16350_v49 }
 0x574   : > { %11478 = vmatprep.subr.bf16.mxu0 %v16355_v51  ;;  %11519 = vmatprep.subr.bf16.mxu1 %v16358_v50  ;;  %v16403_v51 = vld [vmem:[%s18103_s5 + $0x424] ss:$16 sps:$4 sm:$0xff]  }
 0x575   : > { %v16406_v50 = vld [vmem:[%s18103_s5 + $0x624] ss:$16 sps:$4 sm:$0xff]  }
 0x577   : > { %11479 = vmatpush2.bf16.msra.mxu0 %v16353_v53  ;;  %11520 = vmatpush2.bf16.msra.mxu1 %v16356_v25 }
 0x578   : > { %11480 = vmatprep.subr.bf16.mxu0 %v16361_v27  ;;  %11521 = vmatprep.subr.bf16.mxu1 %v16364_v28  ;;  %v16401_v27 = vld [vmem:[%s18103_s5 + $0x420] ss:$16 sps:$4 sm:$0xff]  }
 0x579   : > { %v16404_v28 = vld [vmem:[%s18103_s5 + $0x620] ss:$16 sps:$4 sm:$0xff]  }
 0x57b   : > { %11481 = vmatpush2.bf16.msra.mxu0 %v16359_v34  ;;  %11522 = vmatpush2.bf16.msra.mxu1 %v16362_v21 }
 0x57c   : > { %11532 = vmatprep.subr.bf16.mxu0 %v16367_v22  ;;  %11573 = vmatprep.subr.bf16.mxu1 %v16370_v35  ;;  %v16409_v22 = vld [vmem:[%s18103_s5 + $0x404] ss:$16 sps:$4 sm:$0xff]  }
 0x57d   : > { %v16412_v35 = vld [vmem:[%s18103_s5 + $0x604] ss:$16 sps:$4 sm:$0xff]  }
 0x5d6   : > { %v6356_v36 = vpop.f32.mrf.mxu0  ;;  %v6397_v37 = vpop.f32.mrf.mxu1 }
 0x5d7   : > { %v19208_v12 = vpack.c.bf16 %v6356_v36, %v6356_v36  ;;  %v19210_v46 = vpack.c.bf16 %v6397_v37, %v6397_v37 }
 0x5d8   : > { %v6358_v40 = vpop.f32.mrf.mxu0  ;;  %v6399_v30 = vpop.f32.mrf.mxu1 }
 0x5d9   : > { %v19204_v45 = vpack.c.bf16 %v6358_v40, %v6358_v40  ;;  %v19206_v11 = vpack.c.bf16 %v6399_v30, %v6399_v30 }
 0x5da   : > { %v6360_v47 = vpop.f32.mrf.mxu0  ;;  %v6401_v48 = vpop.f32.mrf.mxu1 }
 0x5db   : > { %11482 = vmatprep.mubr.bf16.mxu0 %v19204_v45  ;;  %11523 = vmatprep.mubr.bf16.mxu1 %v19206_v11 }
 0x5dc   : > { %v6361_v55 = vpop.f32.mrf.mxu0  ;;  %v6402_v56 = vpop.f32.mrf.mxu1  ;;  %11483 = vmatmul.mubr.bf16.vlgmr.msra.gmra.mxu0 %v19208_v12  ;;  %11524 = vmatmul.mubr.bf16.vlgmr.msra.gmra.mxu1 %v19210_v46 }
 0x5dd   : > { %11533 = vmatpush1.bf16.msra.mxu0 %v16365_v3  ;;  %11574 = vmatpush1.bf16.msra.mxu1 %v16368_v4  ;;  %v16407_v3 = vld [vmem:[%s18103_s5 + $0x400] ss:$16 sps:$4 sm:$0xff]  }
 0x5de   : > { %v19218_v61 = vpop.f32.mrf.mxu0  ;;  %v19220_v57 = vpop.f32.mrf.mxu1  ;;  %11534 = vmatprep.subr.bf16.mxu0 %v16373_v33  ;;  %11575 = vmatprep.subr.bf16.mxu1 %v16376_v42  ;;  %v16410_v4 = vld [vmem:[%s18103_s5 + $0x600] ss:$16 sps:$4 sm:$0xff]   ;;  %v16415_v33 = vld [vmem:[%s18103_s5 + $0x5e4] ss:$16 sps:$4 sm:$0xff]  }
 0x5df   : > { %v16418_v42 = vld [vmem:[%s18103_s5 + $0x7e4] ss:$16 sps:$4 sm:$0xff]   ;;  %v16413_v55 = vld [vmem:[%s18103_s5 + $0x5e0] ss:$16 sps:$4 sm:$0xff]  }
 0x5e0   : > { %v6440_v2 = vpop.f32.mrf.mxu0  ;;  %v6481_v10 = vpop.f32.mrf.mxu1  ;;  %v16416_v56 = vld [vmem:[%s18103_s5 + $0x7e0] ss:$16 sps:$4 sm:$0xff]  }
 0x5e1   : > { %v19224_v8 = vpack.c.bf16 %v6440_v2, %v6440_v2  ;;  %v19226_v6 = vpack.c.bf16 %v6481_v10, %v6481_v10  ;;  %11535 = vmatpush1.bf16.msra.mxu0 %v16371_v59  ;;  %11576 = vmatpush1.bf16.msra.mxu1 %v16374_v60 }
 0x5e2   : > { %v6442_v39 = vpop.f32.mrf.mxu0  ;;  %v6483_v62 = vpop.f32.mrf.mxu1  ;;  %11536 = vmatprep.subr.bf16.mxu0 %v16379_v58  ;;  %11577 = vmatprep.subr.bf16.mxu1 %v16382_v32  ;;  %v16421_v58 = vld [vmem:[%s18103_s5 + $0x5c4] ss:$16 sps:$4 sm:$0xff]  }
 0x5e3   : > { %11564 = vmatprep.mubr.bf16.mxu0 %v19224_v8  ;;  %11605 = vmatprep.mubr.bf16.mxu1 %v19226_v6  ;;  %v16424_v32 = vld [vmem:[%s18103_s5 + $0x7c4] ss:$16 sps:$4 sm:$0xff]  }
 0x5e4   : > { %v6443_v29 = vpop.f32.mrf.mxu0  ;;  %v6484_v7 = vpop.f32.mrf.mxu1 }
 0x5e5   : > { %11537 = vmatpush1.bf16.msra.mxu0 %v16377_v63  ;;  %11578 = vmatpush1.bf16.msra.mxu1 %v16380_v0  ;;  %v16419_v63 = vld [vmem:[%s18103_s5 + $0x5c0] ss:$16 sps:$4 sm:$0xff]  }
 0x5e6   : > { %v19236_v38 = vpop.f32.mrf.mxu0  ;;  %v19238_v54 = vpop.f32.mrf.mxu1  ;;  %11538 = vmatprep.subr.bf16.mxu0 %v16385_v5  ;;  %11579 = vmatprep.subr.bf16.mxu1 %v16388_v24  ;;  %v16422_v0 = vld [vmem:[%s18103_s5 + $0x7c0] ss:$16 sps:$4 sm:$0xff]   ;;  %v16427_v5 = vld [vmem:[%s18103_s5 + $0x5a4] ss:$16 sps:$4 sm:$0xff]  }
 0x5e7   : > { %v16430_v24 = vld [vmem:[%s18103_s5 + $0x7a4] ss:$16 sps:$4 sm:$0xff]  }
 0x5e8   : > { %v19242_v41 = vpop.f32.mrf.mxu0  ;;  %v19244_v13 = vpop.f32.mrf.mxu1 }
 0x5e9   : > { %11539 = vmatpush1.bf16.msra.mxu0 %v16383_v17  ;;  %11580 = vmatpush1.bf16.msra.mxu1 %v16386_v52  ;;  %v16425_v17 = vld [vmem:[%s18103_s5 + $0x5a0] ss:$16 sps:$4 sm:$0xff]  }
 0x5ea   : > { %v6524_v9 = vpop.f32.mrf.mxu0  ;;  %v6565_v31 = vpop.f32.mrf.mxu1  ;;  %11540 = vmatprep.subr.bf16.mxu0 %v16391_v26  ;;  %11581 = vmatprep.subr.bf16.mxu1 %v16394_v1  ;;  %v16428_v52 = vld [vmem:[%s18103_s5 + $0x7a0] ss:$16 sps:$4 sm:$0xff]  }
 0x5ec   : > { %v6525_v14 = vpop.f32.mrf.mxu0  ;;  %v6566_v18 = vpop.f32.mrf.mxu1 }
 0x5ed   : > { %11541 = vmatpush1.bf16.msra.mxu0 %v16389_v43  ;;  %11582 = vmatpush1.bf16.msra.mxu1 %v16392_v44  ;;  %v16433_v43 = vld [vmem:[%s18103_s5 + $0x584] ss:$16 sps:$4 sm:$0xff]  }
 0x5ee   : > { %v19252_v20 = vpop.f32.mrf.mxu0  ;;  %v19254_v49 = vpop.f32.mrf.mxu1  ;;  %11542 = vmatprep.subr.bf16.mxu0 %v16397_v15  ;;  %11583 = vmatprep.subr.bf16.mxu1 %v16400_v16  ;;  %v16436_v44 = vld [vmem:[%s18103_s5 + $0x784] ss:$16 sps:$4 sm:$0xff]   ;;  %v16431_v15 = vld [vmem:[%s18103_s5 + $0x580] ss:$16 sps:$4 sm:$0xff]  }
 0x5ef   : > { %v16434_v16 = vld [vmem:[%s18103_s5 + $0x780] ss:$16 sps:$4 sm:$0xff]   ;;  %v16439_v14 = vld [vmem:[%s18103_s5 + $0x564] ss:$16 sps:$4 sm:$0xff]  }
 0x5f0   : > { %v19258_v53 = vpop.f32.mrf.mxu0  ;;  %v19260_v25 = vpop.f32.mrf.mxu1  ;;  %v16442_v18 = vld [vmem:[%s18103_s5 + $0x764] ss:$16 sps:$4 sm:$0xff]  }
 0x5f1   : > { %11543 = vmatpush1.bf16.msra.mxu0 %v16395_v19  ;;  %11584 = vmatpush1.bf16.msra.mxu1 %v16398_v23  ;;  %v16437_v19 = vld [vmem:[%s18103_s5 + $0x560] ss:$16 sps:$4 sm:$0xff]  }
 0x5f2   : > { %v6606_v34 = vpop.f32.mrf.mxu0  ;;  %v6647_v21 = vpop.f32.mrf.mxu1  ;;  %11544 = vmatprep.subr.bf16.mxu0 %v16403_v51  ;;  %11585 = vmatprep.subr.bf16.mxu1 %v16406_v50  ;;  %v16440_v23 = vld [vmem:[%s18103_s5 + $0x760] ss:$16 sps:$4 sm:$0xff]   ;;  %v16445_v51 = vld [vmem:[%s18103_s5 + $0x544] ss:$16 sps:$4 sm:$0xff]  }
 0x5f3   : > { %v16448_v50 = vld [vmem:[%s18103_s5 + $0x744] ss:$16 sps:$4 sm:$0xff]  }
 0x5f4   : > { %v6607_v36 = vpop.f32.mrf.mxu0  ;;  %v6648_v37 = vpop.f32.mrf.mxu1  ;;  %v16451_v34 = vld [vmem:[%s18103_s5 + $0x524] ss:$16 sps:$4 sm:$0xff]  }
 0x5f5   : > { %11545 = vmatpush1.bf16.msra.mxu0 %v16401_v27  ;;  %11586 = vmatpush1.bf16.msra.mxu1 %v16404_v28  ;;  %v16443_v27 = vld [vmem:[%s18103_s5 + $0x540] ss:$16 sps:$4 sm:$0xff]   ;;  %v16454_v21 = vld [vmem:[%s18103_s5 + $0x724] ss:$16 sps:$4 sm:$0xff]  }
 0x5f6   : > { %v19268_v40 = vpop.f32.mrf.mxu0  ;;  %v19270_v30 = vpop.f32.mrf.mxu1  ;;  %11546 = vmatprep.subr.bf16.mxu0 %v16409_v22  ;;  %11587 = vmatprep.subr.bf16.mxu1 %v16412_v35  ;;  %v16446_v28 = vld [vmem:[%s18103_s5 + $0x740] ss:$16 sps:$4 sm:$0xff]   ;;  %v16457_v36 = vld [vmem:[%s18103_s5 + $0x504] ss:$16 sps:$4 sm:$0xff]  }
 0x5f7   : > { %v16449_v22 = vld [vmem:[%s18103_s5 + $0x520] ss:$16 sps:$4 sm:$0xff]   ;;  %v16460_v37 = vld [vmem:[%s18103_s5 + $0x704] ss:$16 sps:$4 sm:$0xff]  }
 0x5f8   : > { %v19274_v47 = vpop.f32.mrf.mxu0  ;;  %v19276_v48 = vpop.f32.mrf.mxu1  ;;  %v16452_v35 = vld [vmem:[%s18103_s5 + $0x720] ss:$16 sps:$4 sm:$0xff]  }
 0x5f9   : > { %11547 = vmatpush1.bf16.msra.mxu0 %v16407_v3  ;;  %11588 = vmatpush1.bf16.msra.mxu1 %v16410_v4  ;;  %v16455_v3 = vld [vmem:[%s18103_s5 + $0x500] ss:$16 sps:$4 sm:$0xff]  }
 0x5fa   : > { %v6688_v59 = vpop.f32.mrf.mxu0  ;;  %v6729_v60 = vpop.f32.mrf.mxu1  ;;  %11548 = vmatprep.subr.bf16.mxu0 %v16415_v33  ;;  %11589 = vmatprep.subr.bf16.mxu1 %v16418_v42  ;;  %v16458_v4 = vld [vmem:[%s18103_s5 + $0x700] ss:$16 sps:$4 sm:$0xff]   ;;  %v16463_v33 = vld [vmem:[%s18103_s5 + $0x8e4] ss:$16 sps:$4 sm:$0xff]  }
 0x5fb   : > { %v16466_v42 = vld [vmem:[%s18103_s5 + $0xae4] ss:$16 sps:$4 sm:$0xff]   ;;  %v19325_v59 = vpack.c.bf16 %v19220_v57, %v19220_v57  ;;  %v16464_v60 = vld [vmem:[%s18103_s5 + $0xae0] ss:$16 sps:$4 sm:$0xff]  }
 0x5fc   : > { %v6689_v2 = vpop.f32.mrf.mxu0  ;;  %v6730_v10 = vpop.f32.mrf.mxu1  ;;  %v16467_v57 = vld [vmem:[%s18103_s5 + $0x8c0] ss:$16 sps:$4 sm:$0xff]  }
 0x5fd   : > { %11549 = vmatpush2.bf16.msra.mxu0 %v16413_v55  ;;  %11590 = vmatpush2.bf16.msra.mxu1 %v16416_v56  ;;  %v16461_v55 = vld [vmem:[%s18103_s5 + $0x8e0] ss:$16 sps:$4 sm:$0xff]   ;;  %v19321_v56 = vpack.c.bf16 %v19218_v61, %v19218_v61  ;;  %v16472_v2 = vld [vmem:[%s18103_s5 + $0xac4] ss:$16 sps:$4 sm:$0xff]   ;;  %v19336_v61 = vpack.c.bf16 %v19244_v13, %v19244_v13 }
 0x5fe   : > { %v19284_v39 = vpop.f32.mrf.mxu0  ;;  %v19286_v62 = vpop.f32.mrf.mxu1  ;;  %11550 = vmatprep.subr.bf16.mxu0 %v16421_v58  ;;  %11591 = vmatprep.subr.bf16.mxu1 %v16424_v32  ;;  %v19330_v58 = vpack.c.bf16 %v19242_v41, %v19242_v41  ;;  %v16469_v32 = vld [vmem:[%s18103_s5 + $0x8c4] ss:$16 sps:$4 sm:$0xff]   ;;  %v16470_v41 = vld [vmem:[%s18103_s5 + $0xac0] ss:$16 sps:$4 sm:$0xff]  }
 0x5ff   : > { %v16475_v10 = vld [vmem:[%s18103_s5 + $0x8a4] ss:$16 sps:$4 sm:$0xff]  }
 0x600   : > { %v19290_v29 = vpop.f32.mrf.mxu0  ;;  %v19292_v7 = vpop.f32.mrf.mxu1  ;;  %v16478_v13 = vld [vmem:[%s18103_s5 + $0xaa4] ss:$16 sps:$4 sm:$0xff]  }
 0x601   : > { %11551 = vmatpush2.bf16.msra.mxu0 %v16419_v63  ;;  %11592 = vmatpush2.bf16.msra.mxu1 %v16422_v0  ;;  %v16473_v63 = vld [vmem:[%s18103_s5 + $0x8a0] ss:$16 sps:$4 sm:$0xff]  }
 0x602   : > { %v6770_v26 = vpop.f32.mrf.mxu0  ;;  %v6811_v1 = vpop.f32.mrf.mxu1  ;;  %11552 = vmatprep.subr.bf16.mxu0 %v16427_v5  ;;  %11593 = vmatprep.subr.bf16.mxu1 %v16430_v24  ;;  %v16476_v0 = vld [vmem:[%s18103_s5 + $0xaa0] ss:$16 sps:$4 sm:$0xff]   ;;  %v16481_v5 = vld [vmem:[%s18103_s5 + $0x884] ss:$16 sps:$4 sm:$0xff]  }
 0x603   : > { %v16484_v24 = vld [vmem:[%s18103_s5 + $0xa84] ss:$16 sps:$4 sm:$0xff]  }
 0x604   : > { %v6771_v9 = vpop.f32.mrf.mxu0  ;;  %v6812_v31 = vpop.f32.mrf.mxu1  ;;  %v16487_v26 = vld [vmem:[%s18103_s5 + $0x864] ss:$16 sps:$4 sm:$0xff]  }
 0x605   : > { %11553 = vmatpush2.bf16.msra.mxu0 %v16425_v17  ;;  %11594 = vmatpush2.bf16.msra.mxu1 %v16428_v52  ;;  %v16479_v17 = vld [vmem:[%s18103_s5 + $0x880] ss:$16 sps:$4 sm:$0xff]   ;;  %v16490_v1 = vld [vmem:[%s18103_s5 + $0xa64] ss:$16 sps:$4 sm:$0xff]  }
 0x606   : > { %11554 = vmatprep.subr.bf16.mxu0 %v16433_v43  ;;  %11595 = vmatprep.subr.bf16.mxu1 %v16436_v44  ;;  %v16482_v52 = vld [vmem:[%s18103_s5 + $0xa80] ss:$16 sps:$4 sm:$0xff]   ;;  %v16493_v9 = vld [vmem:[%s18103_s5 + $0x844] ss:$16 sps:$4 sm:$0xff]  }
 0x607   : > { %v16485_v43 = vld [vmem:[%s18103_s5 + $0x860] ss:$16 sps:$4 sm:$0xff]   ;;  %v16496_v31 = vld [vmem:[%s18103_s5 + $0xa44] ss:$16 sps:$4 sm:$0xff]  }
 0x608   : > { %v16488_v44 = vld [vmem:[%s18103_s5 + $0xa60] ss:$16 sps:$4 sm:$0xff]  }
 0x609   : > { %11555 = vmatpush2.bf16.msra.mxu0 %v16431_v15  ;;  %11596 = vmatpush2.bf16.msra.mxu1 %v16434_v16  ;;  %v16491_v15 = vld [vmem:[%s18103_s5 + $0x840] ss:$16 sps:$4 sm:$0xff]  }
 0x60a   : > { %11556 = vmatprep.subr.bf16.mxu0 %v16439_v14  ;;  %11597 = vmatprep.subr.bf16.mxu1 %v16442_v18  ;;  %v16494_v16 = vld [vmem:[%s18103_s5 + $0xa40] ss:$16 sps:$4 sm:$0xff]   ;;  %v16499_v14 = vld [vmem:[%s18103_s5 + $0x824] ss:$16 sps:$4 sm:$0xff]  }
 0x60b   : > { %v16502_v18 = vld [vmem:[%s18103_s5 + $0xa24] ss:$16 sps:$4 sm:$0xff]  }
 0x60d   : > { %11557 = vmatpush2.bf16.msra.mxu0 %v16437_v19  ;;  %11598 = vmatpush2.bf16.msra.mxu1 %v16440_v23  ;;  %v16497_v19 = vld [vmem:[%s18103_s5 + $0x820] ss:$16 sps:$4 sm:$0xff]  }
 0x60e   : > { %11558 = vmatprep.subr.bf16.mxu0 %v16445_v51  ;;  %11599 = vmatprep.subr.bf16.mxu1 %v16448_v50  ;;  %v16500_v23 = vld [vmem:[%s18103_s5 + $0xa20] ss:$16 sps:$4 sm:$0xff]   ;;  %v16505_v51 = vld [vmem:[%s18103_s5 + $0x804] ss:$16 sps:$4 sm:$0xff]  }
 0x60f   : > { %v16508_v50 = vld [vmem:[%s18103_s5 + $0xa04] ss:$16 sps:$4 sm:$0xff]  }
 0x611   : > { %11559 = vmatpush2.bf16.msra.mxu0 %v16443_v27  ;;  %11600 = vmatpush2.bf16.msra.mxu1 %v16446_v28  ;;  %v16503_v27 = vld [vmem:[%s18103_s5 + $0x800] ss:$16 sps:$4 sm:$0xff]  }
 0x612   : > { %11560 = vmatprep.subr.bf16.mxu0 %v16451_v34  ;;  %11601 = vmatprep.subr.bf16.mxu1 %v16454_v21  ;;  %v16506_v28 = vld [vmem:[%s18103_s5 + $0xa00] ss:$16 sps:$4 sm:$0xff]   ;;  %v16511_v34 = vld [vmem:[%s18103_s5 + $0x9e4] ss:$16 sps:$4 sm:$0xff]  }
 0x613   : > { %v16514_v21 = vld [vmem:[%s18103_s5 + $0xbe4] ss:$16 sps:$4 sm:$0xff]  }
 0x615   : > { %11561 = vmatpush2.bf16.msra.mxu0 %v16449_v22  ;;  %11602 = vmatpush2.bf16.msra.mxu1 %v16452_v35  ;;  %v16509_v22 = vld [vmem:[%s18103_s5 + $0x9e0] ss:$16 sps:$4 sm:$0xff]  }
 0x616   : > { %11562 = vmatprep.subr.bf16.mxu0 %v16457_v36  ;;  %11603 = vmatprep.subr.bf16.mxu1 %v16460_v37  ;;  %v16512_v35 = vld [vmem:[%s18103_s5 + $0xbe0] ss:$16 sps:$4 sm:$0xff]   ;;  %v16517_v36 = vld [vmem:[%s18103_s5 + $0x9c4] ss:$16 sps:$4 sm:$0xff]  }
 0x617   : > { %v16520_v37 = vld [vmem:[%s18103_s5 + $0xbc4] ss:$16 sps:$4 sm:$0xff]  }
 0x619   : > { %11563 = vmatpush2.bf16.msra.mxu0 %v16455_v3  ;;  %11604 = vmatpush2.bf16.msra.mxu1 %v16458_v4  ;;  %v16515_v3 = vld [vmem:[%s18103_s5 + $0x9c0] ss:$16 sps:$4 sm:$0xff]  }
 0x61a   : > { %11614 = vmatprep.subr.bf16.mxu0 %v16463_v33  ;;  %11655 = vmatprep.subr.bf16.mxu1 %v16466_v42  ;;  %v16518_v4 = vld [vmem:[%s18103_s5 + $0xbc0] ss:$16 sps:$4 sm:$0xff]   ;;  %v16523_v33 = vld [vmem:[%s18103_s5 + $0x9a4] ss:$16 sps:$4 sm:$0xff]  }
 0x61b   : > { %v16526_v42 = vld [vmem:[%s18103_s5 + $0xba4] ss:$16 sps:$4 sm:$0xff]  }
 0x61c   : > { %11565 = vmatmul.mubr.bf16.vlgmr.msra.gmra.mxu0 %v19321_v56  ;;  %11606 = vmatmul.mubr.bf16.vlgmr.msra.gmra.mxu1 %v19325_v59 }
 0x61d   : > { %11615 = vmatpush1.bf16.msra.mxu0 %v16461_v55  ;;  %11646 = vmatprep.mubr.bf16.mxu0 %v19330_v58  ;;  %v16521_v55 = vld [vmem:[%s18103_s5 + $0x9a0] ss:$16 sps:$4 sm:$0xff]  }
 0x61e   : > { %11656 = vmatpush1.bf16.msra.mxu1 %v16464_v60  ;;  %11687 = vmatprep.mubr.bf16.mxu1 %v19336_v61  ;;  %v16524_v60 = vld [vmem:[%s18103_s5 + $0xba0] ss:$16 sps:$4 sm:$0xff]  }
 0x61f   : > { %11616 = vmatprep.subr.bf16.mxu0 %v16469_v32  ;;  %11657 = vmatprep.subr.bf16.mxu1 %v16472_v2  ;;  %v16529_v32 = vld [vmem:[%s18103_s5 + $0x984] ss:$16 sps:$4 sm:$0xff]  }
 0x620   : > { %v16532_v2 = vld [vmem:[%s18103_s5 + $0xb84] ss:$16 sps:$4 sm:$0xff]  }
 0x621   : > { %11617 = vmatpush1.bf16.msra.mxu0 %v16467_v57  ;;  %v16527_v57 = vld [vmem:[%s18103_s5 + $0x980] ss:$16 sps:$4 sm:$0xff]  }
 0x622   : > { %11658 = vmatpush1.bf16.msra.mxu1 %v16470_v41  ;;  %11618 = vmatprep.subr.bf16.mxu0 %v16475_v10  ;;  %v16530_v41 = vld [vmem:[%s18103_s5 + $0xb80] ss:$16 sps:$4 sm:$0xff]   ;;  %v16535_v10 = vld [vmem:[%s18103_s5 + $0x964] ss:$16 sps:$4 sm:$0xff]  }
 0x623   : > { %11659 = vmatprep.subr.bf16.mxu1 %v16478_v13  ;;  %v16538_v13 = vld [vmem:[%s18103_s5 + $0xb64] ss:$16 sps:$4 sm:$0xff]  }
 0x625   : > { %11619 = vmatpush1.bf16.msra.mxu0 %v16473_v63  ;;  %v16533_v63 = vld [vmem:[%s18103_s5 + $0x960] ss:$16 sps:$4 sm:$0xff]  }
 0x626   : > { %11660 = vmatpush1.bf16.msra.mxu1 %v16476_v0  ;;  %11620 = vmatprep.subr.bf16.mxu0 %v16481_v5  ;;  %v16536_v0 = vld [vmem:[%s18103_s5 + $0xb60] ss:$16 sps:$4 sm:$0xff]   ;;  %v16541_v5 = vld [vmem:[%s18103_s5 + $0x944] ss:$16 sps:$4 sm:$0xff]  }
 0x627   : > { %11661 = vmatprep.subr.bf16.mxu1 %v16484_v24  ;;  %v16544_v24 = vld [vmem:[%s18103_s5 + $0xb44] ss:$16 sps:$4 sm:$0xff]  }
 0x629   : > { %11621 = vmatpush1.bf16.msra.mxu0 %v16479_v17  ;;  %v16539_v17 = vld [vmem:[%s18103_s5 + $0x940] ss:$16 sps:$4 sm:$0xff]  }
 0x62a   : > { %11662 = vmatpush1.bf16.msra.mxu1 %v16482_v52  ;;  %11622 = vmatprep.subr.bf16.mxu0 %v16487_v26  ;;  %v16542_v52 = vld [vmem:[%s18103_s5 + $0xb40] ss:$16 sps:$4 sm:$0xff]   ;;  %v16547_v26 = vld [vmem:[%s18103_s5 + $0x924] ss:$16 sps:$4 sm:$0xff]  }
 0x62b   : > { %11663 = vmatprep.subr.bf16.mxu1 %v16490_v1  ;;  %v16550_v1 = vld [vmem:[%s18103_s5 + $0xb24] ss:$16 sps:$4 sm:$0xff]  }
 0x62d   : > { %11623 = vmatpush1.bf16.msra.mxu0 %v16485_v43  ;;  %v16545_v43 = vld [vmem:[%s18103_s5 + $0x920] ss:$16 sps:$4 sm:$0xff]  }
 0x62e   : > { %11664 = vmatpush1.bf16.msra.mxu1 %v16488_v44  ;;  %11624 = vmatprep.subr.bf16.mxu0 %v16493_v9  ;;  %v16548_v44 = vld [vmem:[%s18103_s5 + $0xb20] ss:$16 sps:$4 sm:$0xff]   ;;  %v16553_v9 = vld [vmem:[%s18103_s5 + $0x904] ss:$16 sps:$4 sm:$0xff]  }
 0x62f   : > { %11665 = vmatprep.subr.bf16.mxu1 %v16496_v31  ;;  %v16556_v31 = vld [vmem:[%s18103_s5 + $0xb04] ss:$16 sps:$4 sm:$0xff]  }
 0x631   : > { %11625 = vmatpush1.bf16.msra.mxu0 %v16491_v15  ;;  %v16551_v15 = vld [vmem:[%s18103_s5 + $0x900] ss:$16 sps:$4 sm:$0xff]  }
 0x632   : > { %11666 = vmatpush1.bf16.msra.mxu1 %v16494_v16  ;;  %11626 = vmatprep.subr.bf16.mxu0 %v16499_v14  ;;  %v16554_v16 = vld [vmem:[%s18103_s5 + $0xb00] ss:$16 sps:$4 sm:$0xff]   ;;  %v16559_v14 = vld [vmem:[%s18103_s5 + $0xce4] ss:$16 sps:$4 sm:$0xff]  }
 0x633   : > { %11667 = vmatprep.subr.bf16.mxu1 %v16502_v18  ;;  %v16562_v18 = vld [vmem:[%s18103_s5 + $0xee4] ss:$16 sps:$4 sm:$0xff]  }
 0x635   : > { %11627 = vmatpush1.bf16.msra.mxu0 %v16497_v19  ;;  %v16557_v19 = vld [vmem:[%s18103_s5 + $0xce0] ss:$16 sps:$4 sm:$0xff]  }
 0x636   : > { %11668 = vmatpush1.bf16.msra.mxu1 %v16500_v23  ;;  %11628 = vmatprep.subr.bf16.mxu0 %v16505_v51  ;;  %v19405_v23 = vpack.c.bf16 %v19236_v38, %v19236_v38  ;;  %v16560_v51 = vld [vmem:[%s18103_s5 + $0xee0] ss:$16 sps:$4 sm:$0xff]   ;;  %v16568_v38 = vld [vmem:[%s18103_s5 + $0xec4] ss:$16 sps:$4 sm:$0xff]  }
 0x637   : > { %11669 = vmatprep.subr.bf16.mxu1 %v16508_v50  ;;  %v19410_v50 = vpack.c.bf16 %v19238_v54, %v19238_v54  ;;  %v16563_v54 = vld [vmem:[%s18103_s5 + $0xcc0] ss:$16 sps:$4 sm:$0xff]  }
 0x639   : > { %11629 = vmatpush1.bf16.msra.mxu0 %v16503_v27  ;;  %v16565_v27 = vld [vmem:[%s18103_s5 + $0xcc4] ss:$16 sps:$4 sm:$0xff]  }
 0x63a   : > { %11670 = vmatpush1.bf16.msra.mxu1 %v16506_v28  ;;  %11630 = vmatprep.subr.bf16.mxu0 %v16511_v34  ;;  %v19415_v28 = vpack.c.bf16 %v19258_v53, %v19258_v53  ;;  %v19421_v34 = vpack.c.bf16 %v19260_v25, %v19260_v25  ;;  %v16566_v53 = vld [vmem:[%s18103_s5 + $0xec0] ss:$16 sps:$4 sm:$0xff]   ;;  %v16574_v25 = vld [vmem:[%s18103_s5 + $0xea4] ss:$16 sps:$4 sm:$0xff]  }
 0x63b   : > { %11671 = vmatprep.subr.bf16.mxu1 %v16514_v21  ;;  %v16571_v21 = vld [vmem:[%s18103_s5 + $0xca4] ss:$16 sps:$4 sm:$0xff]  }
 0x63d   : > { %11631 = vmatpush2.bf16.msra.mxu0 %v16509_v22  ;;  %v16569_v22 = vld [vmem:[%s18103_s5 + $0xca0] ss:$16 sps:$4 sm:$0xff]  }
 0x63e   : > { %11672 = vmatpush2.bf16.msra.mxu1 %v16512_v35  ;;  %11632 = vmatprep.subr.bf16.mxu0 %v16517_v36  ;;  %v16572_v35 = vld [vmem:[%s18103_s5 + $0xea0] ss:$16 sps:$4 sm:$0xff]   ;;  %v16577_v36 = vld [vmem:[%s18103_s5 + $0xc84] ss:$16 sps:$4 sm:$0xff]  }
 0x63f   : > { %11673 = vmatprep.subr.bf16.mxu1 %v16520_v37  ;;  %v16580_v37 = vld [vmem:[%s18103_s5 + $0xe84] ss:$16 sps:$4 sm:$0xff]  }
 0x641   : > { %11633 = vmatpush2.bf16.msra.mxu0 %v16515_v3  ;;  %v16575_v3 = vld [vmem:[%s18103_s5 + $0xc80] ss:$16 sps:$4 sm:$0xff]  }
 0x642   : > { %11674 = vmatpush2.bf16.msra.mxu1 %v16518_v4  ;;  %11634 = vmatprep.subr.bf16.mxu0 %v16523_v33  ;;  %v16578_v4 = vld [vmem:[%s18103_s5 + $0xe80] ss:$16 sps:$4 sm:$0xff]   ;;  %v16583_v33 = vld [vmem:[%s18103_s5 + $0xc64] ss:$16 sps:$4 sm:$0xff]  }
 0x643   : > { %11675 = vmatprep.subr.bf16.mxu1 %v16526_v42  ;;  %v16586_v42 = vld [vmem:[%s18103_s5 + $0xe64] ss:$16 sps:$4 sm:$0xff]  }
 0x645   : > { %11635 = vmatpush2.bf16.msra.mxu0 %v16521_v55  ;;  %v16581_v55 = vld [vmem:[%s18103_s5 + $0xc60] ss:$16 sps:$4 sm:$0xff]  }
 0x646   : > { %11676 = vmatpush2.bf16.msra.mxu1 %v16524_v60  ;;  %11636 = vmatprep.subr.bf16.mxu0 %v16529_v32  ;;  %v16584_v60 = vld [vmem:[%s18103_s5 + $0xe60] ss:$16 sps:$4 sm:$0xff]   ;;  %v16589_v32 = vld [vmem:[%s18103_s5 + $0xc44] ss:$16 sps:$4 sm:$0xff]  }
 0x647   : > { %11677 = vmatprep.subr.bf16.mxu1 %v16532_v2  ;;  %v16592_v2 = vld [vmem:[%s18103_s5 + $0xe44] ss:$16 sps:$4 sm:$0xff]  }
 0x649   : > { %11637 = vmatpush2.bf16.msra.mxu0 %v16527_v57  ;;  %v16587_v57 = vld [vmem:[%s18103_s5 + $0xc40] ss:$16 sps:$4 sm:$0xff]  }
 0x64a   : > { %11678 = vmatpush2.bf16.msra.mxu1 %v16530_v41  ;;  %11638 = vmatprep.subr.bf16.mxu0 %v16535_v10  ;;  %v16590_v41 = vld [vmem:[%s18103_s5 + $0xe40] ss:$16 sps:$4 sm:$0xff]   ;;  %v16595_v10 = vld [vmem:[%s18103_s5 + $0xc24] ss:$16 sps:$4 sm:$0xff]  }
 0x64b   : > { %11679 = vmatprep.subr.bf16.mxu1 %v16538_v13  ;;  %v16598_v13 = vld [vmem:[%s18103_s5 + $0xe24] ss:$16 sps:$4 sm:$0xff]  }
 0x64d   : > { %11639 = vmatpush2.bf16.msra.mxu0 %v16533_v63  ;;  %v16593_v63 = vld [vmem:[%s18103_s5 + $0xc20] ss:$16 sps:$4 sm:$0xff]  }
 0x64e   : > { %11680 = vmatpush2.bf16.msra.mxu1 %v16536_v0  ;;  %11640 = vmatprep.subr.bf16.mxu0 %v16541_v5  ;;  %v16596_v0 = vld [vmem:[%s18103_s5 + $0xe20] ss:$16 sps:$4 sm:$0xff]   ;;  %v16601_v5 = vld [vmem:[%s18103_s5 + $0xc04] ss:$16 sps:$4 sm:$0xff]  }
 0x64f   : > { %11681 = vmatprep.subr.bf16.mxu1 %v16544_v24  ;;  %v16604_v24 = vld [vmem:[%s18103_s5 + $0xe04] ss:$16 sps:$4 sm:$0xff]  }
 0x651   : > { %11641 = vmatpush2.bf16.msra.mxu0 %v16539_v17  ;;  %v16599_v17 = vld [vmem:[%s18103_s5 + $0xc00] ss:$16 sps:$4 sm:$0xff]  }
 0x652   : > { %11682 = vmatpush2.bf16.msra.mxu1 %v16542_v52  ;;  %11642 = vmatprep.subr.bf16.mxu0 %v16547_v26  ;;  %v16602_v52 = vld [vmem:[%s18103_s5 + $0xe00] ss:$16 sps:$4 sm:$0xff]   ;;  %v16607_v26 = vld [vmem:[%s18103_s5 + $0xde4] ss:$16 sps:$4 sm:$0xff]  }
 0x653   : > { %11683 = vmatprep.subr.bf16.mxu1 %v16550_v1  ;;  %v16610_v1 = vld [vmem:[%s18103_s5 + $0xfe4] ss:$16 sps:$4 sm:$0xff]  }
 0x655   : > { %11643 = vmatpush2.bf16.msra.mxu0 %v16545_v43  ;;  %v16605_v43 = vld [vmem:[%s18103_s5 + $0xde0] ss:$16 sps:$4 sm:$0xff]  }
 0x656   : > { %11684 = vmatpush2.bf16.msra.mxu1 %v16548_v44  ;;  %11644 = vmatprep.subr.bf16.mxu0 %v16553_v9  ;;  %v16608_v44 = vld [vmem:[%s18103_s5 + $0xfe0] ss:$16 sps:$4 sm:$0xff]   ;;  %v16613_v9 = vld [vmem:[%s18103_s5 + $0xdc4] ss:$16 sps:$4 sm:$0xff]  }
 0x657   : > { %11685 = vmatprep.subr.bf16.mxu1 %v16556_v31  ;;  %v16616_v31 = vld [vmem:[%s18103_s5 + $0xfc4] ss:$16 sps:$4 sm:$0xff]  }
 0x659   : > { %11645 = vmatpush2.bf16.msra.mxu0 %v16551_v15  ;;  %v16611_v15 = vld [vmem:[%s18103_s5 + $0xdc0] ss:$16 sps:$4 sm:$0xff]  }
 0x65a   : > { %11686 = vmatpush2.bf16.msra.mxu1 %v16554_v16  ;;  %11696 = vmatprep.subr.bf16.mxu0 %v16559_v14  ;;  %v16614_v16 = vld [vmem:[%s18103_s5 + $0xfc0] ss:$16 sps:$4 sm:$0xff]   ;;  %v16619_v14 = vld [vmem:[%s18103_s5 + $0xda4] ss:$16 sps:$4 sm:$0xff]  }
 0x65b   : > { %11737 = vmatprep.subr.bf16.mxu1 %v16562_v18  ;;  %v16622_v18 = vld [vmem:[%s18103_s5 + $0xfa4] ss:$16 sps:$4 sm:$0xff]  }
 0x65c   : > { %11647 = vmatmul.mubr.bf16.vlgmr.msra.gmra.mxu0 %v19405_v23 }
 0x65d   : > { %11688 = vmatmul.mubr.bf16.vlgmr.msra.gmra.mxu1 %v19410_v50  ;;  %11697 = vmatpush1.bf16.msra.mxu0 %v16557_v19  ;;  %v16617_v19 = vld [vmem:[%s18103_s5 + $0xda0] ss:$16 sps:$4 sm:$0xff]  }
 0x65e   : > { %11728 = vmatprep.mubr.bf16.mxu0 %v19415_v28  ;;  %11738 = vmatpush1.bf16.msra.mxu1 %v16560_v51  ;;  %v16620_v51 = vld [vmem:[%s18103_s5 + $0xfa0] ss:$16 sps:$4 sm:$0xff]  }
 0x65f   : > { %11769 = vmatprep.mubr.bf16.mxu1 %v19421_v34  ;;  %11698 = vmatprep.subr.bf16.mxu0 %v16565_v27  ;;  %v16625_v27 = vld [vmem:[%s18103_s5 + $0xd84] ss:$16 sps:$4 sm:$0xff]  }
 0x660   : > { %11739 = vmatprep.subr.bf16.mxu1 %v16568_v38  ;;  %v16628_v38 = vld [vmem:[%s18103_s5 + $0xf84] ss:$16 sps:$4 sm:$0xff]  }
 0x661   : > { %11699 = vmatpush1.bf16.msra.mxu0 %v16563_v54  ;;  %v16623_v54 = vld [vmem:[%s18103_s5 + $0xd80] ss:$16 sps:$4 sm:$0xff]  }
 0x662   : > { %11740 = vmatpush1.bf16.msra.mxu1 %v16566_v53  ;;  %11700 = vmatprep.subr.bf16.mxu0 %v16571_v21  ;;  %v16626_v53 = vld [vmem:[%s18103_s5 + $0xf80] ss:$16 sps:$4 sm:$0xff]   ;;  %v16631_v21 = vld [vmem:[%s18103_s5 + $0xd64] ss:$16 sps:$4 sm:$0xff]  }
 0x663   : > { %11741 = vmatprep.subr.bf16.mxu1 %v16574_v25  ;;  %v16634_v25 = vld [vmem:[%s18103_s5 + $0xf64] ss:$16 sps:$4 sm:$0xff]  }
 0x665   : > { %11701 = vmatpush1.bf16.msra.mxu0 %v16569_v22  ;;  %v16629_v22 = vld [vmem:[%s18103_s5 + $0xd60] ss:$16 sps:$4 sm:$0xff]  }
 0x666   : > { %11742 = vmatpush1.bf16.msra.mxu1 %v16572_v35  ;;  %11702 = vmatprep.subr.bf16.mxu0 %v16577_v36  ;;  %v16632_v35 = vld [vmem:[%s18103_s5 + $0xf60] ss:$16 sps:$4 sm:$0xff]   ;;  %v16637_v36 = vld [vmem:[%s18103_s5 + $0xd44] ss:$16 sps:$4 sm:$0xff]  }
 0x667   : > { %11743 = vmatprep.subr.bf16.mxu1 %v16580_v37  ;;  %v16640_v37 = vld [vmem:[%s18103_s5 + $0xf44] ss:$16 sps:$4 sm:$0xff]  }
 0x669   : > { %11703 = vmatpush1.bf16.msra.mxu0 %v16575_v3  ;;  %v16635_v3 = vld [vmem:[%s18103_s5 + $0xd40] ss:$16 sps:$4 sm:$0xff]  }
 0x66a   : > { %11744 = vmatpush1.bf16.msra.mxu1 %v16578_v4  ;;  %11704 = vmatprep.subr.bf16.mxu0 %v16583_v33  ;;  %v16638_v4 = vld [vmem:[%s18103_s5 + $0xf40] ss:$16 sps:$4 sm:$0xff]   ;;  %v16643_v33 = vld [vmem:[%s18103_s5 + $0xd24] ss:$16 sps:$4 sm:$0xff]  }
 0x66b   : > { %11745 = vmatprep.subr.bf16.mxu1 %v16586_v42  ;;  %v16646_v42 = vld [vmem:[%s18103_s5 + $0xf24] ss:$16 sps:$4 sm:$0xff]  }
 0x66d   : > { %11705 = vmatpush1.bf16.msra.mxu0 %v16581_v55  ;;  %v16641_v55 = vld [vmem:[%s18103_s5 + $0xd20] ss:$16 sps:$4 sm:$0xff]  }
 0x66e   : > { %11746 = vmatpush1.bf16.msra.mxu1 %v16584_v60  ;;  %11706 = vmatprep.subr.bf16.mxu0 %v16589_v32  ;;  %v16644_v60 = vld [vmem:[%s18103_s5 + $0xf20] ss:$16 sps:$4 sm:$0xff]   ;;  %v16649_v32 = vld [vmem:[%s18103_s5 + $0xd04] ss:$16 sps:$4 sm:$0xff]  }
 0x66f   : > { %11747 = vmatprep.subr.bf16.mxu1 %v16592_v2  ;;  %v16652_v2 = vld [vmem:[%s18103_s5 + $0xf04] ss:$16 sps:$4 sm:$0xff]  }
 0x671   : > { %11707 = vmatpush1.bf16.msra.mxu0 %v16587_v57  ;;  %v16647_v57 = vld [vmem:[%s18103_s5 + $0xd00] ss:$16 sps:$4 sm:$0xff]  }
 0x672   : > { %11748 = vmatpush1.bf16.msra.mxu1 %v16590_v41  ;;  %11708 = vmatprep.subr.bf16.mxu0 %v16595_v10  ;;  %v16650_v41 = vld [vmem:[%s18103_s5 + $0xf00] ss:$16 sps:$4 sm:$0xff]   ;;  %v16655_v10 = vld [vmem:[%s18103_s5 + $0x10e4] ss:$16 sps:$4 sm:$0xff]  }
 0x673   : > { %11749 = vmatprep.subr.bf16.mxu1 %v16598_v13  ;;  %v16658_v13 = vld [vmem:[%s18103_s5 + $0x12e4] ss:$16 sps:$4 sm:$0xff]  }
 0x675   : > { %11709 = vmatpush1.bf16.msra.mxu0 %v16593_v63  ;;  %v16653_v63 = vld [vmem:[%s18103_s5 + $0x10e0] ss:$16 sps:$4 sm:$0xff]  }
 0x676   : > { %11750 = vmatpush1.bf16.msra.mxu1 %v16596_v0  ;;  %11710 = vmatprep.subr.bf16.mxu0 %v16601_v5  ;;  %v19489_v0 = vpack.c.bf16 %v19252_v20, %v19252_v20  ;;  %v16656_v5 = vld [vmem:[%s18103_s5 + $0x12e0] ss:$16 sps:$4 sm:$0xff]  }
 0x677   : > { %11751 = vmatprep.subr.bf16.mxu1 %v16604_v24  ;;  %v19494_v24 = vpack.c.bf16 %v19254_v49, %v19254_v49 }
 0x679   : > { %11711 = vmatpush1.bf16.msra.mxu0 %v16599_v17  ;;  %v16661_v17 = vld [vmem:[%s18103_s5 + $0x10c4] ss:$16 sps:$4 sm:$0xff]  }
 0x67a   : > { %11752 = vmatpush1.bf16.msra.mxu1 %v16602_v52  ;;  %11712 = vmatprep.subr.bf16.mxu0 %v16607_v26  ;;  %v19499_v52 = vpack.c.bf16 %v19274_v47, %v19274_v47 }
 0x67b   : > { %11753 = vmatprep.subr.bf16.mxu1 %v16610_v1  ;;  %v16664_v1 = vld [vmem:[%s18103_s5 + $0x12c4] ss:$16 sps:$4 sm:$0xff]  }
 0x67d   : > { %11713 = vmatpush2.bf16.msra.mxu0 %v16605_v43  ;;  %v19505_v43 = vpack.c.bf16 %v19276_v48, %v19276_v48 }
 0x67e   : > { %11754 = vmatpush2.bf16.msra.mxu1 %v16608_v44  ;;  %11714 = vmatprep.subr.bf16.mxu0 %v16613_v9  ;;  %v16659_v44 = vld [vmem:[%s18103_s5 + $0x10c0] ss:$16 sps:$4 sm:$0xff]  }
 0x67f   : > { %11755 = vmatprep.subr.bf16.mxu1 %v16616_v31  ;;  %v16662_v31 = vld [vmem:[%s18103_s5 + $0x12c0] ss:$16 sps:$4 sm:$0xff]  }
 0x681   : > { %11715 = vmatpush2.bf16.msra.mxu0 %v16611_v15  ;;  %v16667_v15 = vld [vmem:[%s18103_s5 + $0x10a4] ss:$16 sps:$4 sm:$0xff]  }
 0x682   : > { %11756 = vmatpush2.bf16.msra.mxu1 %v16614_v16  ;;  %11716 = vmatprep.subr.bf16.mxu0 %v16619_v14  ;;  %v16670_v16 = vld [vmem:[%s18103_s5 + $0x12a4] ss:$16 sps:$4 sm:$0xff]  }
 0x683   : > { %11757 = vmatprep.subr.bf16.mxu1 %v16622_v18 }
 0x685   : > { %11717 = vmatpush2.bf16.msra.mxu0 %v16617_v19  ;;  %v16665_v19 = vld [vmem:[%s18103_s5 + $0x10a0] ss:$16 sps:$4 sm:$0xff]  }
 0x686   : > { %11758 = vmatpush2.bf16.msra.mxu1 %v16620_v51  ;;  %11718 = vmatprep.subr.bf16.mxu0 %v16625_v27 }
 0x687   : > { %11759 = vmatprep.subr.bf16.mxu1 %v16628_v38  ;;  %v16668_v38 = vld [vmem:[%s18103_s5 + $0x12a0] ss:$16 sps:$4 sm:$0xff]  }
 0x689   : > { %11719 = vmatpush2.bf16.msra.mxu0 %v16623_v54  ;;  %v16673_v54 = vld [vmem:[%s18103_s5 + $0x1084] ss:$16 sps:$4 sm:$0xff]  }
 0x68a   : > { %11760 = vmatpush2.bf16.msra.mxu1 %v16626_v53  ;;  %11720 = vmatprep.subr.bf16.mxu0 %v16631_v21  ;;  %v16676_v53 = vld [vmem:[%s18103_s5 + $0x1284] ss:$16 sps:$4 sm:$0xff]   ;;  %v16671_v21 = vld [vmem:[%s18103_s5 + $0x1080] ss:$16 sps:$4 sm:$0xff]  }
 0x68b   : > { %11761 = vmatprep.subr.bf16.mxu1 %v16634_v25  ;;  %v16674_v25 = vld [vmem:[%s18103_s5 + $0x1280] ss:$16 sps:$4 sm:$0xff]  }
 0x68d   : > { %11721 = vmatpush2.bf16.msra.mxu0 %v16629_v22  ;;  %v16679_v22 = vld [vmem:[%s18103_s5 + $0x1064] ss:$16 sps:$4 sm:$0xff]  }
 0x68e   : > { %11762 = vmatpush2.bf16.msra.mxu1 %v16632_v35  ;;  %11722 = vmatprep.subr.bf16.mxu0 %v16637_v36  ;;  %v16682_v35 = vld [vmem:[%s18103_s5 + $0x1264] ss:$16 sps:$4 sm:$0xff]   ;;  %v16677_v36 = vld [vmem:[%s18103_s5 + $0x1060] ss:$16 sps:$4 sm:$0xff]  }
 0x68f   : > { %11763 = vmatprep.subr.bf16.mxu1 %v16640_v37  ;;  %v16680_v37 = vld [vmem:[%s18103_s5 + $0x1260] ss:$16 sps:$4 sm:$0xff]  }
 0x691   : > { %11723 = vmatpush2.bf16.msra.mxu0 %v16635_v3  ;;  %v16685_v3 = vld [vmem:[%s18103_s5 + $0x1044] ss:$16 sps:$4 sm:$0xff]  }
 0x692   : > { %11764 = vmatpush2.bf16.msra.mxu1 %v16638_v4  ;;  %11724 = vmatprep.subr.bf16.mxu0 %v16643_v33  ;;  %v16688_v4 = vld [vmem:[%s18103_s5 + $0x1244] ss:$16 sps:$4 sm:$0xff]   ;;  %v16683_v33 = vld [vmem:[%s18103_s5 + $0x1040] ss:$16 sps:$4 sm:$0xff]  }
 0x693   : > { %11765 = vmatprep.subr.bf16.mxu1 %v16646_v42  ;;  %v16686_v42 = vld [vmem:[%s18103_s5 + $0x1240] ss:$16 sps:$4 sm:$0xff]  }
 0x695   : > { %11725 = vmatpush2.bf16.msra.mxu0 %v16641_v55  ;;  %v16691_v55 = vld [vmem:[%s18103_s5 + $0x1024] ss:$16 sps:$4 sm:$0xff]  }
 0x696   : > { %11766 = vmatpush2.bf16.msra.mxu1 %v16644_v60  ;;  %11726 = vmatprep.subr.bf16.mxu0 %v16649_v32  ;;  %v16694_v60 = vld [vmem:[%s18103_s5 + $0x1224] ss:$16 sps:$4 sm:$0xff]   ;;  %v16689_v32 = vld [vmem:[%s18103_s5 + $0x1020] ss:$16 sps:$4 sm:$0xff]  }
 0x697   : > { %11767 = vmatprep.subr.bf16.mxu1 %v16652_v2  ;;  %v16692_v2 = vld [vmem:[%s18103_s5 + $0x1220] ss:$16 sps:$4 sm:$0xff]  }
 0x699   : > { %11727 = vmatpush2.bf16.msra.mxu0 %v16647_v57  ;;  %v16697_v57 = vld [vmem:[%s18103_s5 + $0x1004] ss:$16 sps:$4 sm:$0xff]  }
 0x69a   : > { %11768 = vmatpush2.bf16.msra.mxu1 %v16650_v41  ;;  %11778 = vmatprep.subr.bf16.mxu0 %v16655_v10  ;;  %v16700_v41 = vld [vmem:[%s18103_s5 + $0x1204] ss:$16 sps:$4 sm:$0xff]   ;;  %v16695_v10 = vld [vmem:[%s18103_s5 + $0x1000] ss:$16 sps:$4 sm:$0xff]  }
 0x69b   : > { %11819 = vmatprep.subr.bf16.mxu1 %v16658_v13  ;;  %v16698_v13 = vld [vmem:[%s18103_s5 + $0x1200] ss:$16 sps:$4 sm:$0xff]  }
 0x69c   : > { %11729 = vmatmul.mubr.bf16.vlgmr.msra.gmra.mxu0 %v19489_v0  ;;  %v11484_v20 = vpop.f32.mrf.mxu0  ;;  %v11525_v26 = vpop.f32.mrf.mxu1 }
 0x69d   : > { %11770 = vmatmul.mubr.bf16.vlgmr.msra.gmra.mxu1 %v19494_v24  ;;  %v19508_v49 = vadd.f32 %v11525_v26, %v11484_v20  ;;  %11779 = vmatpush1.bf16.msra.mxu0 %v16653_v63  ;;  %v16703_v63 = vld [vmem:[%s18103_s5 + $0x11e4] ss:$16 sps:$4 sm:$0xff]   ;;  %v16704_v20 = vld [vmem:[%s18103_s5 + $0x13e0] ss:$16 sps:$4 sm:$0xff]  }
 0x69e   : > { %11810 = vmatprep.mubr.bf16.mxu0 %v19499_v52  ;;  %11820 = vmatpush1.bf16.msra.mxu1 %v16656_v5  ;;  %v11486_v47 = vpop.f32.mrf.mxu0  ;;  %v11527_v9 = vpop.f32.mrf.mxu1  ;;  %v16706_v5 = vld [vmem:[%s18103_s5 + $0x13e4] ss:$16 sps:$4 sm:$0xff]  }
 0x69f   : > { %11851 = vmatprep.mubr.bf16.mxu1 %v19505_v43  ;;  %v19515_v48 = vadd.f32 %v11527_v9, %v11486_v47  ;;  %11780 = vmatprep.subr.bf16.mxu0 %v16661_v17  ;;  %v16701_v17 = vld [vmem:[%s18103_s5 + $0x11e0] ss:$16 sps:$4 sm:$0xff]   ;;  %v16709_v26 = vld [vmem:[%s18103_s5 + $0x11c4] ss:$16 sps:$4 sm:$0xff]  }
 0x6a0   : > { %11821 = vmatprep.subr.bf16.mxu1 %v16664_v1  ;;  %v11488_v14 = vpop.f32.mrf.mxu0  ;;  %v11529_v18 = vpop.f32.mrf.mxu1  ;;  %v16712_v1 = vld [vmem:[%s18103_s5 + $0x13c4] ss:$16 sps:$4 sm:$0xff]   ;;  %v16710_v47 = vld [vmem:[%s18103_s5 + $0x13c0] ss:$16 sps:$4 sm:$0xff]  }
 0x6a1   : > { %11781 = vmatpush1.bf16.msra.mxu0 %v16659_v44  ;;  %v16707_v44 = vld [vmem:[%s18103_s5 + $0x11c0] ss:$16 sps:$4 sm:$0xff]   ;;  %v16715_v9 = vld [vmem:[%s18103_s5 + $0x11a4] ss:$16 sps:$4 sm:$0xff]  }
 0x6a2   : > { %11822 = vmatpush1.bf16.msra.mxu1 %v16662_v31  ;;  %v11489_v51 = vpop.f32.mrf.mxu0  ;;  %v11530_v27 = vpop.f32.mrf.mxu1  ;;  %11782 = vmatprep.subr.bf16.mxu0 %v16667_v15  ;;  %v16718_v31 = vld [vmem:[%s18103_s5 + $0x13a4] ss:$16 sps:$4 sm:$0xff]   ;;  %v16713_v15 = vld [vmem:[%s18103_s5 + $0x11a0] ss:$16 sps:$4 sm:$0xff]  }
 0x6a3   : > { %11823 = vmatprep.subr.bf16.mxu1 %v16670_v16  ;;  %v16716_v16 = vld [vmem:[%s18103_s5 + $0x13a0] ss:$16 sps:$4 sm:$0xff]   ;;  %v16721_v14 = vld [vmem:[%s18103_s5 + $0x1184] ss:$16 sps:$4 sm:$0xff]  }
 0x6a4   : > { %v16724_v18 = vld [vmem:[%s18103_s5 + $0x1384] ss:$16 sps:$4 sm:$0xff]   ;;  %v16722_v51 = vld [vmem:[%s18103_s5 + $0x1380] ss:$16 sps:$4 sm:$0xff]  }
 0x6a5   : > { %11783 = vmatpush1.bf16.msra.mxu0 %v16665_v19  ;;  %v16719_v19 = vld [vmem:[%s18103_s5 + $0x1180] ss:$16 sps:$4 sm:$0xff]   ;;  %v16727_v27 = vld [vmem:[%s18103_s5 + $0x1164] ss:$16 sps:$4 sm:$0xff]  }
 0x6a6   : > { %11824 = vmatpush1.bf16.msra.mxu1 %v16668_v38  ;;  %11784 = vmatprep.subr.bf16.mxu0 %v16673_v54  ;;  %v16730_v38 = vld [vmem:[%s18103_s5 + $0x1364] ss:$16 sps:$4 sm:$0xff]   ;;  %v16725_v54 = vld [vmem:[%s18103_s5 + $0x1160] ss:$16 sps:$4 sm:$0xff]  }
 0x6a7   : > { %11825 = vmatprep.subr.bf16.mxu1 %v16676_v53  ;;  %v16728_v53 = vld [vmem:[%s18103_s5 + $0x1360] ss:$16 sps:$4 sm:$0xff]  }
 0x6a9   : > { %11785 = vmatpush1.bf16.msra.mxu0 %v16671_v21  ;;  %v16733_v21 = vld [vmem:[%s18103_s5 + $0x1144] ss:$16 sps:$4 sm:$0xff]  }
 0x6aa   : > { %11826 = vmatpush1.bf16.msra.mxu1 %v16674_v25  ;;  %11786 = vmatprep.subr.bf16.mxu0 %v16679_v22  ;;  %v16736_v25 = vld [vmem:[%s18103_s5 + $0x1344] ss:$16 sps:$4 sm:$0xff]   ;;  %v16731_v22 = vld [vmem:[%s18103_s5 + $0x1140] ss:$16 sps:$4 sm:$0xff]  }
 0x6ab   : > { %11827 = vmatprep.subr.bf16.mxu1 %v16682_v35  ;;  %v16734_v35 = vld [vmem:[%s18103_s5 + $0x1340] ss:$16 sps:$4 sm:$0xff]  }
 0x6ad   : > { %11787 = vmatpush1.bf16.msra.mxu0 %v16677_v36  ;;  %v16739_v36 = vld [vmem:[%s18103_s5 + $0x1124] ss:$16 sps:$4 sm:$0xff]  }
 0x6ae   : > { %11828 = vmatpush1.bf16.msra.mxu1 %v16680_v37  ;;  %11788 = vmatprep.subr.bf16.mxu0 %v16685_v3  ;;  %v16742_v37 = vld [vmem:[%s18103_s5 + $0x1324] ss:$16 sps:$4 sm:$0xff]   ;;  %v16737_v3 = vld [vmem:[%s18103_s5 + $0x1120] ss:$16 sps:$4 sm:$0xff]  }
 0x6af   : > { %11829 = vmatprep.subr.bf16.mxu1 %v16688_v4  ;;  %v16740_v4 = vld [vmem:[%s18103_s5 + $0x1320] ss:$16 sps:$4 sm:$0xff]  }
 0x6b1   : > { %11789 = vmatpush1.bf16.msra.mxu0 %v16683_v33  ;;  %v16745_v33 = vld [vmem:[%s18103_s5 + $0x1104] ss:$16 sps:$4 sm:$0xff]  }
 0x6b2   : > { %11830 = vmatpush1.bf16.msra.mxu1 %v16686_v42  ;;  %11790 = vmatprep.subr.bf16.mxu0 %v16691_v55  ;;  %v16748_v42 = vld [vmem:[%s18103_s5 + $0x1304] ss:$16 sps:$4 sm:$0xff]   ;;  %v16743_v55 = vld [vmem:[%s18103_s5 + $0x1100] ss:$16 sps:$4 sm:$0xff]  }
 0x6b3   : > { %11831 = vmatprep.subr.bf16.mxu1 %v16694_v60  ;;  %v16746_v60 = vld [vmem:[%s18103_s5 + $0x1300] ss:$16 sps:$4 sm:$0xff]  }
 0x6b5   : > { %11791 = vmatpush1.bf16.msra.mxu0 %v16689_v32  ;;  %v16751_v32 = vld [vmem:[%s18103_s5 + $0x14e4] ss:$16 sps:$4 sm:$0xff]  }
 0x6b6   : > { %11832 = vmatpush1.bf16.msra.mxu1 %v16692_v2  ;;  %11792 = vmatprep.subr.bf16.mxu0 %v16697_v57  ;;  %v16754_v2 = vld [vmem:[%s18103_s5 + $0x16e4] ss:$16 sps:$4 sm:$0xff]   ;;  %v16749_v57 = vld [vmem:[%s18103_s5 + $0x14e0] ss:$16 sps:$4 sm:$0xff]  }
 0x6b7   : > { %11833 = vmatprep.subr.bf16.mxu1 %v16700_v41  ;;  %v19577_v41 = vpack.c.bf16 %v19268_v40, %v19268_v40  ;;  %v16760_v40 = vld [vmem:[%s18103_s5 + $0x16c4] ss:$16 sps:$4 sm:$0xff]  }
 0x6b9   : > { %11793 = vmatpush1.bf16.msra.mxu0 %v16695_v10  ;;  %v16752_v10 = vld [vmem:[%s18103_s5 + $0x16e0] ss:$16 sps:$4 sm:$0xff]  }
 0x6ba   : > { %11834 = vmatpush1.bf16.msra.mxu1 %v16698_v13  ;;  %11794 = vmatprep.subr.bf16.mxu0 %v16703_v63  ;;  %v19582_v13 = vpack.c.bf16 %v19270_v30, %v19270_v30  ;;  %v16757_v63 = vld [vmem:[%s18103_s5 + $0x14c4] ss:$16 sps:$4 sm:$0xff]  }
 0x6bb   : > { %11835 = vmatprep.subr.bf16.mxu1 %v16706_v5  ;;  %v19587_v5 = vpack.c.bf16 %v19290_v29, %v19290_v29 }
 0x6bd   : > { %11795 = vmatpush2.bf16.msra.mxu0 %v16701_v17 }
 0x6be   : > { %11836 = vmatpush2.bf16.msra.mxu1 %v16704_v20  ;;  %11796 = vmatprep.subr.bf16.mxu0 %v16709_v26  ;;  %v19593_v26 = vpack.c.bf16 %v19292_v7, %v19292_v7 }
 0x6bf   : > { %11837 = vmatprep.subr.bf16.mxu1 %v16712_v1  ;;  %v16755_v1 = vld [vmem:[%s18103_s5 + $0x14c0] ss:$16 sps:$4 sm:$0xff]  }
 0x6c1   : > { %11797 = vmatpush2.bf16.msra.mxu0 %v16707_v44 }
 0x6c2   : > { %11838 = vmatpush2.bf16.msra.mxu1 %v16710_v47  ;;  %11798 = vmatprep.subr.bf16.mxu0 %v16715_v9  ;;  %v16758_v47 = vld [vmem:[%s18103_s5 + $0x16c0] ss:$16 sps:$4 sm:$0xff]   ;;  %v16763_v9 = vld [vmem:[%s18103_s5 + $0x14a4] ss:$16 sps:$4 sm:$0xff]  }
 0x6c3   : > { %11839 = vmatprep.subr.bf16.mxu1 %v16718_v31 }
 0x6c5   : > { %11799 = vmatpush2.bf16.msra.mxu0 %v16713_v15 }
 0x6c6   : > { %11840 = vmatpush2.bf16.msra.mxu1 %v16716_v16  ;;  %11800 = vmatprep.subr.bf16.mxu0 %v16721_v14 }
 0x6c7   : > { %11841 = vmatprep.subr.bf16.mxu1 %v16724_v18  ;;  %v16761_v18 = vld [vmem:[%s18103_s5 + $0x14a0] ss:$16 sps:$4 sm:$0xff]  }
 0x6c9   : > { %11801 = vmatpush2.bf16.msra.mxu0 %v16719_v19 }
 0x6ca   : > { %11842 = vmatpush2.bf16.msra.mxu1 %v16722_v51  ;;  %11802 = vmatprep.subr.bf16.mxu0 %v16727_v27  ;;  %v16769_v27 = vld [vmem:[%s18103_s5 + $0x1484] ss:$16 sps:$4 sm:$0xff]  }
 0x6cb   : > { %11843 = vmatprep.subr.bf16.mxu1 %v16730_v38  ;;  %v16772_v38 = vld [vmem:[%s18103_s5 + $0x1684] ss:$16 sps:$4 sm:$0xff]  }
 0x6cd   : > { %11803 = vmatpush2.bf16.msra.mxu0 %v16725_v54  ;;  %v16767_v54 = vld [vmem:[%s18103_s5 + $0x1480] ss:$16 sps:$4 sm:$0xff]  }
 0x6ce   : > { %11844 = vmatpush2.bf16.msra.mxu1 %v16728_v53  ;;  %11804 = vmatprep.subr.bf16.mxu0 %v16733_v21  ;;  %v16770_v53 = vld [vmem:[%s18103_s5 + $0x1680] ss:$16 sps:$4 sm:$0xff]   ;;  %v16775_v21 = vld [vmem:[%s18103_s5 + $0x1464] ss:$16 sps:$4 sm:$0xff]  }
 0x6cf   : > { %11845 = vmatprep.subr.bf16.mxu1 %v16736_v25  ;;  %v16778_v25 = vld [vmem:[%s18103_s5 + $0x1664] ss:$16 sps:$4 sm:$0xff]  }
 0x6d1   : > { %11805 = vmatpush2.bf16.msra.mxu0 %v16731_v22  ;;  %v16773_v22 = vld [vmem:[%s18103_s5 + $0x1460] ss:$16 sps:$4 sm:$0xff]  }
 0x6d2   : > { %11846 = vmatpush2.bf16.msra.mxu1 %v16734_v35  ;;  %11806 = vmatprep.subr.bf16.mxu0 %v16739_v36  ;;  %v16776_v35 = vld [vmem:[%s18103_s5 + $0x1660] ss:$16 sps:$4 sm:$0xff]   ;;  %v16781_v36 = vld [vmem:[%s18103_s5 + $0x1444] ss:$16 sps:$4 sm:$0xff]  }
 0x6d3   : > { %11847 = vmatprep.subr.bf16.mxu1 %v16742_v37  ;;  %v16784_v37 = vld [vmem:[%s18103_s5 + $0x1644] ss:$16 sps:$4 sm:$0xff]  }
 0x6d5   : > { %11807 = vmatpush2.bf16.msra.mxu0 %v16737_v3  ;;  %v16779_v3 = vld [vmem:[%s18103_s5 + $0x1440] ss:$16 sps:$4 sm:$0xff]  }
 0x6d6   : > { %11848 = vmatpush2.bf16.msra.mxu1 %v16740_v4  ;;  %11808 = vmatprep.subr.bf16.mxu0 %v16745_v33  ;;  %v16782_v4 = vld [vmem:[%s18103_s5 + $0x1640] ss:$16 sps:$4 sm:$0xff]   ;;  %v16787_v33 = vld [vmem:[%s18103_s5 + $0x1424] ss:$16 sps:$4 sm:$0xff]  }
 0x6d7   : > { %11849 = vmatprep.subr.bf16.mxu1 %v16748_v42  ;;  %v16790_v42 = vld [vmem:[%s18103_s5 + $0x1624] ss:$16 sps:$4 sm:$0xff]  }
 0x6d9   : > { %11809 = vmatpush2.bf16.msra.mxu0 %v16743_v55  ;;  %v16785_v55 = vld [vmem:[%s18103_s5 + $0x1420] ss:$16 sps:$4 sm:$0xff]  }
 0x6da   : > { %11850 = vmatpush2.bf16.msra.mxu1 %v16746_v60  ;;  %11860 = vmatprep.subr.bf16.mxu0 %v16751_v32  ;;  %v16788_v60 = vld [vmem:[%s18103_s5 + $0x1620] ss:$16 sps:$4 sm:$0xff]   ;;  %v16793_v32 = vld [vmem:[%s18103_s5 + $0x1404] ss:$16 sps:$4 sm:$0xff]  }
 0x6db   : > { %11901 = vmatprep.subr.bf16.mxu1 %v16754_v2  ;;  %v16796_v2 = vld [vmem:[%s18103_s5 + $0x1604] ss:$16 sps:$4 sm:$0xff]  }
 0x6dc   : > { %v11566_v17 = vpop.f32.mrf.mxu0  ;;  %v11607_v20 = vpop.f32.mrf.mxu1  ;;  %11811 = vmatmul.mubr.bf16.vlgmr.msra.gmra.mxu0 %v19577_v41 }
 0x6dd   : > { %v11567_v30 = vadd.f32 %v11566_v17, %v19508_v49  ;;  %11852 = vmatmul.mubr.bf16.vlgmr.msra.gmra.mxu1 %v19582_v13  ;;  %11861 = vmatpush1.bf16.msra.mxu0 %v16749_v57  ;;  %v16766_v49 = vld [vmem:[%s18103_s5 + $0x16a4] ss:$16 sps:$4 sm:$0xff]   ;;  %v16791_v57 = vld [vmem:[%s18103_s5 + $0x1400] ss:$16 sps:$4 sm:$0xff]  }
 0x6de   : > { %11892 = vmatprep.mubr.bf16.mxu0 %v19587_v5  ;;  %11902 = vmatpush1.bf16.msra.mxu1 %v16752_v10  ;;  %v11568_v29 = vpop.f32.mrf.mxu0  ;;  %v11609_v44 = vpop.f32.mrf.mxu1  ;;  %v16794_v10 = vld [vmem:[%s18103_s5 + $0x1600] ss:$16 sps:$4 sm:$0xff]   ;;  %v16802_v17 = vld [vmem:[%s18103_s5 + $0x17e4] ss:$16 sps:$4 sm:$0xff]  }
 0x6df   : > { %v19601_v31 = vadd.f32 %v11607_v20, %v11567_v30  ;;  %11933 = vmatprep.mubr.bf16.mxu1 %v19593_v26  ;;  %v11569_v7 = vadd.f32 %v11568_v29, %v19515_v48  ;;  %11862 = vmatprep.subr.bf16.mxu0 %v16757_v63  ;;  %v16764_v48 = vld [vmem:[%s18103_s5 + $0x16a0] ss:$16 sps:$4 sm:$0xff]   ;;  %v16799_v63 = vld [vmem:[%s18103_s5 + $0x15e4] ss:$16 sps:$4 sm:$0xff]  }
 0x6e0   : > { %v11570_v15 = vpop.f32.mrf.mxu0  ;;  %v11611_v16 = vpop.f32.mrf.mxu1  ;;  %11903 = vmatprep.subr.bf16.mxu1 %v16760_v40  ;;  %v16797_v20 = vld [vmem:[%s18103_s5 + $0x15e0] ss:$16 sps:$4 sm:$0xff]   ;;  %v16805_v30 = vld [vmem:[%s18103_s5 + $0x15c4] ss:$16 sps:$4 sm:$0xff]  }
 0x6e1   : > { %v19606_v14 = vadd.f32 %v11609_v44, %v11569_v7  ;;  %11863 = vmatpush1.bf16.msra.mxu0 %v16755_v1  ;;  %v16800_v40 = vld [vmem:[%s18103_s5 + $0x17e0] ss:$16 sps:$4 sm:$0xff]   ;;  %v16808_v1 = vld [vmem:[%s18103_s5 + $0x17c4] ss:$16 sps:$4 sm:$0xff]  }
 0x6e2   : > { %11904 = vmatpush1.bf16.msra.mxu1 %v16758_v47  ;;  %v11571_v19 = vpop.f32.mrf.mxu0  ;;  %v11612_v51 = vpop.f32.mrf.mxu1  ;;  %11864 = vmatprep.subr.bf16.mxu0 %v16763_v9  ;;  %v16803_v29 = vld [vmem:[%s18103_s5 + $0x15c0] ss:$16 sps:$4 sm:$0xff]   ;;  %v16811_v47 = vld [vmem:[%s18103_s5 + $0x15a4] ss:$16 sps:$4 sm:$0xff]  }
 0x6e3   : > { %11905 = vmatprep.subr.bf16.mxu1 %v16766_v49  ;;  %v16806_v44 = vld [vmem:[%s18103_s5 + $0x17c0] ss:$16 sps:$4 sm:$0xff]   ;;  %v16814_v9 = vld [vmem:[%s18103_s5 + $0x17a4] ss:$16 sps:$4 sm:$0xff]  }
 0x6e4   : > { %v16809_v7 = vld [vmem:[%s18103_s5 + $0x15a0] ss:$16 sps:$4 sm:$0xff]   ;;  %v16817_v15 = vld [vmem:[%s18103_s5 + $0x1584] ss:$16 sps:$4 sm:$0xff]  }
 0x6e5   : > { %11865 = vmatpush1.bf16.msra.mxu0 %v16761_v18  ;;  %v16812_v49 = vld [vmem:[%s18103_s5 + $0x17a0] ss:$16 sps:$4 sm:$0xff]   ;;  %v16820_v16 = vld [vmem:[%s18103_s5 + $0x1784] ss:$16 sps:$4 sm:$0xff]  }
 0x6e6   : > { %11906 = vmatpush1.bf16.msra.mxu1 %v16764_v48  ;;  %11866 = vmatprep.subr.bf16.mxu0 %v16769_v27  ;;  %v16815_v18 = vld [vmem:[%s18103_s5 + $0x1580] ss:$16 sps:$4 sm:$0xff]   ;;  %v16823_v51 = vld [vmem:[%s18103_s5 + $0x1564] ss:$16 sps:$4 sm:$0xff]  }
 0x6e7   : > { %11907 = vmatprep.subr.bf16.mxu1 %v16772_v38  ;;  %v16818_v19 = vld [vmem:[%s18103_s5 + $0x1780] ss:$16 sps:$4 sm:$0xff]   ;;  %v16826_v48 = vld [vmem:[%s18103_s5 + $0x1764] ss:$16 sps:$4 sm:$0xff]  }
 0x6e8   : > { %v16821_v27 = vld [vmem:[%s18103_s5 + $0x1560] ss:$16 sps:$4 sm:$0xff]  }
 0x6e9   : > { %11867 = vmatpush1.bf16.msra.mxu0 %v16767_v54  ;;  %v16824_v38 = vld [vmem:[%s18103_s5 + $0x1760] ss:$16 sps:$4 sm:$0xff]   ;;  %v16829_v54 = vld [vmem:[%s18103_s5 + $0x1544] ss:$16 sps:$4 sm:$0xff]  }
 0x6ea   : > { %11908 = vmatpush1.bf16.msra.mxu1 %v16770_v53  ;;  %11868 = vmatprep.subr.bf16.mxu0 %v16775_v21  ;;  %v16832_v53 = vld [vmem:[%s18103_s5 + $0x1744] ss:$16 sps:$4 sm:$0xff]   ;;  %v16827_v21 = vld [vmem:[%s18103_s5 + $0x1540] ss:$16 sps:$4 sm:$0xff]  }
 0x6eb   : > { %11909 = vmatprep.subr.bf16.mxu1 %v16778_v25  ;;  %v16830_v25 = vld [vmem:[%s18103_s5 + $0x1740] ss:$16 sps:$4 sm:$0xff]  }
 0x6ed   : > { %11869 = vmatpush1.bf16.msra.mxu0 %v16773_v22  ;;  %v16835_v22 = vld [vmem:[%s18103_s5 + $0x1524] ss:$16 sps:$4 sm:$0xff]  }
 0x6ee   : > { %11910 = vmatpush1.bf16.msra.mxu1 %v16776_v35  ;;  %11870 = vmatprep.subr.bf16.mxu0 %v16781_v36  ;;  %v16838_v35 = vld [vmem:[%s18103_s5 + $0x1724] ss:$16 sps:$4 sm:$0xff]   ;;  %v16833_v36 = vld [vmem:[%s18103_s5 + $0x1520] ss:$16 sps:$4 sm:$0xff]  }
 0x6ef   : > { %11911 = vmatprep.subr.bf16.mxu1 %v16784_v37  ;;  %v16836_v37 = vld [vmem:[%s18103_s5 + $0x1720] ss:$16 sps:$4 sm:$0xff]  }
 0x6f1   : > { %11871 = vmatpush1.bf16.msra.mxu0 %v16779_v3  ;;  %v16841_v3 = vld [vmem:[%s18103_s5 + $0x1504] ss:$16 sps:$4 sm:$0xff]  }
 0x6f2   : > { %11912 = vmatpush1.bf16.msra.mxu1 %v16782_v4  ;;  %11872 = vmatprep.subr.bf16.mxu0 %v16787_v33  ;;  %v16844_v4 = vld [vmem:[%s18103_s5 + $0x1704] ss:$16 sps:$4 sm:$0xff]   ;;  %v16839_v33 = vld [vmem:[%s18103_s5 + $0x1500] ss:$16 sps:$4 sm:$0xff]  }
 0x6f3   : > { %11913 = vmatprep.subr.bf16.mxu1 %v16790_v42  ;;  %v16842_v42 = vld [vmem:[%s18103_s5 + $0x1700] ss:$16 sps:$4 sm:$0xff]  }
 0x6f5   : > { %11873 = vmatpush1.bf16.msra.mxu0 %v16785_v55  ;;  %v16847_v55 = vld [vmem:[%s18103_s5 + $0xec] ss:$16 sps:$4 sm:$0xff]  }
 0x6f6   : > { %11914 = vmatpush1.bf16.msra.mxu1 %v16788_v60  ;;  %11874 = vmatprep.subr.bf16.mxu0 %v16793_v32  ;;  %v16850_v60 = vld [vmem:[%s18103_s5 + $0x2ec] ss:$16 sps:$4 sm:$0xff]   ;;  %v16845_v32 = vld [vmem:[%s18103_s5 + $0xe8] ss:$16 sps:$4 sm:$0xff]  }
 0x6f7   : > { %11915 = vmatprep.subr.bf16.mxu1 %v16796_v2  ;;  %v19667_v2 = vpack.c.bf16 %v19284_v39, %v19284_v39 }
 0x6f9   : > { %11875 = vmatpush1.bf16.msra.mxu0 %v16791_v57  ;;  %v16848_v57 = vld [vmem:[%s18103_s5 + $0x2e8] ss:$16 sps:$4 sm:$0xff]  }
 0x6fa   : > { %11916 = vmatpush1.bf16.msra.mxu1 %v16794_v10  ;;  %11876 = vmatprep.subr.bf16.mxu0 %v16799_v63  ;;  %v19672_v10 = vpack.c.bf16 %v19286_v62, %v19286_v62  ;;  %v16853_v63 = vld [vmem:[%s18103_s5 + $0xcc] ss:$16 sps:$4 sm:$0xff]  }
 0x6fb   : > { %11917 = vmatprep.subr.bf16.mxu1 %v16802_v17 }
 0x6fd   : > { %11877 = vmatpush2.bf16.msra.mxu0 %v16797_v20  ;;  %v16856_v20 = vld [vmem:[%s18103_s5 + $0x2cc] ss:$16 sps:$4 sm:$0xff]  }
 0x6fe   : > { %11918 = vmatpush2.bf16.msra.mxu1 %v16800_v40  ;;  %11878 = vmatprep.subr.bf16.mxu0 %v16805_v30  ;;  %v16851_v30 = vld [vmem:[%s18103_s5 + $0xc8] ss:$16 sps:$4 sm:$0xff]  }
 0x6ff   : > { %11919 = vmatprep.subr.bf16.mxu1 %v16808_v1  ;;  %v16854_v1 = vld [vmem:[%s18103_s5 + $0x2c8] ss:$16 sps:$4 sm:$0xff]  }
 0x701   : > { %11879 = vmatpush2.bf16.msra.mxu0 %v16803_v29  ;;  %v16859_v29 = vld [vmem:[%s18103_s5 + $0xac] ss:$16 sps:$4 sm:$0xff]  }
 0x702   : > { %11920 = vmatpush2.bf16.msra.mxu1 %v16806_v44  ;;  %11880 = vmatprep.subr.bf16.mxu0 %v16811_v47 }
 0x703   : > { %11921 = vmatprep.subr.bf16.mxu1 %v16814_v9  ;;  %v16862_v9 = vld [vmem:[%s18103_s5 + $0x2ac] ss:$16 sps:$4 sm:$0xff]  }
 0x705   : > { %11881 = vmatpush2.bf16.msra.mxu0 %v16809_v7 }
 0x706   : > { %11922 = vmatpush2.bf16.msra.mxu1 %v16812_v49  ;;  %11882 = vmatprep.subr.bf16.mxu0 %v16817_v15  ;;  %v16857_v15 = vld [vmem:[%s18103_s5 + $0xa8] ss:$16 sps:$4 sm:$0xff]  }
 0x707   : > { %11923 = vmatprep.subr.bf16.mxu1 %v16820_v16 }
 0x709   : > { %11883 = vmatpush2.bf16.msra.mxu0 %v16815_v18 }
 0x70a   : > { %11924 = vmatpush2.bf16.msra.mxu1 %v16818_v19  ;;  %11884 = vmatprep.subr.bf16.mxu0 %v16823_v51  ;;  %v16868_v19 = vld [vmem:[%s18103_s5 + $0x28c] ss:$16 sps:$4 sm:$0xff]   ;;  %v16863_v51 = vld [vmem:[%s18103_s5 + $0x88] ss:$16 sps:$4 sm:$0xff]  }
 0x70b   : > { %11925 = vmatprep.subr.bf16.mxu1 %v16826_v48  ;;  %v16866_v48 = vld [vmem:[%s18103_s5 + $0x288] ss:$16 sps:$4 sm:$0xff]  }
 0x70d   : > { %11885 = vmatpush2.bf16.msra.mxu0 %v16821_v27  ;;  %v16871_v27 = vld [vmem:[%s18103_s5 + $0x6c] ss:$16 sps:$4 sm:$0xff]  }
 0x70e   : > { %11926 = vmatpush2.bf16.msra.mxu1 %v16824_v38  ;;  %11886 = vmatprep.subr.bf16.mxu0 %v16829_v54  ;;  %v16874_v38 = vld [vmem:[%s18103_s5 + $0x26c] ss:$16 sps:$4 sm:$0xff]   ;;  %v16869_v54 = vld [vmem:[%s18103_s5 + $0x68] ss:$16 sps:$4 sm:$0xff]  }
 0x70f   : > { %11927 = vmatprep.subr.bf16.mxu1 %v16832_v53  ;;  %v16872_v53 = vld [vmem:[%s18103_s5 + $0x268] ss:$16 sps:$4 sm:$0xff]  }
 0x711   : > { %11887 = vmatpush2.bf16.msra.mxu0 %v16827_v21  ;;  %v16877_v21 = vld [vmem:[%s18103_s5 + $0x4c] ss:$16 sps:$4 sm:$0xff]  }
 0x712   : > { %11928 = vmatpush2.bf16.msra.mxu1 %v16830_v25  ;;  %11888 = vmatprep.subr.bf16.mxu0 %v16835_v22  ;;  %v16880_v25 = vld [vmem:[%s18103_s5 + $0x24c] ss:$16 sps:$4 sm:$0xff]   ;;  %v16875_v22 = vld [vmem:[%s18103_s5 + $0x48] ss:$16 sps:$4 sm:$0xff]  }
 0x713   : > { %11929 = vmatprep.subr.bf16.mxu1 %v16838_v35  ;;  %v16878_v35 = vld [vmem:[%s18103_s5 + $0x248] ss:$16 sps:$4 sm:$0xff]  }
 0x715   : > { %11889 = vmatpush2.bf16.msra.mxu0 %v16833_v36  ;;  %v16883_v36 = vld [vmem:[%s18103_s5 + $0x2c] ss:$16 sps:$4 sm:$0xff]  }
 0x716   : > { %11930 = vmatpush2.bf16.msra.mxu1 %v16836_v37  ;;  %11890 = vmatprep.subr.bf16.mxu0 %v16841_v3  ;;  %v16886_v37 = vld [vmem:[%s18103_s5 + $0x22c] ss:$16 sps:$4 sm:$0xff]   ;;  %v16881_v3 = vld [vmem:[%s18103_s5 + $0x28] ss:$16 sps:$4 sm:$0xff]  }
 0x717   : > { %11931 = vmatprep.subr.bf16.mxu1 %v16844_v4  ;;  %v16884_v4 = vld [vmem:[%s18103_s5 + $0x228] ss:$16 sps:$4 sm:$0xff]  }
 0x719   : > { %11891 = vmatpush2.bf16.msra.mxu0 %v16839_v33  ;;  %v16889_v33 = vld [vmem:[%s18103_s5 + $0xc] ss:$16 sps:$4 sm:$0xff]  }
 0x71a   : > { %11932 = vmatpush2.bf16.msra.mxu1 %v16842_v42  ;;  %11942 = vmatprep.subr.bf16.mxu0 %v16847_v55  ;;  %v16892_v42 = vld [vmem:[%s18103_s5 + $0x20c] ss:$16 sps:$4 sm:$0xff]   ;;  %v16887_v55 = vld [vmem:[%s18103_s5 + $0x8] ss:$16 sps:$4 sm:$0xff]  }
 0x71b   : > { %11983 = vmatprep.subr.bf16.mxu1 %v16850_v60  ;;  %v16890_v60 = vld [vmem:[%s18103_s5 + $0x208] ss:$16 sps:$4 sm:$0xff]  }
 0x71c   : > { %v11648_v17 = vpop.f32.mrf.mxu0  ;;  %11893 = vmatmul.mubr.bf16.vlgmr.msra.gmra.mxu0 %v19667_v2 }
 0x71d   : > { %v11649_v40 = vadd.f32 %v11648_v17, %v19601_v31  ;;  %v11689_v39 = vpop.f32.mrf.mxu1  ;;  %11934 = vmatmul.mubr.bf16.vlgmr.msra.gmra.mxu1 %v19672_v10  ;;  %11943 = vmatpush1.bf16.msra.mxu0 %v16845_v32  ;;  %v16895_v32 = vld [vmem:[%s18103_s5 + $0x1ec] ss:$16 sps:$4 sm:$0xff]   ;;  %v16896_v17 = vld [vmem:[%s18103_s5 + $0x3e8] ss:$16 sps:$4 sm:$0xff]  }
 0x71e   : > { %11974 = vmatprep.mubr.bf16.mxu0 %v19204_v45  ;;  %11984 = vmatpush1.bf16.msra.mxu1 %v16848_v57  ;;  %v11650_v62 = vpop.f32.mrf.mxu0  ;;  %v16898_v57 = vld [vmem:[%s18103_s5 + $0x3ec] ss:$16 sps:$4 sm:$0xff]  }
 0x71f   : > { %v19683_v44 = vadd.f32 %v11689_v39, %v11649_v40  ;;  %12015 = vmatprep.mubr.bf16.mxu1 %v19206_v11  ;;  %v11651_v31 = vadd.f32 %v11650_v62, %v19606_v14  ;;  %v11691_v47 = vpop.f32.mrf.mxu1  ;;  %11944 = vmatprep.subr.bf16.mxu0 %v16853_v63  ;;  %v16860_v11 = vld [vmem:[%s18103_s5 + $0x2a8] ss:$16 sps:$4 sm:$0xff]   ;;  %v16865_v14 = vld [vmem:[%s18103_s5 + $0x8c] ss:$16 sps:$4 sm:$0xff]  }
 0x720   : > { %v11652_v7 = vpop.f32.mrf.mxu0  ;;  %11985 = vmatprep.subr.bf16.mxu1 %v16856_v20  ;;  %v16893_v63 = vld [vmem:[%s18103_s5 + $0x1e8] ss:$16 sps:$4 sm:$0xff]   ;;  %v16901_v20 = vld [vmem:[%s18103_s5 + $0x1cc] ss:$16 sps:$4 sm:$0xff]  }
 0x721   : > { %v19688_v45 = vadd.f32 %v11691_v47, %v11651_v31  ;;  %v11693_v49 = vpop.f32.mrf.mxu1  ;;  %11945 = vmatpush1.bf16.msra.mxu0 %v16851_v30  ;;  %v16904_v40 = vld [vmem:[%s18103_s5 + $0x3cc] ss:$16 sps:$4 sm:$0xff]   ;;  %v16899_v39 = vld [vmem:[%s18103_s5 + $0x1c8] ss:$16 sps:$4 sm:$0xff]  }
 0x722   : > { %11986 = vmatpush1.bf16.msra.mxu1 %v16854_v1  ;;  %v11653_v16 = vpop.f32.mrf.mxu0  ;;  %11946 = vmatprep.subr.bf16.mxu0 %v16859_v29  ;;  %v16902_v30 = vld [vmem:[%s18103_s5 + $0x3c8] ss:$16 sps:$4 sm:$0xff]   ;;  %v16907_v62 = vld [vmem:[%s18103_s5 + $0x1ac] ss:$16 sps:$4 sm:$0xff]  }
 0x723   : > { %v11694_v18 = vpop.f32.mrf.mxu1  ;;  %11987 = vmatprep.subr.bf16.mxu1 %v16862_v9  ;;  %v16910_v1 = vld [vmem:[%s18103_s5 + $0x3ac] ss:$16 sps:$4 sm:$0xff]   ;;  %v16905_v29 = vld [vmem:[%s18103_s5 + $0x1a8] ss:$16 sps:$4 sm:$0xff]  }
 0x724   : > { %v16908_v31 = vld [vmem:[%s18103_s5 + $0x3a8] ss:$16 sps:$4 sm:$0xff]   ;;  %v16913_v47 = vld [vmem:[%s18103_s5 + $0x18c] ss:$16 sps:$4 sm:$0xff]  }
 0x725   : > { %11947 = vmatpush1.bf16.msra.mxu0 %v16857_v15  ;;  %v16916_v9 = vld [vmem:[%s18103_s5 + $0x38c] ss:$16 sps:$4 sm:$0xff]   ;;  %v16911_v7 = vld [vmem:[%s18103_s5 + $0x188] ss:$16 sps:$4 sm:$0xff]  }
 0x726   : > { %11988 = vmatpush1.bf16.msra.mxu1 %v16860_v11  ;;  %11948 = vmatprep.subr.bf16.mxu0 %v16865_v14  ;;  %v16914_v49 = vld [vmem:[%s18103_s5 + $0x388] ss:$16 sps:$4 sm:$0xff]   ;;  %v16919_v15 = vld [vmem:[%s18103_s5 + $0x16c] ss:$16 sps:$4 sm:$0xff]  }
 0x727   : > { %11989 = vmatprep.subr.bf16.mxu1 %v16868_v19  ;;  %v16922_v16 = vld [vmem:[%s18103_s5 + $0x36c] ss:$16 sps:$4 sm:$0xff]   ;;  %v16917_v11 = vld [vmem:[%s18103_s5 + $0x168] ss:$16 sps:$4 sm:$0xff]  }
 0x728   : > { %v16920_v14 = vld [vmem:[%s18103_s5 + $0x368] ss:$16 sps:$4 sm:$0xff]   ;;  %v16925_v18 = vld [vmem:[%s18103_s5 + $0x14c] ss:$16 sps:$4 sm:$0xff]  }
 0x729   : > { %11949 = vmatpush1.bf16.msra.mxu0 %v16863_v51  ;;  %v16928_v19 = vld [vmem:[%s18103_s5 + $0x34c] ss:$16 sps:$4 sm:$0xff]   ;;  %v16923_v51 = vld [vmem:[%s18103_s5 + $0x148] ss:$16 sps:$4 sm:$0xff]  }
 0x72a   : > { %11990 = vmatpush1.bf16.msra.mxu1 %v16866_v48  ;;  %11950 = vmatprep.subr.bf16.mxu0 %v16871_v27  ;;  %v16926_v48 = vld [vmem:[%s18103_s5 + $0x348] ss:$16 sps:$4 sm:$0xff]   ;;  %v16931_v27 = vld [vmem:[%s18103_s5 + $0x12c] ss:$16 sps:$4 sm:$0xff]  }
 0x72b   : > { %11991 = vmatprep.subr.bf16.mxu1 %v16874_v38  ;;  %v16934_v38 = vld [vmem:[%s18103_s5 + $0x32c] ss:$16 sps:$4 sm:$0xff]  }
 0x72d   : > { %11951 = vmatpush1.bf16.msra.mxu0 %v16869_v54  ;;  %v16929_v54 = vld [vmem:[%s18103_s5 + $0x128] ss:$16 sps:$4 sm:$0xff]  }
 0x72e   : > { %11992 = vmatpush1.bf16.msra.mxu1 %v16872_v53  ;;  %11952 = vmatprep.subr.bf16.mxu0 %v16877_v21  ;;  %v16932_v53 = vld [vmem:[%s18103_s5 + $0x328] ss:$16 sps:$4 sm:$0xff]   ;;  %v16937_v21 = vld [vmem:[%s18103_s5 + $0x10c] ss:$16 sps:$4 sm:$0xff]  }
 0x72f   : > { %11993 = vmatprep.subr.bf16.mxu1 %v16880_v25  ;;  %v16940_v25 = vld [vmem:[%s18103_s5 + $0x30c] ss:$16 sps:$4 sm:$0xff]  }
 0x731   : > { %11953 = vmatpush1.bf16.msra.mxu0 %v16875_v22  ;;  %v16935_v22 = vld [vmem:[%s18103_s5 + $0x108] ss:$16 sps:$4 sm:$0xff]  }
 0x732   : > { %11994 = vmatpush1.bf16.msra.mxu1 %v16878_v35  ;;  %11954 = vmatprep.subr.bf16.mxu0 %v16883_v36  ;;  %v16938_v35 = vld [vmem:[%s18103_s5 + $0x308] ss:$16 sps:$4 sm:$0xff]   ;;  %v16943_v36 = vld [vmem:[%s18103_s5 + $0x4ec] ss:$16 sps:$4 sm:$0xff]  }
 0x733   : > { %11995 = vmatprep.subr.bf16.mxu1 %v16886_v37  ;;  %v16946_v37 = vld [vmem:[%s18103_s5 + $0x6ec] ss:$16 sps:$4 sm:$0xff]  }
 0x735   : > { %11955 = vmatpush1.bf16.msra.mxu0 %v16881_v3  ;;  %v16941_v3 = vld [vmem:[%s18103_s5 + $0x4e8] ss:$16 sps:$4 sm:$0xff]  }
 0x736   : > { %11996 = vmatpush1.bf16.msra.mxu1 %v16884_v4  ;;  %11956 = vmatprep.subr.bf16.mxu0 %v16889_v33  ;;  %v16944_v4 = vld [vmem:[%s18103_s5 + $0x6e8] ss:$16 sps:$4 sm:$0xff]   ;;  %v16949_v33 = vld [vmem:[%s18103_s5 + $0x4cc] ss:$16 sps:$4 sm:$0xff]  }
 0x737   : > { %11997 = vmatprep.subr.bf16.mxu1 %v16892_v42 }
 0x739   : > { %11957 = vmatpush1.bf16.msra.mxu0 %v16887_v55  ;;  %v16952_v55 = vld [vmem:[%s18103_s5 + $0x6cc] ss:$16 sps:$4 sm:$0xff]  }
 0x73a   : > { %11998 = vmatpush1.bf16.msra.mxu1 %v16890_v60  ;;  %11958 = vmatprep.subr.bf16.mxu0 %v16895_v32 }
 0x73b   : > { %11999 = vmatprep.subr.bf16.mxu1 %v16898_v57  ;;  %v16947_v57 = vld [vmem:[%s18103_s5 + $0x4c8] ss:$16 sps:$4 sm:$0xff]  }
 0x73d   : > { %11959 = vmatpush2.bf16.msra.mxu0 %v16893_v63 }
 0x73e   : > { %12000 = vmatpush2.bf16.msra.mxu1 %v16896_v17  ;;  %11960 = vmatprep.subr.bf16.mxu0 %v16901_v20  ;;  %v16950_v17 = vld [vmem:[%s18103_s5 + $0x6c8] ss:$16 sps:$4 sm:$0xff]   ;;  %v16955_v20 = vld [vmem:[%s18103_s5 + $0x4ac] ss:$16 sps:$4 sm:$0xff]  }
 0x73f   : > { %12001 = vmatprep.subr.bf16.mxu1 %v16904_v40 }
 0x741   : > { %11961 = vmatpush2.bf16.msra.mxu0 %v16899_v39 }
 0x742   : > { %12002 = vmatpush2.bf16.msra.mxu1 %v16902_v30  ;;  %11962 = vmatprep.subr.bf16.mxu0 %v16907_v62  ;;  %v16953_v62 = vld [vmem:[%s18103_s5 + $0x4a8] ss:$16 sps:$4 sm:$0xff]  }
 0x743   : > { %12003 = vmatprep.subr.bf16.mxu1 %v16910_v1 }
 0x745   : > { %11963 = vmatpush2.bf16.msra.mxu0 %v16905_v29 }
 0x746   : > { %12004 = vmatpush2.bf16.msra.mxu1 %v16908_v31  ;;  %11964 = vmatprep.subr.bf16.mxu0 %v16913_v47  ;;  %v16964_v31 = vld [vmem:[%s18103_s5 + $0x68c] ss:$16 sps:$4 sm:$0xff]   ;;  %v16959_v47 = vld [vmem:[%s18103_s5 + $0x488] ss:$16 sps:$4 sm:$0xff]  }
 0x747   : > { %12005 = vmatprep.subr.bf16.mxu1 %v16916_v9  ;;  %v16962_v9 = vld [vmem:[%s18103_s5 + $0x688] ss:$16 sps:$4 sm:$0xff]  }
 0x749   : > { %11965 = vmatpush2.bf16.msra.mxu0 %v16911_v7  ;;  %v16967_v7 = vld [vmem:[%s18103_s5 + $0x46c] ss:$16 sps:$4 sm:$0xff]  }
 0x74a   : > { %12006 = vmatpush2.bf16.msra.mxu1 %v16914_v49  ;;  %11966 = vmatprep.subr.bf16.mxu0 %v16919_v15  ;;  %v16970_v49 = vld [vmem:[%s18103_s5 + $0x66c] ss:$16 sps:$4 sm:$0xff]   ;;  %v16965_v15 = vld [vmem:[%s18103_s5 + $0x468] ss:$16 sps:$4 sm:$0xff]  }
 0x74b   : > { %12007 = vmatprep.subr.bf16.mxu1 %v16922_v16  ;;  %v16968_v16 = vld [vmem:[%s18103_s5 + $0x668] ss:$16 sps:$4 sm:$0xff]  }
 0x74d   : > { %11967 = vmatpush2.bf16.msra.mxu0 %v16917_v11  ;;  %v16973_v11 = vld [vmem:[%s18103_s5 + $0x44c] ss:$16 sps:$4 sm:$0xff]  }
 0x74e   : > { %12008 = vmatpush2.bf16.msra.mxu1 %v16920_v14  ;;  %11968 = vmatprep.subr.bf16.mxu0 %v16925_v18  ;;  %v16976_v14 = vld [vmem:[%s18103_s5 + $0x64c] ss:$16 sps:$4 sm:$0xff]   ;;  %v16971_v18 = vld [vmem:[%s18103_s5 + $0x448] ss:$16 sps:$4 sm:$0xff]  }
 0x74f   : > { %12009 = vmatprep.subr.bf16.mxu1 %v16928_v19  ;;  %v16974_v19 = vld [vmem:[%s18103_s5 + $0x648] ss:$16 sps:$4 sm:$0xff]  }
 0x751   : > { %11969 = vmatpush2.bf16.msra.mxu0 %v16923_v51  ;;  %v16979_v51 = vld [vmem:[%s18103_s5 + $0x42c] ss:$16 sps:$4 sm:$0xff]  }
 0x752   : > { %12010 = vmatpush2.bf16.msra.mxu1 %v16926_v48  ;;  %11970 = vmatprep.subr.bf16.mxu0 %v16931_v27  ;;  %v16982_v48 = vld [vmem:[%s18103_s5 + $0x62c] ss:$16 sps:$4 sm:$0xff]   ;;  %v16977_v27 = vld [vmem:[%s18103_s5 + $0x428] ss:$16 sps:$4 sm:$0xff]  }
 0x753   : > { %12011 = vmatprep.subr.bf16.mxu1 %v16934_v38  ;;  %v16980_v38 = vld [vmem:[%s18103_s5 + $0x628] ss:$16 sps:$4 sm:$0xff]  }
 0x755   : > { %11971 = vmatpush2.bf16.msra.mxu0 %v16929_v54  ;;  %v16985_v54 = vld [vmem:[%s18103_s5 + $0x40c] ss:$16 sps:$4 sm:$0xff]  }
 0x756   : > { %12012 = vmatpush2.bf16.msra.mxu1 %v16932_v53  ;;  %11972 = vmatprep.subr.bf16.mxu0 %v16937_v21  ;;  %v16988_v53 = vld [vmem:[%s18103_s5 + $0x60c] ss:$16 sps:$4 sm:$0xff]   ;;  %v16983_v21 = vld [vmem:[%s18103_s5 + $0x408] ss:$16 sps:$4 sm:$0xff]  }
 0x757   : > { %12013 = vmatprep.subr.bf16.mxu1 %v16940_v25  ;;  %v16986_v25 = vld [vmem:[%s18103_s5 + $0x608] ss:$16 sps:$4 sm:$0xff]  }
 0x759   : > { %11973 = vmatpush2.bf16.msra.mxu0 %v16935_v22  ;;  %v16991_v22 = vld [vmem:[%s18103_s5 + $0x5ec] ss:$16 sps:$4 sm:$0xff]  }
 0x75a   : > { %12014 = vmatpush2.bf16.msra.mxu1 %v16938_v35  ;;  %12024 = vmatprep.subr.bf16.mxu0 %v16943_v36  ;;  %v16994_v35 = vld [vmem:[%s18103_s5 + $0x7ec] ss:$16 sps:$4 sm:$0xff]   ;;  %v16989_v36 = vld [vmem:[%s18103_s5 + $0x5e8] ss:$16 sps:$4 sm:$0xff]  }
 0x75b   : > { %12065 = vmatprep.subr.bf16.mxu1 %v16946_v37  ;;  %v16992_v37 = vld [vmem:[%s18103_s5 + $0x7e8] ss:$16 sps:$4 sm:$0xff]  }
 0x75c   : > { %v11730_v42 = vpop.f32.mrf.mxu0  ;;  %11975 = vmatmul.mubr.bf16.vlgmr.msra.gmra.mxu0 %v19208_v12 }
 0x75d   : > { %v11731_v60 = vadd.f32 %v11730_v42, %v19683_v44  ;;  %v11771_v32 = vpop.f32.mrf.mxu1  ;;  %12016 = vmatmul.mubr.bf16.vlgmr.msra.gmra.mxu1 %v19210_v46  ;;  %12025 = vmatpush1.bf16.msra.mxu0 %v16941_v3  ;;  %v16958_v46 = vld [vmem:[%s18103_s5 + $0x6ac] ss:$16 sps:$4 sm:$0xff]   ;;  %v16998_v42 = vld [vmem:[%s18103_s5 + $0x7c8] ss:$16 sps:$4 sm:$0xff]  }
 0x75e   : > { %12056 = vmatprep.mubr.bf16.mxu0 %v19224_v8  ;;  %12066 = vmatpush1.bf16.msra.mxu1 %v16944_v4  ;;  %v11732_v63 = vpop.f32.mrf.mxu0  ;;  %v16997_v3 = vld [vmem:[%s18103_s5 + $0x5cc] ss:$16 sps:$4 sm:$0xff]  }
 0x75f   : > { %v19757_v40 = vadd.f32 %v11771_v32, %v11731_v60  ;;  %12097 = vmatprep.mubr.bf16.mxu1 %v19226_v6  ;;  %v11733_v12 = vadd.f32 %v11732_v63, %v19688_v45  ;;  %v11773_v44 = vpop.f32.mrf.mxu1  ;;  %12026 = vmatprep.subr.bf16.mxu0 %v16949_v33  ;;  %v16956_v6 = vld [vmem:[%s18103_s5 + $0x6a8] ss:$16 sps:$4 sm:$0xff]   ;;  %v16961_v45 = vld [vmem:[%s18103_s5 + $0x48c] ss:$16 sps:$4 sm:$0xff]  }
 0x760   : > { %v11734_v39 = vpop.f32.mrf.mxu0  ;;  %12067 = vmatprep.subr.bf16.mxu1 %v16952_v55  ;;  %v17000_v4 = vld [vmem:[%s18103_s5 + $0x7cc] ss:$16 sps:$4 sm:$0xff]   ;;  %v16995_v33 = vld [vmem:[%s18103_s5 + $0x5c8] ss:$16 sps:$4 sm:$0xff]  }
 0x761   : > { %v19762_v8 = vadd.f32 %v11773_v44, %v11733_v12  ;;  %v11775_v30 = vpop.f32.mrf.mxu1  ;;  %12027 = vmatpush1.bf16.msra.mxu0 %v16947_v57  ;;  %v17003_v55 = vld [vmem:[%s18103_s5 + $0x5ac] ss:$16 sps:$4 sm:$0xff]   ;;  %v17001_v32 = vld [vmem:[%s18103_s5 + $0x5a8] ss:$16 sps:$4 sm:$0xff]  }
 0x762   : > { %12068 = vmatpush1.bf16.msra.mxu1 %v16950_v17  ;;  %v11735_v1 = vpop.f32.mrf.mxu0  ;;  %12028 = vmatprep.subr.bf16.mxu0 %v16955_v20  ;;  %v17006_v60 = vld [vmem:[%s18103_s5 + $0x7ac] ss:$16 sps:$4 sm:$0xff]   ;;  %v17004_v57 = vld [vmem:[%s18103_s5 + $0x7a8] ss:$16 sps:$4 sm:$0xff]  }
 0x763   : > { %v11776_v29 = vpop.f32.mrf.mxu1  ;;  %12069 = vmatprep.subr.bf16.mxu1 %v16958_v46  ;;  %v17009_v63 = vld [vmem:[%s18103_s5 + $0x58c] ss:$16 sps:$4 sm:$0xff]   ;;  %v17007_v20 = vld [vmem:[%s18103_s5 + $0x588] ss:$16 sps:$4 sm:$0xff]  }
 0x764   : > { %v17012_v17 = vld [vmem:[%s18103_s5 + $0x78c] ss:$16 sps:$4 sm:$0xff]   ;;  %v17010_v12 = vld [vmem:[%s18103_s5 + $0x788] ss:$16 sps:$4 sm:$0xff]  }
 0x765   : > { %12029 = vmatpush1.bf16.msra.mxu0 %v16953_v62  ;;  %v17015_v44 = vld [vmem:[%s18103_s5 + $0x56c] ss:$16 sps:$4 sm:$0xff]   ;;  %v17013_v39 = vld [vmem:[%s18103_s5 + $0x568] ss:$16 sps:$4 sm:$0xff]  }
 0x766   : > { %12070 = vmatpush1.bf16.msra.mxu1 %v16956_v6  ;;  %12030 = vmatprep.subr.bf16.mxu0 %v16961_v45  ;;  %v17018_v46 = vld [vmem:[%s18103_s5 + $0x76c] ss:$16 sps:$4 sm:$0xff]   ;;  %v17016_v30 = vld [vmem:[%s18103_s5 + $0x768] ss:$16 sps:$4 sm:$0xff]  }
 0x767   : > { %12071 = vmatprep.subr.bf16.mxu1 %v16964_v31  ;;  %v17021_v62 = vld [vmem:[%s18103_s5 + $0x54c] ss:$16 sps:$4 sm:$0xff]   ;;  %v17019_v6 = vld [vmem:[%s18103_s5 + $0x548] ss:$16 sps:$4 sm:$0xff]  }
 0x768   : > { %v17024_v1 = vld [vmem:[%s18103_s5 + $0x74c] ss:$16 sps:$4 sm:$0xff]   ;;  %v17022_v45 = vld [vmem:[%s18103_s5 + $0x748] ss:$16 sps:$4 sm:$0xff]  }
 0x769   : > { %12031 = vmatpush1.bf16.msra.mxu0 %v16959_v47  ;;  %v17027_v29 = vld [vmem:[%s18103_s5 + $0x52c] ss:$16 sps:$4 sm:$0xff]   ;;  %v17025_v47 = vld [vmem:[%s18103_s5 + $0x528] ss:$16 sps:$4 sm:$0xff]  }
 0x76a   : > { %12072 = vmatpush1.bf16.msra.mxu1 %v16962_v9  ;;  %12032 = vmatprep.subr.bf16.mxu0 %v16967_v7  ;;  %v17030_v31 = vld [vmem:[%s18103_s5 + $0x72c] ss:$16 sps:$4 sm:$0xff]   ;;  %v17028_v9 = vld [vmem:[%s18103_s5 + $0x728] ss:$16 sps:$4 sm:$0xff]  }
 0x76b   : > { %12073 = vmatprep.subr.bf16.mxu1 %v16970_v49  ;;  %v17033_v7 = vld [vmem:[%s18103_s5 + $0x50c] ss:$16 sps:$4 sm:$0xff]  }
 0x76c   : > { %v17036_v49 = vld [vmem:[%s18103_s5 + $0x70c] ss:$16 sps:$4 sm:$0xff]  }
 0x76d   : > { %12033 = vmatpush1.bf16.msra.mxu0 %v16965_v15  ;;  %v17031_v15 = vld [vmem:[%s18103_s5 + $0x508] ss:$16 sps:$4 sm:$0xff]  }
 0x76e   : > { %12074 = vmatpush1.bf16.msra.mxu1 %v16968_v16  ;;  %12034 = vmatprep.subr.bf16.mxu0 %v16973_v11  ;;  %v17034_v16 = vld [vmem:[%s18103_s5 + $0x708] ss:$16 sps:$4 sm:$0xff]   ;;  %v17039_v11 = vld [vmem:[%s18103_s5 + $0x8ec] ss:$16 sps:$4 sm:$0xff]  }
 0x76f   : > { %12075 = vmatprep.subr.bf16.mxu1 %v16976_v14  ;;  %v17042_v14 = vld [vmem:[%s18103_s5 + $0xaec] ss:$16 sps:$4 sm:$0xff]  }
 0x771   : > { %12035 = vmatpush1.bf16.msra.mxu0 %v16971_v18  ;;  %v17037_v18 = vld [vmem:[%s18103_s5 + $0x8e8] ss:$16 sps:$4 sm:$0xff]  }
 0x772   : > { %12076 = vmatpush1.bf16.msra.mxu1 %v16974_v19  ;;  %12036 = vmatprep.subr.bf16.mxu0 %v16979_v51  ;;  %v17040_v19 = vld [vmem:[%s18103_s5 + $0xae8] ss:$16 sps:$4 sm:$0xff]   ;;  %v17045_v51 = vld [vmem:[%s18103_s5 + $0x8cc] ss:$16 sps:$4 sm:$0xff]  }
 0x773   : > { %12077 = vmatprep.subr.bf16.mxu1 %v16982_v48 }
 0x775   : > { %12037 = vmatpush1.bf16.msra.mxu0 %v16977_v27  ;;  %v17048_v27 = vld [vmem:[%s18103_s5 + $0xacc] ss:$16 sps:$4 sm:$0xff]  }
 0x776   : > { %12078 = vmatpush1.bf16.msra.mxu1 %v16980_v38  ;;  %12038 = vmatprep.subr.bf16.mxu0 %v16985_v54  ;;  %v17043_v54 = vld [vmem:[%s18103_s5 + $0x8c8] ss:$16 sps:$4 sm:$0xff]  }
 0x777   : > { %12079 = vmatprep.subr.bf16.mxu1 %v16988_v53 }
 0x779   : > { %12039 = vmatpush1.bf16.msra.mxu0 %v16983_v21  ;;  %v17046_v21 = vld [vmem:[%s18103_s5 + $0xac8] ss:$16 sps:$4 sm:$0xff]  }
 0x77a   : > { %12080 = vmatpush1.bf16.msra.mxu1 %v16986_v25  ;;  %12040 = vmatprep.subr.bf16.mxu0 %v16991_v22  ;;  %v17051_v25 = vld [vmem:[%s18103_s5 + $0x8ac] ss:$16 sps:$4 sm:$0xff]  }
 0x77b   : > { %12081 = vmatprep.subr.bf16.mxu1 %v16994_v35 }
 0x77d   : > { %12041 = vmatpush2.bf16.msra.mxu0 %v16989_v36 }
 0x77e   : > { %12082 = vmatpush2.bf16.msra.mxu1 %v16992_v37  ;;  %12042 = vmatprep.subr.bf16.mxu0 %v16997_v3  ;;  %v17052_v37 = vld [vmem:[%s18103_s5 + $0xaa8] ss:$16 sps:$4 sm:$0xff]  }
 0x77f   : > { %12083 = vmatprep.subr.bf16.mxu1 %v17000_v4  ;;  %v17060_v4 = vld [vmem:[%s18103_s5 + $0xa8c] ss:$16 sps:$4 sm:$0xff]  }
 0x781   : > { %12043 = vmatpush2.bf16.msra.mxu0 %v16995_v33  ;;  %v17055_v33 = vld [vmem:[%s18103_s5 + $0x888] ss:$16 sps:$4 sm:$0xff]  }
 0x782   : > { %12084 = vmatpush2.bf16.msra.mxu1 %v16998_v42  ;;  %12044 = vmatprep.subr.bf16.mxu0 %v17003_v55  ;;  %v17058_v42 = vld [vmem:[%s18103_s5 + $0xa88] ss:$16 sps:$4 sm:$0xff]   ;;  %v17063_v55 = vld [vmem:[%s18103_s5 + $0x86c] ss:$16 sps:$4 sm:$0xff]  }
 0x783   : > { %12085 = vmatprep.subr.bf16.mxu1 %v17006_v60  ;;  %v17066_v60 = vld [vmem:[%s18103_s5 + $0xa6c] ss:$16 sps:$4 sm:$0xff]  }
 0x785   : > { %12045 = vmatpush2.bf16.msra.mxu0 %v17001_v32  ;;  %v17061_v32 = vld [vmem:[%s18103_s5 + $0x868] ss:$16 sps:$4 sm:$0xff]  }
 0x786   : > { %12086 = vmatpush2.bf16.msra.mxu1 %v17004_v57  ;;  %12046 = vmatprep.subr.bf16.mxu0 %v17009_v63  ;;  %v17064_v57 = vld [vmem:[%s18103_s5 + $0xa68] ss:$16 sps:$4 sm:$0xff]   ;;  %v17069_v63 = vld [vmem:[%s18103_s5 + $0x84c] ss:$16 sps:$4 sm:$0xff]  }
 0x787   : > { %12087 = vmatprep.subr.bf16.mxu1 %v17012_v17  ;;  %v17072_v17 = vld [vmem:[%s18103_s5 + $0xa4c] ss:$16 sps:$4 sm:$0xff]  }
 0x789   : > { %12047 = vmatpush2.bf16.msra.mxu0 %v17007_v20  ;;  %v17067_v20 = vld [vmem:[%s18103_s5 + $0x848] ss:$16 sps:$4 sm:$0xff]  }
 0x78a   : > { %12088 = vmatpush2.bf16.msra.mxu1 %v17010_v12  ;;  %12048 = vmatprep.subr.bf16.mxu0 %v17015_v44  ;;  %v17070_v12 = vld [vmem:[%s18103_s5 + $0xa48] ss:$16 sps:$4 sm:$0xff]   ;;  %v17075_v44 = vld [vmem:[%s18103_s5 + $0x82c] ss:$16 sps:$4 sm:$0xff]  }
 0x78b   : > { %12089 = vmatprep.subr.bf16.mxu1 %v17018_v46  ;;  %v17078_v46 = vld [vmem:[%s18103_s5 + $0xa2c] ss:$16 sps:$4 sm:$0xff]  }
 0x78d   : > { %12049 = vmatpush2.bf16.msra.mxu0 %v17013_v39  ;;  %v17073_v39 = vld [vmem:[%s18103_s5 + $0x828] ss:$16 sps:$4 sm:$0xff]  }
 0x78e   : > { %12090 = vmatpush2.bf16.msra.mxu1 %v17016_v30  ;;  %12050 = vmatprep.subr.bf16.mxu0 %v17021_v62  ;;  %v17076_v30 = vld [vmem:[%s18103_s5 + $0xa28] ss:$16 sps:$4 sm:$0xff]   ;;  %v17081_v62 = vld [vmem:[%s18103_s5 + $0x80c] ss:$16 sps:$4 sm:$0xff]  }
 0x78f   : > { %12091 = vmatprep.subr.bf16.mxu1 %v17024_v1  ;;  %v17084_v1 = vld [vmem:[%s18103_s5 + $0xa0c] ss:$16 sps:$4 sm:$0xff]  }
 0x791   : > { %12051 = vmatpush2.bf16.msra.mxu0 %v17019_v6  ;;  %v17079_v6 = vld [vmem:[%s18103_s5 + $0x808] ss:$16 sps:$4 sm:$0xff]  }
 0x792   : > { %12092 = vmatpush2.bf16.msra.mxu1 %v17022_v45  ;;  %12052 = vmatprep.subr.bf16.mxu0 %v17027_v29  ;;  %v17082_v45 = vld [vmem:[%s18103_s5 + $0xa08] ss:$16 sps:$4 sm:$0xff]   ;;  %v17087_v29 = vld [vmem:[%s18103_s5 + $0x9ec] ss:$16 sps:$4 sm:$0xff]  }
 0x793   : > { %12093 = vmatprep.subr.bf16.mxu1 %v17030_v31  ;;  %v17090_v31 = vld [vmem:[%s18103_s5 + $0xbec] ss:$16 sps:$4 sm:$0xff]  }
 0x795   : > { %12053 = vmatpush2.bf16.msra.mxu0 %v17025_v47  ;;  %v17085_v47 = vld [vmem:[%s18103_s5 + $0x9e8] ss:$16 sps:$4 sm:$0xff]  }
 0x796   : > { %12094 = vmatpush2.bf16.msra.mxu1 %v17028_v9  ;;  %12054 = vmatprep.subr.bf16.mxu0 %v17033_v7  ;;  %v17088_v9 = vld [vmem:[%s18103_s5 + $0xbe8] ss:$16 sps:$4 sm:$0xff]   ;;  %v17093_v7 = vld [vmem:[%s18103_s5 + $0x9cc] ss:$16 sps:$4 sm:$0xff]  }
 0x797   : > { %12095 = vmatprep.subr.bf16.mxu1 %v17036_v49  ;;  %v17096_v49 = vld [vmem:[%s18103_s5 + $0xbcc] ss:$16 sps:$4 sm:$0xff]  }
 0x799   : > { %12055 = vmatpush2.bf16.msra.mxu0 %v17031_v15  ;;  %v17091_v15 = vld [vmem:[%s18103_s5 + $0x9c8] ss:$16 sps:$4 sm:$0xff]  }
 0x79a   : > { %12096 = vmatpush2.bf16.msra.mxu1 %v17034_v16  ;;  %12106 = vmatprep.subr.bf16.mxu0 %v17039_v11  ;;  %v17094_v16 = vld [vmem:[%s18103_s5 + $0xbc8] ss:$16 sps:$4 sm:$0xff]   ;;  %v17099_v11 = vld [vmem:[%s18103_s5 + $0x9ac] ss:$16 sps:$4 sm:$0xff]  }
 0x79b   : > { %12147 = vmatprep.subr.bf16.mxu1 %v17042_v14  ;;  %v17102_v14 = vld [vmem:[%s18103_s5 + $0xbac] ss:$16 sps:$4 sm:$0xff]  }
 0x79c   : > { %v19823_v48 = vpop.f32.mrf.mxu0  ;;  %12057 = vmatmul.mubr.bf16.vlgmr.msra.gmra.mxu0 %v19321_v56 }
 0x79d   : > { %v19827_v38 = vpop.f32.mrf.mxu1  ;;  %12098 = vmatmul.mubr.bf16.vlgmr.msra.gmra.mxu1 %v19325_v59  ;;  %12107 = vmatpush1.bf16.msra.mxu0 %v17037_v18  ;;  %v17054_v59 = vld [vmem:[%s18103_s5 + $0xaac] ss:$16 sps:$4 sm:$0xff]   ;;  %v17097_v18 = vld [vmem:[%s18103_s5 + $0x9a8] ss:$16 sps:$4 sm:$0xff]  }
 0x79e   : > { %12138 = vmatprep.mubr.bf16.mxu0 %v19330_v58  ;;  %12148 = vmatpush1.bf16.msra.mxu1 %v17040_v19  ;;  %v19832_v53 = vpop.f32.mrf.mxu0  ;;  %v17049_v58 = vld [vmem:[%s18103_s5 + $0x8a8] ss:$16 sps:$4 sm:$0xff]  }
 0x79f   : > { %12179 = vmatprep.mubr.bf16.mxu1 %v19336_v61  ;;  %v19837_v56 = vpop.f32.mrf.mxu1  ;;  %12108 = vmatprep.subr.bf16.mxu0 %v17045_v51  ;;  %v17057_v61 = vld [vmem:[%s18103_s5 + $0x88c] ss:$16 sps:$4 sm:$0xff]   ;;  %v17100_v19 = vld [vmem:[%s18103_s5 + $0xba8] ss:$16 sps:$4 sm:$0xff]  }
 0x7a0   : > { %v11816_v22 = vpop.f32.mrf.mxu0  ;;  %12149 = vmatprep.subr.bf16.mxu1 %v17048_v27  ;;  %v17105_v51 = vld [vmem:[%s18103_s5 + $0x98c] ss:$16 sps:$4 sm:$0xff]  }
 0x7a1   : > { %v11857_v35 = vpop.f32.mrf.mxu1  ;;  %12109 = vmatpush1.bf16.msra.mxu0 %v17043_v54  ;;  %v17108_v27 = vld [vmem:[%s18103_s5 + $0xb8c] ss:$16 sps:$4 sm:$0xff]   ;;  %v17103_v54 = vld [vmem:[%s18103_s5 + $0x988] ss:$16 sps:$4 sm:$0xff]  }
 0x7a2   : > { %12150 = vmatpush1.bf16.msra.mxu1 %v17046_v21  ;;  %v11817_v36 = vpop.f32.mrf.mxu0  ;;  %12110 = vmatprep.subr.bf16.mxu0 %v17051_v25  ;;  %v17106_v21 = vld [vmem:[%s18103_s5 + $0xb88] ss:$16 sps:$4 sm:$0xff]   ;;  %v17111_v25 = vld [vmem:[%s18103_s5 + $0x96c] ss:$16 sps:$4 sm:$0xff]  }
 0x7a3   : > { %v11858_v3 = vpop.f32.mrf.mxu1  ;;  %12151 = vmatprep.subr.bf16.mxu1 %v17054_v59  ;;  %v17114_v59 = vld [vmem:[%s18103_s5 + $0xb6c] ss:$16 sps:$4 sm:$0xff]   ;;  %v17109_v22 = vld [vmem:[%s18103_s5 + $0x968] ss:$16 sps:$4 sm:$0xff]  }
 0x7a4   : > { %v17112_v35 = vld [vmem:[%s18103_s5 + $0xb68] ss:$16 sps:$4 sm:$0xff]   ;;  %v17120_v36 = vld [vmem:[%s18103_s5 + $0xb4c] ss:$16 sps:$4 sm:$0xff]  }
 0x7a5   : > { %12111 = vmatpush1.bf16.msra.mxu0 %v17049_v58  ;;  %v17117_v58 = vld [vmem:[%s18103_s5 + $0x94c] ss:$16 sps:$4 sm:$0xff]  }
 0x7a6   : > { %12152 = vmatpush1.bf16.msra.mxu1 %v17052_v37  ;;  %12112 = vmatprep.subr.bf16.mxu0 %v17057_v61  ;;  %v17115_v37 = vld [vmem:[%s18103_s5 + $0x948] ss:$16 sps:$4 sm:$0xff]   ;;  %v17123_v3 = vld [vmem:[%s18103_s5 + $0x92c] ss:$16 sps:$4 sm:$0xff]  }
 0x7a7   : > { %12153 = vmatprep.subr.bf16.mxu1 %v17060_v4  ;;  %v17118_v61 = vld [vmem:[%s18103_s5 + $0xb48] ss:$16 sps:$4 sm:$0xff]   ;;  %v17126_v4 = vld [vmem:[%s18103_s5 + $0xb2c] ss:$16 sps:$4 sm:$0xff]  }
 0x7a9   : > { %12113 = vmatpush1.bf16.msra.mxu0 %v17055_v33  ;;  %v17121_v33 = vld [vmem:[%s18103_s5 + $0x928] ss:$16 sps:$4 sm:$0xff]  }
 0x7aa   : > { %12154 = vmatpush1.bf16.msra.mxu1 %v17058_v42  ;;  %12114 = vmatprep.subr.bf16.mxu0 %v17063_v55  ;;  %v17124_v42 = vld [vmem:[%s18103_s5 + $0xb28] ss:$16 sps:$4 sm:$0xff]   ;;  %v17129_v55 = vld [vmem:[%s18103_s5 + $0x90c] ss:$16 sps:$4 sm:$0xff]  }
 0x7ab   : > { %12155 = vmatprep.subr.bf16.mxu1 %v17066_v60  ;;  %v17132_v60 = vld [vmem:[%s18103_s5 + $0xb0c] ss:$16 sps:$4 sm:$0xff]  }
 0x7ad   : > { %12115 = vmatpush1.bf16.msra.mxu0 %v17061_v32  ;;  %v17127_v32 = vld [vmem:[%s18103_s5 + $0x908] ss:$16 sps:$4 sm:$0xff]  }
 0x7ae   : > { %12156 = vmatpush1.bf16.msra.mxu1 %v17064_v57  ;;  %12116 = vmatprep.subr.bf16.mxu0 %v17069_v63  ;;  %v17130_v57 = vld [vmem:[%s18103_s5 + $0xb08] ss:$16 sps:$4 sm:$0xff]   ;;  %v17135_v63 = vld [vmem:[%s18103_s5 + $0xcec] ss:$16 sps:$4 sm:$0xff]  }
 0x7af   : > { %12157 = vmatprep.subr.bf16.mxu1 %v17072_v17  ;;  %v11813_v17 = vadd.f32 %v19823_v48, %v19757_v40  ;;  %v17144_v40 = vld [vmem:[%s18103_s5 + $0xecc] ss:$16 sps:$4 sm:$0xff]  }
 0x7b1   : > { %12117 = vmatpush1.bf16.msra.mxu0 %v17067_v20  ;;  %v17138_v20 = vld [vmem:[%s18103_s5 + $0xeec] ss:$16 sps:$4 sm:$0xff]  }
 0x7b2   : > { %12158 = vmatpush1.bf16.msra.mxu1 %v17070_v12  ;;  %12118 = vmatprep.subr.bf16.mxu0 %v17075_v44  ;;  %v11815_v12 = vadd.f32 %v19832_v53, %v19762_v8  ;;  %v17133_v44 = vld [vmem:[%s18103_s5 + $0xce8] ss:$16 sps:$4 sm:$0xff]  }
 0x7b3   : > { %12159 = vmatprep.subr.bf16.mxu1 %v17078_v46  ;;  %v17136_v46 = vld [vmem:[%s18103_s5 + $0xee8] ss:$16 sps:$4 sm:$0xff]  }
 0x7b4   : > { %v11856_v48 = vadd.f32 %v19837_v56, %v11815_v12  ;;  %v17139_v53 = vld [vmem:[%s18103_s5 + $0xcc8] ss:$16 sps:$4 sm:$0xff]   ;;  %v17192_v12 = vld [vmem:[%s18103_s5 + $0xfcc] ss:$16 sps:$4 sm:$0xff]  }
 0x7b5   : > { %12119 = vmatpush1.bf16.msra.mxu0 %v17073_v39  ;;  %v11854_v39 = vadd.f32 %v19827_v38, %v11813_v17  ;;  %v17184_v17 = vld [vmem:[%s18103_s5 + $0xfe8] ss:$16 sps:$4 sm:$0xff]  }
 0x7b6   : > { %12160 = vmatpush1.bf16.msra.mxu1 %v17076_v30  ;;  %12120 = vmatprep.subr.bf16.mxu0 %v17081_v62  ;;  %v17141_v30 = vld [vmem:[%s18103_s5 + $0xccc] ss:$16 sps:$4 sm:$0xff]  }
 0x7b7   : > { %12161 = vmatprep.subr.bf16.mxu1 %v17084_v1 }
 0x7b9   : > { %12121 = vmatpush1.bf16.msra.mxu0 %v17079_v6  ;;  %v6814_v6 = vld [vmem:[#allocation2 + $0x10] sm:$0xff] }
 0x7ba   : > { %12162 = vmatpush1.bf16.msra.mxu1 %v17082_v45  ;;  %12122 = vmatprep.subr.bf16.mxu0 %v17087_v29  ;;  %v17142_v45 = vld [vmem:[%s18103_s5 + $0xec8] ss:$16 sps:$4 sm:$0xff]   ;;  %v17147_v29 = vld [vmem:[%s18103_s5 + $0xcac] ss:$16 sps:$4 sm:$0xff]  }
 0x7bb   : > { %12163 = vmatprep.subr.bf16.mxu1 %v17090_v31 }
 0x7bd   : > { %12123 = vmatpush2.bf16.msra.mxu0 %v17085_v47  ;;  %v17150_v47 = vld [vmem:[%s18103_s5 + $0xeac] ss:$16 sps:$4 sm:$0xff]  }
 0x7be   : > { %12164 = vmatpush2.bf16.msra.mxu1 %v17088_v9  ;;  %12124 = vmatprep.subr.bf16.mxu0 %v17093_v7 }
 0x7bf   : > { %12165 = vmatprep.subr.bf16.mxu1 %v17096_v49 }
 0x7c1   : > { %12125 = vmatpush2.bf16.msra.mxu0 %v17091_v15  ;;  %v17145_v15 = vld [vmem:[%s18103_s5 + $0xca8] ss:$16 sps:$4 sm:$0xff]  }
 0x7c2   : > { %12166 = vmatpush2.bf16.msra.mxu1 %v17094_v16  ;;  %12126 = vmatprep.subr.bf16.mxu0 %v17099_v11  ;;  %v17148_v16 = vld [vmem:[%s18103_s5 + $0xea8] ss:$16 sps:$4 sm:$0xff]   ;;  %v17153_v11 = vld [vmem:[%s18103_s5 + $0xc8c] ss:$16 sps:$4 sm:$0xff]  }
 0x7c3   : > { %12167 = vmatprep.subr.bf16.mxu1 %v17102_v14 }
 0x7c5   : > { %12127 = vmatpush2.bf16.msra.mxu0 %v17097_v18 }
 0x7c6   : > { %12168 = vmatpush2.bf16.msra.mxu1 %v17100_v19  ;;  %12128 = vmatprep.subr.bf16.mxu0 %v17105_v51  ;;  %v17156_v19 = vld [vmem:[%s18103_s5 + $0xe8c] ss:$16 sps:$4 sm:$0xff]   ;;  %v17151_v51 = vld [vmem:[%s18103_s5 + $0xc88] ss:$16 sps:$4 sm:$0xff]  }
 0x7c7   : > { %12169 = vmatprep.subr.bf16.mxu1 %v17108_v27  ;;  %v17154_v27 = vld [vmem:[%s18103_s5 + $0xe88] ss:$16 sps:$4 sm:$0xff]  }
 0x7c9   : > { %12129 = vmatpush2.bf16.msra.mxu0 %v17103_v54  ;;  %v17159_v54 = vld [vmem:[%s18103_s5 + $0xc6c] ss:$16 sps:$4 sm:$0xff]  }
 0x7ca   : > { %12170 = vmatpush2.bf16.msra.mxu1 %v17106_v21  ;;  %12130 = vmatprep.subr.bf16.mxu0 %v17111_v25  ;;  %v17162_v21 = vld [vmem:[%s18103_s5 + $0xe6c] ss:$16 sps:$4 sm:$0xff]   ;;  %v17157_v25 = vld [vmem:[%s18103_s5 + $0xc68] ss:$16 sps:$4 sm:$0xff]  }
 0x7cb   : > { %12171 = vmatprep.subr.bf16.mxu1 %v17114_v59  ;;  %v17160_v59 = vld [vmem:[%s18103_s5 + $0xe68] ss:$16 sps:$4 sm:$0xff]  }
 0x7cd   : > { %12131 = vmatpush2.bf16.msra.mxu0 %v17109_v22  ;;  %v17165_v22 = vld [vmem:[%s18103_s5 + $0xc4c] ss:$16 sps:$4 sm:$0xff]  }
 0x7ce   : > { %12172 = vmatpush2.bf16.msra.mxu1 %v17112_v35  ;;  %12132 = vmatprep.subr.bf16.mxu0 %v17117_v58  ;;  %v17168_v35 = vld [vmem:[%s18103_s5 + $0xe4c] ss:$16 sps:$4 sm:$0xff]   ;;  %v17163_v58 = vld [vmem:[%s18103_s5 + $0xc48] ss:$16 sps:$4 sm:$0xff]  }
 0x7cf   : > { %12173 = vmatprep.subr.bf16.mxu1 %v17120_v36  ;;  %v17166_v36 = vld [vmem:[%s18103_s5 + $0xe48] ss:$16 sps:$4 sm:$0xff]  }
 0x7d1   : > { %12133 = vmatpush2.bf16.msra.mxu0 %v17115_v37  ;;  %v17171_v37 = vld [vmem:[%s18103_s5 + $0xc2c] ss:$16 sps:$4 sm:$0xff]  }
 0x7d2   : > { %12174 = vmatpush2.bf16.msra.mxu1 %v17118_v61  ;;  %12134 = vmatprep.subr.bf16.mxu0 %v17123_v3  ;;  %v17174_v61 = vld [vmem:[%s18103_s5 + $0xe2c] ss:$16 sps:$4 sm:$0xff]   ;;  %v17169_v3 = vld [vmem:[%s18103_s5 + $0xc28] ss:$16 sps:$4 sm:$0xff]  }
 0x7d3   : > { %12175 = vmatprep.subr.bf16.mxu1 %v17126_v4  ;;  %v17172_v4 = vld [vmem:[%s18103_s5 + $0xe28] ss:$16 sps:$4 sm:$0xff]  }
 0x7d5   : > { %12135 = vmatpush2.bf16.msra.mxu0 %v17121_v33  ;;  %v17177_v33 = vld [vmem:[%s18103_s5 + $0xc0c] ss:$16 sps:$4 sm:$0xff]  }
 0x7d6   : > { %12176 = vmatpush2.bf16.msra.mxu1 %v17124_v42  ;;  %12136 = vmatprep.subr.bf16.mxu0 %v17129_v55  ;;  %v17180_v42 = vld [vmem:[%s18103_s5 + $0xe0c] ss:$16 sps:$4 sm:$0xff]   ;;  %v17175_v55 = vld [vmem:[%s18103_s5 + $0xc08] ss:$16 sps:$4 sm:$0xff]  }
 0x7d7   : > { %12177 = vmatprep.subr.bf16.mxu1 %v17132_v60  ;;  %v17178_v60 = vld [vmem:[%s18103_s5 + $0xe08] ss:$16 sps:$4 sm:$0xff]  }
 0x7d9   : > { %12137 = vmatpush2.bf16.msra.mxu0 %v17127_v32  ;;  %v17183_v32 = vld [vmem:[%s18103_s5 + $0xdec] ss:$16 sps:$4 sm:$0xff]  }
 0x7da   : > { %12178 = vmatpush2.bf16.msra.mxu1 %v17130_v57  ;;  %12188 = vmatprep.subr.bf16.mxu0 %v17135_v63  ;;  %v17186_v57 = vld [vmem:[%s18103_s5 + $0xfec] ss:$16 sps:$4 sm:$0xff]   ;;  %v17181_v63 = vld [vmem:[%s18103_s5 + $0xde8] ss:$16 sps:$4 sm:$0xff]  }
 0x7db   : > { %12229 = vmatprep.subr.bf16.mxu1 %v17138_v20  ;;  %v17189_v20 = vld [vmem:[%s18103_s5 + $0xdcc] ss:$16 sps:$4 sm:$0xff]  }
 0x7dc   : > { %v11894_v62 = vpop.f32.mrf.mxu0  ;;  %12139 = vmatmul.mubr.bf16.vlgmr.msra.gmra.mxu0 %v19405_v23 }
 0x7dd   : > { %v11895_v1 = vadd.f32 %v11894_v62, %v11854_v39  ;;  %v11935_v8 = vpop.f32.mrf.mxu1  ;;  %12180 = vmatmul.mubr.bf16.vlgmr.msra.gmra.mxu1 %v19410_v50  ;;  %12189 = vmatpush1.bf16.msra.mxu0 %v17133_v44  ;;  %v6815_v50 = vld [vmem:[#allocation2] sm:$0xff]  ;;  %v17187_v44 = vld [vmem:[%s18103_s5 + $0xdc8] ss:$16 sps:$4 sm:$0xff]   ;;  %v17195_v39 = vld [vmem:[%s18103_s5 + $0xdac] ss:$16 sps:$4 sm:$0xff]  }
 0x7de   : > { %12220 = vmatprep.mubr.bf16.mxu0 %v19415_v28  ;;  %12230 = vmatpush1.bf16.msra.mxu1 %v17136_v46  ;;  %v11896_v38 = vpop.f32.mrf.mxu0  ;;  %v17190_v46 = vld [vmem:[%s18103_s5 + $0xfc8] ss:$16 sps:$4 sm:$0xff]  }
 0x7df   : > { %v11936_v31 = vadd.f32 %v11935_v8, %v11895_v1  ;;  %12261 = vmatprep.mubr.bf16.mxu1 %v19421_v34  ;;  %v11897_v23 = vadd.f32 %v11896_v38, %v11856_v48  ;;  %v11937_v56 = vpop.f32.mrf.mxu1  ;;  %12190 = vmatprep.subr.bf16.mxu0 %v17141_v30  ;;  %v17198_v30 = vld [vmem:[%s18103_s5 + $0xfac] ss:$16 sps:$4 sm:$0xff]   ;;  %v17193_v62 = vld [vmem:[%s18103_s5 + $0xda8] ss:$16 sps:$4 sm:$0xff]  }
 0x7e0   : > { %v11898_v9 = vpop.f32.mrf.mxu0  ;;  %12231 = vmatprep.subr.bf16.mxu1 %v17144_v40  ;;  %v17196_v40 = vld [vmem:[%s18103_s5 + $0xfa8] ss:$16 sps:$4 sm:$0xff]   ;;  %v17201_v48 = vld [vmem:[%s18103_s5 + $0xd8c] ss:$16 sps:$4 sm:$0xff]  }
 0x7e1   : > { %v12434_v7 = vadd.f32 %v11936_v31, %v6814_v6  ;;  %v11938_v28 = vadd.f32 %v11937_v56, %v11897_v23  ;;  %v11939_v49 = vpop.f32.mrf.mxu1  ;;  %12191 = vmatpush1.bf16.msra.mxu0 %v17139_v53  ;;  %v17204_v1 = vld [vmem:[%s18103_s5 + $0xf8c] ss:$16 sps:$4 sm:$0xff]   ;;  %v17199_v8 = vld [vmem:[%s18103_s5 + $0xd88] ss:$16 sps:$4 sm:$0xff]  }
 0x7e2   : > { %12232 = vmatpush1.bf16.msra.mxu1 %v17142_v45  ;;  %v11899_v34 = vpop.f32.mrf.mxu0  ;;  %12192 = vmatprep.subr.bf16.mxu0 %v17147_v29  ;;  %v17202_v53 = vld [vmem:[%s18103_s5 + $0xf88] ss:$16 sps:$4 sm:$0xff]   ;;  %v17207_v6 = vld [vmem:[%s18103_s5 + $0xd6c] ss:$16 sps:$4 sm:$0xff]  }
 0x7e3   : > { %12438 = vst [vmem:[#allocation2 + $0x10] sm:$0xff] %v12434_v7  ;;  %v12435_v14 = vadd.f32 %v11938_v28, %v6815_v50  ;;  %v11940_v18 = vpop.f32.mrf.mxu1  ;;  %12233 = vmatprep.subr.bf16.mxu1 %v17150_v47  ;;  %v17210_v38 = vld [vmem:[%s18103_s5 + $0xf6c] ss:$16 sps:$4 sm:$0xff]   ;;  %v17205_v45 = vld [vmem:[%s18103_s5 + $0xd68] ss:$16 sps:$4 sm:$0xff]  }
 0x7e4   : > { %v17208_v29 = vld [vmem:[%s18103_s5 + $0xf68] ss:$16 sps:$4 sm:$0xff]   ;;  %v17213_v31 = vld [vmem:[%s18103_s5 + $0xd4c] ss:$16 sps:$4 sm:$0xff]  }
 0x7e5   : > { %12439 = vst [vmem:[#allocation2] sm:$0xff] %v12435_v14  ;;  %12193 = vmatpush1.bf16.msra.mxu0 %v17145_v15  ;;  %v17216_v23 = vld [vmem:[%s18103_s5 + $0xf4c] ss:$16 sps:$4 sm:$0xff]   ;;  %v17211_v56 = vld [vmem:[%s18103_s5 + $0xd48] ss:$16 sps:$4 sm:$0xff]  }
 0x7e6   : > { %12234 = vmatpush1.bf16.msra.mxu1 %v17148_v16  ;;  %12194 = vmatprep.subr.bf16.mxu0 %v17153_v11  ;;  %v17214_v47 = vld [vmem:[%s18103_s5 + $0xf48] ss:$16 sps:$4 sm:$0xff]   ;;  %v17219_v50 = vld [vmem:[%s18103_s5 + $0xd2c] ss:$16 sps:$4 sm:$0xff]  }
 0x7e7   : > { %12235 = vmatprep.subr.bf16.mxu1 %v17156_v19  ;;  %v17222_v9 = vld [vmem:[%s18103_s5 + $0xf2c] ss:$16 sps:$4 sm:$0xff]   ;;  %v17217_v7 = vld [vmem:[%s18103_s5 + $0xd28] ss:$16 sps:$4 sm:$0xff]  }
 0x7e8   : > { %v17220_v28 = vld [vmem:[%s18103_s5 + $0xf28] ss:$16 sps:$4 sm:$0xff]   ;;  %v17225_v49 = vld [vmem:[%s18103_s5 + $0xd0c] ss:$16 sps:$4 sm:$0xff]  }
 0x7e9   : > { %12195 = vmatpush1.bf16.msra.mxu0 %v17151_v51  ;;  %v17228_v15 = vld [vmem:[%s18103_s5 + $0xf0c] ss:$16 sps:$4 sm:$0xff]   ;;  %v17223_v34 = vld [vmem:[%s18103_s5 + $0xd08] ss:$16 sps:$4 sm:$0xff]  }
 0x7ea   : > { %12236 = vmatpush1.bf16.msra.mxu1 %v17154_v27  ;;  %12196 = vmatprep.subr.bf16.mxu0 %v17159_v54  ;;  %v17226_v16 = vld [vmem:[%s18103_s5 + $0xf08] ss:$16 sps:$4 sm:$0xff]   ;;  %v17231_v11 = vld [vmem:[%s18103_s5 + $0x10ec] ss:$16 sps:$4 sm:$0xff]  }
 0x7eb   : > { %12237 = vmatprep.subr.bf16.mxu1 %v17162_v21  ;;  %v17234_v14 = vld [vmem:[%s18103_s5 + $0x12ec] ss:$16 sps:$4 sm:$0xff]   ;;  %v17229_v18 = vld [vmem:[%s18103_s5 + $0x10e8] ss:$16 sps:$4 sm:$0xff]  }
 0x7ec   : > { %v17232_v19 = vld [vmem:[%s18103_s5 + $0x12e8] ss:$16 sps:$4 sm:$0xff]   ;;  %v17237_v51 = vld [vmem:[%s18103_s5 + $0x10cc] ss:$16 sps:$4 sm:$0xff]  }
 0x7ed   : > { %12197 = vmatpush1.bf16.msra.mxu0 %v17157_v25  ;;  %v17240_v54 = vld [vmem:[%s18103_s5 + $0x12cc] ss:$16 sps:$4 sm:$0xff]   ;;  %v17235_v25 = vld [vmem:[%s18103_s5 + $0x10c8] ss:$16 sps:$4 sm:$0xff]  }
 0x7ee   : > { %12238 = vmatpush1.bf16.msra.mxu1 %v17160_v59  ;;  %12198 = vmatprep.subr.bf16.mxu0 %v17165_v22 }
 0x7ef   : > { %12239 = vmatprep.subr.bf16.mxu1 %v17168_v35  ;;  %v17238_v35 = vld [vmem:[%s18103_s5 + $0x12c8] ss:$16 sps:$4 sm:$0xff]  }
 0x7f1   : > { %12199 = vmatpush1.bf16.msra.mxu0 %v17163_v58  ;;  %v17243_v58 = vld [vmem:[%s18103_s5 + $0x10ac] ss:$16 sps:$4 sm:$0xff]  }
 0x7f2   : > { %12240 = vmatpush1.bf16.msra.mxu1 %v17166_v36  ;;  %12200 = vmatprep.subr.bf16.mxu0 %v17171_v37  ;;  %v17246_v36 = vld [vmem:[%s18103_s5 + $0x12ac] ss:$16 sps:$4 sm:$0xff]  }
 0x7f3   : > { %12241 = vmatprep.subr.bf16.mxu1 %v17174_v61 }
 0x7f5   : > { %12201 = vmatpush1.bf16.msra.mxu0 %v17169_v3 }
 0x7f6   : > { %12242 = vmatpush1.bf16.msra.mxu1 %v17172_v4  ;;  %12202 = vmatprep.subr.bf16.mxu0 %v17177_v33  ;;  %v17249_v4 = vld [vmem:[%s18103_s5 + $0x108c] ss:$16 sps:$4 sm:$0xff]  }
 0x7f7   : > { %12243 = vmatprep.subr.bf16.mxu1 %v17180_v42  ;;  %v17252_v42 = vld [vmem:[%s18103_s5 + $0x128c] ss:$16 sps:$4 sm:$0xff]  }
 0x7f9   : > { %12203 = vmatpush1.bf16.msra.mxu0 %v17175_v55  ;;  %v17247_v55 = vld [vmem:[%s18103_s5 + $0x1088] ss:$16 sps:$4 sm:$0xff]  }
 0x7fa   : > { %12244 = vmatpush1.bf16.msra.mxu1 %v17178_v60  ;;  %12204 = vmatprep.subr.bf16.mxu0 %v17183_v32  ;;  %v17250_v60 = vld [vmem:[%s18103_s5 + $0x1288] ss:$16 sps:$4 sm:$0xff]   ;;  %v17255_v32 = vld [vmem:[%s18103_s5 + $0x106c] ss:$16 sps:$4 sm:$0xff]  }
 0x7fb   : > { %12245 = vmatprep.subr.bf16.mxu1 %v17186_v57  ;;  %v17258_v57 = vld [vmem:[%s18103_s5 + $0x126c] ss:$16 sps:$4 sm:$0xff]  }
 0x7fd   : > { %12205 = vmatpush2.bf16.msra.mxu0 %v17181_v63  ;;  %v17253_v63 = vld [vmem:[%s18103_s5 + $0x1068] ss:$16 sps:$4 sm:$0xff]  }
 0x7fe   : > { %12246 = vmatpush2.bf16.msra.mxu1 %v17184_v17  ;;  %12206 = vmatprep.subr.bf16.mxu0 %v17189_v20  ;;  %v17256_v17 = vld [vmem:[%s18103_s5 + $0x1268] ss:$16 sps:$4 sm:$0xff]   ;;  %v17261_v20 = vld [vmem:[%s18103_s5 + $0x104c] ss:$16 sps:$4 sm:$0xff]  }
 0x7ff   : > { %12247 = vmatprep.subr.bf16.mxu1 %v17192_v12  ;;  %v17264_v12 = vld [vmem:[%s18103_s5 + $0x124c] ss:$16 sps:$4 sm:$0xff]  }
 0x801   : > { %12207 = vmatpush2.bf16.msra.mxu0 %v17187_v44  ;;  %v17259_v44 = vld [vmem:[%s18103_s5 + $0x1048] ss:$16 sps:$4 sm:$0xff]  }
 0x802   : > { %12248 = vmatpush2.bf16.msra.mxu1 %v17190_v46  ;;  %12208 = vmatprep.subr.bf16.mxu0 %v17195_v39  ;;  %v17262_v46 = vld [vmem:[%s18103_s5 + $0x1248] ss:$16 sps:$4 sm:$0xff]   ;;  %v17267_v39 = vld [vmem:[%s18103_s5 + $0x102c] ss:$16 sps:$4 sm:$0xff]  }
 0x803   : > { %12249 = vmatprep.subr.bf16.mxu1 %v17198_v30  ;;  %v17270_v30 = vld [vmem:[%s18103_s5 + $0x122c] ss:$16 sps:$4 sm:$0xff]  }
 0x805   : > { %12209 = vmatpush2.bf16.msra.mxu0 %v17193_v62  ;;  %v17265_v62 = vld [vmem:[%s18103_s5 + $0x1028] ss:$16 sps:$4 sm:$0xff]  }
 0x806   : > { %12250 = vmatpush2.bf16.msra.mxu1 %v17196_v40  ;;  %12210 = vmatprep.subr.bf16.mxu0 %v17201_v48  ;;  %v17268_v40 = vld [vmem:[%s18103_s5 + $0x1228] ss:$16 sps:$4 sm:$0xff]   ;;  %v17273_v48 = vld [vmem:[%s18103_s5 + $0x100c] ss:$16 sps:$4 sm:$0xff]  }
 0x807   : > { %12251 = vmatprep.subr.bf16.mxu1 %v17204_v1  ;;  %v17276_v1 = vld [vmem:[%s18103_s5 + $0x120c] ss:$16 sps:$4 sm:$0xff]  }
 0x809   : > { %12211 = vmatpush2.bf16.msra.mxu0 %v17199_v8  ;;  %v17271_v8 = vld [vmem:[%s18103_s5 + $0x1008] ss:$16 sps:$4 sm:$0xff]  }
 0x80a   : > { %12252 = vmatpush2.bf16.msra.mxu1 %v17202_v53  ;;  %12212 = vmatprep.subr.bf16.mxu0 %v17207_v6  ;;  %v17274_v53 = vld [vmem:[%s18103_s5 + $0x1208] ss:$16 sps:$4 sm:$0xff]   ;;  %v17279_v6 = vld [vmem:[%s18103_s5 + $0x11ec] ss:$16 sps:$4 sm:$0xff]  }
 0x80b   : > { %12253 = vmatprep.subr.bf16.mxu1 %v17210_v38  ;;  %v17282_v38 = vld [vmem:[%s18103_s5 + $0x13ec] ss:$16 sps:$4 sm:$0xff]  }
 0x80d   : > { %12213 = vmatpush2.bf16.msra.mxu0 %v17205_v45  ;;  %v17277_v45 = vld [vmem:[%s18103_s5 + $0x11e8] ss:$16 sps:$4 sm:$0xff]  }
 0x80e   : > { %12254 = vmatpush2.bf16.msra.mxu1 %v17208_v29  ;;  %12214 = vmatprep.subr.bf16.mxu0 %v17213_v31  ;;  %v17280_v29 = vld [vmem:[%s18103_s5 + $0x13e8] ss:$16 sps:$4 sm:$0xff]   ;;  %v17285_v31 = vld [vmem:[%s18103_s5 + $0x11cc] ss:$16 sps:$4 sm:$0xff]  }
 0x80f   : > { %12255 = vmatprep.subr.bf16.mxu1 %v17216_v23  ;;  %v17288_v23 = vld [vmem:[%s18103_s5 + $0x13cc] ss:$16 sps:$4 sm:$0xff]  }
 0x811   : > { %12215 = vmatpush2.bf16.msra.mxu0 %v17211_v56  ;;  %v17283_v56 = vld [vmem:[%s18103_s5 + $0x11c8] ss:$16 sps:$4 sm:$0xff]  }
 0x812   : > { %12256 = vmatpush2.bf16.msra.mxu1 %v17214_v47  ;;  %12216 = vmatprep.subr.bf16.mxu0 %v17219_v50  ;;  %v17286_v47 = vld [vmem:[%s18103_s5 + $0x13c8] ss:$16 sps:$4 sm:$0xff]   ;;  %v17291_v50 = vld [vmem:[%s18103_s5 + $0x11ac] ss:$16 sps:$4 sm:$0xff]  }
 0x813   : > { %12257 = vmatprep.subr.bf16.mxu1 %v17222_v9  ;;  %v17294_v9 = vld [vmem:[%s18103_s5 + $0x13ac] ss:$16 sps:$4 sm:$0xff]  }
 0x815   : > { %12217 = vmatpush2.bf16.msra.mxu0 %v17217_v7  ;;  %v17289_v7 = vld [vmem:[%s18103_s5 + $0x11a8] ss:$16 sps:$4 sm:$0xff]  }
 0x816   : > { %12258 = vmatpush2.bf16.msra.mxu1 %v17220_v28  ;;  %12218 = vmatprep.subr.bf16.mxu0 %v17225_v49  ;;  %v17292_v28 = vld [vmem:[%s18103_s5 + $0x13a8] ss:$16 sps:$4 sm:$0xff]   ;;  %v17297_v49 = vld [vmem:[%s18103_s5 + $0x118c] ss:$16 sps:$4 sm:$0xff]  }
 0x817   : > { %12259 = vmatprep.subr.bf16.mxu1 %v17228_v15  ;;  %v17300_v15 = vld [vmem:[%s18103_s5 + $0x138c] ss:$16 sps:$4 sm:$0xff]  }
 0x819   : > { %12219 = vmatpush2.bf16.msra.mxu0 %v17223_v34  ;;  %v17295_v34 = vld [vmem:[%s18103_s5 + $0x1188] ss:$16 sps:$4 sm:$0xff]  }
 0x81a   : > { %12260 = vmatpush2.bf16.msra.mxu1 %v17226_v16  ;;  %12270 = vmatprep.subr.bf16.mxu0 %v17231_v11  ;;  %v17298_v16 = vld [vmem:[%s18103_s5 + $0x1388] ss:$16 sps:$4 sm:$0xff]   ;;  %v17303_v11 = vld [vmem:[%s18103_s5 + $0x116c] ss:$16 sps:$4 sm:$0xff]  }
 0x81b   : > { %12311 = vmatprep.subr.bf16.mxu1 %v17234_v14  ;;  %v17306_v14 = vld [vmem:[%s18103_s5 + $0x136c] ss:$16 sps:$4 sm:$0xff]  }
 0x81c   : > { %v11976_v27 = vpop.f32.mrf.mxu0  ;;  %12221 = vmatmul.mubr.bf16.vlgmr.msra.gmra.mxu0 %v19489_v0 }
 0x81d   : > { %v12017_v21 = vpop.f32.mrf.mxu1  ;;  %12262 = vmatmul.mubr.bf16.vlgmr.msra.gmra.mxu1 %v19494_v24  ;;  %12271 = vmatpush1.bf16.msra.mxu0 %v17229_v18  ;;  %v17301_v18 = vld [vmem:[%s18103_s5 + $0x1168] ss:$16 sps:$4 sm:$0xff]  }
 0x81e   : > { %v19977_v59 = vadd.f32 %v12017_v21, %v11976_v27  ;;  %12302 = vmatprep.mubr.bf16.mxu0 %v19499_v52  ;;  %12312 = vmatpush1.bf16.msra.mxu1 %v17232_v19  ;;  %v11978_v22 = vpop.f32.mrf.mxu0  ;;  %v17241_v52 = vld [vmem:[%s18103_s5 + $0x10a8] ss:$16 sps:$4 sm:$0xff]   ;;  %v17312_v27 = vld [vmem:[%s18103_s5 + $0x134c] ss:$16 sps:$4 sm:$0xff]  }
 0x81f   : > { %12343 = vmatprep.mubr.bf16.mxu1 %v19505_v43  ;;  %v12019_v0 = vpop.f32.mrf.mxu1  ;;  %12272 = vmatprep.subr.bf16.mxu0 %v17237_v51  ;;  %v17244_v43 = vld [vmem:[%s18103_s5 + $0x12a8] ss:$16 sps:$4 sm:$0xff]   ;;  %v17309_v51 = vld [vmem:[%s18103_s5 + $0x114c] ss:$16 sps:$4 sm:$0xff]  }
 0x820   : > { %v19984_v24 = vadd.f32 %v12019_v0, %v11978_v22  ;;  %v11980_v37 = vpop.f32.mrf.mxu0  ;;  %12313 = vmatprep.subr.bf16.mxu1 %v17240_v54  ;;  %v17304_v19 = vld [vmem:[%s18103_s5 + $0x1368] ss:$16 sps:$4 sm:$0xff]   ;;  %v17318_v22 = vld [vmem:[%s18103_s5 + $0x132c] ss:$16 sps:$4 sm:$0xff]  }
 0x821   : > { %v12021_v61 = vpop.f32.mrf.mxu1  ;;  %12273 = vmatpush1.bf16.msra.mxu0 %v17235_v25  ;;  %v17307_v54 = vld [vmem:[%s18103_s5 + $0x1148] ss:$16 sps:$4 sm:$0xff]   ;;  %v17315_v25 = vld [vmem:[%s18103_s5 + $0x112c] ss:$16 sps:$4 sm:$0xff]  }
 0x822   : > { %12314 = vmatpush1.bf16.msra.mxu1 %v17238_v35  ;;  %v11981_v3 = vpop.f32.mrf.mxu0  ;;  %12274 = vmatprep.subr.bf16.mxu0 %v17243_v58  ;;  %v17310_v21 = vld [vmem:[%s18103_s5 + $0x1348] ss:$16 sps:$4 sm:$0xff]   ;;  %v17321_v0 = vld [vmem:[%s18103_s5 + $0x110c] ss:$16 sps:$4 sm:$0xff]  }
 0x823   : > { %v12022_v33 = vpop.f32.mrf.mxu1  ;;  %12315 = vmatprep.subr.bf16.mxu1 %v17246_v36  ;;  %v17313_v35 = vld [vmem:[%s18103_s5 + $0x1128] ss:$16 sps:$4 sm:$0xff]   ;;  %v17324_v36 = vld [vmem:[%s18103_s5 + $0x130c] ss:$16 sps:$4 sm:$0xff]  }
 0x824   : > { %v17316_v58 = vld [vmem:[%s18103_s5 + $0x1328] ss:$16 sps:$4 sm:$0xff]   ;;  %v17330_v3 = vld [vmem:[%s18103_s5 + $0x16ec] ss:$16 sps:$4 sm:$0xff]  }
 0x825   : > { %12275 = vmatpush1.bf16.msra.mxu0 %v17241_v52  ;;  %v17319_v37 = vld [vmem:[%s18103_s5 + $0x1108] ss:$16 sps:$4 sm:$0xff]   ;;  %v17327_v52 = vld [vmem:[%s18103_s5 + $0x14ec] ss:$16 sps:$4 sm:$0xff]  }
 0x826   : > { %12316 = vmatpush1.bf16.msra.mxu1 %v17244_v43  ;;  %12276 = vmatprep.subr.bf16.mxu0 %v17249_v4  ;;  %v17322_v61 = vld [vmem:[%s18103_s5 + $0x1308] ss:$16 sps:$4 sm:$0xff]   ;;  %v17333_v33 = vld [vmem:[%s18103_s5 + $0x14cc] ss:$16 sps:$4 sm:$0xff]  }
 0x827   : > { %12317 = vmatprep.subr.bf16.mxu1 %v17252_v42  ;;  %v17325_v43 = vld [vmem:[%s18103_s5 + $0x14e8] ss:$16 sps:$4 sm:$0xff]  }
 0x828   : > { %v17328_v4 = vld [vmem:[%s18103_s5 + $0x16e8] ss:$16 sps:$4 sm:$0xff]  }
 0x829   : > { %12277 = vmatpush1.bf16.msra.mxu0 %v17247_v55  ;;  %v17336_v55 = vld [vmem:[%s18103_s5 + $0x16cc] ss:$16 sps:$4 sm:$0xff]  }
 0x82a   : > { %12318 = vmatpush1.bf16.msra.mxu1 %v17250_v60  ;;  %12278 = vmatprep.subr.bf16.mxu0 %v17255_v32 }
 0x82b   : > { %12319 = vmatprep.subr.bf16.mxu1 %v17258_v57  ;;  %v17331_v57 = vld [vmem:[%s18103_s5 + $0x14c8] ss:$16 sps:$4 sm:$0xff]  }
 0x82d   : > { %12279 = vmatpush1.bf16.msra.mxu0 %v17253_v63 }
 0x82e   : > { %12320 = vmatpush1.bf16.msra.mxu1 %v17256_v17  ;;  %12280 = vmatprep.subr.bf16.mxu0 %v17261_v20  ;;  %v17334_v17 = vld [vmem:[%s18103_s5 + $0x16c8] ss:$16 sps:$4 sm:$0xff]   ;;  %v17339_v20 = vld [vmem:[%s18103_s5 + $0x14ac] ss:$16 sps:$4 sm:$0xff]  }
 0x82f   : > { %12321 = vmatprep.subr.bf16.mxu1 %v17264_v12 }
 0x831   : > { %12281 = vmatpush1.bf16.msra.mxu0 %v17259_v44 }
 0x832   : > { %12322 = vmatpush1.bf16.msra.mxu1 %v17262_v46  ;;  %12282 = vmatprep.subr.bf16.mxu0 %v17267_v39  ;;  %v17337_v39 = vld [vmem:[%s18103_s5 + $0x14a8] ss:$16 sps:$4 sm:$0xff]  }
 0x833   : > { %12323 = vmatprep.subr.bf16.mxu1 %v17270_v30 }
 0x835   : > { %12283 = vmatpush1.bf16.msra.mxu0 %v17265_v62 }
 0x836   : > { %12324 = vmatpush1.bf16.msra.mxu1 %v17268_v40  ;;  %12284 = vmatprep.subr.bf16.mxu0 %v17273_v48  ;;  %v17348_v40 = vld [vmem:[%s18103_s5 + $0x168c] ss:$16 sps:$4 sm:$0xff]   ;;  %v17343_v48 = vld [vmem:[%s18103_s5 + $0x1488] ss:$16 sps:$4 sm:$0xff]  }
 0x837   : > { %12325 = vmatprep.subr.bf16.mxu1 %v17276_v1  ;;  %v17346_v1 = vld [vmem:[%s18103_s5 + $0x1688] ss:$16 sps:$4 sm:$0xff]  }
 0x839   : > { %12285 = vmatpush1.bf16.msra.mxu0 %v17271_v8  ;;  %v17351_v8 = vld [vmem:[%s18103_s5 + $0x146c] ss:$16 sps:$4 sm:$0xff]  }
 0x83a   : > { %12326 = vmatpush1.bf16.msra.mxu1 %v17274_v53  ;;  %12286 = vmatprep.subr.bf16.mxu0 %v17279_v6  ;;  %v17354_v53 = vld [vmem:[%s18103_s5 + $0x166c] ss:$16 sps:$4 sm:$0xff]   ;;  %v17349_v6 = vld [vmem:[%s18103_s5 + $0x1468] ss:$16 sps:$4 sm:$0xff]  }
 0x83b   : > { %12327 = vmatprep.subr.bf16.mxu1 %v17282_v38  ;;  %v17352_v38 = vld [vmem:[%s18103_s5 + $0x1668] ss:$16 sps:$4 sm:$0xff]  }
 0x83d   : > { %12287 = vmatpush2.bf16.msra.mxu0 %v17277_v45  ;;  %v17357_v45 = vld [vmem:[%s18103_s5 + $0x144c] ss:$16 sps:$4 sm:$0xff]  }
 0x83e   : > { %12328 = vmatpush2.bf16.msra.mxu1 %v17280_v29  ;;  %12288 = vmatprep.subr.bf16.mxu0 %v17285_v31  ;;  %v17360_v29 = vld [vmem:[%s18103_s5 + $0x164c] ss:$16 sps:$4 sm:$0xff]   ;;  %v17355_v31 = vld [vmem:[%s18103_s5 + $0x1448] ss:$16 sps:$4 sm:$0xff]  }
 0x83f   : > { %12329 = vmatprep.subr.bf16.mxu1 %v17288_v23  ;;  %v17358_v23 = vld [vmem:[%s18103_s5 + $0x1648] ss:$16 sps:$4 sm:$0xff]  }
 0x841   : > { %12289 = vmatpush2.bf16.msra.mxu0 %v17283_v56  ;;  %v17363_v56 = vld [vmem:[%s18103_s5 + $0x142c] ss:$16 sps:$4 sm:$0xff]  }
 0x842   : > { %12330 = vmatpush2.bf16.msra.mxu1 %v17286_v47  ;;  %12290 = vmatprep.subr.bf16.mxu0 %v17291_v50  ;;  %v17366_v47 = vld [vmem:[%s18103_s5 + $0x162c] ss:$16 sps:$4 sm:$0xff]   ;;  %v17361_v50 = vld [vmem:[%s18103_s5 + $0x1428] ss:$16 sps:$4 sm:$0xff]  }
 0x843   : > { %12331 = vmatprep.subr.bf16.mxu1 %v17294_v9  ;;  %v17364_v9 = vld [vmem:[%s18103_s5 + $0x1628] ss:$16 sps:$4 sm:$0xff]  }
 0x845   : > { %12291 = vmatpush2.bf16.msra.mxu0 %v17289_v7  ;;  %v17369_v7 = vld [vmem:[%s18103_s5 + $0x140c] ss:$16 sps:$4 sm:$0xff]  }
 0x846   : > { %12332 = vmatpush2.bf16.msra.mxu1 %v17292_v28  ;;  %12292 = vmatprep.subr.bf16.mxu0 %v17297_v49  ;;  %v17372_v28 = vld [vmem:[%s18103_s5 + $0x160c] ss:$16 sps:$4 sm:$0xff]   ;;  %v17367_v49 = vld [vmem:[%s18103_s5 + $0x1408] ss:$16 sps:$4 sm:$0xff]  }
 0x847   : > { %12333 = vmatprep.subr.bf16.mxu1 %v17300_v15  ;;  %v17370_v15 = vld [vmem:[%s18103_s5 + $0x1608] ss:$16 sps:$4 sm:$0xff]  }
 0x849   : > { %12293 = vmatpush2.bf16.msra.mxu0 %v17295_v34  ;;  %v17375_v34 = vld [vmem:[%s18103_s5 + $0x15ec] ss:$16 sps:$4 sm:$0xff]  }
 0x84a   : > { %12334 = vmatpush2.bf16.msra.mxu1 %v17298_v16  ;;  %12294 = vmatprep.subr.bf16.mxu0 %v17303_v11  ;;  %v17378_v16 = vld [vmem:[%s18103_s5 + $0x17ec] ss:$16 sps:$4 sm:$0xff]   ;;  %v17373_v11 = vld [vmem:[%s18103_s5 + $0x15e8] ss:$16 sps:$4 sm:$0xff]  }
 0x84b   : > { %12335 = vmatprep.subr.bf16.mxu1 %v17306_v14  ;;  %v17376_v14 = vld [vmem:[%s18103_s5 + $0x17e8] ss:$16 sps:$4 sm:$0xff]  }
 0x84d   : > { %12295 = vmatpush2.bf16.msra.mxu0 %v17301_v18  ;;  %v17381_v18 = vld [vmem:[%s18103_s5 + $0x15cc] ss:$16 sps:$4 sm:$0xff]  }
 0x84e   : > { %12336 = vmatpush2.bf16.msra.mxu1 %v17304_v19  ;;  %12296 = vmatprep.subr.bf16.mxu0 %v17309_v51  ;;  %v17384_v19 = vld [vmem:[%s18103_s5 + $0x17cc] ss:$16 sps:$4 sm:$0xff]   ;;  %v17379_v51 = vld [vmem:[%s18103_s5 + $0x15c8] ss:$16 sps:$4 sm:$0xff]  }
 0x84f   : > { %12337 = vmatprep.subr.bf16.mxu1 %v17312_v27  ;;  %v17382_v27 = vld [vmem:[%s18103_s5 + $0x17c8] ss:$16 sps:$4 sm:$0xff]  }
 0x851   : > { %12297 = vmatpush2.bf16.msra.mxu0 %v17307_v54  ;;  %v17387_v54 = vld [vmem:[%s18103_s5 + $0x15ac] ss:$16 sps:$4 sm:$0xff]  }
 0x852   : > { %12338 = vmatpush2.bf16.msra.mxu1 %v17310_v21  ;;  %12298 = vmatprep.subr.bf16.mxu0 %v17315_v25  ;;  %v17390_v21 = vld [vmem:[%s18103_s5 + $0x17ac] ss:$16 sps:$4 sm:$0xff]   ;;  %v17385_v25 = vld [vmem:[%s18103_s5 + $0x15a8] ss:$16 sps:$4 sm:$0xff]  }
 0x853   : > { %12339 = vmatprep.subr.bf16.mxu1 %v17318_v22  ;;  %v17388_v22 = vld [vmem:[%s18103_s5 + $0x17a8] ss:$16 sps:$4 sm:$0xff]  }
 0x855   : > { %12299 = vmatpush2.bf16.msra.mxu0 %v17313_v35  ;;  %v17393_v35 = vld [vmem:[%s18103_s5 + $0x158c] ss:$16 sps:$4 sm:$0xff]  }
 0x856   : > { %12340 = vmatpush2.bf16.msra.mxu1 %v17316_v58  ;;  %12300 = vmatprep.subr.bf16.mxu0 %v17321_v0  ;;  %v17396_v58 = vld [vmem:[%s18103_s5 + $0x178c] ss:$16 sps:$4 sm:$0xff]   ;;  %v17391_v0 = vld [vmem:[%s18103_s5 + $0x1588] ss:$16 sps:$4 sm:$0xff]  }
 0x857   : > { %12341 = vmatprep.subr.bf16.mxu1 %v17324_v36  ;;  %v17394_v36 = vld [vmem:[%s18103_s5 + $0x1788] ss:$16 sps:$4 sm:$0xff]  }
 0x859   : > { %12301 = vmatpush2.bf16.msra.mxu0 %v17319_v37  ;;  %v17399_v37 = vld [vmem:[%s18103_s5 + $0x156c] ss:$16 sps:$4 sm:$0xff]  }
 0x85a   : > { %12342 = vmatpush2.bf16.msra.mxu1 %v17322_v61  ;;  %12352 = vmatprep.subr.bf16.mxu0 %v17327_v52  ;;  %v17402_v61 = vld [vmem:[%s18103_s5 + $0x176c] ss:$16 sps:$4 sm:$0xff]   ;;  %v17397_v52 = vld [vmem:[%s18103_s5 + $0x1568] ss:$16 sps:$4 sm:$0xff]  }
 0x85b   : > { %12393 = vmatprep.subr.bf16.mxu1 %v17330_v3  ;;  %v17400_v3 = vld [vmem:[%s18103_s5 + $0x1768] ss:$16 sps:$4 sm:$0xff]  }
 0x85c   : > { %v12058_v42 = vpop.f32.mrf.mxu0  ;;  %12303 = vmatmul.mubr.bf16.vlgmr.msra.gmra.mxu0 %v19577_v41 }
 0x85d   : > { %v12059_v60 = vadd.f32 %v12058_v42, %v19977_v59  ;;  %v12099_v32 = vpop.f32.mrf.mxu1  ;;  %12344 = vmatmul.mubr.bf16.vlgmr.msra.gmra.mxu1 %v19582_v13  ;;  %12353 = vmatpush1.bf16.msra.mxu0 %v17325_v43  ;;  %v17342_v13 = vld [vmem:[%s18103_s5 + $0x16ac] ss:$16 sps:$4 sm:$0xff]   ;;  %v17406_v42 = vld [vmem:[%s18103_s5 + $0x1748] ss:$16 sps:$4 sm:$0xff]  }
 0x85e   : > { %12384 = vmatprep.mubr.bf16.mxu0 %v19587_v5  ;;  %12394 = vmatpush1.bf16.msra.mxu1 %v17328_v4  ;;  %v12060_v63 = vpop.f32.mrf.mxu0  ;;  %v17405_v43 = vld [vmem:[%s18103_s5 + $0x154c] ss:$16 sps:$4 sm:$0xff]  }
 0x85f   : > { %v20053_v12 = vadd.f32 %v12099_v32, %v12059_v60  ;;  %12425 = vmatprep.mubr.bf16.mxu1 %v19593_v26  ;;  %v12061_v41 = vadd.f32 %v12060_v63, %v19984_v24  ;;  %v12101_v59 = vpop.f32.mrf.mxu1  ;;  %12354 = vmatprep.subr.bf16.mxu0 %v17333_v33  ;;  %v17340_v26 = vld [vmem:[%s18103_s5 + $0x16a8] ss:$16 sps:$4 sm:$0xff]   ;;  %v17345_v24 = vld [vmem:[%s18103_s5 + $0x148c] ss:$16 sps:$4 sm:$0xff]  }
 0x860   : > { %v12062_v44 = vpop.f32.mrf.mxu0  ;;  %12395 = vmatprep.subr.bf16.mxu1 %v17336_v55  ;;  %v17408_v4 = vld [vmem:[%s18103_s5 + $0x174c] ss:$16 sps:$4 sm:$0xff]   ;;  %v17403_v33 = vld [vmem:[%s18103_s5 + $0x1548] ss:$16 sps:$4 sm:$0xff]  }
 0x861   : > { %v20058_v5 = vadd.f32 %v12101_v59, %v12061_v41  ;;  %v12103_v46 = vpop.f32.mrf.mxu1  ;;  %12355 = vmatpush1.bf16.msra.mxu0 %v17331_v57  ;;  %v17411_v55 = vld [vmem:[%s18103_s5 + $0x152c] ss:$16 sps:$4 sm:$0xff]   ;;  %v17409_v32 = vld [vmem:[%s18103_s5 + $0x1528] ss:$16 sps:$4 sm:$0xff]  }
 0x862   : > { %12396 = vmatpush1.bf16.msra.mxu1 %v17334_v17  ;;  %v12063_v30 = vpop.f32.mrf.mxu0  ;;  %12356 = vmatprep.subr.bf16.mxu0 %v17339_v20  ;;  %v17414_v60 = vld [vmem:[%s18103_s5 + $0x172c] ss:$16 sps:$4 sm:$0xff]   ;;  %v17412_v57 = vld [vmem:[%s18103_s5 + $0x1728] ss:$16 sps:$4 sm:$0xff]  }
 0x863   : > { %v12104_v62 = vpop.f32.mrf.mxu1  ;;  %12397 = vmatprep.subr.bf16.mxu1 %v17342_v13  ;;  %v17417_v63 = vld [vmem:[%s18103_s5 + $0x150c] ss:$16 sps:$4 sm:$0xff]   ;;  %v17415_v20 = vld [vmem:[%s18103_s5 + $0x1508] ss:$16 sps:$4 sm:$0xff]  }
 0x864   : > { %v17420_v17 = vld [vmem:[%s18103_s5 + $0x170c] ss:$16 sps:$4 sm:$0xff]   ;;  %v17418_v41 = vld [vmem:[%s18103_s5 + $0x1708] ss:$16 sps:$4 sm:$0xff]  }
 0x865   : > { %12357 = vmatpush1.bf16.msra.mxu0 %v17337_v39 }
 0x866   : > { %12398 = vmatpush1.bf16.msra.mxu1 %v17340_v26  ;;  %12358 = vmatprep.subr.bf16.mxu0 %v17345_v24 }
 0x867   : > { %12399 = vmatprep.subr.bf16.mxu1 %v17348_v40 }
 0x869   : > { %12359 = vmatpush1.bf16.msra.mxu0 %v17343_v48 }
 0x86a   : > { %12400 = vmatpush1.bf16.msra.mxu1 %v17346_v1  ;;  %12360 = vmatprep.subr.bf16.mxu0 %v17351_v8 }
 0x86b   : > { %12401 = vmatprep.subr.bf16.mxu1 %v17354_v53 }
 0x86d   : > { %12361 = vmatpush1.bf16.msra.mxu0 %v17349_v6 }
 0x86e   : > { %12402 = vmatpush1.bf16.msra.mxu1 %v17352_v38  ;;  %12362 = vmatprep.subr.bf16.mxu0 %v17357_v45 }
 0x86f   : > { %12403 = vmatprep.subr.bf16.mxu1 %v17360_v29 }
 0x871   : > { %12363 = vmatpush1.bf16.msra.mxu0 %v17355_v31 }
 0x872   : > { %12404 = vmatpush1.bf16.msra.mxu1 %v17358_v23  ;;  %12364 = vmatprep.subr.bf16.mxu0 %v17363_v56 }
 0x873   : > { %12405 = vmatprep.subr.bf16.mxu1 %v17366_v47 }
 0x875   : > { %12365 = vmatpush1.bf16.msra.mxu0 %v17361_v50 }
 0x876   : > { %12406 = vmatpush1.bf16.msra.mxu1 %v17364_v9  ;;  %12366 = vmatprep.subr.bf16.mxu0 %v17369_v7 }
 0x877   : > { %12407 = vmatprep.subr.bf16.mxu1 %v17372_v28 }
 0x879   : > { %12367 = vmatpush1.bf16.msra.mxu0 %v17367_v49 }
 0x87a   : > { %12408 = vmatpush1.bf16.msra.mxu1 %v17370_v15  ;;  %12368 = vmatprep.subr.bf16.mxu0 %v17375_v34 }
 0x87b   : > { %12409 = vmatprep.subr.bf16.mxu1 %v17378_v16 }
 0x87d   : > { %12369 = vmatpush2.bf16.msra.mxu0 %v17373_v11 }
 0x87e   : > { %12410 = vmatpush2.bf16.msra.mxu1 %v17376_v14  ;;  %12370 = vmatprep.subr.bf16.mxu0 %v17381_v18 }
 0x87f   : > { %12411 = vmatprep.subr.bf16.mxu1 %v17384_v19 }
 0x881   : > { %12371 = vmatpush2.bf16.msra.mxu0 %v17379_v51 }
 0x882   : > { %12412 = vmatpush2.bf16.msra.mxu1 %v17382_v27  ;;  %12372 = vmatprep.subr.bf16.mxu0 %v17387_v54  ;;  %v6816_v27 = vld [vmem:[#allocation2 + $0x18] sm:$0xff] }
 0x883   : > { %12413 = vmatprep.subr.bf16.mxu1 %v17390_v21 }
 0x885   : > { %12373 = vmatpush2.bf16.msra.mxu0 %v17385_v25 }
 0x886   : > { %12414 = vmatpush2.bf16.msra.mxu1 %v17388_v22  ;;  %12374 = vmatprep.subr.bf16.mxu0 %v17393_v35  ;;  %v6817_v35 = vld [vmem:[#allocation2 + $0x8] sm:$0xff] }
 0x887   : > { %12415 = vmatprep.subr.bf16.mxu1 %v17396_v58 }
 0x889   : > { %12375 = vmatpush2.bf16.msra.mxu0 %v17391_v0 }
 0x88a   : > { %12416 = vmatpush2.bf16.msra.mxu1 %v17394_v36  ;;  %12376 = vmatprep.subr.bf16.mxu0 %v17399_v37 }
 0x88b   : > { %12417 = vmatprep.subr.bf16.mxu1 %v17402_v61 }
 0x88d   : > { %12377 = vmatpush2.bf16.msra.mxu0 %v17397_v52 }
 0x88e   : > { %12418 = vmatpush2.bf16.msra.mxu1 %v17400_v3  ;;  %12378 = vmatprep.subr.bf16.mxu0 %v17405_v43 }
 0x88f   : > { %12419 = vmatprep.subr.bf16.mxu1 %v17408_v4 }
 0x891   : > { %12379 = vmatpush2.bf16.msra.mxu0 %v17403_v33 }
 0x892   : > { %12420 = vmatpush2.bf16.msra.mxu1 %v17406_v42  ;;  %12380 = vmatprep.subr.bf16.mxu0 %v17411_v55 }
 0x893   : > { %12421 = vmatprep.subr.bf16.mxu1 %v17414_v60 }
 0x895   : > { %12381 = vmatpush2.bf16.msra.mxu0 %v17409_v32 }
 0x896   : > { %12422 = vmatpush2.bf16.msra.mxu1 %v17412_v57  ;;  %12382 = vmatprep.subr.bf16.mxu0 %v17417_v63 }
 0x897   : > { %12423 = vmatprep.subr.bf16.mxu1 %v17420_v17 }
 0x899   : > { %12383 = vmatpush2.bf16.msra.mxu0 %v17415_v20 }
 0x89a   : > { %12424 = vmatpush2.bf16.msra.mxu1 %v17418_v41 }
 0x89c   : > { %v12140_v59 = vpop.f32.mrf.mxu0  ;;  %12385 = vmatmul.mubr.bf16.vlgmr.msra.gmra.mxu0 %v19667_v2 }
 0x89d   : > { %v12141_v13 = vadd.f32 %v12140_v59, %v20053_v12  ;;  %v12181_v44 = vpop.f32.mrf.mxu1  ;;  %12426 = vmatmul.mubr.bf16.vlgmr.msra.gmra.mxu1 %v19672_v10 }
 0x89e   : > { %v12142_v46 = vpop.f32.mrf.mxu0 }
 0x89f   : > { %v12182_v39 = vadd.f32 %v12181_v44, %v12141_v13  ;;  %v12143_v30 = vadd.f32 %v12142_v46, %v20058_v5  ;;  %v12183_v26 = vpop.f32.mrf.mxu1 }
 0x8a0   : > { %v12144_v24 = vpop.f32.mrf.mxu0 }
 0x8a1   : > { %v12184_v62 = vadd.f32 %v12183_v26, %v12143_v30  ;;  %v12185_v40 = vpop.f32.mrf.mxu1 }
 0x8a2   : > { %v12145_v48 = vpop.f32.mrf.mxu0 }
 0x8a3   : > { %v12186_v1 = vpop.f32.mrf.mxu1 }
 0x8dc   : > { %v12222_v8 = vpop.f32.mrf.mxu0 }
 0x8dd   : > { %v12223_v53 = vadd.f32 %v12222_v8, %v12182_v39  ;;  %v12263_v6 = vpop.f32.mrf.mxu1 }
 0x8de   : > { %v12224_v38 = vpop.f32.mrf.mxu0 }
 0x8df   : > { %v12264_v2 = vadd.f32 %v12263_v6, %v12223_v53  ;;  %v12225_v45 = vadd.f32 %v12224_v38, %v12184_v62  ;;  %v12265_v12 = vpop.f32.mrf.mxu1 }
 0x8e0   : > { %v12226_v29 = vpop.f32.mrf.mxu0 }
 0x8e1   : > { %v12266_v31 = vadd.f32 %v12265_v12, %v12225_v45  ;;  %v12267_v10 = vpop.f32.mrf.mxu1 }
 0x8e2   : > { %v12227_v23 = vpop.f32.mrf.mxu0 }
 0x8e3   : > { %v12268_v56 = vpop.f32.mrf.mxu1 }
 0x91c   : > { %v12304_v47 = vpop.f32.mrf.mxu0 }
 0x91d   : > { %v12345_v5 = vpop.f32.mrf.mxu1  ;;  %v12305_v34 = vadd.f32 %v12304_v47, %v12264_v2 }
 0x91e   : > { %v12306_v50 = vpop.f32.mrf.mxu0 }
 0x91f   : > { %v12347_v9 = vpop.f32.mrf.mxu1  ;;  %v12307_v16 = vadd.f32 %v12306_v50, %v12266_v31  ;;  %v12346_v11 = vadd.f32 %v12345_v5, %v12305_v34 }
 0x920   : > { %v12308_v7 = vpop.f32.mrf.mxu0 }
 0x921   : > { %v12349_v28 = vpop.f32.mrf.mxu1  ;;  %v12348_v18 = vadd.f32 %v12347_v9, %v12307_v16 }
 0x922   : > { %v12309_v49 = vpop.f32.mrf.mxu0 }
 0x923   : > { %v12350_v15 = vpop.f32.mrf.mxu1 }
 0x95c   : > { %v12386_v14 = vpop.f32.mrf.mxu0 }
 0x95d   : > { %v12387_v19 = vadd.f32 %v12386_v14, %v12346_v11  ;;  %v12427_v51 = vpop.f32.mrf.mxu1 }
 0x95e   : > { %v12388_v54 = vpop.f32.mrf.mxu0 }
 0x95f   : > { %v12428_v21 = vadd.f32 %v12427_v51, %v12387_v19  ;;  %v12389_v25 = vadd.f32 %v12388_v54, %v12348_v18  ;;  %v12429_v22 = vpop.f32.mrf.mxu1 }
 0x960   : > { %v12390_v58 = vpop.f32.mrf.mxu0 }
 0x961   : > { %v12436_v0 = vadd.f32 %v12428_v21, %v6816_v27  ;;  %v12430_v36 = vadd.f32 %v12429_v22, %v12389_v25  ;;  %v12431_v37 = vpop.f32.mrf.mxu1 }
 0x962   : > { %v12391_v61 = vpop.f32.mrf.mxu0 }
 0x963   : > { %12440 = vst [vmem:[#allocation2 + $0x18] sm:$0xff] %v12436_v0  ;;  %v12437_v52 = vadd.f32 %v12430_v36, %v6817_v35  ;;  %v12432_v3 = vpop.f32.mrf.mxu1 }
 0x965   : > { %12441 = vst [vmem:[#allocation2 + $0x8] sm:$0xff] %v12437_v52 }
 0x966 PF: > { %p14872_p6 = scmp.ne.s32.totalorder %s17899_s18, 1 }
 0x968   : > { %12445 = sbr.rel (%p14872_p6) target bundleno = 2883 (0xb43), region = 100 }
 0x96d   : > { %v17421_v43 = vld [vmem:[#allocation8 + $0x74] ss:$8 sps:$4 sm:$0xff]   ;;  %v17425_v33 = vld [vmem:[#allocation8 + $0x70] ss:$8 sps:$4 sm:$0xff]   ;;  %v17427_v55 = vld [vmem:[#allocation8 + $0x64] ss:$8 sps:$4 sm:$0xff]   ;;  %v12452_v5 = vlaneseq }
 0x96e   : > { %v17423_v4 = vld [vmem:[#allocation8 + $0x174] ss:$8 sps:$4 sm:$0xff]   ;;  %12888 = vmatprep.subr.bf16.mxu0 %v17421_v43  ;;  %v17426_v42 = vld [vmem:[#allocation8 + $0x170] ss:$8 sps:$4 sm:$0xff]   ;;  %v17429_v60 = vld [vmem:[#allocation8 + $0x164] ss:$8 sps:$4 sm:$0xff]  }
 0x96f   : > { %12929 = vmatprep.subr.bf16.mxu1 %v17423_v4  ;;  %12889 = vmatpush1.bf16.msra.mxu0 %v17425_v33  ;;  %v17431_v32 = vld [vmem:[#allocation8 + $0x60] ss:$8 sps:$4 sm:$0xff]   ;;  %v17433_v63 = vld [vmem:[#allocation8 + $0x54] ss:$8 sps:$4 sm:$0xff]   ;;  %v17437_v20 = vld [vmem:[#allocation8 + $0x50] ss:$8 sps:$4 sm:$0xff]  }
 0x970   : > { %12930 = vmatpush1.bf16.msra.mxu1 %v17426_v42  ;;  %12890 = vmatprep.subr.bf16.mxu0 %v17427_v55  ;;  %v17432_v57 = vld [vmem:[#allocation8 + $0x160] ss:$8 sps:$4 sm:$0xff]   ;;  %v17435_v17 = vld [vmem:[#allocation8 + $0x154] ss:$8 sps:$4 sm:$0xff]   ;;  %v17438_v41 = vld [vmem:[#allocation8 + $0x150] ss:$8 sps:$4 sm:$0xff]  }
 0x971   : > { %12931 = vmatprep.subr.bf16.mxu1 %v17429_v60  ;;  %v17439_v59 = vld [vmem:[#allocation8 + $0x44] ss:$8 sps:$4 sm:$0xff]   ;;  %v17443_v44 = vld [vmem:[#allocation8 + $0x40] ss:$8 sps:$4 sm:$0xff]   ;;  %v17445_v39 = vld [vmem:[#allocation8 + $0x34] ss:$8 sps:$4 sm:$0xff]  }
 0x972   : > { %v17441_v13 = vld [vmem:[#allocation8 + $0x144] ss:$8 sps:$4 sm:$0xff]   ;;  %v17444_v46 = vld [vmem:[#allocation8 + $0x140] ss:$8 sps:$4 sm:$0xff]   ;;  %v17447_v30 = vld [vmem:[#allocation8 + $0x134] ss:$8 sps:$4 sm:$0xff]  }
 0x973   : > { %12891 = vmatpush1.bf16.msra.mxu0 %v17431_v32  ;;  %v17449_v26 = vld [vmem:[#allocation8 + $0x30] ss:$8 sps:$4 sm:$0xff]   ;;  %v17451_v62 = vld [vmem:[#allocation8 + $0x24] ss:$8 sps:$4 sm:$0xff]   ;;  %v17455_v48 = vld [vmem:[#allocation8 + $0x20] ss:$8 sps:$4 sm:$0xff]  }
 0x974   : > { %12932 = vmatpush1.bf16.msra.mxu1 %v17432_v57  ;;  %12892 = vmatprep.subr.bf16.mxu0 %v17433_v63  ;;  %v17450_v24 = vld [vmem:[#allocation8 + $0x130] ss:$8 sps:$4 sm:$0xff]   ;;  %v17453_v40 = vld [vmem:[#allocation8 + $0x124] ss:$8 sps:$4 sm:$0xff]   ;;  %v17456_v1 = vld [vmem:[#allocation8 + $0x120] ss:$8 sps:$4 sm:$0xff]  }
 0x975   : > { %12933 = vmatprep.subr.bf16.mxu1 %v17435_v17  ;;  %v17457_v8 = vld [vmem:[#allocation8 + $0x14] ss:$8 sps:$4 sm:$0xff]   ;;  %v17461_v6 = vld [vmem:[#allocation8 + $0x10] ss:$8 sps:$4 sm:$0xff]   ;;  %v17463_v2 = vld [vmem:[#allocation8 + $0x4] ss:$8 sps:$4 sm:$0xff]  }
 0x976   : > { %v17459_v53 = vld [vmem:[#allocation8 + $0x114] ss:$8 sps:$4 sm:$0xff]   ;;  %v17462_v38 = vld [vmem:[#allocation8 + $0x110] ss:$8 sps:$4 sm:$0xff]   ;;  %v17465_v45 = vld [vmem:[#allocation8 + $0x104] ss:$8 sps:$4 sm:$0xff]  }
 0x977   : > { %12893 = vmatpush1.bf16.msra.mxu0 %v17437_v20  ;;  %v17467_v12 = vld [vmem:[#allocation8] ss:$8 sps:$4 sm:$0xff]   ;;  %v17469_v31 = vld [vmem:[#allocation8 + $0xf4] ss:$8 sps:$4 sm:$0xff]   ;;  %v17473_v23 = vld [vmem:[#allocation8 + $0xf0] ss:$8 sps:$4 sm:$0xff]  }
 0x978   : > { %12934 = vmatpush1.bf16.msra.mxu1 %v17438_v41  ;;  %12894 = vmatprep.subr.bf16.mxu0 %v17439_v59  ;;  %v17468_v29 = vld [vmem:[#allocation8 + $0x100] ss:$8 sps:$4 sm:$0xff]   ;;  %v17471_v10 = vld [vmem:[#allocation8 + $0x1f4] ss:$8 sps:$4 sm:$0xff]   ;;  %v17474_v56 = vld [vmem:[#allocation8 + $0x1f0] ss:$8 sps:$4 sm:$0xff]  }
 0x979   : > { %12935 = vmatprep.subr.bf16.mxu1 %v17441_v13  ;;  %v17475_v47 = vld [vmem:[#allocation8 + $0xe4] ss:$8 sps:$4 sm:$0xff]   ;;  %v17479_v9 = vld [vmem:[#allocation8 + $0xe0] ss:$8 sps:$4 sm:$0xff]   ;;  %v17481_v28 = vld [vmem:[#allocation8 + $0xd4] ss:$8 sps:$4 sm:$0xff]  }
 0x97a   : > { %v17477_v50 = vld [vmem:[#allocation8 + $0x1e4] ss:$8 sps:$4 sm:$0xff]   ;;  %v17480_v7 = vld [vmem:[#allocation8 + $0x1e0] ss:$8 sps:$4 sm:$0xff]   ;;  %v20119_v49 = vshrl.u32 %v12452_v5, 7  ;;  %v12448_v63 = vld [vmem:[#allocation2 + $0x18] sm:$0xff] }
 0x97b   : > { %12895 = vmatpush1.bf16.msra.mxu0 %v17443_v44  ;;  %v17483_v15 = vld [vmem:[#allocation8 + $0x1d4] ss:$8 sps:$4 sm:$0xff]   ;;  %v17485_v34 = vld [vmem:[#allocation8 + $0xd0] ss:$8 sps:$4 sm:$0xff]   ;;  %v17487_v11 = vld [vmem:[#allocation8 + $0xc4] ss:$8 sps:$4 sm:$0xff]  }
 0x97c   : > { %12936 = vmatpush1.bf16.msra.mxu1 %v17444_v46  ;;  %12896 = vmatprep.subr.bf16.mxu0 %v17445_v39  ;;  %v17486_v16 = vld [vmem:[#allocation8 + $0x1d0] ss:$8 sps:$4 sm:$0xff]   ;;  %v12458_v14 = vsub.s32 1, %v20119_v49  ;;  %v12466_v18 = vsub.s32 3, %v20119_v49  ;;  %v17489_v19 = vld [vmem:[#allocation8 + $0x1c4] ss:$8 sps:$4 sm:$0xff]  }
 0x97d   : > { %12937 = vmatprep.subr.bf16.mxu1 %v17447_v30  ;;  %v17491_v51 = vld [vmem:[#allocation8 + $0xc0] ss:$8 sps:$4 sm:$0xff]   ;;  %v12450_v21 = vld [vmem:[#allocation7] sm:$0xf]  ;;  %v12454_v22 = vsub.s32 0, %v20119_v49  ;;  %v12462_v35 = vsub.s32 2, %v20119_v49 }
 0x97e   : > { %v17492_v27 = vld [vmem:[#allocation8 + $0x1c0] ss:$8 sps:$4 sm:$0xff]   ;;  %v17493_v58 = vld [vmem:[#allocation8 + $0xb4] ss:$8 sps:$4 sm:$0xff]   ;;  %v12459_v0 = vrot.slane %v12450_v21, %v12458_v14  ;;  %v12467_v36 = vrot.slane %v12450_v21, %v12466_v18  ;;  %v17497_v61 = vld [vmem:[#allocation8 + $0xb0] ss:$8 sps:$4 sm:$0xff]  }
 0x97f   : > { %12897 = vmatpush1.bf16.msra.mxu0 %v17449_v26  ;;  %v12447_v54 = vld [vmem:[#allocation2] sm:$0xff]  ;;  %v12449_v25 = vld [vmem:[#allocation2 + $0x8] sm:$0xff]  ;;  %v17498_v52 = vld [vmem:[#allocation8 + $0x1b0] ss:$8 sps:$4 sm:$0xff]   ;;  %v12455_v33 = vrot.slane %v12450_v21, %v12454_v22  ;;  %v12463_v42 = vrot.slane %v12450_v21, %v12462_v35 }
 0x980   : > { %12938 = vmatpush1.bf16.msra.mxu1 %v17450_v24  ;;  %12898 = vmatprep.subr.bf16.mxu0 %v17451_v62  ;;  %v17495_v37 = vld [vmem:[#allocation8 + $0x1b4] ss:$8 sps:$4 sm:$0xff]   ;;  %v12473_v3 = vadd.f32 %v12459_v0, %v12447_v54  ;;  %v12475_v43 = vadd.f32 %v12467_v36, %v12449_v25  ;;  %v12446_v4 = vld [vmem:[#allocation2 + $0x10] sm:$0xff]  ;;  %v17503_v17 = vld [vmem:[#allocation8 + $0xa0] ss:$8 sps:$4 sm:$0xff]  }
 0x981   : > { %12939 = vmatprep.subr.bf16.mxu1 %v17453_v40  ;;  %v17499_v32 = vld [vmem:[#allocation8 + $0xa4] ss:$8 sps:$4 sm:$0xff]   ;;  %v17504_v59 = vld [vmem:[#allocation8 + $0x1a0] ss:$8 sps:$4 sm:$0xff]   ;;  %v12472_v46 = vadd.f32 %v12455_v33, %v12446_v4  ;;  %v17505_v39 = vld [vmem:[#allocation8 + $0x94] ss:$8 sps:$4 sm:$0xff]   ;;  %v12474_v30 = vadd.f32 %v12463_v42, %v12448_v63 }
 0x982   : > { %vm12477_vm2 = vcmp.ge.f32.partialorder %v12473_v3, 0.0  ;;  %v12481_v55 = vmul.f32 0.2, %v12473_v3  ;;  %vm12479_vm3 = vcmp.ge.f32.partialorder %v12475_v43, 0.0  ;;  %v12483_v60 = vmul.f32 0.2, %v12475_v43 }
 0x983   : > { %12899 = vmatpush1.bf16.msra.mxu0 %v17455_v48  ;;  %v17501_v57 = vld [vmem:[#allocation8 + $0x1a4] ss:$8 sps:$4 sm:$0xff]   ;;  %v17507_v26 = vld [vmem:[#allocation8 + $0x194] ss:$8 sps:$4 sm:$0xff]   ;;  %v17509_v24 = vld [vmem:[#allocation8 + $0x90] ss:$8 sps:$4 sm:$0xff]  }
 0x984   : > { %12940 = vmatpush1.bf16.msra.mxu1 %v17456_v1  ;;  %12900 = vmatprep.subr.bf16.mxu0 %v17457_v8  ;;  %v12485_v20 = vsel %vm12477_vm2, %v12473_v3, %v12481_v55  ;;  %v12487_v41 = vsel %vm12479_vm3, %v12475_v43, %v12483_v60  ;;  %v17510_v62 = vld [vmem:[#allocation8 + $0x190] ss:$8 sps:$4 sm:$0xff]   ;;  %v17511_v40 = vld [vmem:[#allocation8 + $0x84] ss:$8 sps:$4 sm:$0xff]   ;;  %v12480_v1 = vmul.f32 0.2, %v12472_v46 }
 0x985   : > { %12941 = vmatprep.subr.bf16.mxu1 %v17459_v53  ;;  %v12489_v13 = vpack.c.bf16 %v12485_v20, %v12485_v20  ;;  %v12491_v44 = vpack.c.bf16 %v12487_v41, %v12487_v41  ;;  %v17513_v48 = vld [vmem:[#allocation8 + $0x184] ss:$8 sps:$4 sm:$0xff]   ;;  %vm12476_vm4 = vcmp.ge.f32.partialorder %v12472_v46, 0.0  ;;  %vm12478_vm5 = vcmp.ge.f32.partialorder %v12474_v30, 0.0  ;;  %v17515_v53 = vld [vmem:[#allocation8 + $0x80] ss:$8 sps:$4 sm:$0xff]  }
 0x986   : > { %v12482_v8 = vmul.f32 0.2, %v12474_v30  ;;  %v17523_v5 = vld [vmem:[#allocation11 + $0x60] sm:$0xff]  }
 0x987   : > { %12901 = vmatpush1.bf16.msra.mxu0 %v17461_v6  ;;  %12920 = vmatprep.mubr.bf16.mxu0 %v12489_v13  ;;  %v17516_v6 = vld [vmem:[#allocation8 + $0x180] ss:$8 sps:$4 sm:$0xff]  }
 0x988   : > { %12942 = vmatpush1.bf16.msra.mxu1 %v17462_v38  ;;  %12902 = vmatprep.subr.bf16.mxu0 %v17463_v2  ;;  %v12484_v38 = vsel %vm12476_vm4, %v12472_v46, %v12480_v1  ;;  %v12486_v2 = vsel %vm12478_vm5, %v12474_v30, %v12482_v8  ;;  %v17532_v18 = vld [vmem:[#allocation11] sm:$0xff]  }
 0x989   : > { %12943 = vmatprep.subr.bf16.mxu1 %v17465_v45  ;;  %12961 = vmatprep.mubr.bf16.mxu1 %v12491_v44  ;;  %v17517_v45 = vld [vmem:[#allocation11 + $0x78] sm:$0xff]   ;;  %v14937_v60 = vld [vmem:[#allocation13] ss:$0 sm:$0xff] }
 0x98b   : > { %12903 = vmatpush1.bf16.msra.mxu0 %v17467_v12  ;;  %v12488_v12 = vpack.c.bf16 %v12484_v38, %v12484_v38 }
 0x98c   : > { %12944 = vmatpush1.bf16.msra.mxu1 %v17468_v29  ;;  %12904 = vmatprep.subr.bf16.mxu0 %v17469_v31  ;;  %v12490_v29 = vpack.c.bf16 %v12486_v2, %v12486_v2  ;;  %v17518_v31 = vld [vmem:[#allocation11 + $0x38] sm:$0xff]  }
 0x98d   : > { %12945 = vmatprep.subr.bf16.mxu1 %v17471_v10  ;;  %v17519_v10 = vld [vmem:[#allocation11 + $0x70] sm:$0xff]  }
 0x98f   : > { %12905 = vmatpush2.bf16.msra.mxu0 %v17473_v23  ;;  %v17520_v23 = vld [vmem:[#allocation11 + $0x30] sm:$0xff]  }
 0x990   : > { %12946 = vmatpush2.bf16.msra.mxu1 %v17474_v56  ;;  %12906 = vmatprep.subr.bf16.mxu0 %v17475_v47  ;;  %v17521_v56 = vld [vmem:[#allocation11 + $0x68] sm:$0xff]  }
 0x991   : > { %12947 = vmatprep.subr.bf16.mxu1 %v17477_v50  ;;  %v17522_v47 = vld [vmem:[#allocation11 + $0x28] sm:$0xff]   ;;  %v17524_v50 = vld [vmem:[#allocation11 + $0x20] sm:$0xff]  }
 0x993   : > { %12907 = vmatpush2.bf16.msra.mxu0 %v17479_v9  ;;  %v17525_v9 = vld [vmem:[#allocation11 + $0x58] sm:$0xff]  }
 0x994   : > { %12948 = vmatpush2.bf16.msra.mxu1 %v17480_v7  ;;  %12908 = vmatprep.subr.bf16.mxu0 %v17481_v28  ;;  %v17526_v7 = vld [vmem:[#allocation11 + $0x18] sm:$0xff]   ;;  %v17527_v28 = vld [vmem:[#allocation11 + $0x50] sm:$0xff]  }
 0x995   : > { %12949 = vmatprep.subr.bf16.mxu1 %v17483_v15  ;;  %v17528_v15 = vld [vmem:[#allocation11 + $0x10] sm:$0xff]  }
 0x997   : > { %12909 = vmatpush2.bf16.msra.mxu0 %v17485_v34  ;;  %v17529_v34 = vld [vmem:[#allocation11 + $0x48] sm:$0xff]  }
 0x998   : > { %12950 = vmatpush2.bf16.msra.mxu1 %v17486_v16  ;;  %12910 = vmatprep.subr.bf16.mxu0 %v17487_v11  ;;  %v17530_v16 = vld [vmem:[#allocation11 + $0x8] sm:$0xff]   ;;  %v17531_v11 = vld [vmem:[#allocation11 + $0x40] sm:$0xff]  }
 0x999   : > { %12951 = vmatprep.subr.bf16.mxu1 %v17489_v19  ;;  %v12556_v19 = vld [vmem:[#allocation10] sm:$0x3] }
 0x99b   : > { %12911 = vmatpush2.bf16.msra.mxu0 %v17491_v51  ;;  %v12561_v51 = vrot.slane %v12556_v19, %v12454_v22 }
 0x99c   : > { %12952 = vmatpush2.bf16.msra.mxu1 %v17492_v27  ;;  %12912 = vmatprep.subr.bf16.mxu0 %v17493_v58  ;;  %v12565_v27 = vrot.slane %v12556_v19, %v12458_v14 }
 0x99d   : > { %12953 = vmatprep.subr.bf16.mxu1 %v17495_v37 }
 0x99f   : > { %12913 = vmatpush2.bf16.msra.mxu0 %v17497_v61 }
 0x9a0   : > { %12954 = vmatpush2.bf16.msra.mxu1 %v17498_v52  ;;  %12914 = vmatprep.subr.bf16.mxu0 %v17499_v32 }
 0x9a1   : > { %12955 = vmatprep.subr.bf16.mxu1 %v17501_v57 }
 0x9a3   : > { %12915 = vmatpush2.bf16.msra.mxu0 %v17503_v17 }
 0x9a4   : > { %12956 = vmatpush2.bf16.msra.mxu1 %v17504_v59  ;;  %12916 = vmatprep.subr.bf16.mxu0 %v17505_v39 }
 0x9a5   : > { %12957 = vmatprep.subr.bf16.mxu1 %v17507_v26 }
 0x9a7   : > { %12917 = vmatpush2.bf16.msra.mxu0 %v17509_v24 }
 0x9a8   : > { %12958 = vmatpush2.bf16.msra.mxu1 %v17510_v62  ;;  %12918 = vmatprep.subr.bf16.mxu0 %v17511_v40 }
 0x9a9   : > { %12959 = vmatprep.subr.bf16.mxu1 %v17513_v48 }
 0x9ab   : > { %12919 = vmatpush2.bf16.msra.mxu0 %v17515_v53 }
 0x9ac   : > { %12960 = vmatpush2.bf16.msra.mxu1 %v17516_v6  ;;  %14960 = vmatprep.subr.bf16.mxu0 %v17517_v45 }
 0x9ae   : > { %12921 = vmatmul.mubr.bf16.vlgmr.msra.gmra.mxu0 %v12488_v12 }
 0x9af   : > { %12962 = vmatmul.mubr.bf16.vlgmr.msra.gmra.mxu1 %v12490_v29  ;;  %14961 = vmatpush3.bf16.msra.mxu0 %v17518_v31 }
 0x9b0   : > { %14962 = vmatprep.subr.bf16.mxu0 %v17519_v10 }
 0x9b3   : > { %14963 = vmatpush3.bf16.msra.mxu0 %v17520_v23 }
 0x9b4   : > { %14964 = vmatprep.subr.bf16.mxu0 %v17521_v56 }
 0x9b7   : > { %14965 = vmatpush3.bf16.msra.mxu0 %v17522_v47 }
 0x9b8   : > { %14966 = vmatprep.subr.bf16.mxu0 %v17523_v5 }
 0x9bb   : > { %14967 = vmatpush3.bf16.msra.mxu0 %v17524_v50 }
 0x9bc   : > { %14968 = vmatprep.subr.bf16.mxu0 %v17525_v9 }
 0x9bf   : > { %14969 = vmatpush3.bf16.msra.mxu0 %v17526_v7 }
 0x9c0   : > { %14970 = vmatprep.subr.bf16.mxu0 %v17527_v28 }
 0x9c3   : > { %14971 = vmatpush3.bf16.msra.mxu0 %v17528_v15 }
 0x9c4   : > { %14972 = vmatprep.subr.bf16.mxu0 %v17529_v34 }
 0x9c7   : > { %14973 = vmatpush3.bf16.msra.mxu0 %v17530_v16 }
 0x9c8   : > { %14974 = vmatprep.subr.bf16.mxu0 %v17531_v11 }
 0x9cb   : > { %14975 = vmatpush3.bf16.msra.mxu0 %v17532_v18 }
 0xa6e   : > { %v12922_v54 = vpop.f32.mrf.mxu0 }
 0xa6f   : > { %v12963_v21 = vpop.f32.mrf.mxu1  ;;  %v12923_v25 = vadd.f32 %v12922_v54, %v12561_v51 }
 0xa70   : > { %v12924_v35 = vpop.f32.mrf.mxu0 }
 0xa71   : > { %v12965_v58 = vpop.f32.mrf.mxu1  ;;  %v12964_v0 = vadd.f32 %v12963_v21, %v12923_v25  ;;  %v12925_v36 = vadd.f32 %v12924_v35, %v12565_v27 }
 0xa72   : > { %v12926_v37 = vpop.f32.mrf.mxu0 }
 0xa73   : > { %v12967_v61 = vpop.f32.mrf.mxu1  ;;  %vm12970_vm6 = vcmp.ge.f32.partialorder %v12964_v0, 0.0  ;;  %v12972_v52 = vmul.f32 0.2, %v12964_v0  ;;  %v12966_v3 = vadd.f32 %v12965_v58, %v12925_v36 }
 0xa74   : > { %v12927_v43 = vpop.f32.mrf.mxu0 }
 0xa75   : > { %v12968_v4 = vpop.f32.mrf.mxu1  ;;  %vm12971_vm7 = vcmp.ge.f32.partialorder %v12966_v3, 0.0  ;;  %v12973_v33 = vmul.f32 0.2, %v12966_v3  ;;  %v12974_v22 = vsel %vm12970_vm6, %v12964_v0, %v12972_v52 }
 0xa76   : > { %v12976_v14 = vpack.c.bf16 %v12974_v22, %v12974_v22 }
 0xa77   : > { %v12975_v42 = vsel %vm12971_vm7, %v12966_v3, %v12973_v33 }
 0xa78   : > { %v12977_v49 = vpack.c.bf16 %v12975_v42, %v12975_v42 }
 0xa7a   : > { %13145 = vmatprep.mubr.bf16.mxu0 %v12977_v49 }
 0xa7b   : > { %13146 = vmatmul.mubr.bf16.vlgmr.msra.gmra.mxu0 %v12976_v14 }
 0xb3b   : > { %v14976_v55 = vpop.f32.mrf.mxu0 }
 0xb3d   : > { %v14977_v32 = vpop.f32.mrf.mxu0 }
 0xb3e   : > { %v14978_v57 = vadd.f32 %v14977_v32, %v14976_v55 }
 0xb3f   : > { %v14979_v63 = vpop.f32.mrf.mxu0 }
 0xb40   : > { %v13148_v17 = vadd.f32 %v14978_v57, %v14937_v60 }
 0xb41   : > { %v14980_v20 = vpop.f32.mrf.mxu0 }
 0xb42   : > { %13153 = vst [vmem:[%s20167_s9] sm:$0xff] %v13148_v17 }
 0xb43 PF: > { %p24_p0 = scmp.ge.s32.totalorder %s17973_s25, 4   ;;  %s20205_s30 = smov %s17773_s10 }
 0xb44   : > { %s20206_s10 = smov %s17777_s11  ;;  %s20207_s11 = smov %s18043_s12 }
 0xb45   : > { %s20208_s12 = smov %s17785_s13  ;;  %s20209_s13 = smov %s17789_s14 }
 0xb46   : > { %s20210_s14 = smov %s17995_s26  ;;  %s20211_s15 = smov %s17973_s25 }
 0xb47   :  { %26 = sbr.rel (!%p24_p0) target bundleno = 14 (0xe), region = 144 }
 0xb4c   :  { %13165 = vsyncpa [#allocation4], 1 }
 0xb4d   :  { %13167 = vsyncpa [#allocation4 + $0x1], 1 }
 0xb4e   :  { %13168 = vsyncpa [#allocation6], 1 }
 0xb4f   :  { %13170 = vsyncpa [#allocation6 + $0x1], 1 }
 0xb50   :  { %13171 = vsyncpa [#allocation9], 1 }
 0xb51   :  { %13172 = vsyncpa [#allocation12], 1 }

</bundles_post_ra>
